<compile_context>
chip_gen: v6e
topology: v6e:2x2x1
jax: 0.10.0
libtpu: 0.0.40
codegen_flags: <defaults>
</compile_context>

<pallas_src>
import functools

import jax
import jax.numpy as jnp
from jax.experimental import pallas as pl
from jax.experimental.pallas import tpu as pltpu


# ---------------------------------------------------------------------------
# Fused Pallas kernel: TB MNIST samples per grid step.
# ---------------------------------------------------------------------------
def _dense_mnist_kernel(p_ref, w1_ref, b1_ref, w2_ref, b2_ref,
                        wf1_ref, bf1_ref, wf2_ref, bf2_ref, o_ref,
                        lhs2_ref, a2f_ref,
                        *, tb, k, c1h, p1h, c2h, p2h, c1o, c2o):
    kk = k * k

    # ---- conv1: single (TB*576, 25) @ (25, 24) GEMM, f32 accumulate -------------
    lhs1 = p_ref[...].reshape(tb * c1h * c1h, kk)            # bf16
    c1 = jnp.dot(lhs1, w1_ref[...], preferred_element_type=jnp.float32)
    c1 = c1 + b1_ref[...]                                    # (TB*576, 24) f32

    # ---- pool1 (2x2) + relu (relu∘maxpool == maxpool∘relu) ----------------------
    # Rows are pre-ordered (b, h, w%2, w//2) by the wrapper, so both pooling
    # reductions are over slow axes (no tiny last-two-dims padding blowup).
    c1 = c1.reshape(tb, c1h, 2, p1h, c1o)                    # [b, h, wp, w2, c]
    pw = jnp.max(c1, axis=2)                                 # [b, h, w2, c]
    pw = pw.reshape(tb, p1h, 2, p1h, c1o)                    # [b, h2, hp, w2, c]
    a1 = jnp.maximum(jnp.max(pw, axis=2), 0.0)               # (TB, 12, 12, 24) f32
    a1 = a1.astype(jnp.bfloat16)                             # cast once

    # ---- conv2: fused im2col into VMEM scratch, then one K=600 GEMM -------------
    for i in range(k):
        for j in range(k):
            t = i * k + j
            win = a1[:, i:i + c2h, j:j + c2h, :].reshape(tb * c2h * c2h, c1o)
            lhs2_ref[:, t * c1o:(t + 1) * c1o] = win
    c2 = jnp.dot(lhs2_ref[...], w2_ref[...], preferred_element_type=jnp.float32)
    c2 = c2 + b2_ref[...]                                    # (TB*64, 128) f32

    # ---- pool2 (2x2) + relu ------------------------------------------------------
    c2 = c2.reshape(tb, p2h, 2, c2h, c2o)                    # [b, h2, hp, w, c]
    pw2 = jnp.max(c2, axis=2)                                # [b, h2, w, c]
    pw2 = pw2.reshape(tb, p2h, p2h, 2, c2o)                  # [b, h2, w2, wp, c]
    a2 = jnp.maximum(jnp.max(pw2, axis=3), 0.0)              # (TB, 4, 4, 128) f32
    a2 = a2.astype(jnp.bfloat16)                             # cast once

    # ---- fc1: flatten (spatial, channel) with 128-lane-aligned stores, then one
    # ---- (TB, 2048) @ (2048, 512) GEMM ------------------------------------------
    for s in range(p2h * p2h):
        hh, ww = divmod(s, p2h)
        a2f_ref[:, s * c2o:(s + 1) * c2o] = a2[:, hh, ww, :]
    h = jnp.dot(a2f_ref[...], wf1_ref[...], preferred_element_type=jnp.float32)
    h = jnp.maximum(h + bf1_ref[...], 0.0).astype(jnp.bfloat16)   # (TB, 512)

    # ---- fc2 ---------------------------------------------------------------------
    out = jnp.dot(h, wf2_ref[...], preferred_element_type=jnp.float32) + bf2_ref[...]
    o_ref[...] = out.astype(o_ref.dtype)                     # (TB, 10)


# ---------------------------------------------------------------------------
# Forward pass (single pallas_call; conv1 patch extraction is tiny JAX glue).
# ---------------------------------------------------------------------------
@functools.partial(jax.jit, static_argnames=("input_size", "tb_target"))
def dense_mnist_forward(x, params, input_size=28, tb_target=16):
    B = x.shape[0]
    x = x.reshape(B, input_size, input_size).astype(jnp.float32)

    w1m, b1 = params["w1m"], params["b1"]
    w2m, b2 = params["w2m"], params["b2"]
    wf1m, bf1 = params["wf1m"], params["bf1"]
    wf2m, bf2 = params["wf2m"], params["bf2"]

    c1o = w1m.shape[1]                        # 24
    c2o = w2m.shape[1]                        # 128
    ncls = wf2m.shape[1]                      # 10
    k = int(round((w2m.shape[0] // c1o) ** 0.5))   # 5
    kk = k * k
    c1h = input_size - (k - 1)                # 24
    p1h = c1h // 2                            # 12
    c2h = p1h - (k - 1)                       # 8
    p2h = c2h // 2                            # 4

    # Batch tile: TB samples per grid step (TB==B when B is small, else a
    # multiple of 8 so the (TB, 10) output block is legal).  ~25 MB VMEM @ TB=16;
    # raise tb_target / vmem_limit_bytes for bigger tiles on v5e/v6e (128 MiB VMEM).
    tb = B if B <= tb_target else tb_target
    b_pad = -(-B // tb) * tb
    if b_pad != B:
        x = jnp.pad(x, ((0, b_pad - B), (0, 0), (0, 0)))

    # conv1 im2col in plain-JAX glue (~29 KB/sample bf16).  Patch rows are
    # pre-ordered (h, w%2, w//2) so in-kernel pooling only reduces slow axes.
    cols = [x[:, i:i + c1h, j:j + c1h] for i in range(k) for j in range(k)]
    patches = jnp.stack(cols, axis=-1)                                   # (B, 24, 24, 25)
    patches = patches.reshape(b_pad, c1h, p1h, 2, kk).transpose(0, 1, 3, 2, 4)
    patches = patches.reshape(b_pad, c1h * c1h, kk).astype(jnp.bfloat16)

    kernel = functools.partial(_dense_mnist_kernel, tb=tb, k=k, c1h=c1h, p1h=p1h,
                               c2h=c2h, p2h=p2h, c1o=c1o, c2o=c2o)

    def const(n):   # constant block index -> weights stay resident across grid steps
        return lambda b: (0,) * n

    out = pl.pallas_call(
        kernel,
        out_shape=jax.ShapeDtypeStruct((b_pad, ncls), jnp.float32),
        grid=(b_pad // tb,),
        in_specs=[
            pl.BlockSpec((tb, c1h * c1h, kk), lambda b: (b, 0, 0)),   # per-tile patches
            pl.BlockSpec(w1m.shape, const(2)),
            pl.BlockSpec(b1.shape, const(2)),
            pl.BlockSpec(w2m.shape, const(2)),
            pl.BlockSpec(b2.shape, const(2)),
            pl.BlockSpec(wf1m.shape, const(2)),
            pl.BlockSpec(bf1.shape, const(2)),
            pl.BlockSpec(wf2m.shape, const(2)),
            pl.BlockSpec(bf2.shape, const(2)),
        ],
        out_specs=pl.BlockSpec((tb, ncls), lambda b: (b, 0)),
        scratch_shapes=[
            pltpu.VMEM((tb * c2h * c2h, kk * c1o), jnp.bfloat16),     # conv2 im2col LHS (TB*64, 600)
            pltpu.VMEM((tb, p2h * p2h * c2o), jnp.bfloat16),          # fc1 flattened LHS (TB, 2048)
        ],
        compiler_params=pltpu.CompilerParams(
            dimension_semantics=("parallel",),     # batch tiles -> both v7x TensorCores
            vmem_limit_bytes=64 * 1024 * 1024,     # <= physical on v5e/v6e/v7x
        ),
    )(patches, w1m, b1, w2m, b2, wf1m, bf1, wf2m, bf2)
    return out[:B]


# ---------------------------------------------------------------------------
# Parameter init (PyTorch layout) + one-time conversion to kernel layout.
# ---------------------------------------------------------------------------
def init_params(key, input_size=28, in_channels=1, conv1_out=24,
                conv2_out=128, fc1_out=512, num_classes=10):
    pool2_size = ((input_size - 4) // 2 - 4) // 2
    conv_output_size = conv2_out * pool2_size * pool2_size
    ks = jax.random.split(key, 8)
    s = 0.05
    return {
        "conv1_w": jax.random.normal(ks[0], (conv1_out, in_channels, 5, 5), jnp.float32) * s,
        "conv1_b": jax.random.normal(ks[1], (conv1_out,), jnp.float32) * s,
        "conv2_w": jax.random.normal(ks[2], (conv2_out, conv1_out, 5, 5), jnp.float32) * s,
        "conv2_b": jax.random.normal(ks[3], (conv2_out,), jnp.float32) * s,
        "fc1_w": jax.random.normal(ks[4], (fc1_out, conv_output_size), jnp.float32) * s,
        "fc1_b": jax.random.normal(ks[5], (fc1_out,), jnp.float32) * s,
        "fc2_w": jax.random.normal(ks[6], (num_classes, fc1_out), jnp.float32) * s,
        "fc2_b": jax.random.normal(ks[7], (num_classes,), jnp.float32) * s,
    }


def prepare_params(p):
    """One-time conversion of PyTorch-layout params into the kernel's bf16 matmul layout."""
    c1o, cin, k, _ = p["conv1_w"].shape              # (24, 1, 5, 5)
    c2o = p["conv2_w"].shape[0]                      # 128
    f1o, feat = p["fc1_w"].shape                     # (512, 2048)
    ncls = p["fc2_w"].shape[0]                       # 10
    p2sq = feat // c2o                               # 16 = pool2_size ** 2

    # conv1: row (i*k + j) -> output channel column.
    w1m = jnp.transpose(p["conv1_w"], (2, 3, 1, 0)).reshape(k * k * cin, c1o)
    # conv2: all 25 taps concatenated -> (600, 128); row = (i*k + j)*c1o + cin.
    w2m = jnp.transpose(p["conv2_w"], (2, 3, 1, 0)).reshape(k * k * c1o, c2o)
    # fc1: PyTorch feature = c*p2sq + s (s = h*pw + w); kernel feeds (s, c)-major
    # flattened activations, so permute columns once -> row = s*c2o + c.
    wf1m = (p["fc1_w"].reshape(f1o, c2o, p2sq).transpose(2, 1, 0)
            .reshape(p2sq * c2o, f1o))                                   # (2048, 512)
    wf2m = p["fc2_w"].T                                                  # (512, 10)

    return {
        "w1m": w1m.astype(jnp.bfloat16),
        "b1": p["conv1_b"].reshape(1, c1o).astype(jnp.float32),
        "w2m": w2m.astype(jnp.bfloat16),
        "b2": p["conv2_b"].reshape(1, c2o).astype(jnp.float32),
        "wf1m": wf1m.astype(jnp.bfloat16),
        "bf1": p["fc1_b"].reshape(1, f1o).astype(jnp.float32),
        "wf2m": wf2m.astype(jnp.bfloat16),
        "bf2": p["fc2_b"].reshape(1, ncls).astype(jnp.float32),
    }


if __name__ == "__main__":
    key = jax.random.PRNGKey(0)
    pkey, xkey = jax.random.split(key)
    torch_layout_params = init_params(pkey)
    params = prepare_params(torch_layout_params)     # one-time, outside the jitted forward
    x = jax.random.normal(xkey, (2, 1, 28, 28), jnp.float32)   # batch=2, MNIST-sized
    out = dense_mnist_forward(x, params)
    out = jax.block_until_ready(out)
    assert out.shape == (2, 10), out.shape
    print("KERNEL_OK")
</pallas_src>

<mosaic_0001>
module attributes {stable_mosaic.version = 11 : i64} {
  func.func @_dense_mnist_kernel(%arg0: i32, %arg1: memref<2x576x25xbf16, #tpu.memory_space<vmem>>, %arg2: memref<25x24xbf16, #tpu.memory_space<vmem>>, %arg3: memref<1x24xf32, #tpu.memory_space<vmem>>, %arg4: memref<600x128xbf16, #tpu.memory_space<vmem>>, %arg5: memref<1x128xf32, #tpu.memory_space<vmem>>, %arg6: memref<2048x512xbf16, #tpu.memory_space<vmem>>, %arg7: memref<1x512xf32, #tpu.memory_space<vmem>>, %arg8: memref<512x10xbf16, #tpu.memory_space<vmem>>, %arg9: memref<1x10xf32, #tpu.memory_space<vmem>>, %arg10: memref<2x10xf32, #tpu.memory_space<vmem>>, %arg11: memref<128x600xbf16, #tpu.memory_space<vmem>>, %arg12: memref<2x2048xbf16, #tpu.memory_space<vmem>>) attributes {dimension_semantics = [#tpu.dimension_semantics<parallel>], iteration_bounds = array<i64: 1>, scalar_prefetch = 0 : i64, scratch_operands = 2 : i64, tpu.core_type = #tpu.core_type<tc>, window_params = [{transform_indices = @transform_0, window_bounds = array<i64: 2, 576, 25>}, {pipeline_mode = #tpu.pipeline_mode<synchronous>, transform_indices = @transform_1, window_bounds = array<i64: 25, 24>}, {pipeline_mode = #tpu.pipeline_mode<synchronous>, transform_indices = @transform_2, window_bounds = array<i64: 1, 24>}, {pipeline_mode = #tpu.pipeline_mode<synchronous>, transform_indices = @transform_3, window_bounds = array<i64: 600, 128>}, {pipeline_mode = #tpu.pipeline_mode<synchronous>, transform_indices = @transform_4, window_bounds = array<i64: 1, 128>}, {pipeline_mode = #tpu.pipeline_mode<synchronous>, transform_indices = @transform_5, window_bounds = array<i64: 2048, 512>}, {pipeline_mode = #tpu.pipeline_mode<synchronous>, transform_indices = @transform_6, window_bounds = array<i64: 1, 512>}, {pipeline_mode = #tpu.pipeline_mode<synchronous>, transform_indices = @transform_7, window_bounds = array<i64: 512, 10>}, {pipeline_mode = #tpu.pipeline_mode<synchronous>, transform_indices = @transform_8, window_bounds = array<i64: 1, 10>}, {transform_indices = @transform_9, window_bounds = array<i64: 2, 10>}]} {
    %c0 = arith.constant 0 : index
    %c0_0 = arith.constant 0 : index
    %c0_1 = arith.constant 0 : index
    %0 = vector.load %arg1[%c0, %c0_0, %c0_1] : memref<2x576x25xbf16, #tpu.memory_space<vmem>>, vector<2x576x25xbf16>
    %1 = vector.shape_cast %0 : vector<2x576x25xbf16> to vector<1152x25xbf16>
    %c0_2 = arith.constant 0 : index
    %c0_3 = arith.constant 0 : index
    %2 = vector.load %arg2[%c0_2, %c0_3] : memref<25x24xbf16, #tpu.memory_space<vmem>>, vector<25x24xbf16>
    %cst = arith.constant dense<0.000000e+00> : vector<1152x24xf32>
    %3 = tpu.matmul %1, %2, %cst {dimension_numbers = #tpu.dot_dimension_numbers<[1], [0], [0], [1], [0, 0, 1, 1], [], []>} : vector<1152x25xbf16>, vector<25x24xbf16>, vector<1152x24xf32> -> vector<1152x24xf32>
    %c0_4 = arith.constant 0 : index
    %c0_5 = arith.constant 0 : index
    %4 = vector.load %arg3[%c0_4, %c0_5] : memref<1x24xf32, #tpu.memory_space<vmem>>, vector<1x24xf32>
    %5 = vector.broadcast %4 : vector<1x24xf32> to vector<1152x24xf32>
    %6 = arith.addf %3, %5 : vector<1152x24xf32>
    %7 = vector.shape_cast %6 : vector<1152x24xf32> to vector<2x24x2x12x24xf32>
    %cst_6 = arith.constant dense<0xFF800000> : vector<2x24x12x24xf32>
    %8 = vector.multi_reduction <maximumf>, %7, %cst_6 [2] : vector<2x24x2x12x24xf32> to vector<2x24x12x24xf32>
    %9 = vector.shape_cast %8 : vector<2x24x12x24xf32> to vector<2x12x2x12x24xf32>
    %cst_7 = arith.constant dense<0xFF800000> : vector<2x12x12x24xf32>
    %10 = vector.multi_reduction <maximumf>, %9, %cst_7 [2] : vector<2x12x2x12x24xf32> to vector<2x12x12x24xf32>
    %cst_8 = arith.constant 0.000000e+00 : f32
    %11 = vector.broadcast %cst_8 : f32 to vector<2x12x12x24xf32>
    %12 = arith.maximumf %10, %11 : vector<2x12x12x24xf32>
    %13 = arith.truncf %12 : vector<2x12x12x24xf32> to vector<2x12x12x24xbf16>
    %14 = vector.extract_strided_slice %13 {offsets = [0, 0, 0, 0], sizes = [2, 8, 8, 24], strides = [1, 1, 1, 1]} : vector<2x12x12x24xbf16> to vector<2x8x8x24xbf16>
    %15 = vector.shape_cast %14 : vector<2x8x8x24xbf16> to vector<128x24xbf16>
    %c0_9 = arith.constant 0 : index
    %c0_10 = arith.constant 0 : index
    %16 = vector.load %arg11[%c0_9, %c0_10] : memref<128x600xbf16, #tpu.memory_space<vmem>>, vector<128x24xbf16>
    tpu.vector_store %arg11[%c0_9, %c0_10], %15 {strides = array<i32>} : memref<128x600xbf16, #tpu.memory_space<vmem>>, vector<128x24xbf16>,
    %17 = vector.extract_strided_slice %13 {offsets = [0, 0, 1, 0], sizes = [2, 8, 8, 24], strides = [1, 1, 1, 1]} : vector<2x12x12x24xbf16> to vector<2x8x8x24xbf16>
    %18 = vector.shape_cast %17 : vector<2x8x8x24xbf16> to vector<128x24xbf16>
    %c0_11 = arith.constant 0 : index
    %c24 = arith.constant 24 : index
    %19 = vector.load %arg11[%c0_11, %c24] : memref<128x600xbf16, #tpu.memory_space<vmem>>, vector<128x24xbf16>
    tpu.vector_store %arg11[%c0_11, %c24], %18 {strides = array<i32>} : memref<128x600xbf16, #tpu.memory_space<vmem>>, vector<128x24xbf16>,
    %20 = vector.extract_strided_slice %13 {offsets = [0, 0, 2, 0], sizes = [2, 8, 8, 24], strides = [1, 1, 1, 1]} : vector<2x12x12x24xbf16> to vector<2x8x8x24xbf16>
    %21 = vector.shape_cast %20 : vector<2x8x8x24xbf16> to vector<128x24xbf16>
    %c0_12 = arith.constant 0 : index
    %c48 = arith.constant 48 : index
    %22 = vector.load %arg11[%c0_12, %c48] : memref<128x600xbf16, #tpu.memory_space<vmem>>, vector<128x24xbf16>
    tpu.vector_store %arg11[%c0_12, %c48], %21 {strides = array<i32>} : memref<128x600xbf16, #tpu.memory_space<vmem>>, vector<128x24xbf16>,
    %23 = vector.extract_strided_slice %13 {offsets = [0, 0, 3, 0], sizes = [2, 8, 8, 24], strides = [1, 1, 1, 1]} : vector<2x12x12x24xbf16> to vector<2x8x8x24xbf16>
    %24 = vector.shape_cast %23 : vector<2x8x8x24xbf16> to vector<128x24xbf16>
    %c0_13 = arith.constant 0 : index
    %c72 = arith.constant 72 : index
    %25 = vector.load %arg11[%c0_13, %c72] : memref<128x600xbf16, #tpu.memory_space<vmem>>, vector<128x24xbf16>
    tpu.vector_store %arg11[%c0_13, %c72], %24 {strides = array<i32>} : memref<128x600xbf16, #tpu.memory_space<vmem>>, vector<128x24xbf16>,
    %26 = vector.extract_strided_slice %13 {offsets = [0, 0, 4, 0], sizes = [2, 8, 8, 24], strides = [1, 1, 1, 1]} : vector<2x12x12x24xbf16> to vector<2x8x8x24xbf16>
    %27 = vector.shape_cast %26 : vector<2x8x8x24xbf16> to vector<128x24xbf16>
    %c0_14 = arith.constant 0 : index
    %c96 = arith.constant 96 : index
    %28 = vector.load %arg11[%c0_14, %c96] : memref<128x600xbf16, #tpu.memory_space<vmem>>, vector<128x24xbf16>
    tpu.vector_store %arg11[%c0_14, %c96], %27 {strides = array<i32>} : memref<128x600xbf16, #tpu.memory_space<vmem>>, vector<128x24xbf16>,
    %29 = vector.extract_strided_slice %13 {offsets = [0, 1, 0, 0], sizes = [2, 8, 8, 24], strides = [1, 1, 1, 1]} : vector<2x12x12x24xbf16> to vector<2x8x8x24xbf16>
    %30 = vector.shape_cast %29 : vector<2x8x8x24xbf16> to vector<128x24xbf16>
    %c0_15 = arith.constant 0 : index
    %c120 = arith.constant 120 : index
    %31 = vector.load %arg11[%c0_15, %c120] : memref<128x600xbf16, #tpu.memory_space<vmem>>, vector<128x24xbf16>
    tpu.vector_store %arg11[%c0_15, %c120], %30 {strides = array<i32>} : memref<128x600xbf16, #tpu.memory_space<vmem>>, vector<128x24xbf16>,
    %32 = vector.extract_strided_slice %13 {offsets = [0, 1, 1, 0], sizes = [2, 8, 8, 24], strides = [1, 1, 1, 1]} : vector<2x12x12x24xbf16> to vector<2x8x8x24xbf16>
    %33 = vector.shape_cast %32 : vector<2x8x8x24xbf16> to vector<128x24xbf16>
    %c0_16 = arith.constant 0 : index
    %c144 = arith.constant 144 : index
    %34 = vector.load %arg11[%c0_16, %c144] : memref<128x600xbf16, #tpu.memory_space<vmem>>, vector<128x24xbf16>
    tpu.vector_store %arg11[%c0_16, %c144], %33 {strides = array<i32>} : memref<128x600xbf16, #tpu.memory_space<vmem>>, vector<128x24xbf16>,
    %35 = vector.extract_strided_slice %13 {offsets = [0, 1, 2, 0], sizes = [2, 8, 8, 24], strides = [1, 1, 1, 1]} : vector<2x12x12x24xbf16> to vector<2x8x8x24xbf16>
    %36 = vector.shape_cast %35 : vector<2x8x8x24xbf16> to vector<128x24xbf16>
    %c0_17 = arith.constant 0 : index
    %c168 = arith.constant 168 : index
    %37 = vector.load %arg11[%c0_17, %c168] : memref<128x600xbf16, #tpu.memory_space<vmem>>, vector<128x24xbf16>
    tpu.vector_store %arg11[%c0_17, %c168], %36 {strides = array<i32>} : memref<128x600xbf16, #tpu.memory_space<vmem>>, vector<128x24xbf16>,
    %38 = vector.extract_strided_slice %13 {offsets = [0, 1, 3, 0], sizes = [2, 8, 8, 24], strides = [1, 1, 1, 1]} : vector<2x12x12x24xbf16> to vector<2x8x8x24xbf16>
    %39 = vector.shape_cast %38 : vector<2x8x8x24xbf16> to vector<128x24xbf16>
    %c0_18 = arith.constant 0 : index
    %c192 = arith.constant 192 : index
    %40 = vector.load %arg11[%c0_18, %c192] : memref<128x600xbf16, #tpu.memory_space<vmem>>, vector<128x24xbf16>
    tpu.vector_store %arg11[%c0_18, %c192], %39 {strides = array<i32>} : memref<128x600xbf16, #tpu.memory_space<vmem>>, vector<128x24xbf16>,
    %41 = vector.extract_strided_slice %13 {offsets = [0, 1, 4, 0], sizes = [2, 8, 8, 24], strides = [1, 1, 1, 1]} : vector<2x12x12x24xbf16> to vector<2x8x8x24xbf16>
    %42 = vector.shape_cast %41 : vector<2x8x8x24xbf16> to vector<128x24xbf16>
    %c0_19 = arith.constant 0 : index
    %c216 = arith.constant 216 : index
    %43 = vector.load %arg11[%c0_19, %c216] : memref<128x600xbf16, #tpu.memory_space<vmem>>, vector<128x24xbf16>
    tpu.vector_store %arg11[%c0_19, %c216], %42 {strides = array<i32>} : memref<128x600xbf16, #tpu.memory_space<vmem>>, vector<128x24xbf16>,
    %44 = vector.extract_strided_slice %13 {offsets = [0, 2, 0, 0], sizes = [2, 8, 8, 24], strides = [1, 1, 1, 1]} : vector<2x12x12x24xbf16> to vector<2x8x8x24xbf16>
    %45 = vector.shape_cast %44 : vector<2x8x8x24xbf16> to vector<128x24xbf16>
    %c0_20 = arith.constant 0 : index
    %c240 = arith.constant 240 : index
    %46 = vector.load %arg11[%c0_20, %c240] : memref<128x600xbf16, #tpu.memory_space<vmem>>, vector<128x24xbf16>
    tpu.vector_store %arg11[%c0_20, %c240], %45 {strides = array<i32>} : memref<128x600xbf16, #tpu.memory_space<vmem>>, vector<128x24xbf16>,
    %47 = vector.extract_strided_slice %13 {offsets = [0, 2, 1, 0], sizes = [2, 8, 8, 24], strides = [1, 1, 1, 1]} : vector<2x12x12x24xbf16> to vector<2x8x8x24xbf16>
    %48 = vector.shape_cast %47 : vector<2x8x8x24xbf16> to vector<128x24xbf16>
    %c0_21 = arith.constant 0 : index
    %c264 = arith.constant 264 : index
    %49 = vector.load %arg11[%c0_21, %c264] : memref<128x600xbf16, #tpu.memory_space<vmem>>, vector<128x24xbf16>
    tpu.vector_store %arg11[%c0_21, %c264], %48 {strides = array<i32>} : memref<128x600xbf16, #tpu.memory_space<vmem>>, vector<128x24xbf16>,
    %50 = vector.extract_strided_slice %13 {offsets = [0, 2, 2, 0], sizes = [2, 8, 8, 24], strides = [1, 1, 1, 1]} : vector<2x12x12x24xbf16> to vector<2x8x8x24xbf16>
    %51 = vector.shape_cast %50 : vector<2x8x8x24xbf16> to vector<128x24xbf16>
    %c0_22 = arith.constant 0 : index
    %c288 = arith.constant 288 : index
    %52 = vector.load %arg11[%c0_22, %c288] : memref<128x600xbf16, #tpu.memory_space<vmem>>, vector<128x24xbf16>
    tpu.vector_store %arg11[%c0_22, %c288], %51 {strides = array<i32>} : memref<128x600xbf16, #tpu.memory_space<vmem>>, vector<128x24xbf16>,
    %53 = vector.extract_strided_slice %13 {offsets = [0, 2, 3, 0], sizes = [2, 8, 8, 24], strides = [1, 1, 1, 1]} : vector<2x12x12x24xbf16> to vector<2x8x8x24xbf16>
    %54 = vector.shape_cast %53 : vector<2x8x8x24xbf16> to vector<128x24xbf16>
    %c0_23 = arith.constant 0 : index
    %c312 = arith.constant 312 : index
    %55 = vector.load %arg11[%c0_23, %c312] : memref<128x600xbf16, #tpu.memory_space<vmem>>, vector<128x24xbf16>
    tpu.vector_store %arg11[%c0_23, %c312], %54 {strides = array<i32>} : memref<128x600xbf16, #tpu.memory_space<vmem>>, vector<128x24xbf16>,
    %56 = vector.extract_strided_slice %13 {offsets = [0, 2, 4, 0], sizes = [2, 8, 8, 24], strides = [1, 1, 1, 1]} : vector<2x12x12x24xbf16> to vector<2x8x8x24xbf16>
    %57 = vector.shape_cast %56 : vector<2x8x8x24xbf16> to vector<128x24xbf16>
    %c0_24 = arith.constant 0 : index
    %c336 = arith.constant 336 : index
    %58 = vector.load %arg11[%c0_24, %c336] : memref<128x600xbf16, #tpu.memory_space<vmem>>, vector<128x24xbf16>
    tpu.vector_store %arg11[%c0_24, %c336], %57 {strides = array<i32>} : memref<128x600xbf16, #tpu.memory_space<vmem>>, vector<128x24xbf16>,
    %59 = vector.extract_strided_slice %13 {offsets = [0, 3, 0, 0], sizes = [2, 8, 8, 24], strides = [1, 1, 1, 1]} : vector<2x12x12x24xbf16> to vector<2x8x8x24xbf16>
    %60 = vector.shape_cast %59 : vector<2x8x8x24xbf16> to vector<128x24xbf16>
    %c0_25 = arith.constant 0 : index
    %c360 = arith.constant 360 : index
    %61 = vector.load %arg11[%c0_25, %c360] : memref<128x600xbf16, #tpu.memory_space<vmem>>, vector<128x24xbf16>
    tpu.vector_store %arg11[%c0_25, %c360], %60 {strides = array<i32>} : memref<128x600xbf16, #tpu.memory_space<vmem>>, vector<128x24xbf16>,
    %62 = vector.extract_strided_slice %13 {offsets = [0, 3, 1, 0], sizes = [2, 8, 8, 24], strides = [1, 1, 1, 1]} : vector<2x12x12x24xbf16> to vector<2x8x8x24xbf16>
    %63 = vector.shape_cast %62 : vector<2x8x8x24xbf16> to vector<128x24xbf16>
    %c0_26 = arith.constant 0 : index
    %c384 = arith.constant 384 : index
    %64 = vector.load %arg11[%c0_26, %c384] : memref<128x600xbf16, #tpu.memory_space<vmem>>, vector<128x24xbf16>
    tpu.vector_store %arg11[%c0_26, %c384], %63 {strides = array<i32>} : memref<128x600xbf16, #tpu.memory_space<vmem>>, vector<128x24xbf16>,
    %65 = vector.extract_strided_slice %13 {offsets = [0, 3, 2, 0], sizes = [2, 8, 8, 24], strides = [1, 1, 1, 1]} : vector<2x12x12x24xbf16> to vector<2x8x8x24xbf16>
    %66 = vector.shape_cast %65 : vector<2x8x8x24xbf16> to vector<128x24xbf16>
    %c0_27 = arith.constant 0 : index
    %c408 = arith.constant 408 : index
    %67 = vector.load %arg11[%c0_27, %c408] : memref<128x600xbf16, #tpu.memory_space<vmem>>, vector<128x24xbf16>
    tpu.vector_store %arg11[%c0_27, %c408], %66 {strides = array<i32>} : memref<128x600xbf16, #tpu.memory_space<vmem>>, vector<128x24xbf16>,
    %68 = vector.extract_strided_slice %13 {offsets = [0, 3, 3, 0], sizes = [2, 8, 8, 24], strides = [1, 1, 1, 1]} : vector<2x12x12x24xbf16> to vector<2x8x8x24xbf16>
    %69 = vector.shape_cast %68 : vector<2x8x8x24xbf16> to vector<128x24xbf16>
    %c0_28 = arith.constant 0 : index
    %c432 = arith.constant 432 : index
    %70 = vector.load %arg11[%c0_28, %c432] : memref<128x600xbf16, #tpu.memory_space<vmem>>, vector<128x24xbf16>
    tpu.vector_store %arg11[%c0_28, %c432], %69 {strides = array<i32>} : memref<128x600xbf16, #tpu.memory_space<vmem>>, vector<128x24xbf16>,
    %71 = vector.extract_strided_slice %13 {offsets = [0, 3, 4, 0], sizes = [2, 8, 8, 24], strides = [1, 1, 1, 1]} : vector<2x12x12x24xbf16> to vector<2x8x8x24xbf16>
    %72 = vector.shape_cast %71 : vector<2x8x8x24xbf16> to vector<128x24xbf16>
    %c0_29 = arith.constant 0 : index
    %c456 = arith.constant 456 : index
    %73 = vector.load %arg11[%c0_29, %c456] : memref<128x600xbf16, #tpu.memory_space<vmem>>, vector<128x24xbf16>
    tpu.vector_store %arg11[%c0_29, %c456], %72 {strides = array<i32>} : memref<128x600xbf16, #tpu.memory_space<vmem>>, vector<128x24xbf16>,
    %74 = vector.extract_strided_slice %13 {offsets = [0, 4, 0, 0], sizes = [2, 8, 8, 24], strides = [1, 1, 1, 1]} : vector<2x12x12x24xbf16> to vector<2x8x8x24xbf16>
    %75 = vector.shape_cast %74 : vector<2x8x8x24xbf16> to vector<128x24xbf16>
    %c0_30 = arith.constant 0 : index
    %c480 = arith.constant 480 : index
    %76 = vector.load %arg11[%c0_30, %c480] : memref<128x600xbf16, #tpu.memory_space<vmem>>, vector<128x24xbf16>
    tpu.vector_store %arg11[%c0_30, %c480], %75 {strides = array<i32>} : memref<128x600xbf16, #tpu.memory_space<vmem>>, vector<128x24xbf16>,
    %77 = vector.extract_strided_slice %13 {offsets = [0, 4, 1, 0], sizes = [2, 8, 8, 24], strides = [1, 1, 1, 1]} : vector<2x12x12x24xbf16> to vector<2x8x8x24xbf16>
    %78 = vector.shape_cast %77 : vector<2x8x8x24xbf16> to vector<128x24xbf16>
    %c0_31 = arith.constant 0 : index
    %c504 = arith.constant 504 : index
    %79 = vector.load %arg11[%c0_31, %c504] : memref<128x600xbf16, #tpu.memory_space<vmem>>, vector<128x24xbf16>
    tpu.vector_store %arg11[%c0_31, %c504], %78 {strides = array<i32>} : memref<128x600xbf16, #tpu.memory_space<vmem>>, vector<128x24xbf16>,
    %80 = vector.extract_strided_slice %13 {offsets = [0, 4, 2, 0], sizes = [2, 8, 8, 24], strides = [1, 1, 1, 1]} : vector<2x12x12x24xbf16> to vector<2x8x8x24xbf16>
    %81 = vector.shape_cast %80 : vector<2x8x8x24xbf16> to vector<128x24xbf16>
    %c0_32 = arith.constant 0 : index
    %c528 = arith.constant 528 : index
    %82 = vector.load %arg11[%c0_32, %c528] : memref<128x600xbf16, #tpu.memory_space<vmem>>, vector<128x24xbf16>
    tpu.vector_store %arg11[%c0_32, %c528], %81 {strides = array<i32>} : memref<128x600xbf16, #tpu.memory_space<vmem>>, vector<128x24xbf16>,
    %83 = vector.extract_strided_slice %13 {offsets = [0, 4, 3, 0], sizes = [2, 8, 8, 24], strides = [1, 1, 1, 1]} : vector<2x12x12x24xbf16> to vector<2x8x8x24xbf16>
    %84 = vector.shape_cast %83 : vector<2x8x8x24xbf16> to vector<128x24xbf16>
    %c0_33 = arith.constant 0 : index
    %c552 = arith.constant 552 : index
    %85 = vector.load %arg11[%c0_33, %c552] : memref<128x600xbf16, #tpu.memory_space<vmem>>, vector<128x24xbf16>
    tpu.vector_store %arg11[%c0_33, %c552], %84 {strides = array<i32>} : memref<128x600xbf16, #tpu.memory_space<vmem>>, vector<128x24xbf16>,
    %86 = vector.extract_strided_slice %13 {offsets = [0, 4, 4, 0], sizes = [2, 8, 8, 24], strides = [1, 1, 1, 1]} : vector<2x12x12x24xbf16> to vector<2x8x8x24xbf16>
    %87 = vector.shape_cast %86 : vector<2x8x8x24xbf16> to vector<128x24xbf16>
    %c0_34 = arith.constant 0 : index
    %c576 = arith.constant 576 : index
    %88 = vector.load %arg11[%c0_34, %c576] : memref<128x600xbf16, #tpu.memory_space<vmem>>, vector<128x24xbf16>
    tpu.vector_store %arg11[%c0_34, %c576], %87 {strides = array<i32>} : memref<128x600xbf16, #tpu.memory_space<vmem>>, vector<128x24xbf16>,
    %c0_35 = arith.constant 0 : index
    %c0_36 = arith.constant 0 : index
    %89 = vector.load %arg11[%c0_35, %c0_36] : memref<128x600xbf16, #tpu.memory_space<vmem>>, vector<128x600xbf16>
    %c0_37 = arith.constant 0 : index
    %c0_38 = arith.constant 0 : index
    %90 = vector.load %arg4[%c0_37, %c0_38] : memref<600x128xbf16, #tpu.memory_space<vmem>>, vector<600x128xbf16>
    %cst_39 = arith.constant dense<0.000000e+00> : vector<128x128xf32>
    %91 = tpu.matmul %89, %90, %cst_39 {dimension_numbers = #tpu.dot_dimension_numbers<[1], [0], [0], [1], [0, 0, 1, 1], [], []>} : vector<128x600xbf16>, vector<600x128xbf16>, vector<128x128xf32> -> vector<128x128xf32>
    %c0_40 = arith.constant 0 : index
    %c0_41 = arith.constant 0 : index
    %92 = vector.load %arg5[%c0_40, %c0_41] : memref<1x128xf32, #tpu.memory_space<vmem>>, vector<1x128xf32>
    %93 = vector.broadcast %92 : vector<1x128xf32> to vector<128x128xf32>
    %94 = arith.addf %91, %93 : vector<128x128xf32>
    %95 = vector.shape_cast %94 : vector<128x128xf32> to vector<2x4x2x8x128xf32>
    %cst_42 = arith.constant dense<0xFF800000> : vector<2x4x8x128xf32>
    %96 = vector.multi_reduction <maximumf>, %95, %cst_42 [2] : vector<2x4x2x8x128xf32> to vector<2x4x8x128xf32>
    %97 = vector.shape_cast %96 : vector<2x4x8x128xf32> to vector<2x4x4x2x128xf32>
    %cst_43 = arith.constant dense<0xFF800000> : vector<2x4x4x128xf32>
    %98 = vector.multi_reduction <maximumf>, %97, %cst_43 [3] : vector<2x4x4x2x128xf32> to vector<2x4x4x128xf32>
    %cst_44 = arith.constant 0.000000e+00 : f32
    %99 = vector.broadcast %cst_44 : f32 to vector<2x4x4x128xf32>
    %100 = arith.maximumf %98, %99 : vector<2x4x4x128xf32>
    %101 = arith.truncf %100 : vector<2x4x4x128xf32> to vector<2x4x4x128xbf16>
    %102 = vector.extract_strided_slice %101 {offsets = [0, 0, 0, 0], sizes = [2, 1, 1, 128], strides = [1, 1, 1, 1]} : vector<2x4x4x128xbf16> to vector<2x1x1x128xbf16>
    %103 = vector.shape_cast %102 : vector<2x1x1x128xbf16> to vector<2x128xbf16>
    %c0_45 = arith.constant 0 : index
    %c0_46 = arith.constant 0 : index
    %104 = vector.load %arg12[%c0_45, %c0_46] : memref<2x2048xbf16, #tpu.memory_space<vmem>>, vector<2x128xbf16>
    tpu.vector_store %arg12[%c0_45, %c0_46], %103 {strides = array<i32>} : memref<2x2048xbf16, #tpu.memory_space<vmem>>, vector<2x128xbf16>,
    %105 = vector.extract_strided_slice %101 {offsets = [0, 0, 1, 0], sizes = [2, 1, 1, 128], strides = [1, 1, 1, 1]} : vector<2x4x4x128xbf16> to vector<2x1x1x128xbf16>
    %106 = vector.shape_cast %105 : vector<2x1x1x128xbf16> to vector<2x128xbf16>
    %c0_47 = arith.constant 0 : index
    %c128 = arith.constant 128 : index
    %107 = vector.load %arg12[%c0_47, %c128] : memref<2x2048xbf16, #tpu.memory_space<vmem>>, vector<2x128xbf16>
    tpu.vector_store %arg12[%c0_47, %c128], %106 {strides = array<i32>} : memref<2x2048xbf16, #tpu.memory_space<vmem>>, vector<2x128xbf16>,
    %108 = vector.extract_strided_slice %101 {offsets = [0, 0, 2, 0], sizes = [2, 1, 1, 128], strides = [1, 1, 1, 1]} : vector<2x4x4x128xbf16> to vector<2x1x1x128xbf16>
    %109 = vector.shape_cast %108 : vector<2x1x1x128xbf16> to vector<2x128xbf16>
    %c0_48 = arith.constant 0 : index
    %c256 = arith.constant 256 : index
    %110 = vector.load %arg12[%c0_48, %c256] : memref<2x2048xbf16, #tpu.memory_space<vmem>>, vector<2x128xbf16>
    tpu.vector_store %arg12[%c0_48, %c256], %109 {strides = array<i32>} : memref<2x2048xbf16, #tpu.memory_space<vmem>>, vector<2x128xbf16>,
    %111 = vector.extract_strided_slice %101 {offsets = [0, 0, 3, 0], sizes = [2, 1, 1, 128], strides = [1, 1, 1, 1]} : vector<2x4x4x128xbf16> to vector<2x1x1x128xbf16>
    %112 = vector.shape_cast %111 : vector<2x1x1x128xbf16> to vector<2x128xbf16>
    %c0_49 = arith.constant 0 : index
    %c384_50 = arith.constant 384 : index
    %113 = vector.load %arg12[%c0_49, %c384_50] : memref<2x2048xbf16, #tpu.memory_space<vmem>>, vector<2x128xbf16>
    tpu.vector_store %arg12[%c0_49, %c384_50], %112 {strides = array<i32>} : memref<2x2048xbf16, #tpu.memory_space<vmem>>, vector<2x128xbf16>,
    %114 = vector.extract_strided_slice %101 {offsets = [0, 1, 0, 0], sizes = [2, 1, 1, 128], strides = [1, 1, 1, 1]} : vector<2x4x4x128xbf16> to vector<2x1x1x128xbf16>
    %115 = vector.shape_cast %114 : vector<2x1x1x128xbf16> to vector<2x128xbf16>
    %c0_51 = arith.constant 0 : index
    %c512 = arith.constant 512 : index
    %116 = vector.load %arg12[%c0_51, %c512] : memref<2x2048xbf16, #tpu.memory_space<vmem>>, vector<2x128xbf16>
    tpu.vector_store %arg12[%c0_51, %c512], %115 {strides = array<i32>} : memref<2x2048xbf16, #tpu.memory_space<vmem>>, vector<2x128xbf16>,
    %117 = vector.extract_strided_slice %101 {offsets = [0, 1, 1, 0], sizes = [2, 1, 1, 128], strides = [1, 1, 1, 1]} : vector<2x4x4x128xbf16> to vector<2x1x1x128xbf16>
    %118 = vector.shape_cast %117 : vector<2x1x1x128xbf16> to vector<2x128xbf16>
    %c0_52 = arith.constant 0 : index
    %c640 = arith.constant 640 : index
    %119 = vector.load %arg12[%c0_52, %c640] : memref<2x2048xbf16, #tpu.memory_space<vmem>>, vector<2x128xbf16>
    tpu.vector_store %arg12[%c0_52, %c640], %118 {strides = array<i32>} : memref<2x2048xbf16, #tpu.memory_space<vmem>>, vector<2x128xbf16>,
    %120 = vector.extract_strided_slice %101 {offsets = [0, 1, 2, 0], sizes = [2, 1, 1, 128], strides = [1, 1, 1, 1]} : vector<2x4x4x128xbf16> to vector<2x1x1x128xbf16>
    %121 = vector.shape_cast %120 : vector<2x1x1x128xbf16> to vector<2x128xbf16>
    %c0_53 = arith.constant 0 : index
    %c768 = arith.constant 768 : index
    %122 = vector.load %arg12[%c0_53, %c768] : memref<2x2048xbf16, #tpu.memory_space<vmem>>, vector<2x128xbf16>
    tpu.vector_store %arg12[%c0_53, %c768], %121 {strides = array<i32>} : memref<2x2048xbf16, #tpu.memory_space<vmem>>, vector<2x128xbf16>,
    %123 = vector.extract_strided_slice %101 {offsets = [0, 1, 3, 0], sizes = [2, 1, 1, 128], strides = [1, 1, 1, 1]} : vector<2x4x4x128xbf16> to vector<2x1x1x128xbf16>
    %124 = vector.shape_cast %123 : vector<2x1x1x128xbf16> to vector<2x128xbf16>
    %c0_54 = arith.constant 0 : index
    %c896 = arith.constant 896 : index
    %125 = vector.load %arg12[%c0_54, %c896] : memref<2x2048xbf16, #tpu.memory_space<vmem>>, vector<2x128xbf16>
    tpu.vector_store %arg12[%c0_54, %c896], %124 {strides = array<i32>} : memref<2x2048xbf16, #tpu.memory_space<vmem>>, vector<2x128xbf16>,
    %126 = vector.extract_strided_slice %101 {offsets = [0, 2, 0, 0], sizes = [2, 1, 1, 128], strides = [1, 1, 1, 1]} : vector<2x4x4x128xbf16> to vector<2x1x1x128xbf16>
    %127 = vector.shape_cast %126 : vector<2x1x1x128xbf16> to vector<2x128xbf16>
    %c0_55 = arith.constant 0 : index
    %c1024 = arith.constant 1024 : index
    %128 = vector.load %arg12[%c0_55, %c1024] : memref<2x2048xbf16, #tpu.memory_space<vmem>>, vector<2x128xbf16>
    tpu.vector_store %arg12[%c0_55, %c1024], %127 {strides = array<i32>} : memref<2x2048xbf16, #tpu.memory_space<vmem>>, vector<2x128xbf16>,
    %129 = vector.extract_strided_slice %101 {offsets = [0, 2, 1, 0], sizes = [2, 1, 1, 128], strides = [1, 1, 1, 1]} : vector<2x4x4x128xbf16> to vector<2x1x1x128xbf16>
    %130 = vector.shape_cast %129 : vector<2x1x1x128xbf16> to vector<2x128xbf16>
    %c0_56 = arith.constant 0 : index
    %c1152 = arith.constant 1152 : index
    %131 = vector.load %arg12[%c0_56, %c1152] : memref<2x2048xbf16, #tpu.memory_space<vmem>>, vector<2x128xbf16>
    tpu.vector_store %arg12[%c0_56, %c1152], %130 {strides = array<i32>} : memref<2x2048xbf16, #tpu.memory_space<vmem>>, vector<2x128xbf16>,
    %132 = vector.extract_strided_slice %101 {offsets = [0, 2, 2, 0], sizes = [2, 1, 1, 128], strides = [1, 1, 1, 1]} : vector<2x4x4x128xbf16> to vector<2x1x1x128xbf16>
    %133 = vector.shape_cast %132 : vector<2x1x1x128xbf16> to vector<2x128xbf16>
    %c0_57 = arith.constant 0 : index
    %c1280 = arith.constant 1280 : index
    %134 = vector.load %arg12[%c0_57, %c1280] : memref<2x2048xbf16, #tpu.memory_space<vmem>>, vector<2x128xbf16>
    tpu.vector_store %arg12[%c0_57, %c1280], %133 {strides = array<i32>} : memref<2x2048xbf16, #tpu.memory_space<vmem>>, vector<2x128xbf16>,
    %135 = vector.extract_strided_slice %101 {offsets = [0, 2, 3, 0], sizes = [2, 1, 1, 128], strides = [1, 1, 1, 1]} : vector<2x4x4x128xbf16> to vector<2x1x1x128xbf16>
    %136 = vector.shape_cast %135 : vector<2x1x1x128xbf16> to vector<2x128xbf16>
    %c0_58 = arith.constant 0 : index
    %c1408 = arith.constant 1408 : index
    %137 = vector.load %arg12[%c0_58, %c1408] : memref<2x2048xbf16, #tpu.memory_space<vmem>>, vector<2x128xbf16>
    tpu.vector_store %arg12[%c0_58, %c1408], %136 {strides = array<i32>} : memref<2x2048xbf16, #tpu.memory_space<vmem>>, vector<2x128xbf16>,
    %138 = vector.extract_strided_slice %101 {offsets = [0, 3, 0, 0], sizes = [2, 1, 1, 128], strides = [1, 1, 1, 1]} : vector<2x4x4x128xbf16> to vector<2x1x1x128xbf16>
    %139 = vector.shape_cast %138 : vector<2x1x1x128xbf16> to vector<2x128xbf16>
    %c0_59 = arith.constant 0 : index
    %c1536 = arith.constant 1536 : index
    %140 = vector.load %arg12[%c0_59, %c1536] : memref<2x2048xbf16, #tpu.memory_space<vmem>>, vector<2x128xbf16>
    tpu.vector_store %arg12[%c0_59, %c1536], %139 {strides = array<i32>} : memref<2x2048xbf16, #tpu.memory_space<vmem>>, vector<2x128xbf16>,
    %141 = vector.extract_strided_slice %101 {offsets = [0, 3, 1, 0], sizes = [2, 1, 1, 128], strides = [1, 1, 1, 1]} : vector<2x4x4x128xbf16> to vector<2x1x1x128xbf16>
    %142 = vector.shape_cast %141 : vector<2x1x1x128xbf16> to vector<2x128xbf16>
    %c0_60 = arith.constant 0 : index
    %c1664 = arith.constant 1664 : index
    %143 = vector.load %arg12[%c0_60, %c1664] : memref<2x2048xbf16, #tpu.memory_space<vmem>>, vector<2x128xbf16>
    tpu.vector_store %arg12[%c0_60, %c1664], %142 {strides = array<i32>} : memref<2x2048xbf16, #tpu.memory_space<vmem>>, vector<2x128xbf16>,
    %144 = vector.extract_strided_slice %101 {offsets = [0, 3, 2, 0], sizes = [2, 1, 1, 128], strides = [1, 1, 1, 1]} : vector<2x4x4x128xbf16> to vector<2x1x1x128xbf16>
    %145 = vector.shape_cast %144 : vector<2x1x1x128xbf16> to vector<2x128xbf16>
    %c0_61 = arith.constant 0 : index
    %c1792 = arith.constant 1792 : index
    %146 = vector.load %arg12[%c0_61, %c1792] : memref<2x2048xbf16, #tpu.memory_space<vmem>>, vector<2x128xbf16>
    tpu.vector_store %arg12[%c0_61, %c1792], %145 {strides = array<i32>} : memref<2x2048xbf16, #tpu.memory_space<vmem>>, vector<2x128xbf16>,
    %147 = vector.extract_strided_slice %101 {offsets = [0, 3, 3, 0], sizes = [2, 1, 1, 128], strides = [1, 1, 1, 1]} : vector<2x4x4x128xbf16> to vector<2x1x1x128xbf16>
    %148 = vector.shape_cast %147 : vector<2x1x1x128xbf16> to vector<2x128xbf16>
    %c0_62 = arith.constant 0 : index
    %c1920 = arith.constant 1920 : index
    %149 = vector.load %arg12[%c0_62, %c1920] : memref<2x2048xbf16, #tpu.memory_space<vmem>>, vector<2x128xbf16>
    tpu.vector_store %arg12[%c0_62, %c1920], %148 {strides = array<i32>} : memref<2x2048xbf16, #tpu.memory_space<vmem>>, vector<2x128xbf16>,
    %c0_63 = arith.constant 0 : index
    %c0_64 = arith.constant 0 : index
    %150 = vector.load %arg12[%c0_63, %c0_64] : memref<2x2048xbf16, #tpu.memory_space<vmem>>, vector<2x2048xbf16>
    %c0_65 = arith.constant 0 : index
    %c0_66 = arith.constant 0 : index
    %151 = vector.load %arg6[%c0_65, %c0_66] : memref<2048x512xbf16, #tpu.memory_space<vmem>>, vector<2048x512xbf16>
    %cst_67 = arith.constant dense<0.000000e+00> : vector<2x512xf32>
    %152 = tpu.matmul %150, %151, %cst_67 {dimension_numbers = #tpu.dot_dimension_numbers<[1], [0], [0], [1], [0, 0, 1, 1], [], []>} : vector<2x2048xbf16>, vector<2048x512xbf16>, vector<2x512xf32> -> vector<2x512xf32>
    %c0_68 = arith.constant 0 : index
    %c0_69 = arith.constant 0 : index
    %153 = vector.load %arg7[%c0_68, %c0_69] : memref<1x512xf32, #tpu.memory_space<vmem>>, vector<1x512xf32>
    %154 = vector.broadcast %153 : vector<1x512xf32> to vector<2x512xf32>
    %155 = arith.addf %152, %154 : vector<2x512xf32>
    %cst_70 = arith.constant 0.000000e+00 : f32
    %156 = vector.broadcast %cst_70 : f32 to vector<2x512xf32>
    %157 = arith.maximumf %155, %156 : vector<2x512xf32>
    %158 = arith.truncf %157 : vector<2x512xf32> to vector<2x512xbf16>
    %c0_71 = arith.constant 0 : index
    %c0_72 = arith.constant 0 : index
    %159 = vector.load %arg8[%c0_71, %c0_72] : memref<512x10xbf16, #tpu.memory_space<vmem>>, vector<512x10xbf16>
    %cst_73 = arith.constant dense<0.000000e+00> : vector<2x10xf32>
    %160 = tpu.matmul %158, %159, %cst_73 {dimension_numbers = #tpu.dot_dimension_numbers<[1], [0], [0], [1], [0, 0, 1, 1], [], []>} : vector<2x512xbf16>, vector<512x10xbf16>, vector<2x10xf32> -> vector<2x10xf32>
    %c0_74 = arith.constant 0 : index
    %c0_75 = arith.constant 0 : index
    %161 = vector.load %arg9[%c0_74, %c0_75] : memref<1x10xf32, #tpu.memory_space<vmem>>, vector<1x10xf32>
    %162 = vector.broadcast %161 : vector<1x10xf32> to vector<2x10xf32>
    %163 = arith.addf %160, %162 : vector<2x10xf32>
    %c0_76 = arith.constant 0 : index
    %c0_77 = arith.constant 0 : index
    %164 = vector.load %arg10[%c0_76, %c0_77] : memref<2x10xf32, #tpu.memory_space<vmem>>, vector<2x10xf32>
    tpu.vector_store %arg10[%c0_76, %c0_77], %163 {strides = array<i32>} : memref<2x10xf32, #tpu.memory_space<vmem>>, vector<2x10xf32>,
    return
  }
  func.func @transform_0(%arg0: i32) -> (i32, i32, i32) {
    %c0_i32 = arith.constant 0 : i32
    %c0_i32_0 = arith.constant 0 : i32
    %c0_i32_1 = arith.constant 0 : i32
    return %arg0, %c0_i32, %c0_i32_0 : i32, i32, i32
  }
  func.func @transform_1(%arg0: i32) -> (i32, i32) {
    %c0_i32 = arith.constant 0 : i32
    %c0_i32_0 = arith.constant 0 : i32
    %c0_i32_1 = arith.constant 0 : i32
    return %c0_i32, %c0_i32_0 : i32, i32
  }
  func.func @transform_2(%arg0: i32) -> (i32, i32) {
    %c0_i32 = arith.constant 0 : i32
    %c0_i32_0 = arith.constant 0 : i32
    %c0_i32_1 = arith.constant 0 : i32
    return %c0_i32, %c0_i32_0 : i32, i32
  }
  func.func @transform_3(%arg0: i32) -> (i32, i32) {
    %c0_i32 = arith.constant 0 : i32
    %c0_i32_0 = arith.constant 0 : i32
    %c0_i32_1 = arith.constant 0 : i32
    return %c0_i32, %c0_i32_0 : i32, i32
  }
  func.func @transform_4(%arg0: i32) -> (i32, i32) {
    %c0_i32 = arith.constant 0 : i32
    %c0_i32_0 = arith.constant 0 : i32
    %c0_i32_1 = arith.constant 0 : i32
    return %c0_i32, %c0_i32_0 : i32, i32
  }
  func.func @transform_5(%arg0: i32) -> (i32, i32) {
    %c0_i32 = arith.constant 0 : i32
    %c0_i32_0 = arith.constant 0 : i32
    %c0_i32_1 = arith.constant 0 : i32
    return %c0_i32, %c0_i32_0 : i32, i32
  }
  func.func @transform_6(%arg0: i32) -> (i32, i32) {
    %c0_i32 = arith.constant 0 : i32
    %c0_i32_0 = arith.constant 0 : i32
    %c0_i32_1 = arith.constant 0 : i32
    return %c0_i32, %c0_i32_0 : i32, i32
  }
  func.func @transform_7(%arg0: i32) -> (i32, i32) {
    %c0_i32 = arith.constant 0 : i32
    %c0_i32_0 = arith.constant 0 : i32
    %c0_i32_1 = arith.constant 0 : i32
    return %c0_i32, %c0_i32_0 : i32, i32
  }
  func.func @transform_8(%arg0: i32) -> (i32, i32) {
    %c0_i32 = arith.constant 0 : i32
    %c0_i32_0 = arith.constant 0 : i32
    %c0_i32_1 = arith.constant 0 : i32
    return %c0_i32, %c0_i32_0 : i32, i32
  }
  func.func @transform_9(%arg0: i32) -> (i32, i32) {
    %c0_i32 = arith.constant 0 : i32
    %c0_i32_0 = arith.constant 0 : i32
    return %arg0, %c0_i32 : i32, i32
  }
}

</mosaic_0001>

<bundles_post_ra>
// kernel: dense_mnist_forward.1
= control target key start
LH: loop header
LB: loop body
LE: loop exit
PB: predicated region body
PF: predicated region fallthrough
CT: control target
= control target key end

     0   :  { %vm20703_vm0 = vcmask 1043456   ;;  %vm778_vm1 = vcmask 1044480   ;;  %v14436_v1 = vmov 65535   ;;  %vm20708_vm2 = vcmask 203776   ;;  %s14437_s22 = smov 96   ;;  %s14438_s23 = smov 48   ;;  %s20692_s0 = inlined_call_operand.vmem [shape: bf16[2,576,25], index: 0, kind: input, shape index: {}]   ;;  %s20693_s1 = inlined_call_operand.vmem [shape: bf16[25,24], index: 1, kind: input, shape index: {}]   ;;  %s20694_s2 = inlined_call_operand.vmem [shape: f32[1,24], index: 2, kind: input, shape index: {}]   ;;  %s20695_s3 = inlined_call_operand.vmem [shape: bf16[600,128], index: 3, kind: input, shape index: {}]   ;;  %s20696_s4 = inlined_call_operand.vmem [shape: f32[1,128], index: 4, kind: input, shape index: {}]   ;;  %s20697_s5 = inlined_call_operand.vmem [shape: bf16[2048,512], index: 5, kind: input, shape index: {}]   ;;  %s20698_s6 = inlined_call_operand.vmem [shape: f32[1,512], index: 6, kind: input, shape index: {}]   ;;  %s20699_s7 = inlined_call_operand.vmem [shape: bf16[512,10], index: 7, kind: input, shape index: {}]   ;;  %s20700_s8 = inlined_call_operand.vmem [shape: f32[1,10], index: 8, kind: input, shape index: {}]   ;;  %s20701_s9 = inlined_call_operand.hbm [shape: f32[2,10], index: 9, kind: output, shape index: {}]  }
   0x1   :  { %v13446_v0 = vld [vmem:[%s20693_s1 + $0x8] sm:$0x1f]   ;;  %v779_v2 = vsel %vm20703_vm0, 4294967295, %v14436_v1  ;;  %v13448_v3 = vld [vmem:[%s20692_s0] sm:$0xff]   ;;  %v13450_v8 = vld [vmem:[%s20692_s0 + $0x10] sm:$0xff]   ;;  %vm1825_vm3 = vcmask 191488  }
   0x2   :  { %v780_v4 = vsel %vm778_vm1, %v779_v2, 0  ;;  %v13447_v6 = vld [vmem:[%s20693_s1] sm:$0xff]   ;;  %13253 = vmatprep.mubr.msk.bf16.mxu0 %vm20708_vm2, %v13448_v3  ;;  %v13449_v7 = vld [vmem:[%s20692_s0 + $0x8] sm:$0xff]   ;;  %v13451_v9 = vld [vmem:[%s20692_s0 + $0x18] sm:$0xff]   ;;  %vm20702_vm4 = vcmask 1041408   ;;  %vm3415_vm5 = vcmask 1045508  }
   0x3   :  { %v782_v5 = vand.u32 %v13446_v0, %v780_v4  ;;  %v13452_v10 = vld [vmem:[%s20692_s0 + $0x20] sm:$0xff]   ;;  %v13453_v11 = vld [vmem:[%s20692_s0 + $0x28] sm:$0xff]   ;;  %v13454_v12 = vld [vmem:[%s20692_s0 + $0x30] sm:$0xff]   ;;  %vm3054_vm6 = vcmask 1042432   ;;  %vm3055_vm7 = vcmask 1046532   ;;  %s14439_s24 = smov 24  }
   0x4   :  { %v13455_v13 = vld [vmem:[%s20692_s0 + $0x38] sm:$0xff]   ;;  %v13456_v14 = vld [vmem:[%s20692_s0 + $0x40] sm:$0xff]   ;;  %v13457_v15 = vld [vmem:[%s20692_s0 + $0x48] sm:$0xff]   ;;  %vm2762_vm9 = vsmask.f32 3328  ;;  %s14440_s29 = smov 72  }
   0x5   :  { %13249 = vmatprep.subr.bf16.mxu0 %v782_v5  ;;  %v13458_v16 = vld [vmem:[%s20692_s0 + $0x50] sm:$0xff]   ;;  %v13459_v17 = vld [vmem:[%s20692_s0 + $0x58] sm:$0xff]   ;;  %v13460_v18 = vld [vmem:[%s20692_s0 + $0x60] sm:$0xff]   ;;  %vm2763_vm10 = vsmask.f32 7440  ;;  %s14441_s13 = smov 120  }
   0x6   :  { %13250 = vmatpush3.bf16.msra.mxu0 %v782_v5  ;;  %v13461_v19 = vld [vmem:[%s20692_s0 + $0x68] sm:$0xff]   ;;  %v13462_v20 = vld [vmem:[%s20692_s0 + $0x70] sm:$0xff]   ;;  %v13463_v21 = vld [vmem:[%s20692_s0 + $0x78] sm:$0xff]   ;;  %vm3186_vm13 = vsmask.f32 2304  ;;  %s14442_s21 = smov 40  }
   0x7   :  { %13251 = vmatprep.subr.bf16.mxu0 %v13447_v6  ;;  %v13464_v22 = vld [vmem:[%s20692_s0 + $0x80] sm:$0xff]   ;;  %v13465_v23 = vld [vmem:[%s20692_s0 + $0x88] sm:$0xff]   ;;  %v13466_v24 = vld [vmem:[%s20692_s0 + $0x90] sm:$0xff]   ;;  %vm3187_vm14 = vsmask.f32 6416  ;;  %s14443_s30 = smov 88  }
   0x8   :  { %v13467_v25 = vld [vmem:[%s20692_s0 + $0x98] sm:$0xff]   ;;  %v13468_v26 = vld [vmem:[%s20692_s0 + $0xa0] sm:$0xff]   ;;  %v13469_v27 = vld [vmem:[%s20692_s0 + $0xa8] sm:$0xff]   ;;  %s14444_s28 = smov 16   ;;  %s14445_s15 = smov 64  }
   0x9   :  { %v13470_v28 = vld [vmem:[%s20692_s0 + $0xb0] sm:$0xff]   ;;  %v13471_v29 = vld [vmem:[%s20692_s0 + $0xb8] sm:$0xff]   ;;  %v13472_v30 = vld [vmem:[%s20692_s0 + $0xc0] sm:$0xff]   ;;  %s14446_s1 = smov 112   ;;  %s14447_s16 = smov 32  }
   0xa   :  { %13252 = vmatpush3.bf16.msra.mxu0 %v13447_v6  ;;  %v13473_v31 = vld [vmem:[%s20692_s0 + $0xc8] sm:$0xff]   ;;  %v13474_v32 = vld [vmem:[%s20692_s0 + $0xd0] sm:$0xff]   ;;  %v13475_v33 = vld [vmem:[%s20692_s0 + $0xd8] sm:$0xff]   ;;  %s14448_s17 = smov 80  }
   0xb   :  { %v13476_v34 = vld [vmem:[%s20692_s0 + $0xe0] sm:$0xff]   ;;  %v13477_v35 = vld [vmem:[%s20692_s0 + $0xe8] sm:$0xff]   ;;  %v13478_v36 = vld [vmem:[%s20692_s0 + $0xf0] sm:$0xff]  }
   0xc   :  { %v13479_v37 = vld [vmem:[%s20692_s0 + $0xf8] sm:$0xff]   ;;  %v13480_v38 = vld [vmem:[%s20692_s0 + $0x100] sm:$0xff]   ;;  %v13481_v39 = vld [vmem:[%s20692_s0 + $0x108] sm:$0xff]  }
   0xd   :  { %13254 = vmatmul.mubr.msk.bf16.vlgmr.msra.gmra.mxu0 %vm20708_vm2, %v13449_v7  ;;  %v13482_v40 = vld [vmem:[%s20692_s0 + $0x110] sm:$0xff]   ;;  %v13483_v41 = vld [vmem:[%s20692_s0 + $0x118] sm:$0xff]   ;;  %v13484_v42 = vld [vmem:[%s20692_s0 + $0x120] sm:$0xff]  }
   0xe   :  { %13257 = vmatprep.mubr.msk.bf16.mxu0 %vm20708_vm2, %v13450_v8  ;;  %v13485_v43 = vld [vmem:[%s20692_s0 + $0x128] sm:$0xff]   ;;  %v13486_v44 = vld [vmem:[%s20692_s0 + $0x130] sm:$0xff]   ;;  %v13487_v45 = vld [vmem:[%s20692_s0 + $0x138] sm:$0xff]  }
   0xf   :  { %v13488_v46 = vld [vmem:[%s20692_s0 + $0x140] sm:$0xff]   ;;  %v13489_v53 = vld [vmem:[%s20692_s0 + $0x148] sm:$0xff]   ;;  %v13490_v63 = vld [vmem:[%s20692_s0 + $0x150] sm:$0xff]  }
  0x10   :  { %v14678_v47 = vld [vmem:[%s20694_s2] ss:$0 sm:$0xff]  ;;  %vm14763_vm8 = vmor %vm20702_vm4, %vm3415_vm5 }
  0x11   :  { %vm14772_vm11 = vmor %vm3054_vm6, %vm3055_vm7 }
  0x12   :  { %vm14825_vm12 = vmor %vm2762_vm9, %vm2763_vm10 }
  0x13   :  { %vm14901_vm15 = vmor %vm3186_vm13, %vm3187_vm14 }
  0x15   :  { %13258 = vmatmul.mubr.msk.bf16.gmra.mxu0 %vm20708_vm2, %v13451_v9 }
  0x16   :  { %13261 = vmatprep.mubr.msk.bf16.mxu0 %vm20708_vm2, %v13452_v10 }
  0x1d   :  { %13262 = vmatmul.mubr.msk.bf16.gmra.mxu0 %vm20708_vm2, %v13453_v11 }
  0x1e   :  { %13265 = vmatprep.mubr.msk.bf16.mxu0 %vm20708_vm2, %v13454_v12 }
  0x25   :  { %13266 = vmatmul.mubr.msk.bf16.gmra.mxu0 %vm20708_vm2, %v13455_v13  ;;  %v13491_v13 = vld [vmem:[%s20692_s0 + $0x158] sm:$0xff]  }
  0x26   :  { %13269 = vmatprep.mubr.msk.bf16.mxu0 %vm20708_vm2, %v13456_v14 }
  0x2d   :  { %13270 = vmatmul.mubr.msk.bf16.gmra.mxu0 %vm20708_vm2, %v13457_v15 }
  0x2e   :  { %13273 = vmatprep.mubr.msk.bf16.mxu0 %vm20708_vm2, %v13458_v16 }
  0x35   :  { %13274 = vmatmul.mubr.msk.bf16.gmra.mxu0 %vm20708_vm2, %v13459_v17 }
  0x36   :  { %13277 = vmatprep.mubr.msk.bf16.mxu0 %vm20708_vm2, %v13460_v18 }
  0x3d   :  { %13278 = vmatmul.mubr.msk.bf16.gmra.mxu0 %vm20708_vm2, %v13461_v19 }
  0x3e   :  { %13281 = vmatprep.mubr.msk.bf16.mxu0 %vm20708_vm2, %v13462_v20 }
  0x45   :  { %13282 = vmatmul.mubr.msk.bf16.gmra.mxu0 %vm20708_vm2, %v13463_v21 }
  0x46   :  { %13285 = vmatprep.mubr.msk.bf16.mxu0 %vm20708_vm2, %v13464_v22 }
  0x4d   :  { %13286 = vmatmul.mubr.msk.bf16.gmra.mxu0 %vm20708_vm2, %v13465_v23 }
  0x4e   :  { %13289 = vmatprep.mubr.msk.bf16.mxu0 %vm20708_vm2, %v13466_v24 }
  0x55   :  { %13290 = vmatmul.mubr.msk.bf16.gmra.mxu0 %vm20708_vm2, %v13467_v25 }
  0x56   :  { %13293 = vmatprep.mubr.msk.bf16.mxu0 %vm20708_vm2, %v13468_v26 }
  0x5d   :  { %13294 = vmatmul.mubr.msk.bf16.gmra.mxu0 %vm20708_vm2, %v13469_v27 }
  0x5e   :  { %13297 = vmatprep.mubr.msk.bf16.mxu0 %vm20708_vm2, %v13470_v28 }
  0x65   :  { %13298 = vmatmul.mubr.msk.bf16.gmra.mxu0 %vm20708_vm2, %v13471_v29 }
  0x66   :  { %13301 = vmatprep.mubr.msk.bf16.mxu0 %vm20708_vm2, %v13472_v30 }
  0x6d   :  { %13302 = vmatmul.mubr.msk.bf16.gmra.mxu0 %vm20708_vm2, %v13473_v31  ;;  %v13492_v31 = vld [vmem:[%s20692_s0 + $0x160] sm:$0xff]  }
  0x6e   :  { %13305 = vmatprep.mubr.msk.bf16.mxu0 %vm20708_vm2, %v13474_v32 }
  0x75   :  { %13306 = vmatmul.mubr.msk.bf16.gmra.mxu0 %vm20708_vm2, %v13475_v33 }
  0x76   :  { %13309 = vmatprep.mubr.msk.bf16.mxu0 %vm20708_vm2, %v13476_v34 }
  0x7d   :  { %13310 = vmatmul.mubr.msk.bf16.gmra.mxu0 %vm20708_vm2, %v13477_v35 }
  0x7e   :  { %13313 = vmatprep.mubr.msk.bf16.mxu0 %vm20708_vm2, %v13478_v36 }
  0x85   :  { %13314 = vmatmul.mubr.msk.bf16.gmra.mxu0 %vm20708_vm2, %v13479_v37 }
  0x86   :  { %13317 = vmatprep.mubr.msk.bf16.mxu0 %vm20708_vm2, %v13480_v38 }
  0x8d   :  { %13318 = vmatmul.mubr.msk.bf16.gmra.mxu0 %vm20708_vm2, %v13481_v39 }
  0x8e   :  { %13321 = vmatprep.mubr.msk.bf16.mxu0 %vm20708_vm2, %v13482_v40 }
  0x95   :  { %13322 = vmatmul.mubr.msk.bf16.gmra.mxu0 %vm20708_vm2, %v13483_v41 }
  0x96   :  { %13325 = vmatprep.mubr.msk.bf16.mxu0 %vm20708_vm2, %v13484_v42 }
  0x9d   :  { %13326 = vmatmul.mubr.msk.bf16.gmra.mxu0 %vm20708_vm2, %v13485_v43 }
  0x9e   :  { %13329 = vmatprep.mubr.msk.bf16.mxu0 %vm20708_vm2, %v13486_v44 }
  0xa5   :  { %13330 = vmatmul.mubr.msk.bf16.gmra.mxu0 %vm20708_vm2, %v13487_v45 }
  0xa6   :  { %13333 = vmatprep.mubr.msk.bf16.mxu0 %vm20708_vm2, %v13488_v46 }
  0xad   :  { %13334 = vmatmul.mubr.msk.bf16.gmra.mxu0 %vm20708_vm2, %v13489_v53 }
  0xae   :  { %13337 = vmatprep.mubr.msk.bf16.mxu0 %vm20708_vm2, %v13490_v63 }
  0xb5   :  { %13338 = vmatmul.mubr.msk.bf16.gmra.mxu0 %vm20708_vm2, %v13491_v13 }
  0xb6   :  { %13341 = vmatprep.mubr.msk.bf16.mxu0 %vm20708_vm2, %v13492_v31 }
  0xcd   :  { %v13255_v48 = vpop.f32.mrf.mxu0 }
  0xce   :  { %v827_v50 = vadd.f32 %v13255_v48, %v14678_v47 }
  0xcf   :  { %v818_v49 = vpop.f32.mrf.mxu0 }
  0xd0   :  { %v819_v51 = vadd.f32 %v14678_v47, %v818_v49  ;;  %v1539_v57 = vcombine.high %v827_v50, %v827_v50  ;;  %v1830_v0 = vsel %vm1825_vm3, %v827_v50, -inf }
  0xd1   :  { %v13256_v52 = vpop.f32.mrf.mxu0 }
  0xd2   :  { %v1537_v54 = vcombine.high %v819_v51, %v819_v51  ;;  %v830_v55 = vadd.f32 %v13256_v52, %v14678_v47  ;;  %v1833_v3 = vsel %vm1825_vm3, %v1539_v57, -inf  ;;  %v1826_v10 = vsel %vm1825_vm3, %v819_v51, -inf  ;;  %v13493_v51 = vld [vmem:[%s20692_s0 + $0x168] sm:$0xff]  }
  0xd3   :  { %v821_v56 = vpop.f32.mrf.mxu0  ;;  %13342 = vmatmul.mubr.msk.bf16.gmra.mxu0 %vm20708_vm2, %v13493_v51 }
  0xd4   :  { %v822_v58 = vadd.f32 %v14678_v47, %v821_v56  ;;  %v1829_v60 = vsel %vm1825_vm3, %v1537_v54, -inf  ;;  %v1540_v1 = vcombine.high %v830_v55, %v830_v55  ;;  %v1835_v14 = vsel %vm1825_vm3, %v830_v55, -inf }
  0xd5   :  { %v13259_v59 = vpop.f32.mrf.mxu0  ;;  %v1831_v7 = vmax.f32 %v1829_v60, %v1830_v0 }
  0xd6   :  { %v1538_v61 = vcombine.high %v822_v58, %v822_v58  ;;  %v1832_v62 = vsel %vm1825_vm3, %v822_v58, -inf  ;;  %v843_v5 = vadd.f32 %v13259_v59, %v14678_v47  ;;  %v1838_v15 = vsel %vm1825_vm3, %v1540_v1, -inf }
  0xd7   :  { %v834_v2 = vpop.f32.mrf.mxu0  ;;  %v1834_v8 = vmax.f32 %v1832_v62, %v1833_v3  ;;  %v2261_v22 = vsel %vm1825_vm3, %v1831_v7, -inf }
  0xd8   :  { %v1827_v4 = vsel %vm1825_vm3, %v1538_v61, -inf  ;;  %v835_v6 = vadd.f32 %v14678_v47, %v834_v2  ;;  %v1543_v18 = vcombine.high %v843_v5, %v843_v5  ;;  %v1844_v24 = vsel %vm1825_vm3, %v843_v5, -inf }
  0xd9   :  { %v13260_v9 = vpop.f32.mrf.mxu0  ;;  %v1828_v16 = vmax.f32 %v1826_v10, %v1827_v4  ;;  %v2264_v23 = vsel %vm1825_vm3, %v1834_v8, -inf }
  0xda   :  { %v1541_v11 = vcombine.high %v835_v6, %v835_v6  ;;  %v846_v12 = vadd.f32 %v13260_v9, %v14678_v47  ;;  %v1841_v33 = vsel %vm1825_vm3, %v835_v6, -inf  ;;  %v1847_v40 = vsel %vm1825_vm3, %v1543_v18, -inf  ;;  %v13494_v6 = vld [vmem:[%s20692_s0 + $0x170] sm:$0xff]  }
  0xdb   :  { %v837_v17 = vpop.f32.mrf.mxu0  ;;  %v2258_v32 = vsel %vm1825_vm3, %v1828_v16, -inf  ;;  %13345 = vmatprep.mubr.msk.bf16.mxu0 %vm20708_vm2, %v13494_v6 }
  0xdc   :  { %v1836_v19 = vsel %vm1825_vm3, %v1541_v11, -inf  ;;  %v1544_v20 = vcombine.high %v846_v12, %v846_v12  ;;  %v838_v21 = vadd.f32 %v14678_v47, %v837_v17  ;;  %v1850_v46 = vsel %vm1825_vm3, %v846_v12, -inf }
  0xdd   :  { %v1837_v25 = vmax.f32 %v1835_v14, %v1836_v19  ;;  %v13263_v26 = vpop.f32.mrf.mxu0 }
  0xde   :  { %v1845_v27 = vsel %vm1825_vm3, %v1544_v20, -inf  ;;  %v1542_v28 = vcombine.high %v838_v21, %v838_v21  ;;  %v1839_v29 = vsel %vm1825_vm3, %v838_v21, -inf  ;;  %v859_v30 = vadd.f32 %v13263_v26, %v14678_v47 }
  0xdf   :  { %v2259_v34 = vsel %vm1825_vm3, %v1837_v25, -inf  ;;  %v1840_v35 = vmax.f32 %v1838_v15, %v1839_v29  ;;  %v850_v36 = vpop.f32.mrf.mxu0  ;;  %v1846_v38 = vmax.f32 %v1844_v24, %v1845_v27  ;;  %v13495_v27 = vld [vmem:[%s20692_s0 + $0x178] sm:$0xff]  }
  0xe0   :  { %v2260_v37 = vmax.f32 %v2258_v32, %v2259_v34  ;;  %v1842_v39 = vsel %vm1825_vm3, %v1542_v28, -inf  ;;  %v1547_v43 = vcombine.high %v859_v30, %v859_v30  ;;  %v851_v44 = vadd.f32 %v14678_v47, %v850_v36  ;;  %13346 = vmatmul.mubr.msk.bf16.gmra.mxu0 %vm20708_vm2, %v13495_v27 }
  0xe1   :  { %v1843_v41 = vmax.f32 %v1841_v33, %v1842_v39  ;;  %v2262_v42 = vsel %vm1825_vm3, %v1840_v35, -inf  ;;  %v13264_v45 = vpop.f32.mrf.mxu0  ;;  %v1859_v49 = vsel %vm1825_vm3, %v859_v30, -inf  ;;  %v2267_v61 = vsel %vm1825_vm3, %v1846_v38, -inf }
  0xe2   :  { %v2263_v48 = vmax.f32 %v2261_v22, %v2262_v42  ;;  %v862_v50 = vadd.f32 %v13264_v45, %v14678_v47  ;;  %v2474_v52 = vmax.f32 %v2260_v37, 0.0  ;;  %v1545_v54 = vcombine.high %v851_v44, %v851_v44 }
  0xe3   :  { %v2265_v53 = vsel %vm1825_vm3, %v1843_v41, -inf  ;;  %v1848_v55 = vsel %vm1825_vm3, %v851_v44, -inf  ;;  %v853_v56 = vpop.f32.mrf.mxu0  ;;  %v1854_v62 = vsel %vm1825_vm3, %v1547_v43, -inf }
  0xe4   :  { %v2266_v57 = vmax.f32 %v2264_v23, %v2265_v53  ;;  %v2475_v58 = vmax.f32 %v2263_v48, 0.0  ;;  %v1849_v59 = vmax.f32 %v1847_v40, %v1848_v55  ;;  %v1548_v60 = vcombine.high %v862_v50, %v862_v50 }
  0xe5   :  { %v1851_v63 = vsel %vm1825_vm3, %v1545_v54, -inf  ;;  %v854_v0 = vadd.f32 %v14678_v47, %v853_v56  ;;  %v13267_v1 = vpop.f32.mrf.mxu0  ;;  %v1857_v5 = vsel %vm1825_vm3, %v862_v50, -inf }
  0xe6   :  { %v14740_v2 = vmax.f32 %v2266_v57, 0.0  ;;  %v14742_v3 = vcombine.low %v2474_v52, %v2475_v58  ;;  %v1852_v4 = vmax.f32 %v1850_v46, %v1851_v63  ;;  %v1860_v7 = vsel %vm1825_vm3, %v1548_v60, -inf }
  0xe7   :  { %v1546_v8 = vcombine.high %v854_v0, %v854_v0  ;;  %v1853_v9 = vsel %vm1825_vm3, %v854_v0, -inf  ;;  %v875_v10 = vadd.f32 %v13267_v1, %v14678_v47  ;;  %v866_v11 = vpop.f32.mrf.mxu0  ;;  %v2270_v14 = vsel %vm1825_vm3, %v1849_v59, -inf }
  0xe8   :  { %v14754_v12 = vpack.c.bf16 %v14742_v3, %v14742_v3  ;;  %v14758_v13 = vpack.c.bf16 %v14740_v2, %v14740_v2  ;;  %v1861_v15 = vmax.f32 %v1859_v49, %v1860_v7  ;;  %v2273_v17 = vsel %vm1825_vm3, %v1852_v4, -inf }
  0xe9   :  { %v1855_v18 = vmax.f32 %v1853_v9, %v1854_v62  ;;  %v1856_v19 = vsel %vm1825_vm3, %v1546_v8, -inf  ;;  %v1551_v20 = vcombine.high %v875_v10, %v875_v10  ;;  %v13268_v21 = vpop.f32.mrf.mxu0  ;;  %v867_v25 = vadd.f32 %v14678_v47, %v866_v11 }
  0xea   :  { %v2274_v23 = vsel %vm1825_vm3, %v1861_v15, -inf  ;;  %v1858_v24 = vmax.f32 %v1856_v19, %v1857_v5  ;;  %v878_v26 = vadd.f32 %v13268_v21, %v14678_v47  ;;  %v1866_v30 = vsel %vm1825_vm3, %v875_v10, -inf }
  0xeb   :  { %v2275_v28 = vmax.f32 %v2273_v17, %v2274_v23  ;;  %v2268_v29 = vsel %vm1825_vm3, %v1855_v18, -inf  ;;  %v1869_v31 = vsel %vm1825_vm3, %v1551_v20, -inf  ;;  %v869_v32 = vpop.f32.mrf.mxu0  ;;  %v1549_v35 = vcombine.high %v867_v25, %v867_v25 }
  0xec   :  { %v2269_v33 = vmax.f32 %v2267_v61, %v2268_v29  ;;  %v2271_v34 = vsel %vm1825_vm3, %v1858_v24, -inf  ;;  %v12245_v36 = vrot.slane %v14754_v12, 10  ;;  %v1862_v39 = vsel %vm1825_vm3, %v867_v25, -inf }
  0xed   :  { %v14787_v37 = vmax.f32 %v2275_v28, 0.0  ;;  %v2272_v38 = vmax.f32 %v2270_v14, %v2271_v34  ;;  %v1552_v40 = vcombine.high %v878_v26, %v878_v26  ;;  %v13271_v41 = vpop.f32.mrf.mxu0  ;;  %v1865_v42 = vsel %vm1825_vm3, %v1549_v35, -inf }
  0xee   :  { %v1871_v43 = vsel %vm1825_vm3, %v878_v26, -inf  ;;  %v870_v44 = vadd.f32 %v14678_v47, %v869_v32  ;;  %v14794_v45 = vadd.f32 %v13271_v41, %v14678_v47  ;;  %v2477_v48 = vmax.f32 %v2269_v33, 0.0 }
  0xef   :  { %v14798_v46 = vpack.c.bf16 %v14787_v37, %v14787_v37  ;;  %v2478_v49 = vmax.f32 %v2272_v38, 0.0  ;;  %v1867_v50 = vmax.f32 %v1865_v42, %v1866_v30  ;;  %v882_v51 = vpop.f32.mrf.mxu0  ;;  %v1874_v52 = vsel %vm1825_vm3, %v1552_v40, -inf }
  0xf0   :  { %v1550_v53 = vcombine.high %v870_v44, %v870_v44  ;;  %v1868_v54 = vsel %vm1825_vm3, %v870_v44, -inf  ;;  %v1555_v55 = vcombine.high %v14794_v45, %v14794_v45  ;;  %v1880_v58 = vsel %vm1825_vm3, %v14794_v45, -inf }
  0xf1   :  { %v14805_v56 = vcombine.low %v2477_v48, %v2478_v49  ;;  %v1870_v57 = vmax.f32 %v1868_v54, %v1869_v31  ;;  %v3419_v59 = vrot.slane %v14758_v13, 6  ;;  %v13272_v60 = vpop.f32.mrf.mxu0  ;;  %v12229_v62 = vrot.slane %v14754_v12, 9 }
  0xf2   :  { %v1863_v61 = vsel %vm1825_vm3, %v1550_v53, -inf  ;;  %v3059_v63 = vrot.slane %v14758_v13, 5  ;;  %v883_v0 = vadd.f32 %v14678_v47, %v882_v51  ;;  %v14819_v4 = vsel %vm1825_vm3, %v1867_v50, -inf }
  0xf3   :  { %v14816_v1 = vpack.c.bf16 %v14805_v56, %v14805_v56  ;;  %v1864_v5 = vmax.f32 %v1862_v39, %v1863_v61  ;;  %v3420_v6 = vsel %vm14763_vm8, %v12245_v36, %v3419_v59  ;;  %v885_v7 = vpop.f32.mrf.mxu0  ;;  %v14830_v9 = vsel %vm1825_vm3, %v1870_v57, -inf }
  0xf4   :  { %3481 = vrot.lane.b32.xlu0 %v3420_v6, %s14437_s22  ;;  %v3060_v10 = vsel %vm14772_vm11, %v12229_v62, %v3059_v63  ;;  %v1553_v11 = vcombine.high %v883_v0, %v883_v0  ;;  %v894_v14 = vadd.f32 %v13272_v60, %v14678_v47  ;;  %v14838_v15 = vsel %vm1825_vm3, %v883_v0, -inf }
  0xf5   :  { %3121 = vrot.lane.b32.xlu1 %v3060_v10, %s14438_s23  ;;  %v886_v17 = vadd.f32 %v14678_v47, %v885_v7  ;;  %v2766_v18 = vshrl.u32 %v14754_v12, 16  ;;  %v2769_v19 = vshll.u32 %v14754_v12, 16  ;;  %v13275_v20 = vpop.f32.mrf.mxu0  ;;  %v14844_v21 = vsel %vm1825_vm3, %v1864_v5, -inf }
  0xf6   :  { %v1872_v23 = vsel %vm1825_vm3, %v1553_v11, -inf  ;;  %v1556_v24 = vcombine.high %v894_v14, %v894_v14  ;;  %v2775_v25 = vshll.u32 %v14758_v13, 16  ;;  %v14851_v12 = vsel %vm1825_vm3, %v894_v14, -inf }
  0xf7   :  { %v1873_v26 = vmax.f32 %v1871_v43, %v1872_v23  ;;  %v1554_v27 = vcombine.high %v886_v17, %v886_v17  ;;  %v1875_v28 = vsel %vm1825_vm3, %v886_v17, -inf  ;;  %v2768_v29 = vrot.slane %v2766_v18, 4  ;;  %v898_v30 = vpop.f32.mrf.mxu0 }
  0xf8   :  { %v1881_v31 = vsel %vm1825_vm3, %v1556_v24, -inf  ;;  %v1876_v32 = vmax.f32 %v1874_v52, %v1875_v28  ;;  %v2771_v33 = vrot.slane %v2769_v19, 5  ;;  %v2777_v36 = vrot.slane %v2775_v25, 5 }
  0xf9   :  { %v1882_v34 = vmax.f32 %v1880_v58, %v1881_v31  ;;  %v14854_v35 = vsel %vm1825_vm3, %v1554_v27, -inf  ;;  %v907_v38 = vadd.f32 %v13275_v20, %v14678_v47  ;;  %v13276_v39 = vpop.f32.mrf.mxu0  ;;  %v14858_v40 = vsel %vm1825_vm3, %v1873_v26, -inf  ;;  %v13497_v31 = vld [vmem:[%s20692_s0 + $0x188] sm:$0xff]  }
  0xfa   :  { %v2772_v41 = vor.u32 %v2771_v33, %v2768_v29  ;;  %v899_v42 = vadd.f32 %v14678_v47, %v898_v30  ;;  %v1879_v44 = vmax.f32 %v14838_v15, %v14854_v35  ;;  %v14867_v45 = vsel %vm1825_vm3, %v1876_v32, -inf }
  0xfb   :  { %v14862_v43 = vsel %vm1825_vm3, %v1882_v34, -inf  ;;  %v1559_v48 = vcombine.high %v907_v38, %v907_v38  ;;  %v901_v49 = vpop.f32.mrf.mxu0  ;;  %v1883_v52 = vsel %vm1825_vm3, %v1555_v55, -inf  ;;  %v1895_v54 = vsel %vm1825_vm3, %v907_v38, -inf }
  0xfc   :  { %v2773_v50 = vrot.slane %v2772_v41, 4  ;;  %v1557_v51 = vcombine.high %v899_v42, %v899_v42  ;;  %v1884_v53 = vsel %vm1825_vm3, %v899_v42, -inf  ;;  %v12230_v58 = vrot.slane %v14816_v1, 9 }
  0xfd   :  { %v1885_v57 = vmax.f32 %v1883_v52, %v1884_v53  ;;  %v3063_v59 = vrot.slane %v14798_v46, 5  ;;  %v14874_v60 = vpop.f32.mrf.mxu0  ;;  %v3189_v63 = vrot.slane %v2766_v18, 5  ;;  %v3190_v0 = vrot.slane %v2769_v19, 6  ;;  %v13496_v19 = vld [vmem:[%s20692_s0 + $0x180] sm:$0xff]  }
  0xfe   :  { %v2778_v61 = vsel %vm14825_vm12, %v2773_v50, %v2777_v36  ;;  %v1887_v62 = vsel %vm1825_vm3, %v1557_v51, -inf  ;;  %v1890_v55 = vsel %vm1825_vm3, %v1559_v48, -inf  ;;  %v3193_v7 = vshrl.u32 %v14758_v13, 16  ;;  %13349 = vmatprep.mubr.msk.bf16.mxu0 %vm20708_vm2, %v13496_v19 }
  0xff   :  { %2989 = vrot.lane.b32.xlu0 %v2778_v61, %s14439_s24  ;;  %v1888_v5 = vmax.f32 %v14851_v12, %v1887_v62  ;;  %v14884_v6 = vsel %vm14772_vm11, %v12230_v58, %v3063_v59  ;;  %v14887_v10 = vpop.f32.mrf.mxu0  ;;  %v3191_v11 = vor.u32 %v3190_v0, %v3189_v63  ;;  %v3196_v14 = vrot.slane %v2775_v25, 6  ;;  %13350 = vmatmul.mubr.msk.bf16.gmra.mxu0 %vm20708_vm2, %v13497_v31  ;;  %v13498_v62 = vld [vmem:[%s20695_s3 + $0x78] sm:$0xff]  }
 0x100   :  { %3123 = vrot.lane.b32.xlu1 %v14884_v6, %s14438_s23  ;;  %v910_v17 = vadd.f32 %v13276_v39, %v14678_v47  ;;  %v902_v18 = vadd.f32 %v14678_v47, %v901_v49  ;;  %v14897_v20 = vsel %vm1825_vm3, %v1885_v57, -inf  ;;  %v20816_v13 = vmov 0  ;;  %v13499_v63 = vld [vmem:[%s20695_s3 + $0x38] sm:$0xff]   ;;  %13063 = vmatprep.subr.bf16.mxu1 %v13498_v62 }
 0x101   :  { %v20817_v13 = vsel %vm14901_vm15, 4294967295, %v20816_v13  ;;  %v3195_v23 = vrot.slane %v3193_v7, 5  ;;  %v12246_v24 = vrot.slane %v14816_v1, 10  ;;  %v3423_v25 = vrot.slane %v14798_v46, 6  ;;  %v14907_v26 = vpop.f32.mrf.mxu0  ;;  %13064 = vmatpush3.bf16.msra.mxu1 %v13499_v63 }
 0x102   :  { %20818 = vst [vmem:[#allocation7_spill] sm:$0xff] %v20817_v13  ;;  %v3192_v27 = vrot.slane %v3191_v11, 4  ;;  %v1560_v28 = vcombine.high %v910_v17, %v910_v17  ;;  %v1893_v29 = vsel %vm1825_vm3, %v910_v17, -inf  ;;  %v1558_v30 = vcombine.high %v902_v18, %v902_v18 }
 0x103   :  { %v3197_v12 = vor.u32 %v3196_v14, %v3195_v23  ;;  %v1889_v32 = vsel %vm1825_vm3, %v902_v18, -inf  ;;  %v14917_v33 = vsel %vm14763_vm8, %v12246_v24, %v3423_v25  ;;  %v2643_v34 = vpack.c.bf16 %v14787_v37, %v14805_v56  ;;  %v14921_v36 = vpop.f32.mrf.mxu0 }
 0x104   :  { %v1896_v38 = vsel %vm1825_vm3, %v1560_v28, -inf  ;;  %v1891_v39 = vmax.f32 %v1889_v32, %v1890_v55  ;;  %v1892_v41 = vsel %vm1825_vm3, %v1558_v30, -inf  ;;  %3483 = vrot.lane.b32.xlu1 %v14917_v33, %s14437_s22  ;;  %v2780_v42 = vshrl.u32 %v14816_v1, 16  ;;  %v13501_v28 = vld [vmem:[%s20692_s0 + $0x198] sm:$0xff]   ;;  %v13503_v32 = vld [vmem:[%s20695_s3 + $0x30] sm:$0xff]  }
 0x105   :  { %v3198_v48 = vsel %vm14901_vm15, %v3192_v27, %v3197_v12  ;;  %v1897_v49 = vmax.f32 %v1895_v54, %v1896_v38  ;;  %v1894_v50 = vmax.f32 %v1892_v41, %v1893_v29  ;;  %2667 = vst.msk [vmem:[#allocation2 + $0x14] sm:$0xf] %vm1825_vm3, %v2643_v34  ;;  %v2783_v37 = vshll.u32 %v14816_v1, 16  ;;  %v14933_v56 = vpop.f32.mrf.mxu0  ;;  %v13504_v38 = vld [vmem:[%s20695_s3 + $0x68] sm:$0xff]  }
 0x106   :  { %v2291_v51 = vsel %vm1825_vm3, %v1888_v5, -inf  ;;  %3349 = vrot.lane.b32.xlu0 %v3198_v48, %s14440_s29  ;;  %v2789_v52 = vshll.u32 %v14798_v46, 16  ;;  %v3199_v53 = vrot.slane %v2780_v42, 5  ;;  %v3203_v57 = vshrl.u32 %v14798_v46, 16 }
 0x107   :  { %v2281_v54 = vmax.f32 %v14819_v4, %v14867_v45  ;;  %v2292_v58 = vsel %vm1825_vm3, %v1897_v49, -inf  ;;  %v2286_v59 = vsel %vm1825_vm3, %v1891_v39, -inf  ;;  %v3200_v1 = vrot.slane %v2783_v37, 6  ;;  %v14943_v61 = vpop.f32.mrf.mxu0 }
 0x108   :  { %v2293_v0 = vmax.f32 %v2291_v51, %v2292_v58  ;;  %v3205_v55 = vrot.slane %v3203_v57, 5  ;;  %v3206_v4 = vrot.slane %v2789_v52, 6  ;;  %v2289_v45 = vsel %vm1825_vm3, %v1894_v50, -inf }
 0x109   :  { %v3201_v5 = vor.u32 %v3200_v1, %v3199_v53  ;;  %v2278_v7 = vmax.f32 %v14844_v21, %v14858_v40  ;;  %v2283_v11 = vsel %vm1825_vm3, %v1879_v44, -inf  ;;  %v14960_v14 = vpop.f32.mrf.mxu0  ;;  %v2287_v18 = vmax.f32 %v14862_v43, %v2286_v59  ;;  %v13500_v43 = vld [vmem:[%s20692_s0 + $0x190] sm:$0xff]   ;;  %v13505_v53 = vld [vmem:[%s20695_s3 + $0x28] sm:$0xff]  }
 0x10a   :  { %v14962_v17 = vmax.f32 %v2293_v0, 0.0  ;;  %3548 = vrot.lane.b32.xlu0 %v2643_v34, %s14441_s13  ;;  %v3207_v19 = vor.u32 %v3206_v4, %v3205_v55  ;;  %v2284_v23 = vmax.f32 %v14830_v9, %v2283_v11  ;;  %v2481_v24 = vmax.f32 %v2281_v54, 0.0  ;;  %v13502_v9 = vld [vmem:[%s20695_s3 + $0x70] sm:$0xff]   ;;  %13353 = vmatprep.mubr.msk.bf16.mxu0 %vm20708_vm2, %v13500_v43  ;;  %v13506_v0 = vld [vmem:[%s20692_s0 + $0x1a0] sm:$0xff]  }
 0x10b   :  { %v3202_v21 = vrot.slane %v3201_v5, 4  ;;  %v2480_v40 = vmax.f32 %v2278_v7, 0.0  ;;  %v2782_v15 = vrot.slane %v2780_v42, 4  ;;  %v14967_v35 = vpop.f32.mrf.mxu0  ;;  %v2290_v44 = vmax.f32 %v14897_v20, %v2289_v45  ;;  %13065 = vmatprep.subr.bf16.mxu1 %v13502_v9  ;;  %13354 = vmatmul.mubr.msk.bf16.gmra.mxu0 %vm20708_vm2, %v13501_v28  ;;  %v15046_v5 = vld [vmem:[%s20694_s2] ss:$0 sm:$0xff] }
 0x10c   :  { %v2482_v25 = vmax.f32 %v2284_v23, 0.0  ;;  %v2785_v27 = vrot.slane %v2783_v37, 5  ;;  %v923_v20 = vadd.f32 %v14874_v60, %v14678_v47  ;;  %v915_v31 = vadd.f32 %v14678_v47, %v14887_v10  ;;  %13066 = vmatpush3.bf16.msra.mxu1 %v13503_v32  ;;  %v13508_v7 = vld [vmem:[%s20695_s3 + $0x60] sm:$0xff]   ;;  %13357 = vmatprep.mubr.msk.bf16.mxu0 %vm20708_vm2, %v13506_v0 }
 0x10d   :  { %v14981_v29 = vsel %vm14901_vm15, %v3202_v21, %v3207_v19  ;;  %v2596_v30 = vcombine.low %v2480_v40, %v2481_v24  ;;  %v14987_v12 = vpop.f32.mrf.mxu0  ;;  %v14994_v34 = vpack.c.bf16 %v14962_v17, %v14962_v17  ;;  %v15005_v39 = vmax.f32 %v2287_v18, 0.0  ;;  %13067 = vmatprep.subr.bf16.mxu1 %v13504_v38  ;;  %v13509_v23 = vld [vmem:[%s20695_s3 + $0x20] sm:$0xff]  }
 0x10e   :  { %3351 = vrot.lane.b32.xlu1 %v14981_v29, %s14440_s29  ;;  %3757 = vrot.lane.b32.xlu0 %v14884_v6, %s14442_s21  ;;  %v15000_v60 = vpack.c.bf16 %v2482_v25, %v2482_v25  ;;  %v2786_v10 = vor.u32 %v2785_v27, %v2782_v15  ;;  %v926_v48 = vadd.f32 %v14907_v26, %v14678_v47  ;;  %v1902_v37 = vsel %vm1825_vm3, %v923_v20, -inf }
 0x10f   :  { %v15007_v41 = vpack.c.bf16 %v2482_v25, %v2596_v30  ;;  %v15009_v42 = vpack.c.bf16 %v2596_v30, %v2596_v30  ;;  %v15013_v49 = vpop.f32.mrf.mxu0  ;;  %v1563_v50 = vcombine.high %v923_v20, %v923_v20  ;;  %v1561_v51 = vcombine.high %v915_v31, %v915_v31 }
 0x110   :  { %v2787_v6 = vrot.slane %v2786_v10, 4  ;;  %v3067_v26 = vrot.slane %v15000_v60, 5  ;;  %v3427_v54 = vrot.slane %v15000_v60, 6  ;;  %v15029_v59 = vmax.f32 %v2290_v44, 0.0  ;;  %13068 = vmatpush3.bf16.msra.mxu1 %v13505_v53 }
 0x111   :  { %2668 = vst.msk [vmem:[#allocation2 + $0x28] sm:$0xf] %vm1825_vm3, %v15007_v41  ;;  %v12231_v47 = vrot.slane %v15009_v42, 9  ;;  %v12247_v57 = vrot.slane %v15009_v42, 10  ;;  %v15027_v58 = vpop.f32.mrf.mxu0  ;;  %v2791_v1 = vrot.slane %v2789_v52, 5  ;;  %v1901_v62 = vsel %vm1825_vm3, %v1561_v51, -inf  ;;  %13069 = vmatprep.subr.bf16.mxu1 %v13508_v7 }
 0x112   :  { %3550 = vrot.lane.b32.xlu1 %v15007_v41, %s14441_s13  ;;  %3915 = vrot.lane.b32.xlu0 %v14917_v33, %s14443_s30  ;;  %v3071_v63 = vrot.slane %v14994_v34, 5  ;;  %v1898_v55 = vsel %vm1825_vm3, %v915_v31, -inf  ;;  %v1903_v4 = vmax.f32 %v1901_v62, %v1902_v37  ;;  %v1564_v45 = vcombine.high %v926_v48, %v926_v48  ;;  %v13507_v52 = vld [vmem:[%s20692_s0 + $0x1a8] sm:$0xff]  }
 0x113   :  { %v918_v46 = vadd.f32 %v15046_v5, %v14921_v36  ;;  %v15050_v33 = vpop.f32.mrf.mxu0  ;;  %v2792_v11 = vsel %vm14825_vm12, %v2787_v6, %v2791_v1  ;;  %v15061_v18 = vsel %vm1825_vm3, %v1563_v50, -inf  ;;  %v2794_v19 = vshrl.u32 %v15009_v42, 16  ;;  %13358 = vmatmul.mubr.msk.bf16.gmra.mxu0 %vm20708_vm2, %v13507_v52  ;;  %v13510_v6 = vld [vmem:[%s20695_s3 + $0x58] sm:$0xff]  }
 0x114   :  { %v2797_v36 = vshll.u32 %v15009_v42, 16  ;;  %v15071_v21 = vsel %vm14772_vm11, %v12231_v47, %v3067_v26  ;;  %v15075_v40 = vsel %vm14763_vm8, %v12247_v57, %v3427_v54  ;;  %v1907_v24 = vsel %vm1825_vm3, %v926_v48, -inf  ;;  %13070 = vmatpush3.bf16.msra.mxu1 %v13509_v23 }
 0x115   :  { %v1562_v15 = vcombine.high %v918_v46, %v918_v46  ;;  %v15078_v44 = vpop.f32.mrf.mxu0  ;;  %v1904_v25 = vsel %vm1825_vm3, %v918_v46, -inf  ;;  %v2796_v27 = vrot.slane %v2794_v19, 4  ;;  %v2803_v28 = vshll.u32 %v15000_v60, 16  ;;  %13071 = vmatprep.subr.bf16.mxu1 %v13510_v6 }
 0x116   :  { %3759 = vrot.lane.b32.xlu1 %v15071_v21, %s14442_s21  ;;  %2991 = vrot.lane.b32.xlu0 %v2792_v11, %s14439_s24  ;;  %v2799_v43 = vrot.slane %v2797_v36, 5  ;;  %v15086_v9 = vsel %vm1825_vm3, %v1903_v4, -inf  ;;  %v1910_v30 = vsel %vm1825_vm3, %v1564_v45, -inf  ;;  %v931_v31 = vadd.f32 %v15046_v5, %v14943_v61  ;;  %v13511_v61 = vld [vmem:[%s20695_s3 + $0x18] sm:$0xff]  }
 0x117   :  { %v1899_v20 = vsel %vm1825_vm3, %v1562_v15, -inf  ;;  %v15092_v32 = vpop.f32.mrf.mxu0  ;;  %v15096_v42 = vadd.f32 %v15046_v5, %v14933_v56  ;;  %v3209_v48 = vrot.slane %v2794_v19, 5  ;;  %v1906_v50 = vmax.f32 %v1904_v25, %v15061_v18 }
 0x118   :  { %v1900_v10 = vmax.f32 %v1898_v55, %v1899_v20  ;;  %v2800_v38 = vor.u32 %v2799_v43, %v2796_v27  ;;  %v1565_v37 = vcombine.high %v931_v31, %v931_v31  ;;  %v3210_v51 = vrot.slane %v2797_v36, 6  ;;  %13072 = vmatpush3.bf16.msra.mxu1 %v13511_v61  ;;  %v13514_v27 = vld [vmem:[%s20695_s3 + $0x48] sm:$0xff]  }
 0x119   :  { %v3213_v53 = vshrl.u32 %v15000_v60, 16  ;;  %v15107_v56 = vpop.f32.mrf.mxu0  ;;  %v2805_v26 = vrot.slane %v2803_v28, 5  ;;  %v3216_v57 = vrot.slane %v2803_v28, 6  ;;  %v942_v54 = vadd.f32 %v15046_v5, %v14960_v14  ;;  %v13512_v14 = vld [vmem:[%s20695_s3 + $0x50] sm:$0xff]   ;;  %v13515_v43 = vld [vmem:[%s20695_s3 + $0x8] sm:$0xff]  }
 0x11a   :  { %3917 = vrot.lane.b32.xlu1 %v15075_v40, %s14443_s30  ;;  %3684 = vrot.lane.b32.xlu0 %v2792_v11, %s14444_s28  ;;  %v2801_v47 = vrot.slane %v2800_v38, 4  ;;  %v1908_v1 = vsel %vm1825_vm3, %v1565_v37, -inf  ;;  %v3211_v62 = vor.u32 %v3210_v51, %v3209_v48  ;;  %v934_v60 = vadd.f32 %v15046_v5, %v14967_v35  ;;  %v13513_v35 = vld [vmem:[%s20695_s3 + $0x10] sm:$0xff]   ;;  %v13516_v37 = vld [vmem:[%s20695_s3 + $0x40] sm:$0xff]  }
 0x11b   :  { %v3215_v0 = vrot.slane %v3213_v53, 5  ;;  %v15117_v55 = vpop.f32.mrf.mxu0  ;;  %v2294_v4 = vsel %vm1825_vm3, %v1900_v10, -inf  ;;  %v1567_v45 = vcombine.high %v15096_v42, %v15096_v42  ;;  %v1909_v46 = vmax.f32 %v1907_v24, %v1908_v1  ;;  %13073 = vmatprep.subr.bf16.mxu1 %v13512_v14 }
 0x11c   :  { %v1913_v52 = vsel %vm1825_vm3, %v931_v31, -inf  ;;  %v15131_v7 = vsel %vm14825_vm12, %v2801_v47, %v2805_v26  ;;  %v3212_v11 = vrot.slane %v3211_v62, 4  ;;  %v1566_v18 = vcombine.high %v934_v60, %v934_v60  ;;  %13074 = vmatpush3.bf16.msra.mxu1 %v13513_v35 }
 0x11d   :  { %v1911_v19 = vsel %vm1825_vm3, %v934_v60, -inf  ;;  %v2295_v36 = vsel %vm1825_vm3, %v1909_v46, -inf  ;;  %v1568_v23 = vcombine.high %v942_v54, %v942_v54  ;;  %v2597_v15 = vcombine.low %v15005_v39, %v15029_v59  ;;  %v15141_v25 = vpop.f32.mrf.mxu0  ;;  %13075 = vmatprep.subr.bf16.mxu1 %v13514_v27 }
 0x11e   :  { %3686 = vrot.lane.b32.xlu1 %v15131_v7, %s14444_s28  ;;  %3842 = vrot.lane.b32.xlu0 %v14981_v29, %s14445_s15  ;;  %v1912_v24 = vmax.f32 %v1910_v30, %v1911_v19  ;;  %v2300_v28 = vsel %vm1825_vm3, %v1906_v50, -inf  ;;  %v2296_v29 = vmax.f32 %v2294_v4, %v2295_v36  ;;  %v3217_v20 = vor.u32 %v3216_v57, %v3215_v0 }
 0x11f   :  { %v1914_v31 = vsel %vm1825_vm3, %v1566_v18, -inf  ;;  %v15153_v59 = vpack.c.bf16 %v14962_v17, %v2597_v15  ;;  %v15155_v10 = vpack.c.bf16 %v2597_v15, %v2597_v15  ;;  %v15159_v38 = vsel %vm1825_vm3, %v15096_v42, -inf }
 0x120   :  { %v1915_v30 = vmax.f32 %v1913_v52, %v1914_v31  ;;  %v2298_v39 = vsel %vm1825_vm3, %v1912_v24, -inf  ;;  %v15163_v48 = vsel %vm14901_vm15, %v3212_v11, %v3217_v20  ;;  %v955_v61 = vadd.f32 %v15046_v5, %v14987_v12  ;;  %13076 = vmatpush3.bf16.msra.mxu1 %v13515_v43  ;;  %v13521_v20 = vld [vmem:[%s20692_s0 + $0x1b0] sm:$0xff]   ;;  %v13522_v31 = vld [vmem:[%s20692_s0 + $0x1b8] sm:$0xff]  }
 0x121   :  { %v2299_v6 = vmax.f32 %v15086_v9, %v2298_v39  ;;  %v1917_v17 = vsel %vm1825_vm3, %v1568_v23, -inf  ;;  %v1922_v42 = vsel %vm1825_vm3, %v942_v54, -inf  ;;  %2669 = vst.msk [vmem:[#allocation2 + $0x3c] sm:$0xf] %vm1825_vm3, %v15153_v59  ;;  %v947_v12 = vadd.f32 %v15046_v5, %v15013_v49  ;;  %v15179_v9 = vpop.f32.mrf.mxu0  ;;  %v13517_v49 = vld [vmem:[%s20695_s3] sm:$0xff]   ;;  %13077 = vmatprep.subr.bf16.mxu1 %v13516_v37  ;;  %13361 = vmatprep.mubr.msk.bf16.mxu0 %vm20708_vm2, %v13521_v20 }
 0x122   :  { %3844 = vrot.lane.b32.xlu1 %v15163_v48, %s14445_s15  ;;  %3982 = vrot.lane.b32.xlu0 %v15007_v41, %s14446_s1  ;;  %v2301_v50 = vsel %vm1825_vm3, %v1915_v30, -inf  ;;  %v2486_v51 = vmax.f32 %v2296_v29, 0.0  ;;  %v1571_v53 = vcombine.high %v955_v61, %v955_v61  ;;  %v12232_v47 = vrot.slane %v15155_v10, 9 }
 0x123   :  { %v2302_v41 = vmax.f32 %v2300_v28, %v2301_v50  ;;  %v1569_v26 = vcombine.high %v947_v12, %v947_v12  ;;  %v1919_v57 = vsel %vm1825_vm3, %v1567_v45, -inf  ;;  %v958_v54 = vadd.f32 %v15046_v5, %v15027_v58  ;;  %v15200_v45 = vpop.f32.mrf.mxu0  ;;  %13362 = vmatmul.mubr.msk.bf16.gmra.mxu0 %vm20708_vm2, %v13522_v31 }
 0x124   :  { %v2487_v1 = vmax.f32 %v2299_v6, 0.0  ;;  %v1931_v62 = vsel %vm1825_vm3, %v955_v61, -inf  ;;  %v1920_v0 = vsel %vm1825_vm3, %v947_v12, -inf  ;;  %v950_v4 = vadd.f32 %v15046_v5, %v15050_v33  ;;  %13078 = vmatpush3.bf16.msra.mxu1 %v13517_v49 }
 0x125   :  { %v1923_v60 = vsel %vm1825_vm3, %v1569_v26, -inf  ;;  %v1572_v58 = vcombine.high %v958_v54, %v958_v54  ;;  %v1918_v46 = vmax.f32 %v15159_v38, %v1917_v17  ;;  %v2488_v52 = vmax.f32 %v2302_v41, 0.0  ;;  %v15221_v29 = vpop.f32.mrf.mxu0 }
 0x126   :  { %3984 = vrot.lane.b32.xlu1 %v15153_v59, %s14446_s1  ;;  %3125 = vrot.lane.b32.xlu0 %v15071_v21, %s14438_s23  ;;  %v1926_v14 = vsel %vm1825_vm3, %v1571_v53, -inf  ;;  %v15208_v35 = vsel %vm14772_vm11, %v12232_v47, %v3071_v63  ;;  %v1929_v11 = vsel %vm1825_vm3, %v958_v54, -inf  ;;  %v1570_v19 = vcombine.high %v950_v4, %v950_v4 }
 0x127   :  { %v1932_v18 = vsel %vm1825_vm3, %v1572_v58, -inf  ;;  %v1925_v33 = vsel %vm1825_vm3, %v950_v4, -inf  ;;  %v2598_v36 = vcombine.low %v2486_v51, %v2487_v1  ;;  %v1924_v23 = vmax.f32 %v1922_v42, %v1923_v60  ;;  %v15247_v53 = vpop.f32.mrf.mxu0 }
 0x128   :  { %v1933_v24 = vmax.f32 %v1931_v62, %v1932_v18  ;;  %v12248_v15 = vrot.slane %v15155_v10, 10  ;;  %v1927_v63 = vmax.f32 %v1925_v33, %v1926_v14  ;;  %v1928_v27 = vsel %vm1825_vm3, %v1570_v19, -inf  ;;  %v13524_v18 = vld [vmem:[%s20692_s0 + $0x1c8] sm:$0xff]  }
 0x129   :  { %v2808_v43 = vshrl.u32 %v15155_v10, 16  ;;  %v2811_v28 = vshll.u32 %v15155_v10, 16  ;;  %v1921_v30 = vmax.f32 %v1919_v57, %v1920_v0  ;;  %v1930_v39 = vmax.f32 %v1928_v27, %v1929_v11  ;;  %v15267_v14 = vpop.f32.mrf.mxu0  ;;  %v13523_v11 = vld [vmem:[%s20692_s0 + $0x1c0] sm:$0xff]  }
 0x12a   :  { %3127 = vrot.lane.b32.xlu1 %v15208_v35, %s14438_s23  ;;  %3485 = vrot.lane.b32.xlu0 %v15075_v40, %s14437_s22  ;;  %v3431_v38 = vrot.slane %v14994_v34, 6  ;;  %v2817_v6 = vshll.u32 %v14994_v34, 16  ;;  %v2309_v10 = vsel %vm1825_vm3, %v1924_v23, -inf  ;;  %v2310_v42 = vsel %vm1825_vm3, %v1933_v24, -inf }
 0x12b   :  { %v2810_v61 = vrot.slane %v2808_v43, 4  ;;  %v2813_v17 = vrot.slane %v2811_v28, 5  ;;  %v2303_v12 = vsel %vm1825_vm3, %v1918_v46, -inf  ;;  %v15240_v37 = vpack.c.bf16 %v2598_v36, %v2598_v36  ;;  %13365 = vmatprep.mubr.msk.bf16.mxu0 %vm20708_vm2, %v13523_v11 }
 0x12c   :  { %v15236_v50 = vsel %vm14763_vm8, %v12248_v15, %v3431_v38  ;;  %v2304_v51 = vsel %vm1825_vm3, %v1927_v63, -inf  ;;  %v15249_v47 = vpack.c.bf16 %v2488_v52, %v2488_v52  ;;  %v2306_v26 = vsel %vm1825_vm3, %v1921_v30, -inf  ;;  %13366 = vmatmul.mubr.msk.bf16.gmra.mxu0 %vm20708_vm2, %v13524_v18 }
 0x12d   :  { %v2814_v41 = vor.u32 %v2813_v17, %v2810_v61  ;;  %v2307_v57 = vsel %vm1825_vm3, %v1930_v39, -inf  ;;  %v15253_v54 = vpack.c.bf16 %v2488_v52, %v2598_v36  ;;  %v2311_v49 = vmax.f32 %v2309_v10, %v2310_v42 }
 0x12e   :  { %3487 = vrot.lane.b32.xlu1 %v15236_v50, %s14437_s22  ;;  %4191 = vrot.lane.b32.xlu0 %v15071_v21, %s14447_s16  ;;  %v2819_v62 = vrot.slane %v2817_v6, 5  ;;  %v2305_v0 = vmax.f32 %v2303_v12, %v2304_v51  ;;  %v3219_v60 = vrot.slane %v2808_v43, 5  ;;  %v3220_v58 = vrot.slane %v2811_v28, 6 }
 0x12f   :  { %v2815_v1 = vrot.slane %v2814_v41, 4  ;;  %2670 = vst.msk [vmem:[#allocation2 + $0x50] sm:$0xf] %vm1825_vm3, %v15253_v54  ;;  %v2308_v21 = vmax.f32 %v2306_v26, %v2307_v57  ;;  %v3223_v46 = vshrl.u32 %v14994_v34, 16  ;;  %v2822_v52 = vshrl.u32 %v15240_v37, 16 }
 0x130   :  { %v2831_v19 = vshll.u32 %v15249_v47, 16  ;;  %v2491_v34 = vmax.f32 %v2311_v49, 0.0  ;;  %v3221_v36 = vor.u32 %v3220_v58, %v3219_v60 }
 0x131   :  { %v15263_v4 = vsel %vm14825_vm12, %v2815_v1, %v2819_v62  ;;  %v2824_v33 = vrot.slane %v2822_v52, 4 }
 0x132   :  { %4193 = vrot.lane.b32.xlu1 %v15208_v35, %s14447_s16  ;;  %4349 = vrot.lane.b32.xlu0 %v15075_v40, %s14448_s17  ;;  %4533 = vst.msk [vmem:[#allocation2 + $0xc] sm:$0xf] %vm1825_vm3, %v15263_v4  ;;  %v2825_v40 = vshll.u32 %v15240_v37, 16 }
 0x134   :  { %v2827_v23 = vrot.slane %v2825_v40, 5 }
 0x135   :  { %14 = vsyncpa [#allocation5], 0  ;;  %v2489_v24 = vmax.f32 %v2305_v0, 0.0  ;;  %v2490_v15 = vmax.f32 %v2308_v21, 0.0  ;;  %v3225_v63 = vrot.slane %v3223_v46, 5  ;;  %v3226_v27 = vrot.slane %v2817_v6, 6  ;;  %v15285_v43 = vpop.f32.mrf.mxu0 }
 0x136   :  { %4351 = vrot.lane.b32.xlu1 %v15236_v50, %s14448_s17  ;;  %2993 = vrot.lane.b32.xlu0 %v15131_v7, %s14439_s24  ;;  %v2828_v28 = vor.u32 %v2827_v23, %v2824_v33  ;;  %v2833_v20 = vrot.slane %v2831_v19, 5  ;;  %v963_v31 = vadd.f32 %v15046_v5, %v15092_v32  ;;  %v966_v30 = vadd.f32 %v15046_v5, %v15117_v55  ;;  %v13526_v60 = vld [vmem:[%s20692_s0 + $0x1d8] sm:$0xff]   ;;  %s14449_s12 = smov 8   ;;  %s14450_s14 = smov 56  }
 0x137   :  { %v15293_v39 = vpack.c.bf16 %v2491_v34, %v2491_v34  ;;  %v3222_v38 = vrot.slane %v3221_v36, 4  ;;  %v12233_v61 = vrot.slane %v15240_v37, 9  ;;  %v974_v6 = vadd.f32 %v15046_v5, %v15107_v56  ;;  %v15306_v12 = vpop.f32.mrf.mxu0  ;;  %s14451_s18 = smov 104   ;;  %s14455_s19 = smov [#allocation4]  }
 0x138   :  { %v2829_v17 = vrot.slane %v2828_v28, 4  ;;  %v2599_v10 = vcombine.low %v2489_v24, %v2490_v15  ;;  %v3075_v32 = vrot.slane %v15249_v47, 5  ;;  %v12249_v55 = vrot.slane %v15240_v37, 10  ;;  %s12042_s20 = sshll.u32 %s14455_s19, 4  ;;  %s12043_s20 = int_to_ptr.vmem [resolvable:$true] %s12042_s20 }
 0x139   :  { %v971_v42 = vadd.f32 %v15046_v5, %v15078_v44  ;;  %v3227_v51 = vor.u32 %v3226_v27, %v3225_v63  ;;  %v1573_v41 = vcombine.high %v963_v31, %v963_v31  ;;  %v1574_v26 = vcombine.high %v966_v30, %v966_v30  ;;  %v15316_v0 = vpop.f32.mrf.mxu0  ;;  %v13525_v44 = vld [vmem:[%s20692_s0 + $0x1d0] sm:$0xff]   ;;  %p14419_p1 = scmp.lt.s32.totalorder %s12043_s20, %s12043_s20 }
 0x13a   :  { %2995 = vrot.lane.b32.xlu1 %v15263_v4, %s14439_s24  ;;  %3353 = vrot.lane.b32.xlu0 %v15163_v48, %s14440_s29  ;;  %v15310_v56 = vsel %vm14825_vm12, %v2829_v17, %v2833_v20  ;;  %v3229_v57 = vrot.slane %v2822_v52, 5  ;;  %v3230_v49 = vrot.slane %v2825_v40, 6  ;;  %v15314_v62 = vpack.c.bf16 %v2491_v34, %v2599_v10 }
 0x13b   :  { %4534 = vst.msk [vmem:[#allocation2 + $0x20] sm:$0xf] %vm1825_vm3, %v15310_v56  ;;  %v1575_v1 = vcombine.high %v971_v42, %v971_v42  ;;  %v15326_v58 = vsel %vm14901_vm15, %v3222_v38, %v3227_v51  ;;  %v3435_v21 = vrot.slane %v15249_v47, 6  ;;  %v1576_v46 = vcombine.high %v974_v6, %v974_v6  ;;  %13369 = vmatprep.mubr.msk.bf16.mxu0 %vm20708_vm2, %v13525_v44  ;;  %v15353_v27 = vpop.f32.mrf.mxu0 }
 0x13c   :  { %v979_v52 = vadd.f32 %v15046_v5, %v15179_v9  ;;  %v15337_v11 = vsel %vm14772_vm11, %v12233_v61, %v3075_v32  ;;  %v3233_v18 = vshrl.u32 %v15249_v47, 16  ;;  %v1934_v40 = vsel %vm1825_vm3, %v963_v31, -inf  ;;  %2671 = vst.msk [vmem:[#allocation2 + $0x64] sm:$0xf] %vm1825_vm3, %v15314_v62  ;;  %13370 = vmatmul.mubr.msk.bf16.gmra.mxu0 %vm20708_vm2, %v13526_v60 }
 0x13d   :  { %20819 = vst [vmem:[#allocation8_spill] sm:$0xff] %v15337_v11  ;;  %v1935_v34 = vsel %vm1825_vm3, %v1574_v26, -inf  ;;  %v1938_v9 = vsel %vm1825_vm3, %v971_v42, -inf  ;;  %v1937_v33 = vsel %vm1825_vm3, %v1573_v41, -inf  ;;  %v1943_v36 = vsel %vm1825_vm3, %v974_v6, -inf }
 0x13e   :  { %3355 = vrot.lane.b32.xlu1 %v15326_v58, %s14440_s29  ;;  %4118 = vrot.lane.b32.xlu0 %v15131_v7, %s14449_s12  ;;  %v1577_v7 = vcombine.high %v979_v52, %v979_v52  ;;  %v3231_v23 = vor.u32 %v3230_v49, %v3229_v57  ;;  %v1941_v24 = vsel %vm1825_vm3, %v1575_v1, -inf  ;;  %v990_v15 = vadd.f32 %v15046_v5, %v15200_v45 }
 0x13f   :  { %v2642_v63 = vpack.c.bf16 %v14740_v2, %v14742_v3  ;;  %v1946_v28 = vsel %vm1825_vm3, %v1576_v46, -inf  ;;  %v1936_v20 = vmax.f32 %v1934_v40, %v1935_v34  ;;  %v982_v38 = vadd.f32 %v15046_v5, %v15221_v29 }
 0x140   :  { %v1944_v31 = vsel %vm1825_vm3, %v1577_v7, -inf  ;;  %v1939_v2 = vmax.f32 %v1937_v33, %v1938_v9  ;;  %v1940_v3 = vsel %vm1825_vm3, %v966_v30, -inf  ;;  %v987_v45 = vadd.f32 %v15046_v5, %v15141_v25  ;;  %v15378_v25 = vpop.f32.mrf.mxu0 }
 0x141   :  { %v1945_v61 = vmax.f32 %v1943_v36, %v1944_v31  ;;  %2666 = vst.msk [vmem:[#allocation2] sm:$0xf] %vm1825_vm3, %v2642_v63  ;;  %v1949_v17 = vsel %vm1825_vm3, %v979_v52, -inf  ;;  %v1578_v6 = vcombine.high %v982_v38, %v982_v38  ;;  %v1947_v29 = vsel %vm1825_vm3, %v982_v38, -inf }
 0x142   :  { %4120 = vrot.lane.b32.xlu1 %v15263_v4, %s14449_s12  ;;  %4276 = vrot.lane.b32.xlu0 %v15163_v48, %s14450_s14  ;;  %v1003_v32 = vadd.f32 %v15046_v5, %v15247_v53  ;;  %v15372_v42 = vpack.c.bf16 %v2599_v10, %v2599_v10  ;;  %v15376_v48 = vrot.slane %v2831_v19, 6  ;;  %v1580_v30 = vcombine.high %v990_v15, %v990_v15  ;;  %v15399_v36 = vpop.f32.mrf.mxu0 }
 0x143   :  { %v1948_v51 = vmax.f32 %v1946_v28, %v1947_v29  ;;  %v1942_v41 = vmax.f32 %v1940_v3, %v1941_v24  ;;  %v2312_v26 = vsel %vm1825_vm3, %v1936_v20, -inf  ;;  %v2313_v57 = vsel %vm1825_vm3, %v1945_v61, -inf }
 0x144   :  { %v1950_v49 = vsel %vm1825_vm3, %v1578_v6, -inf  ;;  %v2315_v53 = vsel %vm1825_vm3, %v1939_v2, -inf  ;;  %v1579_v19 = vcombine.high %v987_v45, %v987_v45  ;;  %v15389_v44 = vrot.slane %v3231_v23, 4 }
 0x145   :  { %v1951_v10 = vmax.f32 %v1949_v17, %v1950_v49  ;;  %v2316_v1 = vsel %vm1825_vm3, %v1948_v51, -inf  ;;  %v15391_v60 = vrot.slane %v3233_v18, 5  ;;  %v1583_v46 = vcombine.high %v1003_v32, %v1003_v32 }
 0x146   :  { %4278 = vrot.lane.b32.xlu1 %v15326_v58, %s14450_s14  ;;  %3552 = vrot.lane.b32.xlu0 %v15153_v59, %s14441_s13  ;;  %v995_v52 = vadd.f32 %v15046_v5, %v15267_v14  ;;  %v1952_v40 = vsel %vm1825_vm3, %v987_v45, -inf  ;;  %v2314_v34 = vmax.f32 %v2312_v26, %v2313_v57  ;;  %v1953_v9 = vsel %vm1825_vm3, %v1580_v30, -inf }
 0x147   :  { %v1006_v33 = vadd.f32 %v15046_v5, %v15285_v43  ;;  %v2318_v7 = vsel %vm1825_vm3, %v1942_v41, -inf  ;;  %v2317_v23 = vmax.f32 %v2315_v53, %v2316_v1  ;;  %v2319_v18 = vsel %vm1825_vm3, %v1951_v10, -inf }
 0x148   :  { %v1581_v24 = vcombine.high %v995_v52, %v995_v52  ;;  %v1958_v14 = vsel %vm1825_vm3, %v990_v15, -inf  ;;  %v1955_v63 = vsel %vm1825_vm3, %v1579_v19, -inf  ;;  %v1956_v43 = vsel %vm1825_vm3, %v995_v52, -inf  ;;  %v15416_v15 = vpop.f32.mrf.mxu0 }
 0x149   :  { %v1584_v28 = vcombine.high %v1006_v33, %v1006_v33  ;;  %v1954_v20 = vmax.f32 %v1952_v40, %v1953_v9  ;;  %v1962_v31 = vsel %vm1825_vm3, %v1583_v46, -inf  ;;  %v1967_v38 = vsel %vm1825_vm3, %v1003_v32, -inf }
 0x14a   :  { %3554 = vrot.lane.b32.xlu1 %v15253_v54, %s14441_s13  ;;  %4416 = vrot.lane.b32.xlu0 %v15153_v59, %s14451_s18  ;;  %v1959_v2 = vsel %vm1825_vm3, %v1581_v24, -inf  ;;  %v2492_v3 = vmax.f32 %v2314_v34, 0.0  ;;  %v2320_v45 = vmax.f32 %v2318_v7, %v2319_v18  ;;  %v998_v59 = vadd.f32 %v15046_v5, %v15306_v12  ;;  %v15431_v52 = vpop.f32.mrf.mxu0  ;;  %v13527_v18 = vld [vmem:[%s20692_s0 + $0x1e0] sm:$0xff]   ;;  %v13528_v24 = vld [vmem:[%s20692_s0 + $0x1e8] sm:$0xff]  }
 0x14b   :  { %v1968_v61 = vsel %vm1825_vm3, %v1584_v28, -inf  ;;  %v2493_v17 = vmax.f32 %v2317_v23, 0.0  ;;  %v1957_v6 = vmax.f32 %v1955_v63, %v1956_v43  ;;  %v1965_v29 = vsel %vm1825_vm3, %v1006_v33, -inf  ;;  %13373 = vmatprep.mubr.msk.bf16.mxu0 %vm20708_vm2, %v13527_v18 }
 0x14c   :  { %v2836_v30 = vshrl.u32 %v15372_v42, 16  ;;  %v1960_v32 = vmax.f32 %v1958_v14, %v1959_v2  ;;  %v1582_v51 = vcombine.high %v998_v59, %v998_v59  ;;  %v1961_v41 = vsel %vm1825_vm3, %v998_v59, -inf  ;;  %13374 = vmatmul.mubr.msk.bf16.gmra.mxu0 %vm20708_vm2, %v13528_v24 }
 0x14d   :  { %v2839_v12 = vshll.u32 %v15372_v42, 16  ;;  %v1969_v26 = vmax.f32 %v1967_v38, %v1968_v61  ;;  %v1963_v57 = vmax.f32 %v1961_v41, %v1962_v31  ;;  %v2845_v53 = vshll.u32 %v15293_v39, 16  ;;  %v15452_v38 = vpop.f32.mrf.mxu0 }
 0x14e   :  { %4418 = vrot.lane.b32.xlu1 %v15253_v54, %s14451_s18  ;;  %3761 = vrot.lane.b32.xlu0 %v15208_v35, %s14442_s21  ;;  %v2838_v49 = vrot.slane %v2836_v30, 4  ;;  %v3237_v19 = vor.u32 %v15376_v48, %v15391_v60  ;;  %v12234_v10 = vrot.slane %v15372_v42, 9  ;;  %v1964_v1 = vsel %vm1825_vm3, %v1582_v51, -inf }
 0x14f   :  { %v2841_v46 = vrot.slane %v2839_v12, 5  ;;  %v2321_v40 = vsel %vm1825_vm3, %v1954_v20, -inf  ;;  %v2494_v34 = vmax.f32 %v2320_v45, 0.0  ;;  %v1966_v9 = vmax.f32 %v1964_v1, %v1965_v29  ;;  %v15491_v51 = vpop.f32.mrf.mxu0  ;;  %v13530_v1 = vld [vmem:[%s20692_s0 + $0x1f8] sm:$0xff]  }
 0x150   :  { %v2322_v33 = vsel %vm1825_vm3, %v1963_v57, -inf  ;;  %v2600_v48 = vcombine.low %v2492_v3, %v2493_v17  ;;  %v2324_v60 = vsel %vm1825_vm3, %v1957_v6, -inf  ;;  %v2847_v23 = vrot.slane %v2845_v53, 5 }
 0x151   :  { %v2842_v7 = vor.u32 %v2841_v46, %v2838_v49  ;;  %v3079_v14 = vrot.slane %v15293_v39, 5  ;;  %v2327_v63 = vsel %vm1825_vm3, %v1960_v32, -inf  ;;  %v2328_v43 = vsel %vm1825_vm3, %v1969_v26, -inf }
 0x152   :  { %3763 = vrot.lane.b32.xlu1 %v15337_v11, %s14442_s21  ;;  %3919 = vrot.lane.b32.xlu0 %v15236_v50, %s14443_s30  ;;  %v2325_v28 = vsel %vm1825_vm3, %v1966_v9, -inf  ;;  %v2323_v20 = vmax.f32 %v2321_v40, %v2322_v33  ;;  %v15461_v2 = vsel %vm14763_vm8, %v12249_v55, %v3435_v21  ;;  %v12954_v3 = vpack.c.bf16 %v2494_v34, %v2494_v34 }
 0x153   :  { %v2843_v31 = vrot.slane %v2842_v7, 4  ;;  %20820 = vst [vmem:[#allocation9_spill] sm:$0xff] %v15461_v2  ;;  %v12250_v45 = vrot.slane %v15372_v42, 10  ;;  %v2326_v61 = vmax.f32 %v2324_v60, %v2325_v28  ;;  %v12953_v59 = vpack.c.bf16 %v2600_v48, %v2600_v48  ;;  %v15520_v7 = vpop.f32.mrf.mxu0 }
 0x154   :  { %v3439_v47 = vrot.slane %v15293_v39, 6  ;;  %v2329_v37 = vmax.f32 %v2327_v63, %v2328_v43  ;;  %v15477_v21 = vsel %vm14901_vm15, %v15389_v44, %v3237_v19  ;;  %v15481_v42 = vsel %vm14772_vm11, %v12234_v10, %v3079_v14  ;;  %v13529_v10 = vld [vmem:[%s20692_s0 + $0x1f0] sm:$0xff]  }
 0x155   :  { %v15472_v55 = vsel %vm14825_vm12, %v2843_v31, %v2847_v23  ;;  %20821 = vst [vmem:[#allocation10_spill] sm:$0xff] %v15477_v21  ;;  %20822 = vst [vmem:[#allocation11_spill] sm:$0xff] %v15481_v42  ;;  %v2495_v17 = vmax.f32 %v2323_v20, 0.0  ;;  %v15487_v6 = vrot.slane %v2839_v12, 6  ;;  %v15489_v29 = vpack.c.bf16 %v2494_v34, %v2600_v48  ;;  %13377 = vmatprep.mubr.msk.bf16.mxu0 %vm20708_vm2, %v13529_v10 }
 0x156   :  { %3921 = vrot.lane.b32.xlu1 %v15461_v2, %s14443_s30  ;;  %4557 = vrot.lane.b32.xlu0 %v15208_v35, %s14439_s24  ;;  %4535 = vst.msk [vmem:[#allocation2 + $0x34] sm:$0xf] %vm1825_vm3, %v15472_v55  ;;  %v15485_v35 = vrot.slane %v2836_v30, 5  ;;  %v12235_v32 = vrot.slane %v12953_v59, 9  ;;  %v2496_v41 = vmax.f32 %v2326_v61, 0.0  ;;  %v3083_v44 = vrot.slane %v12954_v3, 5 }
 0x157   :  { %v12251_v26 = vrot.slane %v12953_v59, 10  ;;  %v3443_v57 = vrot.slane %v12954_v3, 6  ;;  %v15499_v30 = vsel %vm14763_vm8, %v12250_v45, %v3439_v47  ;;  %v2497_v12 = vmax.f32 %v2329_v37, 0.0  ;;  %2672 = vst.msk [vmem:[#allocation2 + $0x78] sm:$0xf] %vm1825_vm3, %v15489_v29  ;;  %13378 = vmatmul.mubr.msk.bf16.gmra.mxu0 %vm20708_vm2, %v13530_v1 }
 0x158   :  { %20823 = vst [vmem:[#allocation12_spill] sm:$0xff] %v15499_v30  ;;  %v2850_v49 = vshrl.u32 %v12953_v59, 16  ;;  %v2853_v19 = vshll.u32 %v12953_v59, 16  ;;  %v15512_v46 = vsel %vm14772_vm11, %v12235_v32, %v3083_v44  ;;  %v2859_v34 = vshll.u32 %v12954_v3, 16 }
 0x159   :  { %20824 = vst [vmem:[#allocation13_spill] sm:$0xff] %v15512_v46  ;;  %v15516_v40 = vsel %vm14763_vm8, %v12251_v26, %v3443_v57  ;;  %v3241_v9 = vor.u32 %v15487_v6, %v15485_v35  ;;  %v2601_v23 = vcombine.low %v2495_v17, %v2496_v41  ;;  %v3253_v24 = vshrl.u32 %v12954_v3, 16  ;;  %v15539_v17 = vpop.f32.mrf.mxu0 }
 0x15a   :  { %4559 = vrot.lane.b32.xlu1 %v15337_v11, %s14439_s24  ;;  %4713 = vrot.lane.b32.xlu0 %v15236_v50, %s14440_s29  ;;  %v3243_v50 = vshrl.u32 %v15293_v39, 16  ;;  %20825 = vst [vmem:[#allocation14_spill] sm:$0xff] %v15516_v40  ;;  %v2852_v33 = vrot.slane %v2850_v49, 4  ;;  %v2855_v48 = vrot.slane %v2853_v19, 5  ;;  %v3249_v60 = vrot.slane %v2850_v49, 5 }
 0x15b   :  { %v3250_v18 = vrot.slane %v2853_v19, 6  ;;  %v3256_v14 = vrot.slane %v2859_v34, 6  ;;  %v2861_v43 = vrot.slane %v2859_v34, 5  ;;  %v1019_v28 = vadd.f32 %v15046_v5, %v15316_v0 }
 0x15c   :  { %v2856_v63 = vor.u32 %v2855_v48, %v2852_v33  ;;  %v1011_v20 = vadd.f32 %v15046_v5, %v15353_v27  ;;  %v15534_v31 = vrot.slane %v2845_v53, 6  ;;  %v3255_v45 = vrot.slane %v3253_v24, 5 }
 0x15d   :  { %v3251_v3 = vor.u32 %v3250_v18, %v3249_v60  ;;  %v1022_v61 = vadd.f32 %v15046_v5, %v15378_v25  ;;  %v1587_v47 = vcombine.high %v1019_v28, %v1019_v28  ;;  %v15541_v0 = vpack.c.bf16 %v2497_v12, %v2497_v12  ;;  %v15576_v60 = vpop.f32.mrf.mxu0  ;;  %v13531_v18 = vld [vmem:[%s20692_s0 + $0x200] sm:$0xff]  }
 0x15e   :  { %4715 = vrot.lane.b32.xlu1 %v15461_v2, %s14440_s29  ;;  %3688 = vrot.lane.b32.xlu0 %v15263_v4, %s14444_s28  ;;  %v2857_v59 = vrot.slane %v2856_v63, 4  ;;  %v1974_v4 = vsel %vm1825_vm3, %v1019_v28, -inf  ;;  %v1585_v37 = vcombine.high %v1011_v20, %v1011_v20  ;;  %v15543_v32 = vpack.c.bf16 %v2601_v23, %v2601_v23 }
 0x15f   :  { %v3252_v27 = vrot.slane %v3251_v3, 4  ;;  %v3257_v41 = vor.u32 %v3256_v14, %v3255_v45  ;;  %v1970_v53 = vsel %vm1825_vm3, %v1011_v20, -inf  ;;  %v1588_v26 = vcombine.high %v1022_v61, %v1022_v61  ;;  %13381 = vmatprep.mubr.msk.bf16.mxu0 %vm20708_vm2, %v13531_v18 }
 0x160   :  { %v15551_v25 = vsel %vm14825_vm12, %v2857_v59, %v2861_v43  ;;  %v1973_v44 = vsel %vm1825_vm3, %v1585_v37, -inf  ;;  %v15562_v49 = vsel %vm1825_vm3, %v1587_v47, -inf  ;;  %v1014_v10 = vadd.f32 %v15046_v5, %v15399_v36  ;;  %v13532_v36 = vld [vmem:[%s20692_s0 + $0x208] sm:$0xff]  }
 0x161   :  { %4536 = vst.msk [vmem:[#allocation2 + $0x48] sm:$0xf] %vm1825_vm3, %v15551_v25  ;;  %v15559_v57 = vsel %vm14901_vm15, %v3252_v27, %v3257_v41  ;;  %v1975_v19 = vmax.f32 %v1973_v44, %v1974_v4  ;;  %v15566_v1 = vpack.c.bf16 %v2497_v12, %v2601_v23  ;;  %v15570_v34 = vadd.f32 %v15046_v5, %v15416_v15 }
 0x162   :  { %3690 = vrot.lane.b32.xlu1 %v15310_v56, %s14444_s28  ;;  %3846 = vrot.lane.b32.xlu0 %v15326_v58, %s14445_s15  ;;  %20826 = vst [vmem:[#allocation15_spill] sm:$0xff] %v15559_v57  ;;  %v1027_v33 = vadd.f32 %v15046_v5, %v15431_v52  ;;  %v1038_v48 = vadd.f32 %v15046_v5, %v15452_v38  ;;  %v1979_v12 = vsel %vm1825_vm3, %v1022_v61, -inf  ;;  %v1976_v23 = vsel %vm1825_vm3, %v1014_v10, -inf  ;;  %v1045_v61 = vpop.f32.mrf.mxu0 }
 0x163   :  { %v1586_v15 = vcombine.high %v1014_v10, %v1014_v10  ;;  %v1030_v52 = vadd.f32 %v15046_v5, %v15491_v51  ;;  %v15593_v38 = vsel %vm1825_vm3, %v1975_v19, -inf  ;;  %v1982_v24 = vsel %vm1825_vm3, %v1588_v26, -inf  ;;  %2673 = vst.msk [vmem:[#allocation2 + $0x8c] sm:$0xf] %vm1825_vm3, %v15566_v1  ;;  %13382 = vmatmul.mubr.msk.bf16.gmra.mxu0 %vm20708_vm2, %v13532_v36 }
 0x164   :  { %v1978_v14 = vmax.f32 %v1976_v23, %v15562_v49  ;;  %v1589_v63 = vcombine.high %v1027_v33, %v1027_v33  ;;  %vm20782_vm1 = vcmask 388288   ;;  %v1591_v51 = vcombine.high %v15570_v34, %v15570_v34  ;;  %v15617_v26 = vpop.f32.mrf.mxu0 }
 0x165   :  { %v1971_v5 = vsel %vm1825_vm3, %v1586_v15, -inf  ;;  %v1592_v43 = vcombine.high %v1038_v48, %v1038_v48  ;;  %vm20710_vm5 = vcmask 585088   ;;  %v1985_v3 = vsel %vm1825_vm3, %v1027_v33, -inf }
 0x166   :  { %3848 = vrot.lane.b32.xlu1 %v15477_v21, %s14445_s15  ;;  %4641 = vrot.lane.b32.xlu0 %v15326_v58, %s14438_s23  ;;  %v1988_v58 = vsel %vm1825_vm3, %v15570_v34, -inf  ;;  %v1972_v28 = vmax.f32 %v1970_v53, %v1971_v5  ;;  %v1980_v20 = vsel %vm1825_vm3, %v1589_v63, -inf  ;;  %v1590_v45 = vcombine.high %v1030_v52, %v1030_v52  ;;  %v15624_v34 = vld [vmem:[%s20694_s2] ss:$0 sm:$0xff]  ;;  %v15638_v23 = vpop.f32.mrf.mxu0 }
 0x167   :  { %v1981_v59 = vmax.f32 %v1979_v12, %v1980_v20  ;;  %v1989_v47 = vsel %vm1825_vm3, %v1592_v43, -inf  ;;  %v1983_v4 = vsel %vm1825_vm3, %v1030_v52, -inf  ;;  %v12236_v37 = vrot.slane %v15543_v32, 9  ;;  %v15640_v52 = vpop.permute.xlu0 %3481 }
 0x168   :  { %v2330_v27 = vsel %vm1825_vm3, %v1972_v28, -inf  ;;  %v1990_v41 = vmax.f32 %v1988_v58, %v1989_v47  ;;  %v1984_v53 = vmax.f32 %v1982_v24, %v1983_v4  ;;  %v1986_v44 = vsel %vm1825_vm3, %v1590_v45, -inf  ;;  %v15672_v58 = vpop.f32.mrf.mxu0 }
 0x169   :  { %v2331_v49 = vsel %vm1825_vm3, %v1981_v59, -inf  ;;  %v1987_v19 = vmax.f32 %v1985_v3, %v1986_v44  ;;  %v3087_v10 = vrot.slane %v15541_v0, 5  ;;  %v1051_v33 = vadd.f32 %v15624_v34, %v15520_v7 }
 0x16a   :  { %4643 = vrot.lane.b32.xlu1 %v15477_v21, %s14438_s23  ;;  %3986 = vrot.lane.b32.xlu0 %v15253_v54, %s14446_s1  ;;  %v15631_v18 = vrot.slane %v3241_v9, 4  ;;  %v2332_v36 = vmax.f32 %v2330_v27, %v2331_v49  ;;  %v15634_v12 = vsel %vm1825_vm3, %v1984_v53, -inf  ;;  %v1043_v15 = vadd.f32 %v15624_v34, %v15539_v17  ;;  %v15697_v49 = vpop.f32.mrf.mxu0 }
 0x16b   :  { %v15644_v24 = vrot.slane %v3243_v50, 5  ;;  %v15647_v7 = vsel %vm1825_vm3, %v1038_v48, -inf  ;;  %v15651_v35 = vsel %vm14772_vm11, %v12236_v37, %v3087_v10  ;;  %v1595_v6 = vcombine.high %v1051_v33, %v1051_v33 }
 0x16c   :  { %20827 = vst [vmem:[#allocation16_spill] sm:$0xff] %v15651_v35  ;;  %vm20728_vm6 = vcmask 781888   ;;  %v15658_v9 = vsel %vm1825_vm3, %v1978_v14, -inf  ;;  %v15661_v39 = vsel %vm1825_vm3, %v1990_v41, -inf  ;;  %v2335_v50 = vmax.f32 %v15593_v38, %v15634_v12  ;;  %v3122_v14 = vpop.permute.xlu1 %3121 }
 0x16d   :  { %v1593_v17 = vcombine.high %v1043_v15, %v1043_v15  ;;  %vm3529_vm7 = vcmask 978688   ;;  %v15665_v48 = vmax.f32 %v2332_v36, 0.0  ;;  %v15668_v63 = vsel %vm1825_vm3, %v1987_v19, -inf }
 0x16e   :  { %3988 = vrot.lane.b32.xlu1 %v15314_v62, %s14446_s1  ;;  %4779 = vrot.lane.b32.xlu0 %v15253_v54, %s14437_s22  ;;  %v1991_v5 = vsel %vm1825_vm3, %v1591_v51, -inf  ;;  %v1992_v54 = vsel %vm1825_vm3, %v1043_v15, -inf  ;;  %v2003_v43 = vsel %vm1825_vm3, %v1051_v33, -inf  ;;  %v12252_v38 = vrot.slane %v15543_v32, 10 }
 0x16f   :  { %v1995_v28 = vsel %vm1825_vm3, %v1593_v17, -inf  ;;  %v3447_v20 = vrot.slane %v15541_v0, 6  ;;  %v1998_v45 = vsel %vm1825_vm3, %v1595_v6, -inf  ;;  %v1054_v59 = vadd.f32 %v15624_v34, %v15576_v60 }
 0x170   :  { %v1046_v51 = vadd.f32 %v15624_v34, %v1045_v61  ;;  %v2864_v47 = vshrl.u32 %v15543_v32, 16  ;;  %vm3629_vm9 = vcmask 1044416   ;;  %v1993_v4 = vmax.f32 %v1991_v5, %v1992_v54 }
 0x171   :  { %v2990_v3 = vpop.permute.xlu0 %2989  ;;  %v15690_v37 = vsel %vm14763_vm8, %v12252_v38, %v3447_v20  ;;  %v2867_v60 = vshll.u32 %v15543_v32, 16  ;;  %v2873_v61 = vshll.u32 %v15541_v0, 16  ;;  %v1996_v27 = vmax.f32 %v15647_v7, %v1995_v28 }
 0x172   :  { %4781 = vrot.lane.b32.xlu1 %v15314_v62, %s14437_s22  ;;  %3129 = vrot.lane.b32.xlu0 %v15337_v11, %s14438_s23  ;;  %3038 = vst.msk [vmem:[#allocation2] sm:$0xf] %vm20782_vm1, %v2990_v3  ;;  %20828 = vst [vmem:[#allocation17_spill] sm:$0xff] %v15690_v37  ;;  %v1596_v41 = vcombine.high %v1054_v59, %v1054_v59  ;;  %v2001_v53 = vsel %vm1825_vm3, %v1054_v59, -inf  ;;  %v1594_v44 = vcombine.high %v1046_v51, %v1046_v51  ;;  %v15699_v19 = vpop.permute.xlu1 %3123  ;;  %vm20709_vm10 = vcmask 982016  }
 0x173   :  { %3170 = vst.msk [vmem:[#allocation2] sm:$0xf] %vm20710_vm5, %v3122_v14  ;;  %v1997_v10 = vsel %vm1825_vm3, %v1046_v51, -inf  ;;  %v2866_v33 = vrot.slane %v2864_v47, 4  ;;  %v2869_v36 = vrot.slane %v2867_v60, 5  ;;  %v2875_v32 = vrot.slane %v2873_v61, 5 }
 0x174   :  { %v2004_v12 = vsel %vm1825_vm3, %v1596_v41, -inf  ;;  %v1999_v15 = vmax.f32 %v1997_v10, %v1998_v45  ;;  %v2000_v6 = vsel %vm1825_vm3, %v1594_v44, -inf  ;;  %v3259_v7 = vrot.slane %v2864_v47, 5  ;;  %v15712_v45 = vpop.f32.mrf.mxu0 }
 0x175   :  { %v2005_v17 = vmax.f32 %v2003_v43, %v2004_v12  ;;  %v2002_v5 = vmax.f32 %v2000_v6, %v2001_v53  ;;  %v2870_v54 = vor.u32 %v2869_v36, %v2866_v33  ;;  %v3260_v14 = vrot.slane %v2867_v60, 6 }
 0x176   :  { %3131 = vrot.lane.b32.xlu1 %v15481_v42, %s14438_s23  ;;  %3489 = vrot.lane.b32.xlu0 %v15461_v2, %s14437_s22  ;;  %v2338_v28 = vmax.f32 %v15658_v9, %v15668_v63  ;;  %v2340_v38 = vsel %vm1825_vm3, %v1999_v15, -inf  ;;  %v3263_v20 = vshrl.u32 %v15541_v0, 16  ;;  %v3266_v3 = vrot.slane %v2873_v61, 6  ;;  %v1074_v44 = vpop.f32.mrf.mxu0  ;;  %v15725_v0 = vpop.permute.xlu1 %3483 }
 0x177   :  { %v2499_v51 = vmax.f32 %v2335_v50, 0.0  ;;  %v2345_v47 = vsel %vm1825_vm3, %v1996_v27, -inf  ;;  %v2346_v41 = vsel %vm1825_vm3, %v2005_v17, -inf  ;;  %v2871_v43 = vrot.slane %v2870_v54, 4 }
 0x178   :  { %v3350_v59 = vpop.permute.xlu0 %3349  ;;  %v2342_v60 = vsel %vm1825_vm3, %v1993_v4, -inf  ;;  %v2343_v9 = vsel %vm1825_vm3, %v2002_v5, -inf  ;;  %v3261_v63 = vor.u32 %v3260_v14, %v3259_v7  ;;  %v3265_v53 = vrot.slane %v3263_v20, 5  ;;  %v13320_v36 = vpop.f32.mrf.mxu0 }
 0x179   :  { %3398 = vst.msk [vmem:[#allocation2] sm:$0xf] %vm20728_vm6, %v3350_v59  ;;  %v3247_v50 = vor.u32 %v15534_v31, %v15644_v24  ;;  %vm3630_vm13 = vcmask 130052   ;;  %v2341_v4 = vmax.f32 %v15661_v39, %v2340_v38  ;;  %v15732_v61 = vsel %vm14825_vm12, %v2871_v43, %v2875_v32 }
 0x17a   :  { %3530 = vst.msk [vmem:[#allocation2] sm:$0xf] %vm3529_vm7, %v15640_v52  ;;  %3491 = vrot.lane.b32.xlu1 %v15499_v30, %s14437_s22  ;;  %4195 = vrot.lane.b32.xlu0 %v15337_v11, %s14447_s16  ;;  %20829 = vst [vmem:[#allocation18_spill] sm:$0xff] %v15732_v61  ;;  %v2347_v27 = vmax.f32 %v2345_v47, %v2346_v41  ;;  %v3262_v52 = vrot.slane %v3261_v63, 4  ;;  %v3267_v10 = vor.u32 %v3266_v3, %v3265_v53  ;;  %v1077_v5 = vpop.f32.mrf.mxu0  ;;  %vm3890_vm4 = vcmask 716288  }
 0x17b   :  { %4537 = vst.msk [vmem:[#allocation2 + $0x5c] sm:$0xf] %vm1825_vm3, %v15732_v61  ;;  %v1067_v33 = vadd.f32 %v15624_v34, %v15617_v26  ;;  %v2344_v15 = vmax.f32 %v2342_v60, %v2343_v9  ;;  %v1059_v31 = vadd.f32 %v15624_v34, %v15638_v23  ;;  %v1070_v24 = vadd.f32 %v15624_v34, %v15672_v58  ;;  %vm15744_vm14 = vmor %vm3630_vm13, %vm3629_vm9 }
 0x17c   :  { %v3549_v12 = vpop.permute.xlu0 %3548  ;;  %v2500_v39 = vmax.f32 %v2338_v28, 0.0  ;;  %v15750_v26 = vsel %vm14901_vm15, %v3262_v52, %v3267_v10  ;;  %v2602_v17 = vcombine.low %v15665_v48, %v2499_v51  ;;  %v15760_v23 = vsel %vm14901_vm15, %v15631_v18, %v3247_v50  ;;  %v13323_v20 = vpop.f32.mrf.mxu0 }
 0x17d   :  { %v3580_v32 = vrot.slane %v3549_v12, 4  ;;  %20832 = vst [vmem:[#allocation19_spill] sm:$0xff] %v15750_v26  ;;  %v1599_v7 = vcombine.high %v1067_v33, %v1067_v33  ;;  %20833 = vst [vmem:[#allocation20_spill] sm:$0xff] %v15760_v23  ;;  %v15762_v58 = vmax.f32 %v2341_v4, 0.0  ;;  %v1597_v54 = vcombine.high %v1059_v31, %v1059_v31 }
 0x17e   :  { %4197 = vrot.lane.b32.xlu1 %v15481_v42, %s14447_s16  ;;  %4353 = vrot.lane.b32.xlu0 %v15461_v2, %s14448_s17  ;;  %v15766_v28 = vsel %vm1825_vm3, %v1067_v33, -inf  ;;  %v1600_v48 = vcombine.high %v1070_v24, %v1070_v24  ;;  %v15768_v38 = vpack.c.bf16 %v2500_v39, %v2602_v17  ;;  %v15776_v18 = vmax.f32 %v2347_v27, 0.0  ;;  %v1090_v53 = vpop.f32.mrf.mxu0 }
 0x17f   :  { %v3597_v14 = vsel %vm20709_vm10, %v3580_v32, %v3549_v12  ;;  %v15778_v51 = vpack.c.bf16 %v2602_v17, %v2602_v17  ;;  %v15780_v47 = vpack.c.bf16 %v2500_v39, %v2500_v39  ;;  %v1062_v41 = vadd.f32 %v15624_v34, %v15697_v49 }
 0x180   :  { %20834 = vst [vmem:[#allocation21_spill] sm:$0xff] %v15768_v38  ;;  %v15770_v3 = vpop.permute.xlu1 %3351  ;;  %v15772_v59 = vpop.permute.xlu0 %3757  ;;  %3632 = vst.msk [vmem:[#allocation2] sm:$0xff] %vm15744_vm14, %v3597_v14  ;;  %v15784_v43 = vmax.f32 %v2344_v15, 0.0  ;;  %v15787_v60 = vsel %vm1825_vm3, %v1599_v7, -inf  ;;  %v1075_v9 = vadd.f32 %v15624_v34, %v1074_v44  ;;  %v1086_v63 = vadd.f32 %v15624_v34, %v13320_v36 }
 0x181   :  { %vm20736_vm9 = vcmask 322688   ;;  %v15796_v50 = vsel %vm1825_vm3, %v1597_v54, -inf  ;;  %v1598_v49 = vcombine.high %v1062_v41, %v1062_v41  ;;  %v1083_v4 = vadd.f32 %v15624_v34, %v15712_v45  ;;  %v13324_v36 = vpop.f32.mrf.mxu0 }
 0x182   :  { %4355 = vrot.lane.b32.xlu1 %v15499_v30, %s14448_s17  ;;  %2997 = vrot.lane.b32.xlu0 %v15310_v56, %s14439_s24  ;;  %v12265_v27 = vrot.slane %v15778_v51, 9  ;;  %vm20712_vm13 = vcmask 519488   ;;  %v2006_v44 = vsel %vm1825_vm3, %v1059_v31, -inf  ;;  %v2015_v52 = vsel %vm1825_vm3, %v1070_v24, -inf }
 0x183   :  { %v15804_v10 = vsel %vm1825_vm3, %v1600_v48, -inf  ;;  %v1601_v33 = vcombine.high %v1075_v9, %v1075_v9  ;;  %v2007_v39 = vsel %vm1825_vm3, %v1598_v49, -inf  ;;  %v15810_v32 = vsel %vm1825_vm3, %v1083_v4, -inf  ;;  %v1093_v14 = vpop.f32.mrf.mxu0 }
 0x184   :  { %v3551_v12 = vpop.permute.xlu1 %3550  ;;  %v15806_v15 = vpop.permute.xlu0 %3915  ;;  %v1604_v45 = vcombine.high %v1086_v63, %v1086_v63  ;;  %v3751_v7 = vrot.slane %v15780_v47, 5  ;;  %v2011_v31 = vmax.f32 %v15796_v50, %v15766_v28  ;;  %v15816_v24 = vsel %vm1825_vm3, %v1062_v41, -inf }
 0x185   :  { %v3581_v17 = vrot.slane %v3551_v12, 4  ;;  %v2016_v54 = vsel %vm1825_vm3, %v1601_v33, -inf  ;;  %v1603_v48 = vcombine.high %v1083_v4, %v1083_v4  ;;  %v1078_v41 = vadd.f32 %v15624_v34, %v1077_v5  ;;  %v15834_v38 = vpop.f32.mrf.mxu0 }
 0x186   :  { %2999 = vrot.lane.b32.xlu1 %v15472_v55, %s14439_s24  ;;  %3357 = vrot.lane.b32.xlu0 %v15477_v21, %s14440_s29  ;;  %v15824_v49 = vsel %vm1825_vm3, %v1604_v45, -inf  ;;  %v15828_v28 = vsel %vm14772_vm11, %v12265_v27, %v3751_v7  ;;  %vm20727_vm0 = vcmask 913088   ;;  %v2008_v50 = vmax.f32 %v2006_v44, %v2007_v39 }
 0x187   :  { %20835 = vst [vmem:[#allocation22_spill] sm:$0xff] %v15828_v28  ;;  %v2017_v33 = vmax.f32 %v2015_v52, %v2016_v54  ;;  %v1099_v11 = vadd.f32 %v15624_v34, %v13323_v20  ;;  %v2014_v26 = vmax.f32 %v15816_v24, %v15787_v60  ;;  %v1602_v27 = vcombine.high %v1078_v41, %v1078_v41  ;;  %v15847_v54 = vpop.f32.mrf.mxu0 }
 0x188   :  { %v15836_v4 = vpop.permute.xlu1 %3759  ;;  %v2992_v45 = vpop.permute.xlu0 %2991  ;;  %v2019_v7 = vsel %vm1825_vm3, %v1078_v41, -inf  ;;  %v12267_v5 = vrot.slane %v15778_v51, 10  ;;  %v3598_v44 = vsel %vm20709_vm10, %v3581_v17, %v3551_v12  ;;  %v2021_v52 = vsel %vm1825_vm3, %v1075_v9, -inf }
 0x189   :  { %3039 = vst.msk [vmem:[#allocation2 + $0x14] sm:$0xf] %vm20782_vm1, %v2992_v45  ;;  %v2030_v20 = vsel %vm1825_vm3, %v1086_v63, -inf  ;;  %v2020_v39 = vmax.f32 %v15804_v10, %v2019_v7  ;;  %vm4063_vm2 = vcmask 1044352   ;;  %vm4064_vm10 = vcmask 64516   ;;  %v15866_v41 = vpop.f32.mrf.mxu0 }
 0x18a   :  { %3171 = vst.msk [vmem:[#allocation2 + $0x14] sm:$0xf] %vm20710_vm5, %v15699_v19  ;;  %3359 = vrot.lane.b32.xlu1 %v15760_v23, %s14440_s29  ;;  %4879 = vrot.lane.b32.xlu0 %v15310_v56, %s14441_s13  ;;  %v2022_v60 = vsel %vm1825_vm3, %v1602_v27, -inf  ;;  %v3909_v9 = vrot.slane %v15780_v47, 6  ;;  %v1091_v63 = vadd.f32 %v15624_v34, %v1090_v53  ;;  %v15859_v10 = vsel %vm1825_vm3, %v1603_v48, -inf }
 0x18b   :  { %3399 = vst.msk [vmem:[#allocation2 + $0x14] sm:$0xf] %vm20728_vm6, %v15770_v3  ;;  %v2348_v19 = vsel %vm1825_vm3, %v2008_v50, -inf  ;;  %v2349_v12 = vsel %vm1825_vm3, %v2017_v33, -inf  ;;  %v1607_v17 = vcombine.high %v1099_v11, %v1099_v11  ;;  %v1102_v24 = vadd.f32 %v15624_v34, %v13324_v36 }
 0x18c   :  { %3531 = vst.msk [vmem:[#allocation2 + $0x14] sm:$0xf] %vm3529_vm7, %v15725_v0  ;;  %v15870_v45 = vpop.permute.xlu1 %3917  ;;  %v3685_v53 = vpop.permute.xlu0 %3684  ;;  %vm20726_vm5 = vcmask 916480   ;;  %v2023_v48 = vmax.f32 %v2021_v52, %v2022_v60  ;;  %v15874_v3 = vsel %vm14763_vm8, %v12267_v5, %v3909_v9  ;;  %v1605_v50 = vcombine.high %v1091_v63, %v1091_v63 }
 0x18d   :  { %20836 = vst [vmem:[#allocation23_spill] sm:$0xff] %v15874_v3  ;;  %v2028_v33 = vsel %vm1825_vm3, %v1091_v63, -inf  ;;  %3733 = vst.msk [vmem:[#allocation2 + $0x4] sm:$0xf] %vm20736_vm9, %v3685_v53  ;;  %v15882_v0 = vpack.c.bf16 %v15776_v18, %v15776_v18  ;;  %v2039_v36 = vsel %vm1825_vm3, %v1099_v11, -inf  ;;  %v1608_v7 = vcombine.high %v1102_v24, %v1102_v24  ;;  %v15886_v52 = vpop.f32.mrf.mxu0 }
 0x18e   :  { %3633 = vst.msk [vmem:[#allocation2 + $0x14] sm:$0xff] %vm15744_vm14, %v3598_v44  ;;  %v2029_v27 = vmax.f32 %v15859_v10, %v2028_v33  ;;  %4881 = vrot.lane.b32.xlu1 %v15472_v55, %s14441_s13  ;;  %4122 = vrot.lane.b32.xlu0 %v15310_v56, %s14449_s12  ;;  %v2351_v5 = vsel %vm1825_vm3, %v2011_v31, -inf  ;;  %v2352_v44 = vsel %vm1825_vm3, %v2020_v39, -inf  ;;  %v2031_v11 = vsel %vm1825_vm3, %v1605_v50, -inf }
 0x18f   :  { %3806 = vst.msk [vmem:[#allocation2 + $0x4] sm:$0xf] %vm20712_vm13, %v15772_v59  ;;  %v1094_v60 = vadd.f32 %v15624_v34, %v1093_v14  ;;  %v2350_v9 = vmax.f32 %v2348_v19, %v2349_v12  ;;  %v2032_v63 = vmax.f32 %v2030_v20, %v2031_v11  ;;  %v2040_v10 = vsel %vm1825_vm3, %v1608_v7, -inf  ;;  %v15900_v33 = vpop.f32.mrf.mxu0 }
 0x190   :  { %v2034_v53 = vsel %vm1825_vm3, %v1607_v17, -inf  ;;  %v3687_v56 = vpop.permute.xlu1 %3686  ;;  %v3843_v2 = vpop.permute.xlu0 %3842  ;;  %v2354_v59 = vsel %vm1825_vm3, %v2014_v26, -inf  ;;  %v2355_v31 = vsel %vm1825_vm3, %v2023_v48, -inf  ;;  %v2041_v3 = vmax.f32 %v2039_v36, %v2040_v10 }
 0x191   :  { %v1606_v39 = vcombine.high %v1094_v60, %v1094_v60  ;;  %3734 = vst.msk [vmem:[#allocation2 + $0x18] sm:$0xf] %vm20736_vm9, %v3687_v56  ;;  %v2353_v14 = vmax.f32 %v2351_v5, %v2352_v44  ;;  %v15907_v20 = vsel %vm1825_vm3, %v2032_v63, -inf  ;;  %v2037_v19 = vsel %vm1825_vm3, %v1102_v24, -inf  ;;  %v15911_v17 = vpop.f32.mrf.mxu0 }
 0x192   :  { %3891 = vst.msk [vmem:[#allocation2 + $0x4] sm:$0xf] %vm3890_vm4, %v3843_v2  ;;  %v2033_v12 = vsel %vm1825_vm3, %v1094_v60, -inf  ;;  %4124 = vrot.lane.b32.xlu1 %v15472_v55, %s14449_s12  ;;  %4280 = vrot.lane.b32.xlu0 %v15477_v21, %s14450_s14  ;;  %v15922_v2 = vsel %vm1825_vm3, %v2041_v3, -inf  ;;  %v20837_v24 = vmax.f32 %v15810_v32, %v15824_v49  ;;  %v2504_v50 = vmax.f32 %v2350_v9, 0.0 }
 0x193   :  { %3964 = vst.msk [vmem:[#allocation2 + $0x4] sm:$0xf] %vm20727_vm0, %v15806_v15  ;;  %v2035_v26 = vmax.f32 %v2033_v12, %v2034_v53  ;;  %v1115_v15 = vadd.f32 %v15624_v34, %v15834_v38  ;;  %v2036_v7 = vsel %vm1825_vm3, %v1606_v39, -inf  ;;  %v15933_v5 = vpop.f32.mrf.mxu0  ;;  %v2360_v11 = vsel %vm1825_vm3, %v2029_v27, -inf }
 0x194   :  { %3807 = vst.msk [vmem:[#allocation2 + $0x18] sm:$0xf] %vm20712_vm13, %v15836_v4  ;;  %v2357_v48 = vsel %vm1825_vm3, %v20837_v24, -inf  ;;  %v2356_v4 = vmax.f32 %v2354_v59, %v2355_v31  ;;  %v3845_v3 = vpop.permute.xlu1 %3844  ;;  %v3983_v44 = vpop.permute.xlu0 %3982  ;;  %v2038_v60 = vmax.f32 %v2036_v7, %v2037_v19  ;;  %v1107_v49 = vadd.f32 %v15624_v34, %v15847_v54  ;;  %vm15942_vm13 = vmor %vm4064_vm10, %vm4063_vm2 }
 0x195   :  { %v2358_v32 = vsel %vm1825_vm3, %v2035_v26, -inf  ;;  %3892 = vst.msk [vmem:[#allocation2 + $0x18] sm:$0xf] %vm3890_vm4, %v3845_v3  ;;  %v20838_v38 = vmov 0  ;;  %v4014_v9 = vrot.slane %v3983_v44, 4  ;;  %v2505_v63 = vmax.f32 %v2353_v14, 0.0  ;;  %v15947_v27 = vpop.f32.mrf.mxu0 }
 0x196   :  { %v20839_v38 = vsel %vm15942_vm13, 4294967295, %v20838_v38  ;;  %v2359_v10 = vmax.f32 %v2357_v48, %v2358_v32  ;;  %v3657_v53 = vshrl.u32 %v15778_v51, 16  ;;  %3965 = vst.msk [vmem:[#allocation2 + $0x18] sm:$0xf] %vm20727_vm0, %v15870_v45  ;;  %4282 = vrot.lane.b32.xlu1 %v15760_v23, %s14450_s14  ;;  %3556 = vrot.lane.b32.xlu0 %v15314_v62, %s14441_s13  ;;  %v2361_v54 = vsel %vm1825_vm3, %v2038_v60, -inf }
 0x197   :  { %20840 = vst [vmem:[#allocation24_spill] sm:$0xff] %v20839_v38  ;;  %v1611_v56 = vcombine.high %v1115_v15, %v1115_v15  ;;  %v15957_v59 = vsel %vm1825_vm3, %v1115_v15, -inf  ;;  %v1609_v31 = vcombine.high %v1107_v49, %v1107_v49  ;;  %v4031_v39 = vsel %vm20726_vm5, %v4014_v9, %v3983_v44  ;;  %v15962_v45 = vpop.f32.mrf.mxu0 }
 0x198   :  { %v15960_v14 = vmax.f32 %v2356_v4, 0.0  ;;  %v2362_v19 = vmax.f32 %v2360_v11, %v2361_v54  ;;  %v2507_v12 = vmax.f32 %v2359_v10, 0.0  ;;  %4066 = vst.msk [vmem:[#allocation2 + $0x4] sm:$0xff] %vm15942_vm13, %v4031_v39  ;;  %v3985_v26 = vpop.permute.xlu1 %3984  ;;  %v15966_v24 = vpop.permute.xlu0 %3125  ;;  %v15973_v15 = vadd.f32 %v15624_v34, %v15866_v41 }
 0x199   :  { %v15969_v48 = vsel %vm1825_vm3, %v1609_v31, -inf  ;;  %v3659_v7 = vrot.slane %v3657_v53, 4  ;;  %v3660_v4 = vshll.u32 %v15778_v51, 16  ;;  %v4015_v3 = vrot.slane %v3985_v26, 4  ;;  %v15979_v32 = vpop.f32.mrf.mxu0 }
 0x19a   :  { %v2508_v44 = vmax.f32 %v2362_v19, 0.0  ;;  %v3666_v60 = vshll.u32 %v15780_v47, 16  ;;  %3558 = vrot.lane.b32.xlu1 %v15489_v29, %s14441_s13  ;;  %4420 = vrot.lane.b32.xlu0 %v15314_v62, %s14451_s18  ;;  %v15985_v41 = vcombine.low %v2504_v50, %v2505_v63  ;;  %v1110_v51 = vadd.f32 %v15624_v34, %v15886_v52 }
 0x19b   :  { %v3662_v9 = vrot.slane %v3660_v4, 5  ;;  %v2049_v10 = vsel %vm1825_vm3, %v1611_v56, -inf  ;;  %v4032_v54 = vsel %vm20726_vm5, %v4015_v3, %v3985_v26  ;;  %v2042_v39 = vsel %vm1825_vm3, %v1107_v49, -inf  ;;  %v15994_v36 = vpop.f32.mrf.mxu0 }
 0x19c   :  { %v15991_v31 = vcombine.low %v2507_v12, %v2508_v44  ;;  %v3822_v19 = vrot.slane %v3657_v53, 5  ;;  %4067 = vst.msk [vmem:[#allocation2 + $0x18] sm:$0xff] %vm15942_vm13, %v4032_v54  ;;  %v15998_v62 = vpop.permute.xlu1 %3127  ;;  %v16000_v50 = vpop.permute.xlu0 %3485  ;;  %v3668_v52 = vrot.slane %v3666_v60, 5  ;;  %v1610_v11 = vcombine.high %v1110_v51, %v1110_v51 }
 0x19d   :  { %v3663_v63 = vor.u32 %v3662_v9, %v3659_v7  ;;  %v2048_v56 = vsel %vm1825_vm3, %v1110_v51, -inf  ;;  %v1612_v12 = vcombine.high %v15973_v15, %v15973_v15  ;;  %v2051_v49 = vsel %vm1825_vm3, %v15973_v15, -inf  ;;  %v16007_v3 = vpop.f32.mrf.mxu0 }
 0x19e   :  { %20841 = vst [vmem:[#allocation25_spill] sm:$0xff] %v15991_v31  ;;  %v2050_v53 = vmax.f32 %v2048_v56, %v2049_v10  ;;  %v3823_v26 = vrot.slane %v3660_v4, 6  ;;  %4422 = vrot.lane.b32.xlu1 %v15489_v29, %s14451_s18  ;;  %3765 = vrot.lane.b32.xlu0 %v15481_v42, %s14442_s21  ;;  %v2043_v44 = vsel %vm1825_vm3, %v1610_v11, -inf  ;;  %v3826_v9 = vshrl.u32 %v15780_v47, 16 }
 0x19f   :  { %v3664_v7 = vrot.slane %v3663_v63, 4  ;;  %v3829_v51 = vrot.slane %v3666_v60, 6  ;;  %v2044_v54 = vmax.f32 %v2042_v39, %v2043_v44  ;;  %v1131_v15 = vadd.f32 %v15624_v34, %v15900_v33  ;;  %v16019_v56 = vpop.f32.mrf.mxu0 }
 0x1a0   :  { %v3824_v10 = vor.u32 %v3823_v26, %v3822_v19  ;;  %v1123_v4 = vadd.f32 %v15624_v34, %v15911_v17  ;;  %v16021_v21 = vpop.permute.xlu1 %3487  ;;  %v16023_v28 = vpop.permute.xlu0 %4191  ;;  %v3828_v47 = vrot.slane %v3826_v9, 5  ;;  %v1134_v60 = vadd.f32 %v15624_v34, %v15933_v5 }
 0x1a1   :  { %v16027_v11 = vsel %vm14825_vm12, %v3664_v7, %v3668_v52  ;;  %v1126_v33 = vadd.f32 %v15624_v34, %v15947_v27  ;;  %v16036_v17 = vsel %vm1825_vm3, %v2050_v53, -inf  ;;  %v16039_v39 = vsel %vm1825_vm3, %v1131_v15, -inf  ;;  %v16041_v52 = vpop.f32.mrf.mxu0  ;;  %v13518_v7 = vld [vmem:[#allocation2] ss:$20 sps:$4 sm:$0xff]  }
 0x1a2   :  { %20842 = vst [vmem:[#allocation26_spill] sm:$0xff] %v16027_v11  ;;  %4538 = vst.msk [vmem:[#allocation2 + $0x70] sm:$0xf] %vm1825_vm3, %v16027_v11  ;;  %v3825_v19 = vrot.slane %v3824_v10, 4  ;;  %v1613_v63 = vcombine.high %v1123_v4, %v1123_v4  ;;  %3767 = vrot.lane.b32.xlu1 %v15512_v46, %s14442_s21  ;;  %3923 = vrot.lane.b32.xlu0 %v15499_v30, %s14443_s30  ;;  %v2366_v5 = vsel %vm1825_vm3, %v2044_v54, -inf  ;;  %v2057_v26 = vsel %vm1825_vm3, %v1123_v4, -inf }
 0x1a3   :  { %v3830_v27 = vor.u32 %v3829_v51, %v3828_v47  ;;  %v1614_v53 = vcombine.high %v1126_v33, %v1126_v33  ;;  %v13520_v44 = vld [vmem:[#allocation2 + $0x4] ss:$20 sps:$4 sm:$0xff]   ;;  %v1615_v9 = vcombine.high %v1131_v15, %v1131_v15  ;;  %v1616_v11 = vcombine.high %v1134_v60, %v1134_v60  ;;  %v16052_v61 = vpop.f32.mrf.mxu0 }
 0x1a4   :  { %v2052_v10 = vsel %vm1825_vm3, %v1613_v63, -inf  ;;  %v1147_v38 = vadd.f32 %v15624_v34, %v15962_v45  ;;  %v16054_v31 = vpop.permute.xlu1 %4193  ;;  %v16056_v37 = vpop.permute.xlu0 %4349  ;;  %v16063_v4 = vsel %vm1825_vm3, %v1134_v60, -inf  ;;  %v2054_v15 = vsel %vm1825_vm3, %v1612_v12, -inf  ;;  %5818 = vmatprep.mubr.bf16.mxu1 %v13520_v44 }
 0x1a5   :  { %v16060_v51 = vsel %vm14901_vm15, %v3825_v19, %v3830_v27  ;;  %v2053_v54 = vmax.f32 %v2051_v49, %v2052_v10  ;;  %v2055_v47 = vsel %vm1825_vm3, %v1126_v33, -inf  ;;  %v2058_v45 = vsel %vm1825_vm3, %v1614_v53, -inf  ;;  %v16072_v13 = vpop.f32.mrf.mxu0  ;;  %5819 = vmatmul.mubr.bf16.vlgmr.msra.gmra.mxu1 %v13518_v7 }
 0x1a6   :  { %20843 = vst [vmem:[#allocation27_spill] sm:$0xff] %v16060_v51  ;;  %v2603_v63 = vcombine.low %v15762_v58, %v15784_v43  ;;  %v1139_v35 = vadd.f32 %v15624_v34, %v15979_v32  ;;  %3925 = vrot.lane.b32.xlu1 %v15516_v40, %s14443_s30  ;;  %4561 = vrot.lane.b32.xlu0 %v15481_v42, %s14439_s24  ;;  %vm4166_vm2 = vcmask 257088   ;;  %vm4239_vm10 = vcmask 453888  }
 0x1a7   :  { %v2367_v12 = vsel %vm1825_vm3, %v2053_v54, -inf  ;;  %v2056_v49 = vmax.f32 %v2054_v15, %v2055_v47  ;;  %v2059_v60 = vmax.f32 %v2057_v26, %v2058_v45  ;;  %v20844_v33 = vmax.f32 %v15969_v48, %v15957_v59  ;;  %v16087_v53 = vpop.f32.mrf.mxu0 }
 0x1a8   :  { %v2368_v43 = vmax.f32 %v2366_v5, %v2367_v12  ;;  %v2061_v32 = vsel %vm1825_vm3, %v1616_v11, -inf  ;;  %v1619_v19 = vcombine.high %v1147_v38, %v1147_v38  ;;  %v16085_v27 = vpack.c.bf16 %v15776_v18, %v2603_v63  ;;  %v16089_v44 = vpop.permute.xlu1 %4351  ;;  %v2994_v10 = vpop.permute.xlu0 %2993 }
 0x1a9   :  { %v2369_v58 = vsel %vm1825_vm3, %v20844_v33, -inf  ;;  %v2370_v26 = vsel %vm1825_vm3, %v2056_v49, -inf  ;;  %v2373_v59 = vsel %vm1825_vm3, %v2059_v60, -inf  ;;  %v1617_v48 = vcombine.high %v1139_v35, %v1139_v35  ;;  %3040 = vst.msk [vmem:[#allocation2 + $0x28] sm:$0xf] %vm20782_vm1, %v2994_v10  ;;  %v16111_v49 = vpop.f32.mrf.mxu0 }
 0x1aa   :  { %20845 = vst [vmem:[#allocation28_spill] sm:$0xff] %v16085_v27  ;;  %v2063_v7 = vsel %vm1825_vm3, %v1615_v9, -inf  ;;  %v2510_v5 = vmax.f32 %v2368_v43, 0.0  ;;  %v2371_v11 = vmax.f32 %v2369_v58, %v2370_v26  ;;  %v2374_v54 = vmax.f32 %v16036_v17, %v2373_v59  ;;  %4563 = vrot.lane.b32.xlu1 %v15512_v46, %s14439_s24  ;;  %4717 = vrot.lane.b32.xlu0 %v15499_v30, %s14440_s29 }
 0x1ab   :  { %v2064_v18 = vsel %vm1825_vm3, %v1139_v35, -inf  ;;  %vm20846_vm5 = vcmask 585088   ;;  %vm20729_vm0 = vcmask 650688   ;;  %v2067_v9 = vsel %vm1825_vm3, %v1617_v48, -inf }
 0x1ac   :  { %3172 = vst.msk [vmem:[#allocation2 + $0x28] sm:$0xf] %vm20846_vm5, %v15966_v24  ;;  %v2065_v15 = vmax.f32 %v2063_v7, %v2064_v18  ;;  %v1150_v47 = vadd.f32 %v15624_v34, %v15994_v36  ;;  %v1142_v17 = vadd.f32 %v15624_v34, %v16007_v3  ;;  %v2062_v35 = vmax.f32 %v16039_v39, %v2061_v32  ;;  %v2996_v60 = vpop.permute.xlu1 %2995  ;;  %v3354_v33 = vpop.permute.xlu0 %3353 }
 0x1ad   :  { %v2511_v45 = vmax.f32 %v2371_v11, 0.0  ;;  %v2075_v24 = vsel %vm1825_vm3, %v1147_v38, -inf  ;;  %v2070_v12 = vsel %vm1825_vm3, %v1619_v19, -inf  ;;  %v16113_v58 = vpack.c.bf16 %v2603_v63, %v2603_v63  ;;  %3041 = vst.msk [vmem:[#allocation2 + $0x3c] sm:$0xf] %vm20782_vm1, %v2996_v60  ;;  %v21140_v22 = vld [vmem:[#allocation27_spill] sm:$0xff] }
 0x1ae   :  { %v1620_v43 = vcombine.high %v1150_v47, %v1150_v47  ;;  %v2073_v10 = vsel %vm1825_vm3, %v1150_v47, -inf  ;;  %v1618_v36 = vcombine.high %v1142_v17, %v1142_v17  ;;  %3400 = vst.msk [vmem:[#allocation2 + $0x28] sm:$0xf] %vm20728_vm6, %v3354_v33  ;;  %v16118_v3 = vmax.f32 %v2374_v54, 0.0  ;;  %4719 = vrot.lane.b32.xlu1 %v15516_v40, %s14440_s29  ;;  %3692 = vrot.lane.b32.xlu0 %v15472_v55, %s14444_s28 }
 0x1af   :  { %v16120_v39 = vcombine.low %v2510_v5, %v2511_v45  ;;  %v2068_v38 = vmax.f32 %v16063_v4, %v2067_v9  ;;  %v2069_v32 = vsel %vm1825_vm3, %v1142_v17, -inf  ;;  %3173 = vst.msk [vmem:[#allocation2 + $0x3c] sm:$0xf] %vm20846_vm5, %v15998_v62  ;;  %v2378_v63 = vsel %vm1825_vm3, %v2065_v15, -inf }
 0x1b0   :  { %20847 = vst [vmem:[#allocation29_spill] sm:$0xff] %v16118_v3  ;;  %3532 = vst.msk [vmem:[#allocation2 + $0x28] sm:$0xf] %vm3529_vm7, %v16000_v50  ;;  %v2076_v19 = vsel %vm1825_vm3, %v1620_v43, -inf  ;;  %v2071_v26 = vmax.f32 %v2069_v32, %v2070_v12  ;;  %v2072_v4 = vsel %vm1825_vm3, %v1618_v36, -inf  ;;  %v2375_v62 = vsel %vm1825_vm3, %v2062_v35, -inf  ;;  %v16137_v50 = vpop.f32.mrf.mxu0  ;;  %v3356_v5 = vpop.permute.xlu1 %3355 }
 0x1b1   :  { %20848 = vst [vmem:[#allocation30_spill] sm:$0xff] %v16120_v39  ;;  %v2077_v59 = vmax.f32 %v2075_v24, %v2076_v19  ;;  %v2074_v48 = vmax.f32 %v2072_v4, %v2073_v10  ;;  %v12273_v7 = vrot.slane %v16113_v58, 9  ;;  %v4119_v11 = vpop.permute.xlu0 %4118  ;;  %v4185_v55 = vrot.slane %v15882_v0, 5  ;;  %3401 = vst.msk [vmem:[#allocation2 + $0x3c] sm:$0xf] %vm20728_vm6, %v3356_v5 }
 0x1b2   :  { %v2376_v54 = vsel %vm1825_vm3, %v2071_v26, -inf  ;;  %v12275_v18 = vrot.slane %v16113_v58, 10  ;;  %v4343_v15 = vrot.slane %v15882_v0, 6  ;;  %4167 = vst.msk [vmem:[#allocation2 + $0x8] sm:$0xf] %vm4166_vm2, %v4119_v11  ;;  %vm20783_vm5 = vcmask 847488   ;;  %3694 = vrot.lane.b32.xlu1 %v15551_v25, %s14444_s28  ;;  %3850 = vrot.lane.b32.xlu0 %v15760_v23, %s14445_s15  ;;  %v16173_v33 = vpop.f32.mrf.mxu0 }
 0x1b3   :  { %v2381_v9 = vsel %vm1825_vm3, %v2068_v38, -inf  ;;  %v2382_v47 = vsel %vm1825_vm3, %v2077_v59, -inf  ;;  %v2379_v17 = vsel %vm1825_vm3, %v2074_v48, -inf  ;;  %3533 = vst.msk [vmem:[#allocation2 + $0x3c] sm:$0xf] %vm3529_vm7, %v16021_v21  ;;  %vm20737_vm6 = vcmask 1044288  }
 0x1b4   :  { %4240 = vst.msk [vmem:[#allocation2 + $0x8] sm:$0xf] %vm4239_vm10, %v16023_v28  ;;  %v16158_v35 = vpack.c.bf16 %v15985_v41, %v15985_v41  ;;  %v16162_v45 = vsel %vm14772_vm11, %v12273_v7, %v4185_v55  ;;  %v4091_v21 = vshrl.u32 %v16113_v58, 16  ;;  %v16167_v24 = vpack.c.bf16 %v15960_v14, %v15960_v14  ;;  %v4121_v43 = vpop.permute.xlu1 %4120  ;;  %v16208_v11 = vpop.f32.mrf.mxu0 }
 0x1b5   :  { %20849 = vst [vmem:[#allocation31_spill] sm:$0xff] %v16162_v45  ;;  %v2377_v12 = vmax.f32 %v2375_v62, %v2376_v54  ;;  %v2380_v60 = vmax.f32 %v2378_v63, %v2379_v17  ;;  %v16171_v28 = vsel %vm14763_vm8, %v12275_v18, %v4343_v15  ;;  %v4277_v10 = vpop.permute.xlu0 %4276  ;;  %v16177_v36 = vpack.c.bf16 %v16118_v3, %v16118_v3 }
 0x1b6   :  { %20850 = vst [vmem:[#allocation32_spill] sm:$0xff] %v16171_v28  ;;  %v2383_v38 = vmax.f32 %v2381_v9, %v2382_v47  ;;  %v1163_v32 = vadd.f32 %v15624_v34, %v16019_v56  ;;  %v1155_v19 = vadd.f32 %v15624_v34, %v16041_v52  ;;  %4168 = vst.msk [vmem:[#allocation2 + $0x1c] sm:$0xf] %vm4166_vm2, %v4121_v43  ;;  %v4093_v63 = vrot.slane %v4091_v21, 4 }
 0x1b7   :  { %4325 = vst.msk [vmem:[#allocation2 + $0x8] sm:$0xf] %vm20729_vm0, %v4277_v10  ;;  %v4094_v26 = vshll.u32 %v16113_v58, 16  ;;  %v4100_v4 = vshll.u32 %v15882_v0, 16  ;;  %v1158_v59 = vadd.f32 %v15624_v34, %v16072_v13  ;;  %3852 = vrot.lane.b32.xlu1 %v15559_v57, %s14445_s15  ;;  %4645 = vrot.lane.b32.xlu0 %v15760_v23, %s14438_s23  ;;  %v20851_v56 = vmax.f32 %v15907_v20, %v15922_v2 }
 0x1b8   :  { %4241 = vst.msk [vmem:[#allocation2 + $0x1c] sm:$0xf] %vm4239_vm10, %v16054_v31  ;;  %v16204_v13 = vpack.c.bf16 %v16120_v39, %v16120_v39  ;;  %v1623_v58 = vcombine.high %v1163_v32, %v1163_v32  ;;  %v1621_v31 = vcombine.high %v1155_v19, %v1155_v19  ;;  %v2513_v48 = vmax.f32 %v2377_v12, 0.0 }
 0x1b9   :  { %4398 = vst.msk [vmem:[#allocation2 + $0x8] sm:$0xf] %vm20783_vm5, %v16056_v37  ;;  %v16200_v52 = vmax.f32 %v20851_v56, 0.0  ;;  %v2514_v62 = vmax.f32 %v2380_v60, 0.0  ;;  %v4096_v7 = vrot.slane %v4094_v26, 5  ;;  %v1166_v5 = vadd.f32 %v15624_v34, %v16052_v61  ;;  %v4279_v37 = vpop.permute.xlu1 %4278  ;;  %v3553_v54 = vpop.permute.xlu0 %3552 }
 0x1ba   :  { %v16210_v55 = vmax.f32 %v2383_v38, 0.0  ;;  %v16213_v20 = vsel %vm1825_vm3, %v1163_v32, -inf  ;;  %v2078_v2 = vsel %vm1825_vm3, %v1155_v19, -inf  ;;  %v1622_v18 = vcombine.high %v1158_v59, %v1158_v59  ;;  %4326 = vst.msk [vmem:[#allocation2 + $0x1c] sm:$0xf] %vm20729_vm0, %v4279_v37 }
 0x1bb   :  { %20852 = vst [vmem:[#allocation33_spill] sm:$0xff] %v16200_v52  ;;  %v3582_v15 = vrot.slane %v3553_v54, 4  ;;  %v2081_v9 = vsel %vm1825_vm3, %v1621_v31, -inf  ;;  %v4097_v47 = vor.u32 %v4096_v7, %v4093_v63  ;;  %v4102_v17 = vrot.slane %v4100_v4, 5  ;;  %4647 = vrot.lane.b32.xlu1 %v15559_v57, %s14438_s23  ;;  %3990 = vrot.lane.b32.xlu0 %v15489_v29, %s14446_s1  ;;  %4399 = vst.msk [vmem:[#allocation2 + $0x1c] sm:$0xf] %vm20783_vm5, %v16089_v44  ;;  %v16232_v63 = vpop.f32.mrf.mxu0 }
 0x1bc   :  { %v2079_v61 = vsel %vm1825_vm3, %v1622_v18, -inf  ;;  %v2084_v12 = vsel %vm1825_vm3, %v1158_v59, -inf  ;;  %v2085_v60 = vsel %vm1825_vm3, %v1623_v58, -inf  ;;  %v1171_v43 = vadd.f32 %v15624_v34, %v16111_v49 }
 0x1bd   :  { %vm20853_vm0 = vcmask 982016   ;;  %v16230_v38 = vcombine.low %v2513_v48, %v2514_v62  ;;  %v4098_v32 = vrot.slane %v4097_v47, 4  ;;  %v1624_v19 = vcombine.high %v1166_v5, %v1166_v5  ;;  %v3555_v44 = vpop.permute.xlu1 %3554  ;;  %v4417_v56 = vpop.permute.xlu0 %4416 }
 0x1be   :  { %v3599_v10 = vsel %vm20853_vm0, %v3582_v15, %v3553_v54  ;;  %v2083_v59 = vmax.f32 %v2081_v9, %v16213_v20  ;;  %v2087_v58 = vsel %vm1825_vm3, %v1166_v5, -inf  ;;  %v1625_v31 = vcombine.high %v1171_v43, %v1171_v43  ;;  %4465 = vst.msk [vmem:[#allocation2 + $0x8] sm:$0xf] %vm20737_vm6, %v4417_v56  ;;  %v16257_v9 = vld [vmem:[%s20694_s2] ss:$0 sm:$0xff]  ;;  %v13348_v47 = vpop.f32.mrf.mxu0 }
 0x1bf   :  { %3634 = vst.msk [vmem:[#allocation2 + $0x28] sm:$0xff] %vm15744_vm14, %v3599_v10  ;;  %v4256_v7 = vrot.slane %v4091_v21, 5  ;;  %v3583_v49 = vrot.slane %v3555_v44, 4  ;;  %v16241_v48 = vsel %vm14825_vm12, %v4098_v32, %v4102_v17  ;;  %v2080_v62 = vmax.f32 %v2078_v2, %v2079_v61  ;;  %3992 = vrot.lane.b32.xlu1 %v15566_v1, %s14446_s1  ;;  %4783 = vrot.lane.b32.xlu0 %v15489_v29, %s14437_s22 }
 0x1c0   :  { %v2086_v37 = vmax.f32 %v2084_v12, %v2085_v60  ;;  %4539 = vst.msk [vmem:[#allocation2 + $0x84] sm:$0xf] %vm1825_vm3, %v16241_v48  ;;  %v2088_v21 = vsel %vm1825_vm3, %v1625_v31, -inf  ;;  %v4257_v5 = vrot.slane %v4094_v26, 6  ;;  %v4260_v54 = vshrl.u32 %v15882_v0, 16  ;;  %v1189_v31 = vpop.f32.mrf.mxu0 }
 0x1c1   :  { %v4263_v20 = vrot.slane %v4100_v4, 6  ;;  %v3600_v18 = vsel %vm20853_vm0, %v3583_v49, %v3555_v44  ;;  %v1179_v2 = vadd.f32 %v15624_v34, %v16087_v53  ;;  %v2089_v15 = vmax.f32 %v2087_v58, %v2088_v21  ;;  %v4419_v0 = vpop.permute.xlu1 %4418  ;;  %v16263_v26 = vpop.permute.xlu0 %3761 }
 0x1c2   :  { %v1174_v29 = vadd.f32 %v16257_v9, %v16173_v33  ;;  %3635 = vst.msk [vmem:[#allocation2 + $0x3c] sm:$0xff] %vm15744_vm14, %v3600_v18  ;;  %v4258_v4 = vor.u32 %v4257_v5, %v4256_v7  ;;  %v4262_v17 = vrot.slane %v4260_v54, 5  ;;  %v1182_v34 = vadd.f32 %v16257_v9, %v16137_v50 }
 0x1c3   :  { %v2090_v53 = vsel %vm1825_vm3, %v1624_v19, -inf  ;;  %4466 = vst.msk [vmem:[#allocation2 + $0x1c] sm:$0xf] %vm20737_vm6, %v4419_v0  ;;  %v2384_v61 = vsel %vm1825_vm3, %v2080_v62, -inf  ;;  %v2093_v33 = vsel %vm1825_vm3, %v1171_v43, -inf  ;;  %v2385_v12 = vsel %vm1825_vm3, %v2089_v15, -inf  ;;  %4785 = vrot.lane.b32.xlu1 %v15566_v1, %s14437_s22  ;;  %3133 = vrot.lane.b32.xlu0 %v15512_v46, %s14438_s23 }
 0x1c4   :  { %v1626_v60 = vcombine.high %v1174_v29, %v1174_v29  ;;  %v2390_v10 = vsel %vm1825_vm3, %v2086_v37, -inf  ;;  %v4259_v50 = vrot.slane %v4258_v4, 4  ;;  %v4264_v32 = vor.u32 %v4263_v20, %v4262_v17  ;;  %v20856_v0 = vld [vmem:[#allocation16_spill] sm:$0xff] }
 0x1c5   :  { %v2091_v19 = vsel %vm1825_vm3, %v1174_v29, -inf  ;;  %v2387_v43 = vsel %vm1825_vm3, %v2083_v59, -inf  ;;  %v12281_v58 = vrot.slane %v16158_v35, 9  ;;  %v16281_v7 = vpop.permute.xlu1 %3763  ;;  %v16283_v49 = vpop.permute.xlu0 %3919  ;;  %v2386_v62 = vmax.f32 %v2384_v61, %v2385_v12 }
 0x1c6   :  { %v2092_v44 = vmax.f32 %v2090_v53, %v2091_v19  ;;  %v2094_v56 = vsel %vm1825_vm3, %v1626_v60, -inf  ;;  %v16287_v37 = vsel %vm14901_vm15, %v4259_v50, %v4264_v32  ;;  %v1628_v5 = vcombine.high %v1182_v34, %v1182_v34  ;;  %v16293_v29 = vpop.f32.mrf.mxu0 }
 0x1c7   :  { %20855 = vst [vmem:[#allocation7_spill] sm:$0xff] %v16287_v37  ;;  %v2095_v54 = vmax.f32 %v2093_v33, %v2094_v56  ;;  %v1627_v20 = vcombine.high %v1179_v2, %v1179_v2  ;;  %v4551_v15 = vrot.slane %v16167_v24, 5  ;;  %v1195_v59 = vadd.f32 %v16257_v9, %v16208_v11  ;;  %3135 = vrot.lane.b32.xlu1 %v20856_v0, %s14438_s23 }
 0x1c8   :  { %v2388_v18 = vsel %vm1825_vm3, %v2092_v44, -inf  ;;  %3493 = vrot.lane.b32.xlu0 %v15516_v40, %s14437_s22  ;;  %v2096_v4 = vsel %vm1825_vm3, %v1179_v2, -inf  ;;  %v1187_v53 = vadd.f32 %v16257_v9, %v16232_v63  ;;  %v12283_v61 = vrot.slane %v16158_v35, 10  ;;  %v16309_v50 = vpop.f32.mrf.mxu0 }
 0x1c9   :  { %v2391_v17 = vsel %vm1825_vm3, %v2095_v54, -inf  ;;  %v2102_v33 = vsel %vm1825_vm3, %v1182_v34, -inf  ;;  %v2389_v11 = vmax.f32 %v2387_v43, %v2388_v18  ;;  %v16307_v12 = vsel %vm14772_vm11, %v12281_v58, %v4551_v15  ;;  %v16311_v32 = vpop.permute.xlu1 %3921  ;;  %v4558_v2 = vpop.permute.xlu0 %4557  ;;  %v20858_v15 = vld [vmem:[#allocation17_spill] sm:$0xff] }
 0x1ca   :  { %20857 = vst [vmem:[#allocation34_spill] sm:$0xff] %v16307_v12  ;;  %v1631_v60 = vcombine.high %v1195_v59, %v1195_v59  ;;  %v2516_v19 = vmax.f32 %v2386_v62, 0.0  ;;  %v2097_v44 = vsel %vm1825_vm3, %v1628_v5, -inf  ;;  %v1629_v56 = vcombine.high %v1187_v53, %v1187_v53  ;;  %4605 = vst.msk [vmem:[#allocation2 + $0xc] sm:$0xf] %vm20782_vm1, %v4558_v2  ;;  %v16319_v18 = vpop.f32.mrf.mxu0 }
 0x1cb   :  { %v4707_v63 = vrot.slane %v16167_v24, 6  ;;  %v2392_v34 = vmax.f32 %v2390_v10, %v2391_v17  ;;  %v2099_v43 = vsel %vm1825_vm3, %v1627_v20, -inf  ;;  %v1198_v58 = vadd.f32 %v16257_v9, %v13348_v47  ;;  %3495 = vrot.lane.b32.xlu1 %v20858_v15, %s14437_s22 }
 0x1cc   :  { %v1190_v54 = vadd.f32 %v16257_v9, %v1189_v31  ;;  %4199 = vrot.lane.b32.xlu0 %v15512_v46, %s14447_s16  ;;  %v2100_v62 = vsel %vm1825_vm3, %v1187_v53, -inf  ;;  %v2103_v5 = vsel %vm1825_vm3, %v1629_v56, -inf  ;;  %v2106_v47 = vsel %vm1825_vm3, %v1631_v60, -inf  ;;  %v16341_v60 = vpop.f32.mrf.mxu0 }
 0x1cd   :  { %v16329_v10 = vsel %vm14763_vm8, %v12283_v61, %v4707_v63  ;;  %v2098_v20 = vmax.f32 %v2096_v4, %v2097_v44  ;;  %v2517_v31 = vmax.f32 %v2389_v11, 0.0  ;;  %v2111_v17 = vsel %vm1825_vm3, %v1195_v59, -inf  ;;  %v4560_v30 = vpop.permute.xlu1 %4559  ;;  %v16333_v23 = vpop.permute.xlu0 %4713 }
 0x1ce   :  { %20859 = vst [vmem:[#allocation35_spill] sm:$0xff] %v16329_v10  ;;  %v1632_v2 = vcombine.high %v1198_v58, %v1198_v58  ;;  %v2104_v42 = vmax.f32 %v2102_v33, %v2103_v5  ;;  %v2109_v46 = vsel %vm1825_vm3, %v1198_v58, -inf  ;;  %v1630_v53 = vcombine.high %v1190_v54, %v1190_v54  ;;  %4606 = vst.msk [vmem:[#allocation2 + $0x20] sm:$0xf] %vm20782_vm1, %v4560_v30 }
 0x1cf   :  { %v2105_v56 = vsel %vm1825_vm3, %v1190_v54, -inf  ;;  %v16338_v61 = vmax.f32 %v2392_v34, 0.0  ;;  %v2101_v63 = vmax.f32 %v2099_v43, %v2100_v62  ;;  %4201 = vrot.lane.b32.xlu1 %v20856_v0, %s14447_s16  ;;  %v4490_v44 = vshrl.u32 %v16158_v35, 16 }
 0x1d0   :  { %v2112_v4 = vsel %vm1825_vm3, %v1632_v2, -inf  ;;  %v2107_v11 = vmax.f32 %v2105_v56, %v2106_v47  ;;  %4357 = vrot.lane.b32.xlu0 %v15516_v40, %s14448_s17  ;;  %v2108_v33 = vsel %vm1825_vm3, %v1630_v53, -inf  ;;  %v4493_v30 = vshll.u32 %v16158_v35, 16  ;;  %v16361_v56 = vpop.f32.mrf.mxu0 }
 0x1d1   :  { %v2113_v59 = vmax.f32 %v2111_v17, %v2112_v4  ;;  %v16350_v34 = vcombine.low %v2516_v19, %v2517_v31  ;;  %v2110_v43 = vmax.f32 %v2108_v33, %v2109_v46  ;;  %v4499_v58 = vshll.u32 %v16167_v24, 16  ;;  %v16354_v62 = vpop.permute.xlu1 %4715  ;;  %v3689_v5 = vpop.permute.xlu0 %3688  ;;  %v20862_v33 = vld [vmem:[#allocation25_spill] sm:$0xff] }
 0x1d2   :  { %v4625_v54 = vshrl.u32 %v16167_v24, 16  ;;  %v2399_v47 = vsel %vm1825_vm3, %v2104_v42, -inf  ;;  %v4621_v2 = vrot.slane %v4490_v44, 5  ;;  %v4622_v53 = vrot.slane %v4493_v30, 6  ;;  %3735 = vst.msk [vmem:[#allocation2 + $0x2c] sm:$0xf] %vm20736_vm9, %v3689_v5  ;;  %v16377_v5 = vpop.f32.mrf.mxu0 }
 0x1d3   :  { %v2400_v17 = vsel %vm1825_vm3, %v2113_v59, -inf  ;;  %v2393_v35 = vsel %vm1825_vm3, %v2098_v20, -inf  ;;  %v2394_v19 = vsel %vm1825_vm3, %v2107_v11, -inf  ;;  %v4628_v31 = vrot.slane %v4499_v58, 6  ;;  %4359 = vrot.lane.b32.xlu1 %v20858_v15, %s14448_s17 }
 0x1d4   :  { %v4627_v46 = vrot.slane %v4625_v54, 5  ;;  %vm20860_vm0 = vcmask 519488   ;;  %3001 = vrot.lane.b32.xlu0 %v15551_v25, %s14439_s24  ;;  %v2396_v42 = vsel %vm1825_vm3, %v2101_v63, -inf  ;;  %v2397_v24 = vsel %vm1825_vm3, %v2110_v43, -inf }
 0x1d5   :  { %3808 = vst.msk [vmem:[#allocation2 + $0x2c] sm:$0xf] %vm20860_vm0, %v16263_v26  ;;  %v4623_v20 = vor.u32 %v4622_v53, %v4621_v2  ;;  %v16373_v4 = vpack.c.bf16 %v15960_v14, %v15985_v41  ;;  %v2401_v11 = vmax.f32 %v2399_v47, %v2400_v17  ;;  %v4492_v54 = vrot.slane %v4490_v44, 4  ;;  %v3691_v40 = vpop.permute.xlu1 %3690  ;;  %v3847_v3 = vpop.permute.xlu0 %3846 }
 0x1d6   :  { %v4629_v59 = vor.u32 %v4628_v31, %v4627_v46  ;;  %v16381_v63 = vpack.c.bf16 %v16210_v55, %v16210_v55  ;;  %v2395_v43 = vmax.f32 %v2393_v35, %v2394_v19  ;;  %v4495_v53 = vrot.slane %v4493_v30, 5  ;;  %3736 = vst.msk [vmem:[#allocation2 + $0x40] sm:$0xf] %vm20736_vm9, %v3691_v40  ;;  %v20866_v40 = vld [vmem:[#allocation18_spill] sm:$0xff]  ;;  %v16421_v31 = vpop.f32.mrf.mxu0 }
 0x1d7   :  { %20861 = vst [vmem:[#allocation36_spill] sm:$0xff] %v16373_v4  ;;  %v4624_v2 = vrot.slane %v4623_v20, 4  ;;  %3893 = vst.msk [vmem:[#allocation2 + $0x2c] sm:$0xf] %vm3890_vm4, %v3847_v3  ;;  %v16387_v14 = vpack.c.bf16 %v16200_v52, %v16200_v52  ;;  %v16391_v41 = vpack.c.bf16 %v20862_v33, %v20862_v33  ;;  %v16395_v44 = vpack.c.bf16 %v16230_v38, %v16230_v38 }
 0x1d8   :  { %v2398_v47 = vmax.f32 %v2396_v42, %v2397_v24  ;;  %3809 = vst.msk [vmem:[#allocation2 + $0x40] sm:$0xf] %vm20860_vm0, %v16281_v7  ;;  %vm20865_vm9 = vcmask 913088   ;;  %3003 = vrot.lane.b32.xlu1 %v20866_v40, %s14439_s24  ;;  %3361 = vrot.lane.b32.xlu0 %v15559_v57, %s14440_s29  ;;  %v4496_v30 = vor.u32 %v4495_v53, %v4492_v54  ;;  %v4501_v17 = vrot.slane %v4499_v58, 5 }
 0x1d9   :  { %20863 = vst [vmem:[#allocation37_spill] sm:$0xff] %v16387_v14  ;;  %20864 = vst [vmem:[#allocation38_spill] sm:$0xff] %v16391_v41  ;;  %v16407_v3 = vsel %vm14901_vm15, %v4624_v2, %v4629_v59  ;;  %v12237_v35 = vrot.slane %v16204_v13, 9  ;;  %v16412_v7 = vpack.c.bf16 %v16350_v34, %v16350_v34  ;;  %v16418_v19 = vmax.f32 %v2401_v11, 0.0  ;;  %v3849_v42 = vpop.permute.xlu1 %3848  ;;  %v4642_v24 = vpop.permute.xlu0 %4641 }
 0x1da   :  { %3966 = vst.msk [vmem:[#allocation2 + $0x2c] sm:$0xf] %vm20865_vm9, %v16283_v49  ;;  %20867 = vst [vmem:[#allocation18_spill] sm:$0xff] %v16407_v3  ;;  %v16416_v49 = vpack.c.bf16 %v16338_v61, %v16338_v61  ;;  %v3091_v46 = vrot.slane %v16177_v36, 5  ;;  %v2519_v20 = vmax.f32 %v2395_v43, 0.0  ;;  %v4497_v58 = vrot.slane %v4496_v30, 4 }
 0x1db   :  { %v12238_v59 = vrot.slane %v16395_v44, 9  ;;  %v3095_v54 = vrot.slane %v16381_v63, 5  ;;  %3894 = vst.msk [vmem:[#allocation2 + $0x40] sm:$0xf] %vm3890_vm4, %v3849_v42  ;;  %vm20868_vm9 = vcmask 585088   ;;  %v2520_v2 = vmax.f32 %v2398_v47, 0.0 }
 0x1dc   :  { %4689 = vst.msk [vmem:[#allocation2 + $0xc] sm:$0xf] %vm20868_vm9, %v4642_v24  ;;  %v16429_v11 = vsel %vm14772_vm11, %v12237_v35, %v3091_v46  ;;  %v12253_v53 = vrot.slane %v16204_v13, 10  ;;  %v3451_v26 = vrot.slane %v16177_v36, 6  ;;  %vm20870_vm0 = vcmask 913088   ;;  %v20872_v43 = vld [vmem:[#allocation19_spill] sm:$0xff]  ;;  %4883 = vrot.lane.b32.xlu0 %v15551_v25, %s14441_s13  ;;  %v16463_v24 = vpop.f32.mrf.mxu0 }
 0x1dd   :  { %20869 = vst [vmem:[#allocation39_spill] sm:$0xff] %v16429_v11  ;;  %3967 = vst.msk [vmem:[#allocation2 + $0x40] sm:$0xf] %vm20870_vm0, %v16311_v32  ;;  %vm20871_vm6 = vcmask 781888   ;;  %3363 = vrot.lane.b32.xlu1 %v20872_v43, %s14440_s29  ;;  %v16443_v47 = vsel %vm14825_vm12, %v4497_v58, %v4501_v17  ;;  %v16447_v30 = vsel %vm14772_vm11, %v12238_v59, %v3095_v54  ;;  %v12254_v35 = vrot.slane %v16395_v44, 10  ;;  %v4644_v58 = vpop.permute.xlu1 %4643  ;;  %v3987_v59 = vpop.permute.xlu0 %3986 }
 0x1de   :  { %4761 = vst.msk [vmem:[#allocation2 + $0xc] sm:$0xf] %vm20871_vm6, %v16333_v23  ;;  %20873 = vst [vmem:[#allocation40_spill] sm:$0xff] %v16443_v47  ;;  %v3455_v32 = vrot.slane %v16381_v63, 6  ;;  %v16453_v23 = vpack.c.bf16 %v16418_v19, %v16418_v19  ;;  %v16459_v46 = vsel %vm14763_vm8, %v12253_v53, %v3451_v26  ;;  %v2878_v17 = vshrl.u32 %v16204_v13, 16 }
 0x1df   :  { %20874 = vst [vmem:[#allocation41_spill] sm:$0xff] %v16447_v30  ;;  %4540 = vst.msk [vmem:[#allocation2 + $0x98] sm:$0xf] %vm1825_vm3, %v16443_v47  ;;  %v2881_v42 = vshll.u32 %v16204_v13, 16  ;;  %v2887_v39 = vshll.u32 %v16177_v36, 16  ;;  %v1211_v30 = vadd.f32 %v16257_v9, %v16293_v29  ;;  %v1203_v26 = vadd.f32 %v16257_v9, %v16309_v50  ;;  %v16491_v47 = vpop.f32.mrf.mxu0 }
 0x1e0   :  { %20875 = vst [vmem:[#allocation42_spill] sm:$0xff] %v16459_v46  ;;  %v16467_v54 = vsel %vm14763_vm8, %v12254_v35, %v3455_v32  ;;  %vm20877_vm6 = vmmov %vm20868_vm9  ;;  %v4016_v53 = vrot.slane %v3987_v59, 4  ;;  %v2880_v46 = vrot.slane %v2878_v17, 4  ;;  %vm20878_vm9 = vcmask 781888   ;;  %4126 = vrot.lane.b32.xlu0 %v15551_v25, %s14449_s12 }
 0x1e1   :  { %20876 = vst [vmem:[#allocation43_spill] sm:$0xff] %v16467_v54  ;;  %4690 = vst.msk [vmem:[#allocation2 + $0x20] sm:$0xf] %vm20877_vm6, %v4644_v58  ;;  %v2883_v11 = vrot.slane %v2881_v42, 5  ;;  %4885 = vrot.lane.b32.xlu1 %v20866_v40, %s14441_s13  ;;  %v16482_v29 = vcombine.low %v2519_v20, %v2520_v2  ;;  %v16484_v35 = vrot.slane %v2887_v39, 5  ;;  %v1635_v50 = vcombine.high %v1211_v30, %v1211_v30  ;;  %v3989_v25 = vpop.permute.xlu1 %3988  ;;  %v4780_v20 = vpop.permute.xlu0 %4779 }
 0x1e2   :  { %4762 = vst.msk [vmem:[#allocation2 + $0x20] sm:$0xf] %vm20878_vm9, %v16354_v62  ;;  %v1633_v32 = vcombine.high %v1203_v26, %v1203_v26  ;;  %vm20879_vm0 = vcmask 916480   ;;  %v16488_v54 = vsel %vm1825_vm3, %v1211_v30, -inf  ;;  %v2892_v62 = vshrl.u32 %v16395_v44, 16 }
 0x1e3   :  { %v4033_v58 = vsel %vm20879_vm0, %v4016_v53, %v3987_v59  ;;  %v2884_v13 = vor.u32 %v2883_v11, %v2880_v46  ;;  %v16496_v2 = vsel %vm1825_vm3, %v1203_v26, -inf  ;;  %v2895_v52 = vshll.u32 %v16395_v44, 16  ;;  %4827 = vst.msk [vmem:[#allocation2 + $0xc] sm:$0xf] %vm3529_vm7, %v4780_v20  ;;  %vm20881_vm6 = vmmov %vm20879_vm0 }
 0x1e4   :  { %4068 = vst.msk [vmem:[#allocation2 + $0x2c] sm:$0xff] %vm15942_vm13, %v4033_v58  ;;  %v2901_v59 = vshll.u32 %v16381_v63, 16  ;;  %v3269_v11 = vrot.slane %v2878_v17, 5  ;;  %v4017_v46 = vrot.slane %v3989_v25, 4  ;;  %v16504_v53 = vsel %vm1825_vm3, %v1633_v32, -inf  ;;  %4284 = vrot.lane.b32.xlu0 %v15559_v57, %s14450_s14  ;;  %v13540_v32 = vld [vmem:[%s20692_s0 + $0x218] sm:$0xff]  }
 0x1e5   :  { %v16501_v30 = vrot.slane %v2884_v13, 4  ;;  %v2894_v4 = vrot.slane %v2892_v62, 4  ;;  %4128 = vrot.lane.b32.xlu1 %v20866_v40, %s14449_s12  ;;  %v2897_v26 = vrot.slane %v2895_v52, 5  ;;  %v3270_v58 = vrot.slane %v2881_v42, 6  ;;  %v13539_v13 = vld [vmem:[%s20692_s0 + $0x210] sm:$0xff]   ;;  %v4782_v10 = vpop.permute.xlu1 %4781  ;;  %v16530_v14 = vpop.permute.xlu0 %3129 }
 0x1e6   :  { %v2903_v44 = vrot.slane %v2901_v59, 5  ;;  %v3273_v17 = vshrl.u32 %v16177_v36, 16  ;;  %v4034_v20 = vsel %vm20881_vm6, %v4017_v46, %v3989_v25  ;;  %v3276_v3 = vrot.slane %v2887_v39, 6  ;;  %v16526_v36 = vpop.f32.mrf.mxu0  ;;  %4828 = vst.msk [vmem:[#allocation2 + $0x20] sm:$0xf] %vm3529_vm7, %v4782_v10 }
 0x1e7   :  { %v16524_v42 = vadd.f32 %v16257_v9, %v16319_v18  ;;  %4069 = vst.msk [vmem:[#allocation2 + $0x40] sm:$0xff] %vm15942_vm13, %v4034_v20  ;;  %v2898_v12 = vor.u32 %v2897_v26, %v2894_v4  ;;  %v3271_v25 = vor.u32 %v3270_v58, %v3269_v11  ;;  %v1206_v37 = vadd.f32 %v16257_v9, %v16341_v60 }
 0x1e8   :  { %v3275_v46 = vrot.slane %v3273_v17, 5  ;;  %vm20882_vm9 = vcmask 203776   ;;  %v2121_v20 = vsel %vm1825_vm3, %v1635_v50, -inf  ;;  %v3279_v57 = vrot.slane %v2892_v62, 5  ;;  %3560 = vrot.lane.b32.xlu0 %v15566_v1, %s14441_s13  ;;  %v16548_v50 = vpop.f32.mrf.mxu0 }
 0x1e9   :  { %13385 = vmatprep.mubr.msk.bf16.mxu0 %vm20882_vm9, %v13539_v13  ;;  %v1636_v18 = vcombine.high %v16524_v42, %v16524_v42  ;;  %vm20883_vm0 = vmmov %vm20882_vm9  ;;  %4286 = vrot.lane.b32.xlu1 %v20872_v43, %s14450_s14  ;;  %v2899_v60 = vrot.slane %v2898_v12, 4  ;;  %v3272_v4 = vrot.slane %v3271_v25, 4  ;;  %v1634_v11 = vcombine.high %v1206_v37, %v1206_v37  ;;  %v16550_v62 = vpop.permute.xlu1 %3131 }
 0x1ea   :  { %13386 = vmatmul.mubr.msk.bf16.gmra.mxu0 %vm20883_vm0, %v13540_v32  ;;  %v3277_v10 = vor.u32 %v3276_v3, %v3275_v46  ;;  %v2120_v26 = vsel %vm1825_vm3, %v1206_v37, -inf  ;;  %v3280_v58 = vrot.slane %v2895_v52, 6  ;;  %v3283_v17 = vshrl.u32 %v16381_v63, 16  ;;  %v16552_v32 = vpop.permute.xlu0 %3489  ;;  %v20886_v46 = vld [vmem:[#allocation21_spill] sm:$0xff]  ;;  %vm20888_vm6 = vmmov %vm20883_vm0 }
 0x1eb   :  { %v3286_v13 = vrot.slane %v2901_v59, 6  ;;  %v16556_v39 = vsel %vm14825_vm12, %v2899_v60, %v2903_v44  ;;  %v2115_v37 = vsel %vm1825_vm3, %v1634_v11, -inf  ;;  %v2122_v52 = vmax.f32 %v2120_v26, %v2121_v20  ;;  %vm20890_vm9 = vmmov %vm20883_vm0 }
 0x1ec   :  { %v16560_v12 = vsel %vm14901_vm15, %v3272_v4, %v3277_v10  ;;  %v2116_v63 = vmax.f32 %v16496_v2, %v2115_v37  ;;  %v3281_v3 = vor.u32 %v3280_v58, %v3279_v57  ;;  %v3285_v59 = vrot.slane %v3283_v17, 5  ;;  %4424 = vrot.lane.b32.xlu0 %v15566_v1, %s14451_s18  ;;  %v13535_v2 = vld [vmem:[#allocation2 + $0x28] ss:$20 sps:$4 sm:$0xff]  }
 0x1ed   :  { %20884 = vst [vmem:[#allocation24_spill] sm:$0xff] %v16560_v12  ;;  %v16566_v25 = vpack.c.bf16 %v16210_v55, %v16230_v38  ;;  %3562 = vrot.lane.b32.xlu1 %v20886_v46, %s14441_s13  ;;  %v2123_v44 = vsel %vm1825_vm3, %v16524_v42, -inf  ;;  %v16576_v20 = vadd.f32 %v16257_v9, %v16361_v56  ;;  %v1219_v57 = vadd.f32 %v16257_v9, %v16377_v5  ;;  %v16593_v5 = vpop.f32.mrf.mxu0  ;;  %v16595_v4 = vpop.permute.xlu1 %3491 }
 0x1ee   :  { %v16582_v55 = vpack.c.bf16 %v16338_v61, %v16350_v34  ;;  %v13533_v38 = vld [vmem:[#allocation2 + $0x2c] ss:$20 sps:$4 sm:$0xff]   ;;  %v16585_v60 = vsel %vm1825_vm3, %v2122_v52, -inf  ;;  %v3287_v1 = vor.u32 %v3286_v13, %v3285_v59  ;;  %v1230_v56 = vadd.f32 %v16257_v9, %v16421_v31  ;;  %v16597_v61 = vpop.permute.xlu0 %4195 }
 0x1ef   :  { %20885 = vst [vmem:[#allocation44_spill] sm:$0xff] %v16566_v25  ;;  %2675 = vst.msk [vmem:[#allocation2 + $0xb4] sm:$0xf] %vm1825_vm3, %v16566_v25  ;;  %v1222_v42 = vadd.f32 %v16257_v9, %v16463_v24  ;;  %v2402_v34 = vsel %vm1825_vm3, %v2116_v63, -inf  ;;  %v3282_v10 = vrot.slane %v3281_v3, 4  ;;  %v1639_v11 = vcombine.high %v16576_v20, %v16576_v20  ;;  %v13541_v31 = vld [vmem:[%s20692_s0 + $0x220] sm:$0xff]   ;;  %5826 = vmatprep.mubr.bf16.mxu1 %v13533_v38  ;;  %v16615_v52 = vpop.f32.mrf.mxu0 }
 0x1f0   :  { %20887 = vst [vmem:[#allocation21_spill] sm:$0xff] %v16582_v55  ;;  %v1637_v26 = vcombine.high %v1219_v57, %v1219_v57  ;;  %2676 = vst.msk [vmem:[#allocation2 + $0xc8] sm:$0xf] %vm1825_vm3, %v16582_v55  ;;  %v13542_v24 = vld [vmem:[%s20692_s0 + $0x228] sm:$0xff]   ;;  %v16612_v58 = vsel %vm1825_vm3, %v16576_v20, -inf  ;;  %v2129_v17 = vsel %vm1825_vm3, %v1219_v57, -inf  ;;  %v1640_v13 = vcombine.high %v1230_v56, %v1230_v56  ;;  %3769 = vrot.lane.b32.xlu0 %v20856_v0, %s14442_s21 }
 0x1f1   :  { %v1638_v37 = vcombine.high %v1222_v42, %v1222_v42  ;;  %4426 = vrot.lane.b32.xlu1 %v20886_v46, %s14451_s18  ;;  %v16623_v63 = vsel %vm14901_vm15, %v3282_v10, %v3287_v1  ;;  %v2126_v59 = vsel %vm1825_vm3, %v1636_v18, -inf  ;;  %v2127_v20 = vsel %vm1825_vm3, %v1222_v42, -inf  ;;  %5827 = vmatmul.mubr.bf16.gmra.mxu1 %v13535_v2  ;;  %v16633_v12 = vpop.f32.mrf.mxu0  ;;  %v16635_v1 = vpop.permute.xlu1 %4197 }
 0x1f2   :  { %v2124_v3 = vsel %vm1825_vm3, %v1637_v26, -inf  ;;  %v16629_v38 = vsel %vm1825_vm3, %v1230_v56, -inf  ;;  %v2128_v55 = vmax.f32 %v2126_v59, %v2127_v20  ;;  %13389 = vmatprep.mubr.msk.bf16.mxu0 %vm20888_vm6, %v13541_v31  ;;  %v16637_v10 = vpop.permute.xlu0 %4353  ;;  %v16640_v18 = vsel %vm1825_vm3, %v1640_v13, -inf }
 0x1f3   :  { %v2125_v57 = vmax.f32 %v2123_v44, %v2124_v3  ;;  %v2130_v25 = vsel %vm1825_vm3, %v1638_v37, -inf  ;;  %v20889_v44 = vmax.f32 %v16504_v53, %v16488_v54  ;;  %v12239_v56 = vrot.slane %v16412_v7, 9  ;;  %13390 = vmatmul.mubr.msk.bf16.gmra.mxu0 %vm20890_vm9, %v13542_v24  ;;  %v16670_v20 = vpop.f32.mrf.mxu0  ;;  %vm20897_vm9 = vmmov %vm20883_vm0 }
 0x1f4   :  { %v2131_v42 = vmax.f32 %v2129_v17, %v2130_v25  ;;  %v2406_v31 = vsel %vm1825_vm3, %v2128_v55, -inf  ;;  %v3099_v37 = vrot.slane %v16416_v49, 5  ;;  %v1243_v13 = vadd.f32 %v16257_v9, %v16491_v47  ;;  %v20891_v25 = vld [vmem:[#allocation22_spill] sm:$0xff]  ;;  %3927 = vrot.lane.b32.xlu0 %v20858_v15, %s14443_s30 }
 0x1f5   :  { %v2405_v2 = vsel %vm1825_vm3, %v20889_v44, -inf  ;;  %v2403_v26 = vsel %vm1825_vm3, %v2125_v57, -inf  ;;  %3771 = vrot.lane.b32.xlu1 %v20891_v25, %s14442_s21  ;;  %v1235_v24 = vadd.f32 %v16257_v9, %v16526_v36  ;;  %v13543_v55 = vld [vmem:[%s20692_s0 + $0x230] sm:$0xff]   ;;  %v2134_v47 = vmax.f32 %v16612_v58, %v16640_v18  ;;  %v16672_v57 = vpop.permute.xlu1 %4355 }
 0x1f6   :  { %v2404_v54 = vmax.f32 %v2402_v34, %v2403_v26  ;;  %v2407_v53 = vmax.f32 %v2405_v2, %v2406_v31  ;;  %v2409_v17 = vsel %vm1825_vm3, %v2131_v42, -inf  ;;  %v16668_v59 = vsel %vm14772_vm11, %v12239_v56, %v3099_v37  ;;  %v2998_v42 = vpop.permute.xlu0 %2997  ;;  %13393 = vmatprep.mubr.msk.bf16.mxu0 %vm20883_vm0, %v13543_v55 }
 0x1f7   :  { %v2410_v3 = vmax.f32 %v16585_v60, %v2409_v17  ;;  %20892 = vst [vmem:[#allocation45_spill] sm:$0xff] %v16668_v59  ;;  %v1643_v34 = vcombine.high %v1243_v13, %v1243_v13  ;;  %v1641_v2 = vcombine.high %v1235_v24, %v1235_v24  ;;  %v2135_v26 = vsel %vm1825_vm3, %v1639_v11, -inf  ;;  %v13544_v60 = vld [vmem:[%s20692_s0 + $0x238] sm:$0xff]   ;;  %3042 = vst.msk [vmem:[#allocation2 + $0x50] sm:$0xf] %vm20782_vm1, %v2998_v42  ;;  %v16707_v42 = vpop.f32.mrf.mxu0 }
 0x1f8   :  { %v2522_v36 = vmax.f32 %v2404_v54, 0.0  ;;  %v2523_v44 = vmax.f32 %v2407_v53, 0.0  ;;  %v2136_v18 = vsel %vm1825_vm3, %v1235_v24, -inf  ;;  %v12255_v56 = vrot.slane %v16412_v7, 10  ;;  %v20894_v11 = vld [vmem:[#allocation23_spill] sm:$0xff]  ;;  %4565 = vrot.lane.b32.xlu0 %v20856_v0, %s14439_s24 }
 0x1f9   :  { %v16680_v58 = vmax.f32 %v2410_v3, 0.0  ;;  %v3459_v31 = vrot.slane %v16416_v49, 6  ;;  %vm20893_vm6 = vcmask 585088   ;;  %3929 = vrot.lane.b32.xlu1 %v20894_v11, %s14443_s30  ;;  %v2137_v54 = vmax.f32 %v2135_v26, %v2136_v18 }
 0x1fa   :  { %3174 = vst.msk [vmem:[#allocation2 + $0x50] sm:$0xf] %vm20893_vm6, %v16530_v14  ;;  %v16691_v37 = vcombine.low %v2522_v36, %v2523_v44  ;;  %v2139_v53 = vsel %vm1825_vm3, %v1641_v2, -inf  ;;  %v1246_v17 = vadd.f32 %v16257_v9, %v16548_v50  ;;  %v16698_v24 = vpack.c.bf16 %v16482_v29, %v16482_v29  ;;  %v3000_v36 = vpop.permute.xlu1 %2999  ;;  %v3358_v44 = vpop.permute.xlu0 %3357 }
 0x1fb   :  { %v2140_v14 = vmax.f32 %v16629_v38, %v2139_v53  ;;  %v16703_v55 = vsel %vm14763_vm8, %v12255_v56, %v3459_v31  ;;  %v1238_v3 = vadd.f32 %v16257_v9, %v16593_v5  ;;  %v2147_v2 = vsel %vm1825_vm3, %v1243_v13, -inf  ;;  %13394 = vmatmul.mubr.msk.bf16.gmra.mxu0 %vm20897_vm9, %v13544_v60  ;;  %3043 = vst.msk [vmem:[#allocation2 + $0x64] sm:$0xf] %vm20782_vm1, %v3000_v36 }
 0x1fc   :  { %20895 = vst [vmem:[#allocation46_spill] sm:$0xff] %v16703_v55  ;;  %v16711_v50 = vpack.c.bf16 %v16680_v58, %v16691_v37  ;;  %v2414_v26 = vsel %vm1825_vm3, %v2137_v54, -inf  ;;  %v1644_v38 = vcombine.high %v1246_v17, %v1246_v17  ;;  %vm20898_vm0 = vcmask 781888   ;;  %3175 = vst.msk [vmem:[#allocation2 + $0x64] sm:$0xf] %vm20893_vm6, %v16550_v62  ;;  %4721 = vrot.lane.b32.xlu0 %v20858_v15, %s14440_s29 }
 0x1fd   :  { %3402 = vst.msk [vmem:[#allocation2 + $0x50] sm:$0xf] %vm20898_vm0, %v3358_v44  ;;  %v2417_v5 = vsel %vm1825_vm3, %v2140_v14, -inf  ;;  %v2145_v18 = vsel %vm1825_vm3, %v1246_v17, -inf  ;;  %v1642_v56 = vcombine.high %v1238_v3, %v1238_v3  ;;  %v2141_v31 = vsel %vm1825_vm3, %v1238_v3, -inf  ;;  %4567 = vrot.lane.b32.xlu1 %v20891_v25, %s14439_s24  ;;  %v16737_v3 = vpop.f32.mrf.mxu0  ;;  %vm20899_vm9 = vmmov %vm20898_vm0 }
 0x1fe   :  { %20896 = vst [vmem:[#allocation47_spill] sm:$0xff] %v16711_v50  ;;  %3534 = vst.msk [vmem:[#allocation2 + $0x50] sm:$0xf] %vm3529_vm7, %v16552_v32  ;;  %v2148_v13 = vsel %vm1825_vm3, %v1644_v38, -inf  ;;  %v2142_v60 = vsel %vm1825_vm3, %v1643_v34, -inf  ;;  %v2411_v54 = vsel %vm1825_vm3, %v2134_v47, -inf  ;;  %v3360_v36 = vpop.permute.xlu1 %3359  ;;  %v4880_v44 = vpop.permute.xlu0 %4879 }
 0x1ff   :  { %2678 = vst.msk [vmem:[#allocation2 + $0xf0] sm:$0xf] %vm1825_vm3, %v16711_v50  ;;  %v2906_v62 = vshrl.u32 %v16412_v7, 16  ;;  %v2149_v53 = vmax.f32 %v2147_v2, %v2148_v13  ;;  %v2143_v17 = vmax.f32 %v2141_v31, %v2142_v60  ;;  %v2144_v32 = vsel %vm1825_vm3, %v1642_v56, -inf }
 0x200   :  { %v2909_v14 = vshll.u32 %v16412_v7, 16  ;;  %v2146_v15 = vmax.f32 %v2144_v32, %v2145_v18  ;;  %v2915_v38 = vshll.u32 %v16416_v49, 16  ;;  %3403 = vst.msk [vmem:[#allocation2 + $0x64] sm:$0xf] %vm20899_vm9, %v3360_v36  ;;  %v4911_v47 = vrot.slane %v4880_v44, 4  ;;  %3696 = vrot.lane.b32.xlu0 %v20866_v40, %s14444_s28  ;;  %v16751_v32 = vpop.f32.mrf.mxu0 }
 0x201   :  { %v2908_v0 = vrot.slane %v2906_v62, 4  ;;  %v3289_v50 = vrot.slane %v2906_v62, 5  ;;  %v2418_v34 = vsel %vm1825_vm3, %v2149_v53, -inf  ;;  %v2412_v2 = vsel %vm1825_vm3, %v2143_v17, -inf  ;;  %3535 = vst.msk [vmem:[#allocation2 + $0x64] sm:$0xf] %vm3529_vm7, %v16595_v4  ;;  %4723 = vrot.lane.b32.xlu1 %v20894_v11, %s14440_s29 }
 0x202   :  { %v2911_v31 = vrot.slane %v2909_v14, 5  ;;  %v2419_v7 = vmax.f32 %v2417_v5, %v2418_v34  ;;  %v2413_v18 = vmax.f32 %v2411_v54, %v2412_v2  ;;  %v2415_v56 = vsel %vm1825_vm3, %v2146_v15, -inf  ;;  %v4882_v4 = vpop.permute.xlu1 %4881  ;;  %v4123_v36 = vpop.permute.xlu0 %4122 }
 0x203   :  { %v2917_v13 = vrot.slane %v2915_v38, 5  ;;  %vm20900_vm0 = vcmask 982016   ;;  %v2416_v62 = vmax.f32 %v2414_v26, %v2415_v56  ;;  %v3290_v17 = vrot.slane %v2909_v14, 6  ;;  %4169 = vst.msk [vmem:[#allocation2 + $0x30] sm:$0xf] %vm4166_vm2, %v4123_v36 }
 0x204   :  { %v4927_v60 = vsel %vm20900_vm0, %v4911_v47, %v4880_v44  ;;  %v2912_v53 = vor.u32 %v2911_v31, %v2908_v0  ;;  %v2527_v55 = vmax.f32 %v2419_v7, 0.0  ;;  %v2525_v59 = vmax.f32 %v2413_v18, 0.0  ;;  %4242 = vst.msk [vmem:[#allocation2 + $0x30] sm:$0xf] %vm4239_vm10, %v16597_v61  ;;  %v20901_v0 = vld [vmem:[#allocation26_spill] sm:$0xff]  ;;  %3854 = vrot.lane.b32.xlu0 %v20872_v43, %s14445_s15  ;;  %vm20903_vm6 = vmmov %vm20900_vm0  ;;  %v16776_v31 = vpop.f32.mrf.mxu0 }
 0x205   :  { %4959 = vst.msk [vmem:[#allocation2 + $0xc] sm:$0xff] %vm15744_vm14, %v4927_v60  ;;  %v3293_v40 = vshrl.u32 %v16416_v49, 16  ;;  %v3296_v5 = vrot.slane %v2915_v38, 6  ;;  %v4912_v54 = vrot.slane %v4882_v4, 4  ;;  %v2526_v15 = vmax.f32 %v2416_v62, 0.0  ;;  %3698 = vrot.lane.b32.xlu1 %v20901_v0, %s14444_s28 }
 0x206   :  { %v2913_v44 = vrot.slane %v2912_v53, 4  ;;  %v3291_v26 = vor.u32 %v3290_v17, %v3289_v50  ;;  %v16766_v49 = vpack.c.bf16 %v16418_v19, %v16482_v29  ;;  %v12240_v38 = vrot.slane %v16698_v24, 9  ;;  %v4125_v7 = vpop.permute.xlu1 %4124  ;;  %v4281_v18 = vpop.permute.xlu0 %4280 }
 0x207   :  { %v3295_v47 = vrot.slane %v3293_v40, 5  ;;  %v4928_v50 = vsel %vm20903_vm6, %v4912_v54, %v4882_v4  ;;  %v16770_v34 = vcombine.low %v2525_v59, %v2526_v15  ;;  %v3103_v29 = vrot.slane %v16453_v23, 5  ;;  %4170 = vst.msk [vmem:[#allocation2 + $0x44] sm:$0xf] %vm4166_vm2, %v4125_v7  ;;  %v16828_v40 = vpop.f32.mrf.mxu0 }
 0x208   :  { %20902 = vst [vmem:[#allocation26_spill] sm:$0xff] %v16766_v49  ;;  %v16774_v61 = vsel %vm14825_vm12, %v2913_v44, %v2917_v13  ;;  %v3292_v2 = vrot.slane %v3291_v26, 4  ;;  %4960 = vst.msk [vmem:[#allocation2 + $0x20] sm:$0xff] %vm15744_vm14, %v4928_v50  ;;  %v12256_v59 = vrot.slane %v16698_v24, 10  ;;  %v3463_v56 = vrot.slane %v16453_v23, 6  ;;  %4649 = vrot.lane.b32.xlu0 %v20872_v43, %s14438_s23 }
 0x209   :  { %v3297_v19 = vor.u32 %v3296_v5, %v3295_v47  ;;  %2677 = vst.msk [vmem:[#allocation2 + $0xdc] sm:$0xf] %vm1825_vm3, %v16766_v49  ;;  %vm20904_vm9 = vcmask 650688   ;;  %v16789_v13 = vpack.c.bf16 %v16680_v58, %v16680_v58  ;;  %v16792_v60 = vpack.c.bf16 %v2527_v55, %v16770_v34  ;;  %3856 = vrot.lane.b32.xlu1 %v16060_v51, %s14445_s15 }
 0x20a   :  { %4327 = vst.msk [vmem:[#allocation2 + $0x30] sm:$0xf] %vm20904_vm9, %v4281_v18  ;;  %v1259_v62 = vadd.f32 %v16257_v9, %v16615_v52  ;;  %v1251_v53 = vadd.f32 %v16257_v9, %v16633_v12  ;;  %v16812_v52 = vsel %vm14772_vm11, %v12240_v38, %v3103_v29  ;;  %v16816_v12 = vsel %vm14763_vm8, %v12256_v59, %v3463_v56  ;;  %v4283_v5 = vpop.permute.xlu1 %4282  ;;  %v3557_v54 = vpop.permute.xlu0 %3556  ;;  %vm20906_vm0 = vmmov %vm20904_vm9 }
 0x20b   :  { %20905 = vst [vmem:[#allocation48_spill] sm:$0xff] %v16792_v60  ;;  %4243 = vst.msk [vmem:[#allocation2 + $0x44] sm:$0xf] %vm4239_vm10, %v16635_v1  ;;  %v16808_v58 = vsel %vm14901_vm15, %v3292_v2, %v3297_v19  ;;  %v2920_v1 = vshrl.u32 %v16698_v24, 16  ;;  %v16830_v15 = vpack.c.bf16 %v2527_v55, %v2527_v55  ;;  %v2923_v26 = vshll.u32 %v16698_v24, 16  ;;  %v16854_v59 = vpop.f32.mrf.mxu0 }
 0x20c   :  { %4400 = vst.msk [vmem:[#allocation2 + $0x30] sm:$0xf] %vm20783_vm5, %v16637_v10  ;;  %v16821_v10 = vpack.c.bf16 %v16691_v37, %v16691_v37  ;;  %v1647_v17 = vcombine.high %v1259_v62, %v1259_v62  ;;  %v16826_v4 = vsel %vm1825_vm3, %v1259_v62, -inf  ;;  %v1645_v36 = vcombine.high %v1251_v53, %v1251_v53  ;;  %3994 = vrot.lane.b32.xlu0 %v20886_v46, %s14446_s1 }
 0x20d   :  { %2679 = vst.msk [vmem:[#allocation2 + $0x104] sm:$0xf] %vm1825_vm3, %v16792_v60  ;;  %v2922_v44 = vrot.slane %v2920_v1, 4  ;;  %v2929_v37 = vshll.u32 %v16453_v23, 16  ;;  %v3584_v47 = vrot.slane %v3557_v54, 4  ;;  %v1254_v50 = vadd.f32 %v16257_v9, %v16707_v42  ;;  %4651 = vrot.lane.b32.xlu1 %v16060_v51, %s14438_s23 }
 0x20e   :  { %4328 = vst.msk [vmem:[#allocation2 + $0x44] sm:$0xf] %vm20906_vm0, %v4283_v5  ;;  %v16836_v38 = vsel %vm1825_vm3, %v1645_v36, -inf  ;;  %v2157_v2 = vsel %vm1825_vm3, %v1647_v17, -inf  ;;  %v2150_v24 = vsel %vm1825_vm3, %v1251_v53, -inf  ;;  %v2925_v7 = vrot.slane %v2923_v26, 5  ;;  %v3559_v56 = vpop.permute.xlu1 %3558  ;;  %v4421_v62 = vpop.permute.xlu0 %4420  ;;  %vm20908_vm0 = vmmov %vm20903_vm6 }
 0x20f   :  { %4401 = vst.msk [vmem:[#allocation2 + $0x44] sm:$0xf] %vm20783_vm5, %v16672_v57  ;;  %v2155_v55 = vmax.f32 %v16836_v38, %v16826_v4  ;;  %v1262_v42 = vadd.f32 %v16257_v9, %v16670_v20  ;;  %v3601_v18 = vsel %vm20903_vm6, %v3584_v47, %v3557_v54  ;;  %v2931_v19 = vrot.slane %v2929_v37, 5 }
 0x210   :  { %v1646_v29 = vcombine.high %v1254_v50, %v1254_v50  ;;  %v2156_v57 = vsel %vm1825_vm3, %v1254_v50, -inf  ;;  %3636 = vst.msk [vmem:[#allocation2 + $0x50] sm:$0xff] %vm15744_vm14, %v3601_v18  ;;  %v2926_v53 = vor.u32 %v2925_v7, %v2922_v44  ;;  %v3299_v4 = vrot.slane %v2920_v1, 5  ;;  %4787 = vrot.lane.b32.xlu0 %v20886_v46, %s14437_s22 }
 0x211   :  { %v2158_v17 = vmax.f32 %v2156_v57, %v2157_v2  ;;  %v3300_v36 = vrot.slane %v2923_v26, 6  ;;  %v3585_v5 = vrot.slane %v3559_v56, 4  ;;  %vm20907_vm9 = vcmask 1044288   ;;  %3996 = vrot.lane.b32.xlu1 %v16085_v27, %s14446_s1 }
 0x212   :  { %4467 = vst.msk [vmem:[#allocation2 + $0x30] sm:$0xf] %vm20907_vm9, %v4421_v62  ;;  %v2151_v20 = vsel %vm1825_vm3, %v1646_v29, -inf  ;;  %v3303_v54 = vshrl.u32 %v16453_v23, 16  ;;  %v3306_v47 = vrot.slane %v2929_v37, 6  ;;  %v2927_v38 = vrot.slane %v2926_v53, 4  ;;  %v1282_v37 = vpop.f32.mrf.mxu0  ;;  %v4423_v18 = vpop.permute.xlu1 %4422  ;;  %vm20909_vm6 = vmmov %vm20907_vm9 }
 0x213   :  { %v1648_v50 = vcombine.high %v1262_v42, %v1262_v42  ;;  %v2152_v44 = vmax.f32 %v2150_v24, %v2151_v20  ;;  %v3301_v2 = vor.u32 %v3300_v36, %v3299_v4  ;;  %v3602_v1 = vsel %vm20908_vm0, %v3585_v5, %v3559_v56  ;;  %v16872_v29 = vpop.permute.xlu0 %3765  ;;  %4468 = vst.msk [vmem:[#allocation2 + $0x44] sm:$0xf] %vm20909_vm6, %v4423_v18 }
 0x214   :  { %v3305_v26 = vrot.slane %v3303_v54, 5  ;;  %v1275_v7 = vadd.f32 %v16257_v9, %v16737_v3  ;;  %v1267_v23 = vadd.f32 %v16257_v9, %v16751_v32  ;;  %3637 = vst.msk [vmem:[#allocation2 + $0x64] sm:$0xff] %vm15744_vm14, %v3602_v1  ;;  %v16876_v46 = vsel %vm14825_vm12, %v2927_v38, %v2931_v19  ;;  %4203 = vrot.lane.b32.xlu0 %v20891_v25, %s14447_s16  ;;  %v13372_v54 = vpop.f32.mrf.mxu0 }
 0x215   :  { %v2159_v24 = vsel %vm1825_vm3, %v1262_v42, -inf  ;;  %v3302_v57 = vrot.slane %v3301_v2, 4  ;;  %v1278_v3 = vadd.f32 %v16257_v9, %v16776_v31  ;;  %4541 = vst.msk [vmem:[#allocation2 + $0xac] sm:$0xf] %vm1825_vm3, %v16876_v46  ;;  %v2420_v32 = vsel %vm1825_vm3, %v2152_v44, -inf  ;;  %4789 = vrot.lane.b32.xlu1 %v16085_v27, %s14437_s22 }
 0x216   :  { %v2426_v56 = vsel %vm1825_vm3, %v2158_v17, -inf  ;;  %v3307_v62 = vor.u32 %v3306_v47, %v3305_v26  ;;  %v1649_v53 = vcombine.high %v1267_v23, %v1267_v23  ;;  %v1651_v42 = vcombine.high %v1275_v7, %v1275_v7  ;;  %v16902_v47 = vpop.permute.xlu1 %3767 }
 0x217   :  { %v16891_v31 = vsel %vm1825_vm3, %v1275_v7, -inf  ;;  %v1652_v19 = vcombine.high %v1278_v3, %v1278_v3  ;;  %v1270_v4 = vadd.f32 %v16257_v9, %v16828_v40  ;;  %v2165_v5 = vsel %vm1825_vm3, %v1267_v23, -inf  ;;  %v16904_v38 = vpop.permute.xlu0 %3923 }
 0x218   :  { %v16897_v36 = vsel %vm14901_vm15, %v3302_v57, %v3307_v62  ;;  %v2160_v17 = vsel %vm1825_vm3, %v1649_v53, -inf  ;;  %v2162_v20 = vsel %vm1825_vm3, %v1648_v50, -inf  ;;  %v2423_v9 = vsel %vm1825_vm3, %v2155_v55, -inf  ;;  %4361 = vrot.lane.b32.xlu0 %v20894_v11, %s14448_s17  ;;  %v16920_v55 = vld [vmem:[%s20694_s2] ss:$0 sm:$0xff] }
 0x219   :  { %v2161_v44 = vmax.f32 %v2159_v24, %v2160_v17  ;;  %v1650_v2 = vcombine.high %v1270_v4, %v1270_v4  ;;  %v2163_v1 = vsel %vm1825_vm3, %v1270_v4, -inf  ;;  %v2169_v40 = vsel %vm1825_vm3, %v1652_v19, -inf  ;;  %4205 = vrot.lane.b32.xlu1 %v16162_v45, %s14447_s16  ;;  %v1285_v17 = vpop.f32.mrf.mxu0 }
 0x21a   :  { %v2164_v26 = vmax.f32 %v2162_v20, %v2163_v1  ;;  %v12241_v7 = vrot.slane %v16821_v10, 9  ;;  %v3107_v23 = vrot.slane %v16789_v13, 5  ;;  %v1291_v24 = vadd.f32 %v16920_v55, %v16854_v59  ;;  %v16930_v20 = vpop.permute.xlu1 %3925 }
 0x21b   :  { %v2421_v50 = vsel %vm1825_vm3, %v2161_v44, -inf  ;;  %v2166_v18 = vsel %vm1825_vm3, %v1650_v2, -inf  ;;  %v1283_v57 = vadd.f32 %v16920_v55, %v1282_v37  ;;  %v4562_v44 = vpop.permute.xlu0 %4561  ;;  %v2170_v2 = vmax.f32 %v16891_v31, %v2169_v40 }
 0x21c   :  { %v2422_v62 = vmax.f32 %v2420_v32, %v2421_v50  ;;  %v2167_v53 = vmax.f32 %v2165_v5, %v2166_v18  ;;  %v2424_v19 = vsel %vm1825_vm3, %v2164_v26, -inf  ;;  %v16928_v4 = vsel %vm14772_vm11, %v12241_v7, %v3107_v23  ;;  %4607 = vst.msk [vmem:[#allocation2 + $0x34] sm:$0xf] %vm20782_vm1, %v4562_v44  ;;  %v16937_v7 = vpop.f32.mrf.mxu0  ;;  %4887 = vrot.lane.b32.xlu0 %v20901_v0, %s14441_s13 }
 0x21d   :  { %v2174_v1 = vsel %vm1825_vm3, %v1278_v3, -inf  ;;  %v2425_v14 = vmax.f32 %v2423_v9, %v2424_v19  ;;  %v1653_v59 = vcombine.high %v1283_v57, %v1283_v57  ;;  %v1655_v5 = vcombine.high %v1291_v24, %v1291_v24  ;;  %4363 = vrot.lane.b32.xlu1 %v16171_v28, %s14448_s17 }
 0x21e   :  { %v2528_v37 = vmax.f32 %v2422_v62, 0.0  ;;  %v2427_v32 = vsel %vm1825_vm3, %v2167_v53, -inf  ;;  %v2171_v26 = vsel %vm1825_vm3, %v1651_v42, -inf  ;;  %v2172_v9 = vsel %vm1825_vm3, %v1283_v57, -inf  ;;  %v4564_v62 = vpop.permute.xlu1 %4563 }
 0x21f   :  { %v2428_v31 = vmax.f32 %v2426_v56, %v2427_v32  ;;  %v2529_v3 = vmax.f32 %v2425_v14, 0.0  ;;  %v2175_v40 = vsel %vm1825_vm3, %v1653_v59, -inf  ;;  %v12257_v50 = vrot.slane %v16821_v10, 10  ;;  %v16948_v53 = vpop.permute.xlu0 %4717  ;;  %4608 = vst.msk [vmem:[#allocation2 + $0x48] sm:$0xf] %vm20782_vm1, %v4564_v62  ;;  %v16965_v32 = vpop.f32.mrf.mxu0 }
 0x220   :  { %v2176_v23 = vmax.f32 %v2174_v1, %v2175_v40  ;;  %v3467_v18 = vrot.slane %v16789_v13, 6  ;;  %v1294_v42 = vadd.f32 %v16920_v55, %v13372_v54  ;;  %v16952_v19 = vpack.c.bf16 %v16770_v34, %v16770_v34  ;;  %4130 = vrot.lane.b32.xlu0 %v20901_v0, %s14449_s12 }
 0x221   :  { %v16954_v56 = vmax.f32 %v2428_v31, 0.0  ;;  %v16956_v14 = vcombine.low %v2528_v37, %v2529_v3  ;;  %v1286_v57 = vadd.f32 %v16920_v55, %v1285_v17  ;;  %v2183_v44 = vsel %vm1825_vm3, %v1291_v24, -inf  ;;  %4889 = vrot.lane.b32.xlu1 %v16241_v48, %s14441_s13 }
 0x222   :  { %v2173_v1 = vmax.f32 %v2171_v26, %v2172_v9  ;;  %v16963_v54 = vsel %vm14763_vm8, %v12257_v50, %v3467_v18  ;;  %v1656_v59 = vcombine.high %v1294_v42, %v1294_v42  ;;  %v2435_v24 = vsel %vm1825_vm3, %v2176_v23, -inf  ;;  %v16981_v40 = vpop.permute.xlu1 %4719 }
 0x223   :  { %20910 = vst [vmem:[#allocation49_spill] sm:$0xff] %v16963_v54  ;;  %v16973_v34 = vpack.c.bf16 %v16954_v56, %v16956_v14  ;;  %v2181_v17 = vsel %vm1825_vm3, %v1294_v42, -inf  ;;  %v2177_v37 = vsel %vm1825_vm3, %v1286_v57, -inf  ;;  %v1654_v31 = vcombine.high %v1286_v57, %v1286_v57  ;;  %v3693_v0 = vpop.permute.xlu0 %3692 }
 0x224   :  { %v2184_v26 = vsel %vm1825_vm3, %v1656_v59, -inf  ;;  %v2178_v3 = vsel %vm1825_vm3, %v1655_v5, -inf  ;;  %v2429_v9 = vsel %vm1825_vm3, %v2170_v2, -inf  ;;  %v2934_v23 = vshrl.u32 %v16821_v10, 16  ;;  %v16992_v59 = vpop.f32.mrf.mxu0  ;;  %4288 = vrot.lane.b32.xlu0 %v16060_v51, %s14450_s14  ;;  %v20932_v51 = vld [vmem:[#allocation36_spill] sm:$0xff] }
 0x225   :  { %20911 = vst [vmem:[#allocation50_spill] sm:$0xff] %v16973_v34  ;;  %2680 = vst.msk [vmem:[#allocation2 + $0x118] sm:$0xf] %vm1825_vm3, %v16973_v34  ;;  %v2185_v50 = vmax.f32 %v2183_v44, %v2184_v26  ;;  %v2179_v18 = vmax.f32 %v2177_v37, %v2178_v3  ;;  %v2937_v42 = vshll.u32 %v16821_v10, 16  ;;  %vm20912_vm9 = vcmask 322688   ;;  %4132 = vrot.lane.b32.xlu1 %v16241_v48, %s14449_s12 }
 0x226   :  { %3737 = vst.msk [vmem:[#allocation2 + $0x54] sm:$0xf] %vm20912_vm9, %v3693_v0  ;;  %v2432_v62 = vsel %vm1825_vm3, %v2173_v1, -inf  ;;  %v2180_v5 = vsel %vm1825_vm3, %v1654_v31, -inf  ;;  %v2943_v2 = vshll.u32 %v16789_v13, 16  ;;  %v3313_v57 = vshrl.u32 %v16789_v13, 16  ;;  %v3695_v0 = vpop.permute.xlu1 %3694  ;;  %vm20914_vm6 = vmmov %vm20912_vm9 }
 0x227   :  { %vm20913_vm0 = vcmask 519488   ;;  %v2436_v10 = vsel %vm1825_vm3, %v2185_v50, -inf  ;;  %v2182_v44 = vmax.f32 %v2180_v5, %v2181_v17  ;;  %v2430_v1 = vsel %vm1825_vm3, %v2179_v18, -inf  ;;  %v3851_v11 = vpop.permute.xlu0 %3850  ;;  %3738 = vst.msk [vmem:[#allocation2 + $0x68] sm:$0xf] %vm20914_vm6, %v3695_v0 }
 0x228   :  { %3810 = vst.msk [vmem:[#allocation2 + $0x54] sm:$0xf] %vm20913_vm0, %v16872_v29  ;;  %v2936_v37 = vrot.slane %v2934_v23, 4  ;;  %v2437_v26 = vmax.f32 %v2435_v24, %v2436_v10  ;;  %v2431_v31 = vmax.f32 %v2429_v9, %v2430_v1  ;;  %v2939_v13 = vrot.slane %v2937_v42, 5  ;;  %v1301_v24 = vpop.f32.mrf.mxu0  ;;  %vm20915_vm9 = vmmov %vm20913_vm0  ;;  %v20917_v9 = vld [vmem:[#allocation7_spill] sm:$0xff]  ;;  %4569 = vrot.lane.b32.xlu0 %v16162_v45, %s14439_s24 }
 0x229   :  { %v12242_v3 = vrot.slane %v16952_v19, 9  ;;  %v2433_v29 = vsel %vm1825_vm3, %v2182_v44, -inf  ;;  %v3309_v25 = vrot.slane %v2934_v23, 5  ;;  %v3310_v48 = vrot.slane %v2937_v42, 6  ;;  %3895 = vst.msk [vmem:[#allocation2 + $0x54] sm:$0xf] %vm3890_vm4, %v3851_v11  ;;  %4290 = vrot.lane.b32.xlu1 %v20917_v9, %s14450_s14 }
 0x22a   :  { %v3315_v43 = vrot.slane %v3313_v57, 5  ;;  %v2434_v17 = vmax.f32 %v2432_v62, %v2433_v29  ;;  %v2531_v50 = vmax.f32 %v2431_v31, 0.0  ;;  %v2940_v18 = vor.u32 %v2939_v13, %v2936_v37  ;;  %3811 = vst.msk [vmem:[#allocation2 + $0x68] sm:$0xf] %vm20915_vm9, %v16902_v47  ;;  %v3853_v1 = vpop.permute.xlu1 %3852 }
 0x22b   :  { %v2945_v5 = vrot.slane %v2943_v2, 5  ;;  %vm20916_vm0 = vcmask 913088   ;;  %v3311_v23 = vor.u32 %v3310_v48, %v3309_v25  ;;  %v3316_v42 = vrot.slane %v2943_v2, 6  ;;  %3896 = vst.msk [vmem:[#allocation2 + $0x68] sm:$0xf] %vm3890_vm4, %v3853_v1 }
 0x22c   :  { %3968 = vst.msk [vmem:[#allocation2 + $0x54] sm:$0xf] %vm20916_vm0, %v16904_v38  ;;  %v3111_v11 = vrot.slane %v16830_v15, 5  ;;  %v12258_v62 = vrot.slane %v16952_v19, 10  ;;  %v17016_v57 = vmax.f32 %v2437_v26, 0.0  ;;  %v2532_v10 = vmax.f32 %v2434_v17, 0.0  ;;  %v4646_v38 = vpop.permute.xlu0 %4645  ;;  %v17039_v17 = vpop.f32.mrf.mxu0  ;;  %vm20923_vm9 = vmmov %vm20916_vm0  ;;  %4725 = vrot.lane.b32.xlu0 %v16171_v28, %s14440_s29 }
 0x22d   :  { %v2941_v44 = vrot.slane %v2940_v18, 4  ;;  %v3471_v47 = vrot.slane %v16830_v15, 6  ;;  %v20918_v37 = vshrl.u32 %v16391_v41, 16  ;;  %v3312_v13 = vrot.slane %v3311_v23, 4  ;;  %3969 = vst.msk [vmem:[#allocation2 + $0x68] sm:$0xf] %vm20923_vm9, %v16930_v20 }
 0x22e   :  { %v3317_v0 = vor.u32 %v3316_v42, %v3315_v43  ;;  %v17023_v25 = vsel %vm14772_vm11, %v12242_v3, %v3111_v11  ;;  %vm20920_vm6 = vcmask 585088   ;;  %v20921_v2 = vshll.u32 %v16391_v41, 16  ;;  %v20925_v3 = vld [vmem:[#allocation34_spill] sm:$0xff]  ;;  %v4648_v23 = vpop.permute.xlu1 %4647  ;;  %v1314_v1 = vpop.f32.mrf.mxu0 }
 0x22f   :  { %v4854_v31 = vrot.slane %v20918_v37, 4  ;;  %20919 = vst [vmem:[#allocation51_spill] sm:$0xff] %v17023_v25  ;;  %4691 = vst.msk [vmem:[#allocation2 + $0x34] sm:$0xf] %vm20920_vm6, %v4646_v38  ;;  %v17029_v29 = vcombine.low %v2531_v50, %v2532_v10  ;;  %v17033_v48 = vsel %vm14825_vm12, %v2941_v44, %v2945_v5  ;;  %v17037_v43 = vsel %vm14763_vm8, %v12258_v62, %v3471_v47  ;;  %v20926_v50 = vld [vmem:[#allocation37_spill] sm:$0xff]  ;;  %v20929_v38 = vld [vmem:[#allocation35_spill] sm:$0xff] }
 0x230   :  { %v4857_v26 = vrot.slane %v20921_v2, 5  ;;  %20922 = vst [vmem:[#allocation52_spill] sm:$0xff] %v17037_v43  ;;  %vm20924_vm0 = vcmask 781888   ;;  %4571 = vrot.lane.b32.xlu1 %v20925_v3, %s14439_s24  ;;  %v20763_v18 = vshll.u32 %v20926_v50, 16  ;;  %4542 = vst.msk [vmem:[#allocation2 + $0xc0] sm:$0xf] %vm1825_vm3, %v17033_v48  ;;  %v17054_v5 = vsel %vm14901_vm15, %v3312_v13, %v3317_v0  ;;  %v3991_v42 = vpop.permute.xlu0 %3990  ;;  %4653 = vrot.lane.b32.xlu0 %v20917_v9, %s14438_s23 }
 0x231   :  { %4763 = vst.msk [vmem:[#allocation2 + $0x34] sm:$0xf] %vm20924_vm0, %v16948_v53  ;;  %v2948_v20 = vshrl.u32 %v16952_v19, 16  ;;  %v17059_v53 = vpack.c.bf16 %v17016_v57, %v17029_v29  ;;  %v2951_v62 = vshll.u32 %v16952_v19, 16  ;;  %v2957_v10 = vshll.u32 %v16830_v15, 16  ;;  %vm20928_vm9 = vmmov %vm20924_vm0 }
 0x232   :  { %4692 = vst.msk [vmem:[#allocation2 + $0x48] sm:$0xf] %vm20920_vm6, %v4648_v23  ;;  %v4018_v44 = vrot.slane %v3991_v42, 4  ;;  %v4858_v47 = vor.u32 %v4857_v26, %v4854_v31  ;;  %v4863_v19 = vrot.slane %v20763_v18, 5  ;;  %vm20930_vm0 = vcmask 916480   ;;  %v3993_v2 = vpop.permute.xlu1 %3992 }
 0x233   :  { %20927 = vst [vmem:[#allocation53_spill] sm:$0xff] %v17059_v53  ;;  %v2950_v11 = vrot.slane %v2948_v20, 4  ;;  %2681 = vst.msk [vmem:[#allocation2 + $0x12c] sm:$0xf] %vm1825_vm3, %v17059_v53  ;;  %v2953_v37 = vrot.slane %v2951_v62, 5  ;;  %v1299_v31 = vadd.f32 %v16920_v55, %v16965_v32  ;;  %v1310_v0 = vadd.f32 %v16920_v55, %v16992_v59  ;;  %v13380_v59 = vpop.f32.mrf.mxu0 }
 0x234   :  { %4764 = vst.msk [vmem:[#allocation2 + $0x48] sm:$0xf] %vm20928_vm9, %v16981_v40  ;;  %4727 = vrot.lane.b32.xlu1 %v20929_v38, %s14440_s29  ;;  %v4035_v13 = vsel %vm20930_vm0, %v4018_v44, %v3991_v42  ;;  %v17080_v40 = vadd.f32 %v16920_v55, %v1301_v24  ;;  %v4784_v26 = vpop.permute.xlu0 %4783  ;;  %v2959_v38 = vrot.slane %v2957_v10, 5  ;;  %v3319_v18 = vrot.slane %v2948_v20, 5  ;;  %v20931_v24 = vld [vmem:[#allocation18_spill] sm:$0xff]  ;;  %4791 = vrot.lane.b32.xlu0 %v20932_v51, %s14437_s22  ;;  %vm20933_vm6 = vmmov %vm20930_vm0 }
 0x235   :  { %4070 = vst.msk [vmem:[#allocation2 + $0x54] sm:$0xff] %vm15942_vm13, %v4035_v13  ;;  %v2954_v23 = vor.u32 %v2953_v37, %v2950_v11  ;;  %v3320_v28 = vrot.slane %v2951_v62, 6  ;;  %v4019_v9 = vrot.slane %v3993_v2, 4  ;;  %v4859_v42 = vrot.slane %v4858_v47, 4 }
 0x236   :  { %4829 = vst.msk [vmem:[#allocation2 + $0x34] sm:$0xf] %vm3529_vm7, %v4784_v26  ;;  %v3323_v32 = vshrl.u32 %v16830_v15, 16  ;;  %v3326_v44 = vrot.slane %v2957_v10, 6  ;;  %v1307_v11 = vadd.f32 %v16920_v55, %v16937_v7  ;;  %v1657_v13 = vcombine.high %v1299_v31, %v1299_v31  ;;  %v4786_v15 = vpop.permute.xlu1 %4785 }
 0x237   :  { %v2955_v37 = vrot.slane %v2954_v23, 4  ;;  %v3321_v20 = vor.u32 %v3320_v28, %v3319_v18  ;;  %v4036_v62 = vsel %vm20933_vm6, %v4019_v9, %v3993_v2  ;;  %v1315_v47 = vadd.f32 %v16920_v55, %v1314_v1  ;;  %4830 = vst.msk [vmem:[#allocation2 + $0x48] sm:$0xf] %vm3529_vm7, %v4786_v15  ;;  %v1317_v2 = vpop.f32.mrf.mxu0  ;;  %v20935_v23 = vld [vmem:[#allocation33_spill] sm:$0xff] }
 0x238   :  { %4655 = vrot.lane.b32.xlu1 %v20931_v24, %s14438_s23  ;;  %v3325_v26 = vrot.slane %v3323_v32, 5  ;;  %4071 = vst.msk [vmem:[#allocation2 + $0x68] sm:$0xff] %vm15942_vm13, %v4036_v62  ;;  %v17096_v10 = vpop.permute.xlu0 %3133  ;;  %v1660_v3 = vcombine.high %v1310_v0, %v1310_v0  ;;  %v1658_v28 = vcombine.high %v17080_v40, %v17080_v40  ;;  %v4864_v9 = vsel %vm14825_vm12, %v4859_v42, %v4863_v19  ;;  %v20936_v32 = vld [vmem:[#allocation25_spill] sm:$0xff] }
 0x239   :  { %v17100_v24 = vsel %vm14825_vm12, %v2955_v37, %v2959_v38  ;;  %v3322_v7 = vrot.slane %v3321_v20, 4  ;;  %v17109_v18 = vpack.c.bf16 %v16954_v56, %v16954_v56  ;;  %v1661_v38 = vcombine.high %v1315_v47, %v1315_v47  ;;  %v20938_v20 = vld [vmem:[#allocation40_spill] sm:$0xff]  ;;  %v13383_v41 = vpop.f32.mrf.mxu0 }
 0x23a   :  { %20934 = vst [vmem:[#allocation54_spill] sm:$0xff] %v17100_v24  ;;  %4543 = vst.msk [vmem:[#allocation2 + $0xd4] sm:$0xf] %vm1825_vm3, %v17100_v24  ;;  %v3327_v1 = vor.u32 %v3326_v44, %v3325_v26  ;;  %v20937_v37 = vpack.c.bf16 %v20935_v23, %v20936_v32  ;;  %4891 = vrot.lane.b32.xlu0 %v20938_v20, %s14441_s13  ;;  %v17121_v19 = vpack.c.bf16 %v16956_v14, %v16956_v14  ;;  %v17131_v23 = vpop.permute.xlu1 %3135  ;;  %vm20947_vm9 = vcmask 585088  }
 0x23b   :  { %v1659_v56 = vcombine.high %v1307_v11, %v1307_v11  ;;  %v1318_v42 = vadd.f32 %v16920_v55, %v1317_v2  ;;  %v2190_v62 = vsel %vm1825_vm3, %v1307_v11, -inf  ;;  %v2186_v44 = vsel %vm1825_vm3, %v1299_v31, -inf  ;;  %vm20952_vm6 = vmmov %vm20947_vm9 }
 0x23c   :  { %4793 = vrot.lane.b32.xlu1 %v20937_v37, %s14437_s22  ;;  %v2189_v26 = vsel %vm1825_vm3, %v1657_v13, -inf  ;;  %v17129_v15 = vsel %vm14901_vm15, %v3322_v7, %v3327_v1  ;;  %v17133_v32 = vpop.permute.xlu0 %3493  ;;  %v2195_v14 = vsel %vm1825_vm3, %v1310_v0, -inf  ;;  %v2187_v37 = vsel %vm1825_vm3, %v1658_v28, -inf  ;;  %v20940_v1 = vld [vmem:[#allocation39_spill] sm:$0xff] }
 0x23d   :  { %20939 = vst [vmem:[#allocation33_spill] sm:$0xff] %v17129_v15  ;;  %v2196_v2 = vsel %vm1825_vm3, %v1661_v38, -inf  ;;  %v2198_v11 = vsel %vm1825_vm3, %v1660_v3, -inf  ;;  %v1662_v20 = vcombine.high %v1318_v42, %v1318_v42  ;;  %v2199_v31 = vsel %vm1825_vm3, %v1318_v42, -inf  ;;  %v13538_v38 = vld [vmem:[#allocation2 + $0x50] ss:$20 sps:$4 sm:$0xff]  }
 0x23e   :  { %v12243_v13 = vrot.slane %v17121_v19, 9  ;;  %v3115_v7 = vrot.slane %v17109_v18, 5  ;;  %3137 = vrot.lane.b32.xlu0 %v20940_v1, %s14438_s23  ;;  %v2193_v0 = vsel %vm1825_vm3, %v1659_v56, -inf  ;;  %v1326_v28 = vadd.f32 %v16920_v55, %v13380_v59  ;;  %v17153_v27 = vpop.permute.xlu1 %3495 }
 0x23f   :  { %v13536_v45 = vld [vmem:[#allocation2 + $0x54] ss:$20 sps:$4 sm:$0xff]   ;;  %v2188_v50 = vmax.f32 %v2186_v44, %v2187_v37  ;;  %v2192_v3 = vsel %vm1825_vm3, %v17080_v40, -inf  ;;  %v2191_v1 = vmax.f32 %v2189_v26, %v2190_v62  ;;  %v2197_v51 = vmax.f32 %v2195_v14, %v2196_v2  ;;  %v1330_v26 = vpop.f32.mrf.mxu0 }
 0x240   :  { %4893 = vrot.lane.b32.xlu1 %v4864_v9, %s14441_s13  ;;  %v17151_v42 = vsel %vm14772_vm11, %v12243_v13, %v3115_v7  ;;  %v17155_v9 = vpop.permute.xlu0 %4199  ;;  %v2200_v56 = vmax.f32 %v2198_v11, %v2199_v31  ;;  %5834 = vmatprep.mubr.bf16.mxu1 %v13536_v45  ;;  %v2201_v59 = vsel %vm1825_vm3, %v1315_v47, -inf  ;;  %v2202_v44 = vsel %vm1825_vm3, %v1662_v20, -inf  ;;  %v20942_v37 = vld [vmem:[#allocation41_spill] sm:$0xff]  ;;  %v20943_v40 = vld [vmem:[#allocation42_spill] sm:$0xff] }
 0x241   :  { %20941 = vst [vmem:[#allocation25_spill] sm:$0xff] %v17151_v42  ;;  %v2194_v13 = vmax.f32 %v2192_v3, %v2193_v0  ;;  %v1664_v7 = vcombine.high %v1326_v28, %v1326_v28  ;;  %5835 = vmatmul.mubr.bf16.gmra.mxu1 %v13538_v38  ;;  %v2438_v53 = vsel %vm1825_vm3, %v2188_v50, -inf  ;;  %v1323_v62 = vadd.f32 %v16920_v55, %v17039_v17  ;;  %v20945_v3 = vld [vmem:[#allocation43_spill] sm:$0xff] }
 0x242   :  { %3497 = vrot.lane.b32.xlu0 %v20943_v40, %s14437_s22  ;;  %v12259_v45 = vrot.slane %v17121_v19, 10  ;;  %v3475_v47 = vrot.slane %v17109_v18, 6  ;;  %v17168_v14 = vpop.permute.xlu1 %4201  ;;  %v2439_v11 = vsel %vm1825_vm3, %v2197_v51, -inf  ;;  %v2203_v20 = vmax.f32 %v2201_v59, %v2202_v44 }
 0x243   :  { %v2441_v31 = vsel %vm1825_vm3, %v2191_v1, -inf  ;;  %v2442_v0 = vsel %vm1825_vm3, %v2200_v56, -inf  ;;  %v17177_v50 = vpack.c.bf16 %v17016_v57, %v17016_v57  ;;  %v17181_v17 = vpack.c.bf16 %v17029_v29, %v17029_v29 }
 0x244   :  { %3139 = vrot.lane.b32.xlu1 %v20942_v37, %s14438_s23  ;;  %v17170_v2 = vpop.permute.xlu0 %4357  ;;  %v17185_v38 = vsel %vm14763_vm8, %v12259_v45, %v3475_v47  ;;  %v20946_v51 = vsel %vm14825_vm12, %v16501_v30, %v16484_v35  ;;  %v2444_v57 = vsel %vm1825_vm3, %v2194_v13, -inf  ;;  %v17197_v1 = vsel %vm1825_vm3, %v1323_v62, -inf  ;;  %v13384_v45 = vpop.f32.mrf.mxu0 }
 0x245   :  { %20944 = vst [vmem:[#allocation40_spill] sm:$0xff] %v17185_v38  ;;  %v17200_v29 = vsel %vm1825_vm3, %v1664_v7, -inf  ;;  %v17203_v56 = vadd.f32 %v16920_v55, %v13383_v41  ;;  %v1663_v59 = vcombine.high %v1323_v62, %v1323_v62  ;;  %v2440_v44 = vmax.f32 %v2438_v53, %v2439_v11 }
 0x246   :  { %3005 = vrot.lane.b32.xlu0 %v20946_v51, %s14439_s24  ;;  %v2443_v40 = vmax.f32 %v2441_v31, %v2442_v0  ;;  %v2962_v47 = vshrl.u32 %v17121_v19, 16  ;;  %v17206_v38 = vpop.permute.xlu1 %4359  ;;  %v17209_v30 = vsel %vm1825_vm3, %v1326_v28, -inf  ;;  %v2445_v13 = vsel %vm1825_vm3, %v2203_v20, -inf  ;;  %v20948_v28 = vld [vmem:[#allocation24_spill] sm:$0xff] }
 0x247   :  { %v17213_v7 = vadd.f32 %v16920_v55, %v1330_v26  ;;  %v2965_v41 = vshll.u32 %v17121_v19, 16  ;;  %v2971_v11 = vshll.u32 %v17109_v18, 16  ;;  %v1667_v19 = vcombine.high %v17203_v56, %v17203_v56 }
 0x248   :  { %3499 = vrot.lane.b32.xlu1 %v20945_v3, %s14437_s22  ;;  %v3002_v35 = vpop.permute.xlu0 %3001  ;;  %v2964_v62 = vrot.slane %v2962_v47, 4  ;;  %v3329_v31 = vrot.slane %v2962_v47, 5  ;;  %v2534_v51 = vmax.f32 %v2440_v44, 0.0  ;;  %v2535_v47 = vmax.f32 %v2443_v40, 0.0  ;;  %v20950_v40 = vld [vmem:[#allocation30_spill] sm:$0xff] }
 0x249   :  { %3044 = vst.msk [vmem:[#allocation2 + $0x78] sm:$0xf] %vm20782_vm1, %v3002_v35  ;;  %v1665_v26 = vcombine.high %v17213_v7, %v17213_v7  ;;  %v2967_v20 = vrot.slane %v2965_v41, 5  ;;  %v3330_v0 = vrot.slane %v2965_v41, 6  ;;  %v2446_v35 = vmax.f32 %v2444_v57, %v2445_v13  ;;  %v20951_v13 = vld [vmem:[#allocation29_spill] sm:$0xff] }
 0x24a   :  { %3176 = vst.msk [vmem:[#allocation2 + $0x78] sm:$0xf] %vm20947_vm9, %v17096_v10  ;;  %3365 = vrot.lane.b32.xlu0 %v20948_v28, %s14440_s29  ;;  %v17231_v53 = vsel %vm1825_vm3, %v1663_v59, -inf  ;;  %v1333_v10 = vpop.f32.mrf.mxu0  ;;  %v3004_v42 = vpop.permute.xlu1 %3003  ;;  %v2973_v24 = vrot.slane %v2971_v11, 5  ;;  %v3333_v43 = vshrl.u32 %v17109_v18, 16  ;;  %vm20949_vm0 = vcmask 781888  }
 0x24b   :  { %v2968_v15 = vor.u32 %v2967_v20, %v2964_v62  ;;  %v3331_v28 = vor.u32 %v3330_v0, %v3329_v31  ;;  %3045 = vst.msk [vmem:[#allocation2 + $0x8c] sm:$0xf] %vm20782_vm1, %v3004_v42  ;;  %v17238_v44 = vsel %vm1825_vm3, %v17213_v7, -inf  ;;  %v17241_v57 = vadd.f32 %v16920_v55, %v13384_v45  ;;  %vm20955_vm9 = vmmov %vm20949_vm0  ;;  %v20963_v7 = vld [vmem:[#allocation46_spill] sm:$0xff] }
 0x24c   :  { %3007 = vrot.lane.b32.xlu1 %v16556_v39, %s14439_s24  ;;  %v3362_v34 = vpop.permute.xlu0 %3361  ;;  %v3336_v59 = vrot.slane %v2971_v11, 6  ;;  %v2654_v41 = vpack.c.bf16 %v20951_v13, %v20950_v40  ;;  %3177 = vst.msk [vmem:[#allocation2 + $0x8c] sm:$0xf] %vm20952_vm6, %v17131_v23  ;;  %v1334_v18 = vadd.f32 %v16920_v55, %v1333_v10  ;;  %v3335_v62 = vrot.slane %v3333_v43, 5 }
 0x24d   :  { %3404 = vst.msk [vmem:[#allocation2 + $0x78] sm:$0xf] %vm20949_vm0, %v3362_v34  ;;  %v20953_v34 = vld [vmem:[#allocation44_spill] sm:$0xff]  ;;  %v2969_v42 = vrot.slane %v2968_v15, 4  ;;  %v3332_v45 = vrot.slane %v3331_v28, 4  ;;  %v2536_v11 = vmax.f32 %v2446_v35, 0.0  ;;  %v2614_v40 = vcombine.low %v2534_v51, %v2535_v47 }
 0x24e   :  { %3536 = vst.msk [vmem:[#allocation2 + $0x78] sm:$0xf] %vm3529_vm7, %v17133_v32  ;;  %3564 = vrot.lane.b32.xlu0 %v20953_v34, %s14441_s13  ;;  %v12244_v31 = vrot.slane %v17181_v17, 9  ;;  %v3119_v23 = vrot.slane %v17177_v50, 5  ;;  %v12260_v32 = vrot.slane %v17181_v17, 10  ;;  %v3337_v55 = vor.u32 %v3336_v59, %v3335_v62 }
 0x24f   :  { %2674 = vst.msk [vmem:[#allocation2 + $0xa0] sm:$0xf] %vm1825_vm3, %v2654_v41  ;;  %v3364_v20 = vpop.permute.xlu1 %3363  ;;  %v17260_v13 = vsel %vm14825_vm12, %v2969_v42, %v2973_v24  ;;  %v3479_v15 = vrot.slane %v17177_v50, 6  ;;  %v2976_v10 = vshrl.u32 %v17181_v17, 16  ;;  %v2979_v51 = vshll.u32 %v17181_v17, 16  ;;  %v20957_v24 = vld [vmem:[#allocation21_spill] sm:$0xff] }
 0x250   :  { %3367 = vrot.lane.b32.xlu1 %v16623_v63, %s14440_s29  ;;  %v4884_v0 = vpop.permute.xlu0 %4883  ;;  %20954 = vst [vmem:[#allocation39_spill] sm:$0xff] %v17260_v13  ;;  %3405 = vst.msk [vmem:[#allocation2 + $0x8c] sm:$0xf] %vm20955_vm9, %v3364_v20  ;;  %v17268_v35 = vsel %vm14772_vm11, %v12244_v31, %v3119_v23  ;;  %v1666_v47 = vcombine.high %v1334_v18, %v1334_v18  ;;  %v17280_v28 = vsel %vm14901_vm15, %v3332_v45, %v3337_v55  ;;  %vm20959_vm0 = vcmask 982016  }
 0x251   :  { %v4913_v43 = vrot.slane %v4884_v0, 4  ;;  %4544 = vst.msk [vmem:[#allocation2 + $0xe8] sm:$0xf] %vm1825_vm3, %v17260_v13  ;;  %20956 = vst [vmem:[#allocation41_spill] sm:$0xff] %v17268_v35  ;;  %v17284_v59 = vsel %vm14763_vm8, %v12260_v32, %v3479_v15  ;;  %v2985_v17 = vshll.u32 %v17177_v50, 16  ;;  %v2981_v34 = vrot.slane %v2979_v51, 5 }
 0x252   :  { %3537 = vst.msk [vmem:[#allocation2 + $0x8c] sm:$0xf] %vm3529_vm7, %v17153_v27  ;;  %3773 = vrot.lane.b32.xlu0 %v20942_v37, %s14442_s21  ;;  %20958 = vst [vmem:[#allocation42_spill] sm:$0xff] %v17280_v28  ;;  %v2978_v27 = vrot.slane %v2976_v10, 4  ;;  %v3339_v42 = vrot.slane %v2976_v10, 5  ;;  %v1668_v45 = vcombine.high %v17241_v57, %v17241_v57  ;;  %v3340_v31 = vrot.slane %v2979_v51, 6 }
 0x253   :  { %v4929_v41 = vsel %vm20959_vm0, %v4913_v43, %v4884_v0  ;;  %v4886_v37 = vpop.permute.xlu1 %4885  ;;  %v3343_v23 = vshrl.u32 %v17177_v50, 16  ;;  %v3346_v32 = vrot.slane %v2985_v17, 6  ;;  %v2987_v0 = vrot.slane %v2985_v17, 5  ;;  %v20960_v43 = vld [vmem:[#allocation45_spill] sm:$0xff]  ;;  %vm20961_vm6 = vmmov %vm20959_vm0 }
 0x254   :  { %3566 = vrot.lane.b32.xlu1 %v20957_v24, %s14441_s13  ;;  %4961 = vst.msk [vmem:[#allocation2 + $0x34] sm:$0xff] %vm15744_vm14, %v4929_v41  ;;  %v4127_v62 = vpop.permute.xlu0 %4126  ;;  %v4914_v20 = vrot.slane %v4886_v37, 4  ;;  %v2982_v55 = vor.u32 %v2981_v34, %v2978_v27  ;;  %v17294_v15 = vpack.c.bf16 %v2536_v11, %v2614_v40  ;;  %v2217_v50 = vsel %vm1825_vm3, %v17241_v57, -inf }
 0x255   :  { %4171 = vst.msk [vmem:[#allocation2 + $0x58] sm:$0xf] %vm4166_vm2, %v4127_v62  ;;  %v2213_v10 = vsel %vm1825_vm3, %v1334_v18, -inf  ;;  %v3341_v51 = vor.u32 %v3340_v31, %v3339_v42  ;;  %v3345_v41 = vrot.slane %v3343_v23, 5  ;;  %v2216_v27 = vsel %vm1825_vm3, %v1666_v47, -inf }
 0x256   :  { %4244 = vst.msk [vmem:[#allocation2 + $0x58] sm:$0xf] %vm4239_vm10, %v17155_v9  ;;  %3931 = vrot.lane.b32.xlu0 %v20945_v3, %s14443_s30  ;;  %v4930_v17 = vsel %vm20961_vm6, %v4914_v20, %v4886_v37  ;;  %v2214_v9 = vsel %vm1825_vm3, %v1667_v19, -inf  ;;  %v2983_v34 = vrot.slane %v2982_v55, 4  ;;  %v17313_v57 = vpack.c.bf16 %v2536_v11, %v2536_v11 }
 0x257   :  { %4962 = vst.msk [vmem:[#allocation2 + $0x48] sm:$0xff] %vm15744_vm14, %v4930_v17  ;;  %v4129_v3 = vpop.permute.xlu1 %4128  ;;  %v2211_v18 = vsel %vm1825_vm3, %v1665_v26, -inf  ;;  %v3342_v42 = vrot.slane %v3341_v51, 4  ;;  %v3347_v37 = vor.u32 %v3346_v32, %v3345_v41  ;;  %vm20962_vm9 = vcmask 650688  }
 0x258   :  { %3775 = vrot.lane.b32.xlu1 %v20960_v43, %s14442_s21  ;;  %v4285_v62 = vpop.permute.xlu0 %4284  ;;  %4172 = vst.msk [vmem:[#allocation2 + $0x6c] sm:$0xf] %vm4166_vm2, %v4129_v3  ;;  %v12975_v19 = vpack.c.bf16 %v2614_v40, %v2614_v40  ;;  %v2219_v47 = vsel %vm1825_vm3, %v17203_v56, -inf  ;;  %v2209_v31 = vmax.f32 %v17231_v53, %v17238_v44  ;;  %v17327_v11 = vsel %vm14825_vm12, %v2983_v34, %v2987_v0  ;;  %vm20964_vm0 = vmmov %vm20962_vm9 }
 0x259   :  { %4329 = vst.msk [vmem:[#allocation2 + $0x58] sm:$0xf] %vm20962_vm9, %v4285_v62  ;;  %v2220_v56 = vsel %vm1825_vm3, %v1668_v45, -inf  ;;  %v2215_v26 = vmax.f32 %v2213_v10, %v2214_v9  ;;  %v2218_v53 = vmax.f32 %v2216_v27, %v2217_v50  ;;  %v17342_v44 = vsel %vm14901_vm15, %v3342_v42, %v3347_v37 }
 0x25a   :  { %4245 = vst.msk [vmem:[#allocation2 + $0x6c] sm:$0xf] %vm4239_vm10, %v17168_v14  ;;  %3700 = vrot.lane.b32.xlu0 %v16556_v39, %s14444_s28  ;;  %v2212_v14 = vmax.f32 %v17209_v30, %v2211_v18  ;;  %v12266_v23 = vrot.slane %v12975_v19, 9  ;;  %v3755_v32 = vrot.slane %v17313_v57, 5  ;;  %v12268_v20 = vrot.slane %v12975_v19, 10 }
 0x25b   :  { %4402 = vst.msk [vmem:[#allocation2 + $0x58] sm:$0xf] %vm20783_vm5, %v17170_v2  ;;  %v4287_v2 = vpop.permute.xlu1 %4286  ;;  %v3913_v39 = vrot.slane %v17313_v57, 6  ;;  %v2450_v55 = vsel %vm1825_vm3, %v2209_v31, -inf  ;;  %v2221_v0 = vmax.f32 %v2219_v47, %v2220_v56  ;;  %v20965_v50 = vmax.f32 %v17197_v1, %v17200_v29 }
 0x25c   :  { %3933 = vrot.lane.b32.xlu1 %v20963_v7, %s14443_s30  ;;  %4545 = vst.msk [vmem:[#allocation2 + $0xfc] sm:$0xf] %vm1825_vm3, %v17327_v11  ;;  %v3561_v40 = vpop.permute.xlu0 %3560  ;;  %v2448_v30 = vsel %vm1825_vm3, %v2215_v26, -inf  ;;  %v2451_v51 = vsel %vm1825_vm3, %v2218_v53, -inf  ;;  %v17363_v41 = vsel %vm14772_vm11, %v12266_v23, %v3755_v32  ;;  %vm20966_vm9 = vcmask 1044288  }
 0x25d   :  { %4330 = vst.msk [vmem:[#allocation2 + $0x6c] sm:$0xf] %vm20964_vm0, %v4287_v2  ;;  %v3586_v45 = vrot.slane %v3561_v40, 4  ;;  %v2447_v10 = vsel %vm1825_vm3, %v20965_v50, -inf  ;;  %v17367_v1 = vsel %vm14763_vm8, %v12268_v20, %v3913_v39  ;;  %v2454_v27 = vsel %vm1825_vm3, %v2221_v0, -inf  ;;  %vm20967_vm0 = vmmov %vm20961_vm6 }
 0x25e   :  { %4403 = vst.msk [vmem:[#allocation2 + $0x6c] sm:$0xf] %vm20783_vm5, %v17206_v38  ;;  %3858 = vrot.lane.b32.xlu0 %v16623_v63, %s14445_s15  ;;  %v2453_v63 = vsel %vm1825_vm3, %v2212_v14, -inf  ;;  %v2449_v34 = vmax.f32 %v2447_v10, %v2448_v30  ;;  %v2452_v3 = vmax.f32 %v2450_v55, %v2451_v51  ;;  %v3671_v62 = vshrl.u32 %v12975_v19, 16 }
 0x25f   :  { %v3603_v38 = vsel %vm20961_vm6, %v3586_v45, %v3561_v40  ;;  %v3563_v29 = vpop.permute.xlu1 %3562  ;;  %v3674_v18 = vshll.u32 %v12975_v19, 16  ;;  %v3680_v42 = vshll.u32 %v17313_v57, 16  ;;  %v2455_v56 = vmax.f32 %v2453_v63, %v2454_v27  ;;  %vm20968_vm6 = vmmov %vm20966_vm9 }
 0x260   :  { %3702 = vrot.lane.b32.xlu1 %v16774_v61, %s14444_s28  ;;  %3638 = vst.msk [vmem:[#allocation2 + $0x78] sm:$0xff] %vm15744_vm14, %v3603_v38  ;;  %v4425_v17 = vpop.permute.xlu0 %4424  ;;  %v3587_v9 = vrot.slane %v3563_v29, 4  ;;  %v3673_v26 = vrot.slane %v3671_v62, 4  ;;  %v2537_v14 = vmax.f32 %v2449_v34, 0.0  ;;  %v2538_v2 = vmax.f32 %v2452_v3, 0.0 }
 0x261   :  { %4469 = vst.msk [vmem:[#allocation2 + $0x58] sm:$0xf] %vm20966_vm9, %v4425_v17  ;;  %v3676_v53 = vrot.slane %v3674_v18, 5  ;;  %v3682_v40 = vrot.slane %v3680_v42, 5  ;;  %v3832_v19 = vrot.slane %v3671_v62, 5  ;;  %v3833_v23 = vrot.slane %v3674_v18, 6 }
 0x262   :  { %3998 = vrot.lane.b32.xlu0 %v20957_v24, %s14446_s1  ;;  %v3604_v37 = vsel %vm20967_vm0, %v3587_v9, %v3563_v29  ;;  %v3836_v32 = vshrl.u32 %v17313_v57, 16  ;;  %v3839_v20 = vrot.slane %v3680_v42, 6  ;;  %v17389_v55 = vmax.f32 %v2455_v56, 0.0 }
 0x263   :  { %3639 = vst.msk [vmem:[#allocation2 + $0x8c] sm:$0xff] %vm15744_vm14, %v3604_v37  ;;  %v4427_v47 = vpop.permute.xlu1 %4426  ;;  %v3677_v24 = vor.u32 %v3676_v53, %v3673_v26  ;;  %v3834_v50 = vor.u32 %v3833_v23, %v3832_v19  ;;  %v2615_v30 = vcombine.low %v2537_v14, %v2538_v2  ;;  %vm20970_vm9 = vcmask 322688   ;;  %v20975_v26 = vld [vmem:[#allocation47_spill] sm:$0xff] }
 0x264   :  { %3860 = vrot.lane.b32.xlu1 %v16808_v58, %s14445_s15  ;;  %v3770_v31 = vpop.permute.xlu0 %3769  ;;  %4470 = vst.msk [vmem:[#allocation2 + $0x6c] sm:$0xf] %vm20968_vm6, %v4427_v47  ;;  %v3838_v10 = vrot.slane %v3836_v32, 5  ;;  %vm20971_vm0 = vcmask 519488   ;;  %vm20972_vm6 = vmmov %vm20970_vm9  ;;  %vm20974_vm5 = vcmask 913088  }
 0x265   :  { %v3678_v0 = vrot.slane %v3677_v24, 4  ;;  %v3835_v57 = vrot.slane %v3834_v50, 4  ;;  %v13079_v29 = vpop.f32.mrf.mxu1  ;;  %v17406_v27 = vpack.c.bf16 %v17389_v55, %v2615_v30  ;;  %v12979_v19 = vpack.c.bf16 %v2615_v30, %v2615_v30 }
 0x266   :  { %3141 = vrot.lane.b32.xlu0 %v20960_v43, %s14438_s23  ;;  %v3840_v38 = vor.u32 %v3839_v20, %v3838_v10 }
 0x267   :  { %v3772_v39 = vpop.permute.xlu1 %3771  ;;  %v17397_v51 = vsel %vm14825_vm12, %v3678_v0, %v3682_v40  ;;  %v13080_v34 = vpop.f32.mrf.mxu1  ;;  %v4105_v0 = vshrl.u32 %v12979_v19, 16  ;;  %v4108_v50 = vshll.u32 %v12979_v19, 16 }
 0x268   :  { %4000 = vrot.lane.b32.xlu1 %v16766_v49, %s14446_s1  ;;  %v3928_v45 = vpop.permute.xlu0 %3927  ;;  %4546 = vst.msk [vmem:[#allocation2 + $0x110] sm:$0xf] %vm1825_vm3, %v17397_v51  ;;  %v17403_v9 = vsel %vm14901_vm15, %v3835_v57, %v3840_v38  ;;  %v17409_v3 = vadd.f32 %v13080_v34, %v13079_v29 }
 0x269   :  { %v4107_v57 = vrot.slane %v4105_v0, 4  ;;  %v4110_v38 = vrot.slane %v4108_v50, 5 }
 0x26a   :  { %3501 = vrot.lane.b32.xlu0 %v20963_v7, %s14437_s22  ;;  %20969 = vst [vmem:[#allocation43_spill] sm:$0xff] %v17409_v3 }
 0x26b   :  { %v3930_v17 = vpop.permute.xlu1 %3929  ;;  %v4111_v29 = vor.u32 %v4110_v38, %v4107_v57 }
 0x26c   :  { %3143 = vrot.lane.b32.xlu1 %v16812_v52, %s14438_s23  ;;  %v4566_v63 = vpop.permute.xlu0 %4565 }
 0x26d   :  { %4609 = vst.msk [vmem:[#allocation2 + $0x5c] sm:$0xf] %vm20782_vm1, %v4566_v63 }
 0x26e   :  { %3009 = vrot.lane.b32.xlu0 %v16774_v61, %s14439_s24 }
 0x26f   :  { %v4568_v62 = vpop.permute.xlu1 %4567 }
 0x270   :  { %3503 = vrot.lane.b32.xlu1 %v16816_v12, %s14437_s22  ;;  %v4722_v18 = vpop.permute.xlu0 %4721  ;;  %4610 = vst.msk [vmem:[#allocation2 + $0x70] sm:$0xf] %vm20782_vm1, %v4568_v62  ;;  %vm20973_vm1 = vmmov %vm20971_vm0 }
 0x272   :  { %3369 = vrot.lane.b32.xlu0 %v16808_v58, %s14440_s29 }
 0x273   :  { %v4724_v42 = vpop.permute.xlu1 %4723 }
 0x274   :  { %3011 = vrot.lane.b32.xlu1 %v16876_v46, %s14439_s24  ;;  %v3697_v37 = vpop.permute.xlu0 %3696 }
 0x275   :  { %3739 = vst.msk [vmem:[#allocation2 + $0x7c] sm:$0xf] %vm20970_vm9, %v3697_v37  ;;  %vm20976_vm9 = vcmask 585088  }
 0x276   :  { %3812 = vst.msk [vmem:[#allocation2 + $0x7c] sm:$0xf] %vm20971_vm0, %v3770_v31  ;;  %3568 = vrot.lane.b32.xlu0 %v16766_v49, %s14441_s13  ;;  %vm20977_vm0 = vmmov %vm20974_vm5 }
 0x277   :  { %v3699_v47 = vpop.permute.xlu1 %3698 }
 0x278   :  { %3371 = vrot.lane.b32.xlu1 %v16897_v36, %s14440_s29  ;;  %v3855_v56 = vpop.permute.xlu0 %3854  ;;  %3740 = vst.msk [vmem:[#allocation2 + $0x90] sm:$0xf] %vm20972_vm6, %v3699_v47  ;;  %vm20978_vm6 = vcmask 781888   ;;  %v12276_v47 = vrot.slane %v12979_v19, 10 }
 0x279   :  { %3897 = vst.msk [vmem:[#allocation2 + $0x7c] sm:$0xf] %vm3890_vm4, %v3855_v56  ;;  %v4112_v56 = vrot.slane %v4111_v29, 4 }
 0x27a   :  { %3813 = vst.msk [vmem:[#allocation2 + $0x90] sm:$0xf] %vm20973_vm1, %v3772_v39  ;;  %3777 = vrot.lane.b32.xlu0 %v16812_v52, %s14442_s21  ;;  %vm20979_vm1 = vmmov %vm20976_vm9 }
 0x27b   :  { %3970 = vst.msk [vmem:[#allocation2 + $0x7c] sm:$0xf] %vm20974_vm5, %v3928_v45  ;;  %v3857_v31 = vpop.permute.xlu1 %3856  ;;  %vm20980_vm5 = vmmov %vm20978_vm6  ;;  %v12980_v45 = vpack.c.bf16 %v17389_v55, %v17389_v55  ;;  %v12274_v55 = vrot.slane %v12979_v19, 9 }
 0x27c   :  { %3570 = vrot.lane.b32.xlu1 %v20975_v26, %s14441_s13  ;;  %v4650_v53 = vpop.permute.xlu0 %4649  ;;  %3898 = vst.msk [vmem:[#allocation2 + $0x90] sm:$0xf] %vm3890_vm4, %v3857_v31 }
 0x27d   :  { %4693 = vst.msk [vmem:[#allocation2 + $0x5c] sm:$0xf] %vm20976_vm9, %v4650_v53  ;;  %vm20981_vm9 = vcmask 916480   ;;  %v4189_v63 = vrot.slane %v12980_v45, 5  ;;  %v4270_v37 = vshrl.u32 %v12980_v45, 16 }
 0x27e   :  { %3971 = vst.msk [vmem:[#allocation2 + $0x90] sm:$0xf] %vm20977_vm0, %v3930_v17  ;;  %3935 = vrot.lane.b32.xlu0 %v16816_v12, %s14443_s30  ;;  %vm20982_vm0 = vmmov %vm20981_vm9  ;;  %v4114_v17 = vshll.u32 %v12980_v45, 16 }
 0x27f   :  { %4765 = vst.msk [vmem:[#allocation2 + $0x5c] sm:$0xf] %vm20978_vm6, %v4722_v18  ;;  %v4652_v14 = vpop.permute.xlu1 %4651  ;;  %v4266_v18 = vrot.slane %v4105_v0, 5  ;;  %v17468_v53 = vsel %vm14772_vm11, %v12274_v55, %v4189_v63  ;;  %vm20987_vm6 = vcmask 982016   ;;  %v20988_v63 = vld [vmem:[#allocation52_spill] sm:$0xff] }
 0x280   :  { %3779 = vrot.lane.b32.xlu1 %v16928_v4, %s14442_s21  ;;  %v3995_v2 = vpop.permute.xlu0 %3994  ;;  %4694 = vst.msk [vmem:[#allocation2 + $0x70] sm:$0xf] %vm20979_vm1, %v4652_v14  ;;  %v4116_v31 = vrot.slane %v4114_v17, 5  ;;  %20983 = vst [vmem:[#allocation24_spill] sm:$0xff] %v17468_v53  ;;  %v4273_v14 = vrot.slane %v4114_v17, 6 }
 0x281   :  { %v4020_v40 = vrot.slane %v3995_v2, 4  ;;  %4766 = vst.msk [vmem:[#allocation2 + $0x70] sm:$0xf] %vm20980_vm5, %v4724_v42  ;;  %v4267_v42 = vrot.slane %v4108_v50, 6  ;;  %vm20989_vm1 = vmmov %vm20987_vm6  ;;  %vm20990_vm5 = vcmask 650688  }
 0x282   :  { %3704 = vrot.lane.b32.xlu0 %v16876_v46, %s14444_s28  ;;  %v17476_v19 = vsel %vm14825_vm12, %v4112_v56, %v4116_v31  ;;  %v20996_v31 = vld [vmem:[#allocation33_spill] sm:$0xff] }
 0x283   :  { %v4037_v24 = vsel %vm20981_vm9, %v4020_v40, %v3995_v2  ;;  %v3997_v23 = vpop.permute.xlu1 %3996  ;;  %v4268_v2 = vor.u32 %v4267_v42, %v4266_v18  ;;  %v4272_v40 = vrot.slane %v4270_v37, 5  ;;  %20984 = vst [vmem:[#allocation30_spill] sm:$0xff] %v17476_v19  ;;  %4547 = vst.msk [vmem:[#allocation2 + $0x124] sm:$0xf] %vm1825_vm3, %v17476_v19  ;;  %vm20991_vm9 = vcmask 847488  }
 0x284   :  { %3937 = vrot.lane.b32.xlu1 %v16963_v54, %s14443_s30  ;;  %4072 = vst.msk [vmem:[#allocation2 + $0x7c] sm:$0xff] %vm15942_vm13, %v4037_v24  ;;  %v4788_v32 = vpop.permute.xlu0 %4787  ;;  %v4021_v20 = vrot.slane %v3997_v23, 4  ;;  %v4347_v24 = vrot.slane %v12980_v45, 6 }
 0x285   :  { %4831 = vst.msk [vmem:[#allocation2 + $0x5c] sm:$0xf] %vm3529_vm7, %v4788_v32  ;;  %v13547_v32 = vld [vmem:[#allocation2 + $0x78] ss:$20 sps:$4 sm:$0xff]   ;;  %v4269_v0 = vrot.slane %v4268_v2, 4  ;;  %v4274_v50 = vor.u32 %v4273_v14, %v4272_v40 }
 0x286   :  { %3862 = vrot.lane.b32.xlu0 %v16897_v36, %s14445_s15  ;;  %v4038_v39 = vsel %vm20982_vm0, %v4021_v20, %v3997_v23  ;;  %vm20993_vm0 = vmmov %vm20990_vm5  ;;  %v20998_v14 = vld [vmem:[#allocation50_spill] sm:$0xff] }
 0x287   :  { %4073 = vst.msk [vmem:[#allocation2 + $0x90] sm:$0xff] %vm15942_vm13, %v4038_v39  ;;  %v4790_v10 = vpop.permute.xlu1 %4789  ;;  %v17490_v45 = vsel %vm14901_vm15, %v4269_v0, %v4274_v50 }
 0x288   :  { %3706 = vrot.lane.b32.xlu1 %v17033_v48, %s14444_s28  ;;  %v4204_v30 = vpop.permute.xlu0 %4203  ;;  %4832 = vst.msk [vmem:[#allocation2 + $0x70] sm:$0xf] %vm3529_vm7, %v4790_v10  ;;  %v17482_v10 = vsel %vm14763_vm8, %v12276_v47, %v4347_v24  ;;  %20986 = vst [vmem:[#allocation44_spill] sm:$0xff] %v17490_v45  ;;  %v21001_v24 = vld [vmem:[#allocation25_spill] sm:$0xff] }
 0x289   :  { %20985 = vst [vmem:[#allocation29_spill] sm:$0xff] %v17482_v10 }
 0x28a   :  { %4002 = vrot.lane.b32.xlu0 %v20975_v26, %s14446_s1 }
 0x28b   :  { %v4206_v34 = vpop.permute.xlu1 %4205 }
 0x28c   :  { %3864 = vrot.lane.b32.xlu1 %v17054_v5, %s14445_s15  ;;  %v4362_v62 = vpop.permute.xlu0 %4361 }
 0x28e   :  { %3145 = vrot.lane.b32.xlu0 %v16928_v4, %s14438_s23  ;;  %v13545_v23 = vld [vmem:[#allocation2 + $0x7c] ss:$20 sps:$4 sm:$0xff]  }
 0x28f   :  { %v4364_v20 = vpop.permute.xlu1 %4363  ;;  %5842 = vmatprep.mubr.bf16.mxu1 %v13545_v23  ;;  %v21093_v33 = vld [vmem:[#allocation44_spill] sm:$0xff] }
 0x290   :  { %4004 = vrot.lane.b32.xlu1 %v16792_v60, %s14446_s1  ;;  %v4888_v39 = vpop.permute.xlu0 %4887  ;;  %5843 = vmatmul.mubr.bf16.gmra.mxu1 %v13547_v32  ;;  %v21099_v8 = vld [vmem:[#allocation29_spill] sm:$0xff] }
 0x291   :  { %v4915_v57 = vrot.slane %v4888_v39, 4 }
 0x292   :  { %3505 = vrot.lane.b32.xlu0 %v16963_v54, %s14437_s22 }
 0x293   :  { %v4931_v38 = vsel %vm20987_vm6, %v4915_v57, %v4888_v39  ;;  %v4890_v29 = vpop.permute.xlu1 %4889  ;;  %vm20994_vm6 = vcmask 388288   ;;  %v21004_v39 = vld [vmem:[#allocation40_spill] sm:$0xff]  ;;  %v17537_v57 = vpop.f32.mrf.mxu1 }
 0x294   :  { %3147 = vrot.lane.b32.xlu1 %v17023_v25, %s14438_s23  ;;  %4963 = vst.msk [vmem:[#allocation2 + $0x5c] sm:$0xff] %vm15744_vm14, %v4931_v38  ;;  %v4131_v17 = vpop.permute.xlu0 %4130  ;;  %v4916_v55 = vrot.slane %v4890_v29, 4  ;;  %21005 = vst [vmem:[#allocation21_spill] sm:$0xff] %v17537_v57 }
 0x295   :  { %4173 = vst.msk [vmem:[#allocation2 + $0x80] sm:$0xf] %vm4166_vm2, %v4131_v17 }
 0x296   :  { %4246 = vst.msk [vmem:[#allocation2 + $0x80] sm:$0xf] %vm4239_vm10, %v4204_v30  ;;  %3013 = vrot.lane.b32.xlu0 %v17033_v48, %s14439_s24  ;;  %v4932_v18 = vsel %vm20989_vm1, %v4916_v55, %v4890_v29  ;;  %v20992_v30 = vld [vmem:[#allocation54_spill] sm:$0xff]  ;;  %vm20995_vm1 = vmmov %vm20991_vm9 }
 0x297   :  { %4964 = vst.msk [vmem:[#allocation2 + $0x70] sm:$0xff] %vm15744_vm14, %v4932_v18  ;;  %v4133_v42 = vpop.permute.xlu1 %4132 }
 0x298   :  { %3507 = vrot.lane.b32.xlu1 %v20988_v63, %s14437_s22  ;;  %v4289_v37 = vpop.permute.xlu0 %4288  ;;  %4174 = vst.msk [vmem:[#allocation2 + $0x94] sm:$0xf] %vm4166_vm2, %v4133_v42 }
 0x299   :  { %4331 = vst.msk [vmem:[#allocation2 + $0x80] sm:$0xf] %vm20990_vm5, %v4289_v37  ;;  %vm20997_vm5 = vmmov %vm20994_vm6  ;;  %v17547_v37 = vpop.f32.mrf.mxu1 }
 0x29a   :  { %4247 = vst.msk [vmem:[#allocation2 + $0x94] sm:$0xf] %vm4239_vm10, %v4206_v34  ;;  %3373 = vrot.lane.b32.xlu0 %v17054_v5, %s14440_s29  ;;  %21007 = vst [vmem:[#allocation45_spill] sm:$0xff] %v17547_v37 }
 0x29b   :  { %4404 = vst.msk [vmem:[#allocation2 + $0x80] sm:$0xf] %vm20991_vm9, %v4362_v62  ;;  %v4291_v47 = vpop.permute.xlu1 %4290  ;;  %vm20999_vm9 = vcmask 585088  }
 0x29c   :  { %3015 = vrot.lane.b32.xlu1 %v20992_v30, %s14439_s24  ;;  %v4570_v56 = vpop.permute.xlu0 %4569  ;;  %4332 = vst.msk [vmem:[#allocation2 + $0x94] sm:$0xf] %vm20993_vm0, %v4291_v47  ;;  %vm21000_vm0 = vcmask 781888  }
 0x29d   :  { %4611 = vst.msk [vmem:[#allocation2 + $0x84] sm:$0xf] %vm20994_vm6, %v4570_v56  ;;  %vm21002_vm6 = vmmov %vm20999_vm9 }
 0x29e   :  { %4405 = vst.msk [vmem:[#allocation2 + $0x94] sm:$0xf] %vm20995_vm1, %v4364_v20  ;;  %3572 = vrot.lane.b32.xlu0 %v16792_v60, %s14441_s13  ;;  %vm21003_vm1 = vmmov %vm21000_vm0 }
 0x2a0   :  { %3375 = vrot.lane.b32.xlu1 %v20996_v31, %s14440_s29  ;;  %v4726_v62 = vpop.permute.xlu0 %4725 }
 0x2a2   :  { %v4572_v34 = vpop.permute.xlu1 %4571  ;;  %3781 = vrot.lane.b32.xlu0 %v17023_v25, %s14442_s21 }
 0x2a3   :  { %4612 = vst.msk [vmem:[#allocation2 + $0x98] sm:$0xf] %vm20997_vm5, %v4572_v34  ;;  %vm21006_vm5 = vcmask 982016  }
 0x2a4   :  { %3574 = vrot.lane.b32.xlu1 %v20998_v14, %s14441_s13  ;;  %v4654_v40 = vpop.permute.xlu0 %4653 }
 0x2a5   :  { %4695 = vst.msk [vmem:[#allocation2 + $0x84] sm:$0xf] %vm20999_vm9, %v4654_v40  ;;  %vm21008_vm9 = vmmov %vm21006_vm5 }
 0x2a6   :  { %v4728_v2 = vpop.permute.xlu1 %4727  ;;  %4767 = vst.msk [vmem:[#allocation2 + $0x84] sm:$0xf] %vm21000_vm0, %v4726_v62  ;;  %3939 = vrot.lane.b32.xlu0 %v20988_v63, %s14443_s30  ;;  %vm21011_vm0 = vcmask 388288  }
 0x2a8   :  { %3783 = vrot.lane.b32.xlu1 %v21001_v24, %s14442_s21  ;;  %v4792_v32 = vpop.permute.xlu0 %4791 }
 0x2a9   :  { %4833 = vst.msk [vmem:[#allocation2 + $0x84] sm:$0xf] %vm3529_vm7, %v4792_v32 }
 0x2aa   :  { %v4656_v23 = vpop.permute.xlu1 %4655  ;;  %v13387_v20 = vpop.f32.mrf.mxu0  ;;  %3708 = vrot.lane.b32.xlu0 %v20992_v30, %s14444_s28 }
 0x2ab   :  { %4696 = vst.msk [vmem:[#allocation2 + $0x98] sm:$0xf] %vm21002_vm6, %v4656_v23 }
 0x2ac   :  { %4768 = vst.msk [vmem:[#allocation2 + $0x98] sm:$0xf] %vm21003_vm1, %v4728_v2  ;;  %3941 = vrot.lane.b32.xlu1 %v21004_v39, %s14443_s30  ;;  %v4892_v50 = vpop.permute.xlu0 %4891  ;;  %v1346_v29 = vpop.f32.mrf.mxu0  ;;  %vm21012_vm1 = vmmov %vm21011_vm0 }
 0x2ad   :  { %v4917_v38 = vrot.slane %v4892_v50, 4 }
 0x2ae   :  { %v4794_v0 = vpop.permute.xlu1 %4793  ;;  %3866 = vrot.lane.b32.xlu0 %v20996_v31, %s14445_s15  ;;  %v13388_v55 = vpop.f32.mrf.mxu0 }
 0x2af   :  { %4834 = vst.msk [vmem:[#allocation2 + $0x98] sm:$0xf] %vm3529_vm7, %v4794_v0  ;;  %v4933_v17 = vsel %vm21006_vm5, %v4917_v38, %v4892_v50  ;;  %v21010_v50 = vld [vmem:[#allocation53_spill] sm:$0xff]  ;;  %vm21013_vm5 = vcmask 781888  }
 0x2b0   :  { %3710 = vrot.lane.b32.xlu1 %v17260_v13, %s14444_s28  ;;  %4965 = vst.msk [vmem:[#allocation2 + $0x84] sm:$0xff] %vm15744_vm14, %v4933_v17  ;;  %v3138_v42 = vpop.permute.xlu0 %3137  ;;  %v1349_v56 = vpop.f32.mrf.mxu0 }
 0x2b1   :  { %v13085_v62 = vpop.f32.mrf.mxu1 }
 0x2b2   :  { %v4894_v18 = vpop.permute.xlu1 %4893  ;;  %4006 = vrot.lane.b32.xlu0 %v20998_v14, %s14446_s1 }
 0x2b3   :  { %v4918_v47 = vrot.slane %v4894_v18, 4  ;;  %v13086_v23 = vpop.f32.mrf.mxu1  ;;  %v13391_v32 = vpop.f32.mrf.mxu0 }
 0x2b4   :  { %3868 = vrot.lane.b32.xlu1 %v17280_v28, %s14445_s15  ;;  %v3498_v40 = vpop.permute.xlu0 %3497  ;;  %v17556_v0 = vadd.f32 %v13086_v23, %v13085_v62 }
 0x2b5   :  { %v4934_v34 = vsel %vm21008_vm9, %v4918_v47, %v4894_v18  ;;  %v1362_v38 = vpop.f32.mrf.mxu0  ;;  %v14413_v47 = vld [vmem:[%s20694_s2] ss:$0 sm:$0xff]  ;;  %vm21014_vm9 = vmmov %vm21002_vm6 }
 0x2b6   :  { %4966 = vst.msk [vmem:[#allocation2 + $0x98] sm:$0xff] %vm15744_vm14, %v4934_v34  ;;  %v3140_v2 = vpop.permute.xlu1 %3139  ;;  %21009 = vst [vmem:[#allocation54_spill] sm:$0xff] %v17556_v0  ;;  %3149 = vrot.lane.b32.xlu0 %v21001_v24, %s14438_s23  ;;  %v1371_v34 = vadd.f32 %v14413_v47, %v13391_v32  ;;  %v1355_v3 = vadd.f32 %v14413_v47, %v13387_v20  ;;  %v1347_v32 = vadd.f32 %v14413_v47, %v1346_v29 }
 0x2b7   :  { %v13392_v18 = vpop.f32.mrf.mxu0  ;;  %v1363_v63 = vadd.f32 %v14413_v47, %v1362_v38 }
 0x2b8   :  { %4008 = vrot.lane.b32.xlu1 %v21010_v50, %s14446_s1  ;;  %v3006_v37 = vpop.permute.xlu0 %3005  ;;  %v17571_v62 = vadd.f32 %v14413_v47, %v13392_v18  ;;  %v1350_v18 = vadd.f32 %v14413_v47, %v1349_v56  ;;  %v1671_v53 = vcombine.high %v1355_v3, %v1355_v3  ;;  %v2226_v56 = vsel %vm1825_vm3, %v1355_v3, -inf }
 0x2b9   :  { %3046 = vst.msk [vmem:[#allocation2 + $0xa0] sm:$0xf] %vm21011_vm0, %v3006_v37  ;;  %v1365_v23 = vpop.f32.mrf.mxu0  ;;  %v17574_v37 = vsel %vm1825_vm3, %v1371_v34, -inf  ;;  %vm21015_vm0 = vmmov %vm21013_vm5 }
 0x2ba   :  { %v3500_v17 = vpop.permute.xlu1 %3499  ;;  %3178 = vst.msk [vmem:[#allocation2 + $0xa0] sm:$0xf] %vm21002_vm6, %v3138_v42  ;;  %3509 = vrot.lane.b32.xlu0 %v21004_v39, %s14437_s22  ;;  %v1676_v42 = vcombine.high %v17571_v62, %v17571_v62  ;;  %vm21016_vm6 = vcmask 982016   ;;  %v17601_v38 = vsel %vm1825_vm3, %v1671_v53, -inf  ;;  %v2222_v53 = vsel %vm1825_vm3, %v1347_v32, -inf }
 0x2bb   :  { %v13395_v10 = vpop.f32.mrf.mxu0 }
 0x2bc   :  { %3151 = vrot.lane.b32.xlu1 %v17268_v35, %s14438_s23  ;;  %v3366_v57 = vpop.permute.xlu0 %3365  ;;  %v2241_v45 = vsel %vm1825_vm3, %v1676_v42, -inf  ;;  %v17588_v39 = vadd.f32 %v14413_v47, %v13395_v10 }
 0x2bd   :  { %3406 = vst.msk [vmem:[#allocation2 + $0xa0] sm:$0xf] %vm21013_vm5, %v3366_v57  ;;  %v2242_v57 = vmax.f32 %v17574_v37, %v2241_v45  ;;  %v1378_v20 = vpop.f32.mrf.mxu0  ;;  %v1669_v45 = vcombine.high %v1347_v32, %v1347_v32  ;;  %vm21018_vm5 = vcmask 322688  }
 0x2be   :  { %v3008_v0 = vpop.permute.xlu1 %3007  ;;  %3538 = vst.msk [vmem:[#allocation2 + $0xa0] sm:$0xf] %vm3529_vm7, %v3498_v40  ;;  %3017 = vrot.lane.b32.xlu0 %v17260_v13, %s14439_s24  ;;  %v17591_v31 = vadd.f32 %v14413_v47, %v1378_v20  ;;  %v1679_v42 = vcombine.high %v17588_v39, %v17588_v39  ;;  %v1673_v13 = vcombine.high %v1363_v63, %v1363_v63 }
 0x2bf   :  { %3047 = vst.msk [vmem:[#allocation2 + $0xb4] sm:$0xf] %vm21012_vm1, %v3008_v0  ;;  %v1358_v0 = vadd.f32 %v14413_v47, %v13388_v55  ;;  %v13396_v29 = vpop.f32.mrf.mxu0  ;;  %v1670_v55 = vcombine.high %v1350_v18, %v1350_v18  ;;  %vm21017_vm1 = vmmov %vm21016_vm6 }
 0x2c0   :  { %3179 = vst.msk [vmem:[#allocation2 + $0xb4] sm:$0xf] %vm21014_vm9, %v3140_v2  ;;  %3511 = vrot.lane.b32.xlu1 %v17284_v59, %s14437_s22  ;;  %v3565_v14 = vpop.permute.xlu0 %3564  ;;  %v1675_v2 = vcombine.high %v1371_v34, %v1371_v34  ;;  %vm21019_vm9 = vcmask 519488  }
 0x2c1   :  { %v3588_v40 = vrot.slane %v3565_v14, 4  ;;  %v1381_v34 = vpop.f32.mrf.mxu0  ;;  %v2223_v24 = vsel %vm1825_vm3, %v1670_v55, -inf  ;;  %v2250_v55 = vsel %vm1825_vm3, %v1679_v42, -inf }
 0x2c2   :  { %v3368_v19 = vpop.permute.xlu1 %3367  ;;  %3377 = vrot.lane.b32.xlu0 %v17280_v28, %s14440_s29  ;;  %v2243_v20 = vsel %vm1825_vm3, %v1675_v2, -inf  ;;  %v1366_v28 = vadd.f32 %v14413_v47, %v1365_v23  ;;  %v2231_v2 = vsel %vm1825_vm3, %v1358_v0, -inf  ;;  %v1382_v25 = vadd.f32 %v14413_v47, %v1381_v34 }
 0x2c3   :  { %3407 = vst.msk [vmem:[#allocation2 + $0xb4] sm:$0xf] %vm21015_vm0, %v3368_v19  ;;  %v3605_v10 = vsel %vm21016_vm6, %v3588_v40, %v3565_v14  ;;  %v1672_v19 = vcombine.high %v1358_v0, %v1358_v0  ;;  %v2244_v14 = vsel %vm1825_vm3, %v17591_v31, -inf  ;;  %v17610_v40 = vadd.f32 %v14413_v47, %v13396_v29  ;;  %vm21021_vm0 = vmmov %vm21018_vm5 }
 0x2c4   :  { %3539 = vst.msk [vmem:[#allocation2 + $0xb4] sm:$0xf] %vm3529_vm7, %v3500_v17  ;;  %3019 = vrot.lane.b32.xlu1 %v17327_v11, %s14439_s24  ;;  %v3774_v37 = vpop.permute.xlu0 %3773  ;;  %v1674_v49 = vcombine.high %v1366_v28, %v1366_v28  ;;  %v2245_v60 = vmax.f32 %v2243_v20, %v2244_v14  ;;  %v2249_v0 = vsel %vm1825_vm3, %v1382_v25, -inf  ;;  %v2232_v47 = vsel %vm1825_vm3, %v1673_v13, -inf  ;;  %vm21022_vm6 = vmmov %vm21019_vm9 }
 0x2c5   :  { %3640 = vst.msk [vmem:[#allocation2 + $0xa0] sm:$0xff] %vm15744_vm14, %v3605_v10  ;;  %v2225_v10 = vsel %vm1825_vm3, %v1669_v45, -inf  ;;  %v2234_v32 = vsel %vm1825_vm3, %v1672_v19, -inf  ;;  %v1678_v45 = vcombine.high %v1382_v25, %v1382_v25  ;;  %v2235_v34 = vsel %vm1825_vm3, %v1366_v28, -inf }
 0x2c6   :  { %v3567_v17 = vpop.permute.xlu1 %3566  ;;  %3576 = vrot.lane.b32.xlu0 %v21010_v50, %s14441_s13  ;;  %v2253_v50 = vsel %vm1825_vm3, %v17610_v40, -inf  ;;  %v2465_v19 = vsel %vm1825_vm3, %v2242_v57, -inf  ;;  %v2227_v20 = vmax.f32 %v2225_v10, %v2226_v56  ;;  %v2228_v14 = vsel %vm1825_vm3, %v1350_v18, -inf }
 0x2c7   :  { %v3589_v3 = vrot.slane %v3567_v17, 4  ;;  %v2237_v25 = vsel %vm1825_vm3, %v1363_v63, -inf  ;;  %v2252_v42 = vsel %vm1825_vm3, %v1678_v45, -inf  ;;  %v2238_v13 = vsel %vm1825_vm3, %v1674_v49, -inf  ;;  %v21020_v63 = vld [vmem:[#allocation36_spill] sm:$0xff] }
 0x2c8   :  { %3379 = vrot.lane.b32.xlu1 %v17342_v44, %s14440_s29  ;;  %v3932_v26 = vpop.permute.xlu0 %3931  ;;  %v2468_v28 = vsel %vm1825_vm3, %v2245_v60, -inf  ;;  %v2233_v7 = vmax.f32 %v2231_v2, %v2232_v47  ;;  %v2236_v54 = vmax.f32 %v2234_v32, %v2235_v34  ;;  %v2230_v49 = vmax.f32 %v2228_v14, %v17601_v38  ;;  %v13558_v14 = vld [vmem:[%s20695_s3 + $0xb8] sm:$0xff]  }
 0x2c9   :  { %v3606_v29 = vsel %vm21017_vm1, %v3589_v3, %v3567_v17  ;;  %v2251_v17 = vmax.f32 %v2249_v0, %v2250_v55  ;;  %v2254_v3 = vmax.f32 %v2252_v42, %v2253_v50  ;;  %v2224_v55 = vmax.f32 %v2222_v53, %v2223_v24 }
 0x2ca   :  { %3641 = vst.msk [vmem:[#allocation2 + $0xb4] sm:$0xff] %vm15744_vm14, %v3606_v29  ;;  %v3776_v23 = vpop.permute.xlu1 %3775  ;;  %3785 = vrot.lane.b32.xlu0 %v17268_v35, %s14442_s21  ;;  %v2239_v60 = vmax.f32 %v2237_v25, %v2238_v13  ;;  %v2459_v56 = vsel %vm1825_vm3, %v2227_v20, -inf  ;;  %v2457_v32 = vsel %vm1825_vm3, %v2233_v7, -inf  ;;  %vm21023_vm1 = vcmask 913088  }
 0x2cb   :  { %v2466_v57 = vsel %vm1825_vm3, %v2251_v17, -inf  ;;  %v2469_v18 = vsel %vm1825_vm3, %v2254_v3, -inf  ;;  %v2456_v2 = vsel %vm1825_vm3, %v2224_v55, -inf  ;;  %v1680_v20 = vcombine.high %v17610_v40, %v17610_v40 }
 0x2cc   :  { %3578 = vrot.lane.b32.xlu1 %v17294_v15, %s14441_s13  ;;  %v3701_v0 = vpop.permute.xlu0 %3700  ;;  %v2467_v35 = vmax.f32 %v2465_v19, %v2466_v57  ;;  %v2470_v50 = vmax.f32 %v2468_v28, %v2469_v18  ;;  %v2463_v7 = vsel %vm1825_vm3, %v2239_v60, -inf  ;;  %v2458_v38 = vmax.f32 %v2456_v2, %v2457_v32 }
 0x2cd   :  { %3741 = vst.msk [vmem:[#allocation2 + $0xa4] sm:$0xf] %vm21018_vm5, %v3701_v0  ;;  %vm21024_vm5 = vmmov %vm21023_vm1  ;;  %v1677_v19 = vcombine.high %v17591_v31, %v17591_v31  ;;  %v13559_v31 = vld [vmem:[%s20695_s3 + $0xf0] sm:$0xff]   ;;  %v2255_v0 = vsel %vm1825_vm3, %v17588_v39, -inf  ;;  %v2256_v18 = vsel %vm1825_vm3, %v1680_v20, -inf  ;;  %v13561_v39 = vld [vmem:[%s20695_s3 + $0xe8] sm:$0xff]  }
 0x2ce   :  { %v3934_v29 = vpop.permute.xlu1 %3933  ;;  %3814 = vst.msk [vmem:[#allocation2 + $0xa4] sm:$0xf] %vm21019_vm9, %v3774_v37  ;;  %3943 = vrot.lane.b32.xlu0 %v17284_v59, %s14443_s30  ;;  %v2543_v24 = vmax.f32 %v2467_v35, 0.0  ;;  %v2460_v37 = vsel %vm1825_vm3, %v2236_v54, -inf  ;;  %v2544_v45 = vmax.f32 %v2470_v50, 0.0  ;;  %v2462_v35 = vsel %vm1825_vm3, %v2230_v49, -inf }
 0x2cf   :  { %v2461_v47 = vmax.f32 %v2459_v56, %v2460_v37  ;;  %v2464_v17 = vmax.f32 %v2462_v35, %v2463_v7  ;;  %vm21025_vm9 = vcmask 916480   ;;  %v2540_v42 = vmax.f32 %v2458_v38, 0.0  ;;  %v13563_v35 = vld [vmem:[%s20695_s3 + $0xe0] sm:$0xff]  }
 0x2d0   :  { %4430 = vrot.lane.b32.xlu1 %v21020_v63, %s14451_s18  ;;  %v3859_v10 = vpop.permute.xlu0 %3858  ;;  %v17663_v54 = vcombine.low %v2543_v24, %v2544_v45  ;;  %v2247_v55 = vsel %vm1825_vm3, %v1677_v19, -inf  ;;  %v13560_v63 = vld [vmem:[%s20695_s3 + $0xb0] sm:$0xff]   ;;  %v13562_v45 = vld [vmem:[%s20695_s3 + $0xa8] sm:$0xff]  }
 0x2d1   :  { %3899 = vst.msk [vmem:[#allocation2 + $0xa4] sm:$0xf] %vm3890_vm4, %v3859_v10  ;;  %v2541_v13 = vmax.f32 %v2461_v47, 0.0  ;;  %v17687_v40 = vmax.f32 %v2464_v17, 0.0  ;;  %v21027_v10 = vld [vmem:[#allocation28_spill] sm:$0xff] }
 0x2d2   :  { %v3703_v53 = vpop.permute.xlu1 %3702  ;;  %3972 = vst.msk [vmem:[#allocation2 + $0xa4] sm:$0xf] %vm21023_vm1, %v3932_v26  ;;  %3712 = vrot.lane.b32.xlu0 %v17327_v11, %s14444_s28  ;;  %vm21029_vm1 = vcmask 585088  }
 0x2d3   :  { %3742 = vst.msk [vmem:[#allocation2 + $0xb8] sm:$0xf] %vm21021_vm0, %v3703_v53  ;;  %vm21026_vm0 = vmmov %vm21025_vm9  ;;  %v17703_v60 = vcombine.low %v2540_v42, %v2541_v13  ;;  %v17712_v24 = vpack.c.bf16 %v17687_v40, %v17687_v40  ;;  %v2257_v53 = vmax.f32 %v2255_v0, %v2256_v18 }
 0x2d4   :  { %3815 = vst.msk [vmem:[#allocation2 + $0xb8] sm:$0xf] %vm21022_vm6, %v3776_v23  ;;  %4136 = vrot.lane.b32.xlu1 %v16876_v46, %s14449_s12  ;;  %v13557_v23 = vld [vmem:[%s20695_s3 + $0xf8] sm:$0xff]   ;;  %v3999_v26 = vpop.permute.xlu0 %3998  ;;  %vm21028_vm6 = vcmask 388288  }
 0x2d5   :  { %v4022_v46 = vrot.slane %v3999_v26, 4  ;;  %13127 = vmatprep.subr.bf16.mxu1 %v13557_v23  ;;  %v17720_v2 = vpack.c.bf16 %v17703_v60, %v17703_v60  ;;  %v2472_v38 = vsel %vm1825_vm3, %v2257_v53, -inf  ;;  %v4555_v23 = vrot.slane %v17712_v24, 5 }
 0x2d6   :  { %v3861_v34 = vpop.permute.xlu1 %3860  ;;  %3870 = vrot.lane.b32.xlu0 %v17342_v44, %s14445_s15  ;;  %13128 = vmatpush3.bf16.msra.mxu1 %v13558_v14  ;;  %v13564_v14 = vld [vmem:[%s20695_s3 + $0xa0] sm:$0xff]   ;;  %v4513_v18 = vshll.u32 %v17712_v24, 16 }
 0x2d7   :  { %3900 = vst.msk [vmem:[#allocation2 + $0xb8] sm:$0xf] %vm3890_vm4, %v3861_v34  ;;  %v4039_v25 = vsel %vm21025_vm9, %v4022_v46, %v3999_v26  ;;  %13129 = vmatprep.subr.bf16.mxu1 %v13559_v31  ;;  %v12282_v47 = vrot.slane %v17720_v2, 9  ;;  %v13550_v26 = vld [vmem:[#allocation2 + $0xa0] ss:$20 sps:$4 sm:$0xff]   ;;  %vm21031_vm9 = vcmask 781888  }
 0x2d8   :  { %3973 = vst.msk [vmem:[#allocation2 + $0xb8] sm:$0xf] %vm21024_vm5, %v3934_v29  ;;  %4575 = vrot.lane.b32.xlu1 %v16928_v4, %s14439_s24  ;;  %v3142_v3 = vpop.permute.xlu0 %3141  ;;  %v2246_v29 = vsel %vm1825_vm3, %v17571_v62, -inf  ;;  %vm21030_vm5 = vmmov %vm21028_vm6  ;;  %v13567_v31 = vld [vmem:[%s20695_s3 + $0xd0] sm:$0xff]   ;;  %v4504_v0 = vshrl.u32 %v17720_v2, 16 }
 0x2d9   :  { %4074 = vst.msk [vmem:[#allocation2 + $0xa4] sm:$0xff] %vm15942_vm13, %v4039_v25  ;;  %v2248_v56 = vmax.f32 %v2246_v29, %v2247_v55  ;;  %v17740_v46 = vsel %vm14772_vm11, %v12282_v47, %v4555_v23  ;;  %v4507_v55 = vshll.u32 %v17720_v2, 16 }
 0x2da   :  { %v4001_v28 = vpop.permute.xlu1 %4000  ;;  %4010 = vrot.lane.b32.xlu0 %v17294_v15, %s14446_s1  ;;  %13130 = vmatpush3.bf16.msra.mxu1 %v13560_v63 }
 0x2db   :  { %v4023_v57 = vrot.slane %v4001_v28, 4  ;;  %13131 = vmatprep.subr.bf16.mxu1 %v13561_v39  ;;  %v2471_v7 = vsel %vm1825_vm3, %v2248_v56, -inf  ;;  %v4631_v56 = vrot.slane %v4504_v0, 5  ;;  %v4632_v53 = vrot.slane %v4507_v55, 6 }
 0x2dc   :  { %3787 = vrot.lane.b32.xlu1 %v17363_v41, %s14442_s21  ;;  %v3502_v50 = vpop.permute.xlu0 %3501  ;;  %v2473_v20 = vmax.f32 %v2471_v7, %v2472_v38 }
 0x2dd   :  { %v4040_v49 = vsel %vm21026_vm0, %v4023_v57, %v4001_v28  ;;  %vm21032_vm0 = vmmov %vm21029_vm1  ;;  %v13566_v28 = vld [vmem:[%s20695_s3 + $0x98] sm:$0xff]   ;;  %v17772_v57 = vpack.c.bf16 %v17663_v54, %v17663_v54  ;;  %v4633_v38 = vor.u32 %v4632_v53, %v4631_v56  ;;  %v4711_v56 = vrot.slane %v17712_v24, 6 }
 0x2de   :  { %4075 = vst.msk [vmem:[#allocation2 + $0xb8] sm:$0xff] %vm15942_vm13, %v4040_v49  ;;  %v3144_v62 = vpop.permute.xlu1 %3143  ;;  %4428 = vrot.lane.b32.xlu0 %v21027_v10, %s14451_s18  ;;  %13132 = vmatpush3.bf16.msra.mxu1 %v13562_v45  ;;  %v17756_v13 = vmax.f32 %v2473_v20, 0.0  ;;  %v4638_v10 = vrot.slane %v4513_v18, 6  ;;  %v4506_v45 = vrot.slane %v4504_v0, 4  ;;  %v13573_v20 = vld [vmem:[%s20695_s3 + $0x88] sm:$0xff]  }
 0x2df   :  { %13133 = vmatprep.subr.bf16.mxu1 %v13563_v35  ;;  %v4509_v35 = vrot.slane %v4507_v55, 5  ;;  %v4866_v47 = vshrl.u32 %v17772_v57, 16  ;;  %v4869_v23 = vshll.u32 %v17772_v57, 16 }
 0x2e0   :  { %3945 = vrot.lane.b32.xlu1 %v17367_v1, %s14443_s30  ;;  %v3010_v37 = vpop.permute.xlu0 %3009 }
 0x2e1   :  { %3048 = vst.msk [vmem:[#allocation2 + $0xc8] sm:$0xf] %vm21028_vm6, %v3010_v37  ;;  %vm21033_vm6 = vmmov %vm21031_vm9 }
 0x2e2   :  { %v3504_v32 = vpop.permute.xlu1 %3503  ;;  %3180 = vst.msk [vmem:[#allocation2 + $0xc8] sm:$0xf] %vm21029_vm1, %v3142_v3  ;;  %4134 = vrot.lane.b32.xlu0 %v16774_v61, %s14449_s12  ;;  %v13565_v61 = vld [vmem:[%s20695_s3 + $0xd8] sm:$0xff]   ;;  %13134 = vmatpush3.bf16.msra.mxu1 %v13564_v14  ;;  %vm21034_vm1 = vcmask 982016  }
 0x2e3   :  { %13135 = vmatprep.subr.bf16.mxu1 %v13565_v61  ;;  %v4634_v61 = vrot.slane %v4633_v38, 4 }
 0x2e4   :  { %3714 = vrot.lane.b32.xlu1 %v17397_v51, %s14444_s28  ;;  %v3370_v19 = vpop.permute.xlu0 %3369 }
 0x2e5   :  { %v13548_v34 = vld [vmem:[#allocation2 + $0xa4] ss:$20 sps:$4 sm:$0xff]   ;;  %3408 = vst.msk [vmem:[#allocation2 + $0xc8] sm:$0xf] %vm21031_vm9, %v3370_v19  ;;  %v4515_v19 = vrot.slane %v4513_v18, 5  ;;  %vm21036_vm9 = vcmask 322688  }
 0x2e6   :  { %v3012_v17 = vpop.permute.xlu1 %3011  ;;  %5850 = vmatprep.mubr.bf16.mxu1 %v13548_v34  ;;  %3540 = vst.msk [vmem:[#allocation2 + $0xc8] sm:$0xf] %vm3529_vm7, %v3502_v50  ;;  %4573 = vrot.lane.b32.xlu0 %v16812_v52, %s14439_s24  ;;  %v4635_v50 = vshrl.u32 %v17712_v24, 16 }
 0x2e7   :  { %3049 = vst.msk [vmem:[#allocation2 + $0xdc] sm:$0xf] %vm21030_vm5, %v3012_v17  ;;  %5851 = vmatmul.mubr.bf16.gmra.mxu1 %v13550_v26  ;;  %vm21035_vm5 = vmmov %vm21034_vm1  ;;  %v4510_v17 = vor.u32 %v4509_v35, %v4506_v45  ;;  %v2665_v35 = vpack.c.bf16 %v17756_v13, %v17663_v54  ;;  %v21108_v54 = vld [vmem:[#allocation8_spill] sm:$0xff] }
 0x2e8   :  { %3181 = vst.msk [vmem:[#allocation2 + $0xdc] sm:$0xf] %vm21032_vm0, %v3144_v62  ;;  %3872 = vrot.lane.b32.xlu1 %v17403_v9, %s14445_s15  ;;  %v3569_v42 = vpop.permute.xlu0 %3568  ;;  %13136 = vmatpush3.bf16.msra.mxu1 %v13566_v28  ;;  %v13568_v62 = vld [vmem:[%s20695_s3 + $0x90] sm:$0xff]   ;;  %v4637_v37 = vrot.slane %v4635_v50, 5  ;;  %v13577_v28 = vld [vmem:[%s20695_s3 + $0xc0] sm:$0xff]   ;;  %vm21037_vm0 = vcmask 519488  }
 0x2e9   :  { %v3590_v3 = vrot.slane %v3569_v42, 4  ;;  %13137 = vmatprep.subr.bf16.mxu1 %v13567_v31 }
 0x2ea   :  { %v3372_v25 = vpop.permute.xlu1 %3371  ;;  %4207 = vrot.lane.b32.xlu0 %v20960_v43, %s14447_s16  ;;  %v17782_v43 = vpack.c.bf16 %v17756_v13, %v17756_v13  ;;  %v13583_v13 = vld [vmem:[#allocation2 + $0x84] ss:$20 sps:$4 sm:$0xff]  }
 0x2eb   :  { %3409 = vst.msk [vmem:[#allocation2 + $0xdc] sm:$0xf] %vm21033_vm6, %v3372_v25  ;;  %v3607_v29 = vsel %vm21034_vm1, %v3590_v3, %v3569_v42  ;;  %v4868_v25 = vrot.slane %v4866_v47, 4  ;;  %v4871_v42 = vrot.slane %v4869_v23, 5  ;;  %v4511_v3 = vrot.slane %v4510_v17, 4  ;;  %vm21039_vm6 = vmmov %vm21037_vm0 }
 0x2ec   :  { %3541 = vst.msk [vmem:[#allocation2 + $0xdc] sm:$0xf] %vm3529_vm7, %v3504_v32  ;;  %4012 = vrot.lane.b32.xlu1 %v17406_v27, %s14446_s1  ;;  %v3778_v49 = vpop.permute.xlu0 %3777  ;;  %v13572_v32 = vld [vmem:[%s20695_s3 + $0xc8] sm:$0xff]   ;;  %13138 = vmatpush3.bf16.msra.mxu1 %v13568_v62  ;;  %v4875_v14 = vshll.u32 %v17782_v43, 16  ;;  %v13578_v62 = vld [vmem:[%s20695_s3 + $0x80] sm:$0xff]   ;;  %vm21040_vm1 = vcmask 913088  }
 0x2ed   :  { %3642 = vst.msk [vmem:[#allocation2 + $0xc8] sm:$0xff] %vm15744_vm14, %v3607_v29  ;;  %13139 = vmatprep.subr.bf16.mxu1 %v13572_v32  ;;  %v4872_v29 = vor.u32 %v4871_v42, %v4868_v25 }
 0x2ee   :  { %v3571_v63 = vpop.permute.xlu1 %3570  ;;  %4657 = vrot.lane.b32.xlu0 %v16897_v36, %s14438_s23  ;;  %v17821_v0 = vrot.slane %v4875_v14, 5 }
 0x2ef   :  { %v3591_v39 = vrot.slane %v3571_v63, 4  ;;  %v17833_v50 = vrot.slane %v4872_v29, 4 }
 0x2f0   :  { %4209 = vrot.lane.b32.xlu1 %v16812_v52, %s14447_s16  ;;  %v3936_v26 = vpop.permute.xlu0 %3935  ;;  %v4639_v52 = vor.u32 %v4638_v10, %v4637_v37  ;;  %13140 = vmatpush3.bf16.msra.mxu1 %v13573_v20  ;;  %v17862_v37 = vpop.f32.mrf.mxu1 }
 0x2f1   :  { %v3608_v7 = vsel %vm21035_vm5, %v3591_v39, %v3571_v63  ;;  %v17825_v63 = vsel %vm14825_vm12, %v4511_v3, %v4515_v19  ;;  %13141 = vmatprep.subr.bf16.mxu1 %v13577_v28  ;;  %v12284_v39 = vrot.slane %v17720_v2, 10  ;;  %v4878_v53 = vsel %vm14825_vm12, %v17833_v50, %v17821_v0  ;;  %vm21041_vm5 = vmmov %vm21040_vm1  ;;  %v21047_v28 = vld [vmem:[#allocation48_spill] sm:$0xff]  ;;  %v21048_v3 = vld [vmem:[#allocation26_spill] sm:$0xff] }
 0x2f2   :  { %3643 = vst.msk [vmem:[#allocation2 + $0xdc] sm:$0xff] %vm15744_vm14, %v3608_v7  ;;  %v3780_v34 = vpop.permute.xlu1 %3779  ;;  %4895 = vrot.lane.b32.xlu0 %v17033_v48, %s14441_s13  ;;  %v17817_v31 = vsel %vm14901_vm15, %v4634_v61, %v4639_v52  ;;  %v21043_v7 = vld [vmem:[#allocation46_spill] sm:$0xff]  ;;  %v21045_v52 = vld [vmem:[#allocation47_spill] sm:$0xff]  ;;  %vm21100_vm12 = vcmask 982016  }
 0x2f3   :  { %4548 = vst.msk [vmem:[#allocation2 + $0x138] sm:$0xf] %vm1825_vm3, %v17825_v63  ;;  %vm21038_vm3 = vmmov %vm21036_vm9 }
 0x2f4   :  { %4659 = vrot.lane.b32.xlu1 %v17054_v5, %s14438_s23  ;;  %v3705_v18 = vpop.permute.xlu0 %3704  ;;  %13142 = vmatpush3.bf16.msra.mxu1 %v13578_v62 }
 0x2f5   :  { %3743 = vst.msk [vmem:[#allocation2 + $0xcc] sm:$0xf] %vm21036_vm9, %v3705_v18  ;;  %vm21044_vm9 = vcmask 916480  }
 0x2f6   :  { %v3938_v55 = vpop.permute.xlu1 %3937  ;;  %3816 = vst.msk [vmem:[#allocation2 + $0xcc] sm:$0xf] %vm21037_vm0, %v3778_v49  ;;  %4292 = vrot.lane.b32.xlu0 %v16808_v58, %s14450_s14  ;;  %v17848_v49 = vsel %vm14763_vm8, %v12284_v39, %v4711_v56  ;;  %v17860_v58 = vpack.c.bf16 %v17687_v40, %v17703_v60  ;;  %vm21046_vm0 = vmmov %vm21044_vm9  ;;  %v21054_v56 = vld [vmem:[#allocation51_spill] sm:$0xff] }
 0x2f8   :  { %4897 = vrot.lane.b32.xlu1 %v20992_v30, %s14441_s13  ;;  %v3863_v32 = vpop.permute.xlu0 %3862 }
 0x2f9   :  { %3901 = vst.msk [vmem:[#allocation2 + $0xcc] sm:$0xf] %vm3890_vm4, %v3863_v32  ;;  %v13553_v18 = vld [vmem:[#allocation2 + $0xc8] ss:$20 sps:$4 sm:$0xff]  }
 0x2fa   :  { %v3707_v10 = vpop.permute.xlu1 %3706  ;;  %3974 = vst.msk [vmem:[#allocation2 + $0xcc] sm:$0xf] %vm21040_vm1, %v3936_v26  ;;  %4729 = vrot.lane.b32.xlu0 %v16816_v12, %s14440_s29 }
 0x2fb   :  { %3744 = vst.msk [vmem:[#allocation2 + $0xe0] sm:$0xf] %vm21038_vm3, %v3707_v10  ;;  %vm21049_vm3 = vcmask 388288  }
 0x2fc   :  { %3817 = vst.msk [vmem:[#allocation2 + $0xe0] sm:$0xf] %vm21039_vm6, %v3780_v34  ;;  %4294 = vrot.lane.b32.xlu1 %v16897_v36, %s14450_s14  ;;  %v4003_v2 = vpop.permute.xlu0 %4002  ;;  %v21042_v36 = vld [vmem:[#allocation49_spill] sm:$0xff]  ;;  %v17875_v34 = vpop.f32.mrf.mxu1  ;;  %vm21050_vm6 = vcmask 585088   ;;  %vm21051_vm1 = vmmov %vm21049_vm3 }
 0x2fd   :  { %v4024_v45 = vrot.slane %v4003_v2, 4 }
 0x2fe   :  { %v3865_v24 = vpop.permute.xlu1 %3864  ;;  %4365 = vrot.lane.b32.xlu0 %v21043_v7, %s14448_s17 }
 0x2ff   :  { %3902 = vst.msk [vmem:[#allocation2 + $0xe0] sm:$0xf] %vm3890_vm4, %v3865_v24  ;;  %v4041_v40 = vsel %vm21044_vm9, %v4024_v45, %v4003_v2  ;;  %vm21053_vm9 = vmmov %vm21050_vm6  ;;  %v21056_v24 = vld [vmem:[#allocation25_spill] sm:$0xff] }
 0x300   :  { %3975 = vst.msk [vmem:[#allocation2 + $0xe0] sm:$0xf] %vm21041_vm5, %v3938_v55  ;;  %4731 = vrot.lane.b32.xlu1 %v21042_v36, %s14440_s29  ;;  %v3146_v38 = vpop.permute.xlu0 %3145  ;;  %vm21052_vm5 = vcmask 781888  }
 0x301   :  { %4076 = vst.msk [vmem:[#allocation2 + $0xcc] sm:$0xff] %vm15942_vm13, %v4041_v40  ;;  %v13091_v19 = vpop.f32.mrf.mxu1  ;;  %v21058_v40 = vld [vmem:[#allocation33_spill] sm:$0xff] }
 0x302   :  { %v4005_v60 = vpop.permute.xlu1 %4004  ;;  %4795 = vrot.lane.b32.xlu0 %v21045_v52, %s14437_s22 }
 0x303   :  { %v4025_v26 = vrot.slane %v4005_v60, 4  ;;  %v13092_v25 = vpop.f32.mrf.mxu1 }
 0x304   :  { %4367 = vrot.lane.b32.xlu1 %v16816_v12, %s14448_s17  ;;  %v3506_v61 = vpop.permute.xlu0 %3505  ;;  %v17884_v42 = vadd.f32 %v13092_v25, %v13091_v19  ;;  %v4981_v25 = vrot.slane %v17782_v43, 5 }
 0x305   :  { %v4042_v17 = vsel %vm21046_vm0, %v4025_v26, %v4005_v60  ;;  %vm21055_vm0 = vmmov %vm21052_vm5 }
 0x306   :  { %4077 = vst.msk [vmem:[#allocation2 + $0xe0] sm:$0xff] %vm15942_vm13, %v4042_v17  ;;  %v3148_v20 = vpop.permute.xlu1 %3147  ;;  %4432 = vrot.lane.b32.xlu0 %v21048_v3, %s14451_s18  ;;  %v21061_v17 = vld [vmem:[#allocation39_spill] sm:$0xff]  ;;  %v5057_v3 = vrot.slane %v4866_v47, 5 }
 0x308   :  { %4797 = vrot.lane.b32.xlu1 %v21047_v28, %s14437_s22  ;;  %v3014_v29 = vpop.permute.xlu0 %3013 }
 0x309   :  { %3050 = vst.msk [vmem:[#allocation2 + $0xf0] sm:$0xf] %vm21049_vm3, %v3014_v29  ;;  %vm21057_vm3 = vcmask 982016   ;;  %v5061_v29 = vshrl.u32 %v17782_v43, 16 }
 0x30a   :  { %v3508_v12 = vpop.permute.xlu1 %3507  ;;  %3182 = vst.msk [vmem:[#allocation2 + $0xf0] sm:$0xf] %vm21050_vm6, %v3146_v38  ;;  %4138 = vrot.lane.b32.xlu0 %v17033_v48, %s14449_s12  ;;  %vm21059_vm6 = vmmov %vm21057_vm3 }
 0x30c   :  { %4434 = vrot.lane.b32.xlu1 %v21045_v52, %s14451_s18  ;;  %v3374_v39 = vpop.permute.xlu0 %3373  ;;  %v21060_v52 = vld [vmem:[#allocation42_spill] sm:$0xff] }
 0x30d   :  { %v13551_v55 = vld [vmem:[#allocation2 + $0xcc] ss:$20 sps:$4 sm:$0xff]   ;;  %3410 = vst.msk [vmem:[#allocation2 + $0xf0] sm:$0xf] %vm21052_vm5, %v3374_v39  ;;  %vm21063_vm5 = vcmask 519488   ;;  %v5063_v39 = vrot.slane %v5061_v29, 5 }
 0x30e   :  { %v3016_v62 = vpop.permute.xlu1 %3015  ;;  %5858 = vmatprep.mubr.bf16.mxu1 %v13551_v55  ;;  %3542 = vst.msk [vmem:[#allocation2 + $0xf0] sm:$0xf] %vm3529_vm7, %v3506_v61  ;;  %4577 = vrot.lane.b32.xlu0 %v21054_v56, %s14439_s24  ;;  %v12290_v61 = vrot.slane %v17772_v57, 9  ;;  %v12292_v55 = vrot.slane %v17772_v57, 10  ;;  %v21073_v29 = vld [vmem:[#allocation53_spill] sm:$0xff] }
 0x30f   :  { %3051 = vst.msk [vmem:[#allocation2 + $0x104] sm:$0xf] %vm21051_vm1, %v3016_v62  ;;  %5859 = vmatmul.mubr.bf16.gmra.mxu1 %v13553_v18  ;;  %vm21062_vm1 = vcmask 322688   ;;  %v5137_v18 = vrot.slane %v17782_v43, 6  ;;  %v5064_v62 = vrot.slane %v4875_v14, 6  ;;  %v21067_v43 = vld [vmem:[#allocation52_spill] sm:$0xff] }
 0x310   :  { %3183 = vst.msk [vmem:[#allocation2 + $0x104] sm:$0xf] %vm21053_vm9, %v3148_v20  ;;  %4140 = vrot.lane.b32.xlu1 %v20992_v30, %s14449_s12  ;;  %v3573_v10 = vpop.permute.xlu0 %3572  ;;  %v17941_v47 = vsel %vm14772_vm11, %v12290_v61, %v4981_v25  ;;  %vm21064_vm9 = vmmov %vm21062_vm1  ;;  %v21071_v25 = vld [vmem:[#allocation50_spill] sm:$0xff] }
 0x311   :  { %v3592_v32 = vrot.slane %v3573_v10, 4  ;;  %v17947_v57 = vsel %vm14763_vm8, %v12292_v55, %v5137_v18 }
 0x312   :  { %v3376_v48 = vpop.permute.xlu1 %3375  ;;  %4211 = vrot.lane.b32.xlu0 %v16928_v4, %s14447_s16 }
 0x313   :  { %3411 = vst.msk [vmem:[#allocation2 + $0x104] sm:$0xf] %vm21055_vm0, %v3376_v48  ;;  %v3609_v2 = vsel %vm21057_vm3, %v3592_v32, %v3573_v10  ;;  %vm21065_vm0 = vmmov %vm21063_vm5  ;;  %vm21066_vm3 = vcmask 913088  }
 0x314   :  { %3543 = vst.msk [vmem:[#allocation2 + $0x104] sm:$0xf] %vm3529_vm7, %v3508_v12  ;;  %4579 = vrot.lane.b32.xlu1 %v21056_v24, %s14439_s24  ;;  %v3782_v45 = vpop.permute.xlu0 %3781  ;;  %v5058_v12 = vrot.slane %v4869_v23, 6 }
 0x315   :  { %3644 = vst.msk [vmem:[#allocation2 + $0xf0] sm:$0xff] %vm15744_vm14, %v3609_v2  ;;  %v5065_v2 = vor.u32 %v5064_v62, %v5063_v39 }
 0x316   :  { %v3575_v30 = vpop.permute.xlu1 %3574  ;;  %4661 = vrot.lane.b32.xlu0 %v21058_v40, %s14438_s23  ;;  %v5059_v23 = vor.u32 %v5058_v12, %v5057_v3 }
 0x317   :  { %v3593_v7 = vrot.slane %v3575_v30, 4 }
 0x318   :  { %4213 = vrot.lane.b32.xlu1 %v21054_v56, %s14447_s16  ;;  %v3940_v26 = vpop.permute.xlu0 %3939  ;;  %v5060_v32 = vrot.slane %v5059_v23, 4 }
 0x319   :  { %v3610_v60 = vsel %vm21059_vm6, %v3593_v7, %v3575_v30  ;;  %vm21068_vm6 = vmmov %vm21066_vm3 }
 0x31a   :  { %3645 = vst.msk [vmem:[#allocation2 + $0x104] sm:$0xff] %vm15744_vm14, %v3610_v60  ;;  %v3784_v38 = vpop.permute.xlu1 %3783  ;;  %4899 = vrot.lane.b32.xlu0 %v21061_v17, %s14441_s13  ;;  %v17959_v14 = vsel %vm14901_vm15, %v5060_v32, %v5065_v2  ;;  %v21069_v60 = vld [vmem:[#allocation40_spill] sm:$0xff] }
 0x31c   :  { %4663 = vrot.lane.b32.xlu1 %v21060_v52, %s14438_s23  ;;  %v3709_v20 = vpop.permute.xlu0 %3708 }
 0x31d   :  { %3745 = vst.msk [vmem:[#allocation2 + $0xf4] sm:$0xf] %vm21062_vm1, %v3709_v20  ;;  %vm21070_vm1 = vcmask 916480  }
 0x31e   :  { %v3942_v19 = vpop.permute.xlu1 %3941  ;;  %3818 = vst.msk [vmem:[#allocation2 + $0xf4] sm:$0xf] %vm21063_vm5, %v3782_v45  ;;  %4296 = vrot.lane.b32.xlu0 %v17054_v5, %s14450_s14  ;;  %vm21072_vm5 = vmmov %vm21070_vm1 }
 0x320   :  { %4901 = vrot.lane.b32.xlu1 %v17327_v11, %s14441_s13  ;;  %v3867_v10 = vpop.permute.xlu0 %3866 }
 0x321   :  { %3903 = vst.msk [vmem:[#allocation2 + $0xf4] sm:$0xf] %vm3890_vm4, %v3867_v10  ;;  %v13556_v62 = vld [vmem:[#allocation2 + $0xf0] ss:$20 sps:$4 sm:$0xff]  }
 0x322   :  { %v3711_v48 = vpop.permute.xlu1 %3710  ;;  %3976 = vst.msk [vmem:[#allocation2 + $0xf4] sm:$0xf] %vm21066_vm3, %v3940_v26  ;;  %4733 = vrot.lane.b32.xlu0 %v21067_v43, %s14440_s29 }
 0x323   :  { %3746 = vst.msk [vmem:[#allocation2 + $0x108] sm:$0xf] %vm21064_vm9, %v3711_v48  ;;  %vm21074_vm9 = vcmask 388288  }
 0x324   :  { %3819 = vst.msk [vmem:[#allocation2 + $0x108] sm:$0xf] %vm21065_vm0, %v3784_v38  ;;  %4298 = vrot.lane.b32.xlu1 %v21058_v40, %s14450_s14  ;;  %v4007_v45 = vpop.permute.xlu0 %4006  ;;  %vm21075_vm0 = vcmask 585088   ;;  %vm21076_vm3 = vmmov %vm21074_vm9 }
 0x325   :  { %v4026_v7 = vrot.slane %v4007_v45, 4 }
 0x326   :  { %v3869_v30 = vpop.permute.xlu1 %3868  ;;  %4369 = vrot.lane.b32.xlu0 %v21042_v36, %s14448_s17 }
 0x327   :  { %3904 = vst.msk [vmem:[#allocation2 + $0x108] sm:$0xf] %vm3890_vm4, %v3869_v30  ;;  %v4043_v38 = vsel %vm21070_vm1, %v4026_v7, %v4007_v45  ;;  %vm21078_vm1 = vmmov %vm21075_vm0 }
 0x328   :  { %3977 = vst.msk [vmem:[#allocation2 + $0x108] sm:$0xf] %vm21068_vm6, %v3942_v19  ;;  %4735 = vrot.lane.b32.xlu1 %v21069_v60, %s14440_s29  ;;  %v3150_v20 = vpop.permute.xlu0 %3149  ;;  %vm21077_vm6 = vcmask 781888  }
 0x329   :  { %4078 = vst.msk [vmem:[#allocation2 + $0xf4] sm:$0xff] %vm15942_vm13, %v4043_v38 }
 0x32a   :  { %v4009_v26 = vpop.permute.xlu1 %4008  ;;  %4799 = vrot.lane.b32.xlu0 %v21071_v25, %s14437_s22 }
 0x32b   :  { %v4027_v61 = vrot.slane %v4009_v26, 4 }
 0x32c   :  { %4371 = vrot.lane.b32.xlu1 %v21067_v43, %s14448_s17  ;;  %v3510_v12 = vpop.permute.xlu0 %3509 }
 0x32d   :  { %v4044_v19 = vsel %vm21072_vm5, %v4027_v61, %v4009_v26  ;;  %vm21080_vm5 = vmmov %vm21077_vm6 }
 0x32e   :  { %4079 = vst.msk [vmem:[#allocation2 + $0x108] sm:$0xff] %vm15942_vm13, %v4044_v19  ;;  %v3152_v3 = vpop.permute.xlu1 %3151  ;;  %4436 = vrot.lane.b32.xlu0 %v21047_v28, %s14451_s18  ;;  %v21079_v28 = vld [vmem:[#allocation41_spill] sm:$0xff] }
 0x330   :  { %4801 = vrot.lane.b32.xlu1 %v21073_v29, %s14437_s22  ;;  %v3018_v18 = vpop.permute.xlu0 %3017 }
 0x331   :  { %3052 = vst.msk [vmem:[#allocation2 + $0x118] sm:$0xf] %vm21074_vm9, %v3018_v18  ;;  %vm21081_vm9 = vcmask 982016   ;;  %v18030_v18 = vpop.f32.mrf.mxu1 }
 0x332   :  { %v3512_v55 = vpop.permute.xlu1 %3511  ;;  %3184 = vst.msk [vmem:[#allocation2 + $0x118] sm:$0xf] %vm21075_vm0, %v3150_v20  ;;  %4142 = vrot.lane.b32.xlu0 %v21061_v17, %s14449_s12  ;;  %vm21082_vm0 = vmmov %vm21081_vm9 }
 0x334   :  { %4438 = vrot.lane.b32.xlu1 %v21071_v25, %s14451_s18  ;;  %v3378_v48 = vpop.permute.xlu0 %3377  ;;  %v21086_v25 = vld [vmem:[#allocation30_spill] sm:$0xff] }
 0x335   :  { %v13554_v23 = vld [vmem:[#allocation2 + $0xf4] ss:$20 sps:$4 sm:$0xff]   ;;  %3412 = vst.msk [vmem:[#allocation2 + $0x118] sm:$0xf] %vm21077_vm6, %v3378_v48  ;;  %vm21084_vm6 = vcmask 322688  }
 0x336   :  { %v3020_v39 = vpop.permute.xlu1 %3019  ;;  %5866 = vmatprep.mubr.bf16.mxu1 %v13554_v23  ;;  %3544 = vst.msk [vmem:[#allocation2 + $0x118] sm:$0xf] %vm3529_vm7, %v3510_v12  ;;  %4581 = vrot.lane.b32.xlu0 %v21079_v28, %s14439_s24 }
 0x337   :  { %3053 = vst.msk [vmem:[#allocation2 + $0x12c] sm:$0xf] %vm21076_vm3, %v3020_v39  ;;  %5867 = vmatmul.mubr.bf16.gmra.mxu1 %v13556_v62  ;;  %vm21083_vm3 = vcmask 1044288  }
 0x338   :  { %3185 = vst.msk [vmem:[#allocation2 + $0x12c] sm:$0xf] %vm21078_vm1, %v3152_v3  ;;  %4144 = vrot.lane.b32.xlu1 %v17327_v11, %s14449_s12  ;;  %v3577_v10 = vpop.permute.xlu0 %3576  ;;  %vm21085_vm1 = vcmask 519488  }
 0x339   :  { %v3594_v32 = vrot.slane %v3577_v10, 4 }
 0x33a   :  { %v3380_v17 = vpop.permute.xlu1 %3379  ;;  %4215 = vrot.lane.b32.xlu0 %v21056_v24, %s14447_s16 }
 0x33b   :  { %3413 = vst.msk [vmem:[#allocation2 + $0x12c] sm:$0xf] %vm21080_vm5, %v3380_v17  ;;  %v3611_v2 = vsel %vm21081_vm9, %v3594_v32, %v3577_v10  ;;  %vm21087_vm5 = vcmask 388288   ;;  %vm21088_vm9 = vcmask 913088   ;;  %v18039_v17 = vpop.f32.mrf.mxu1 }
 0x33c   :  { %3545 = vst.msk [vmem:[#allocation2 + $0x12c] sm:$0xf] %vm3529_vm7, %v3512_v55  ;;  %4583 = vrot.lane.b32.xlu1 %v17363_v41, %s14439_s24  ;;  %v3786_v30 = vpop.permute.xlu0 %3785 }
 0x33d   :  { %3646 = vst.msk [vmem:[#allocation2 + $0x118] sm:$0xff] %vm15744_vm14, %v3611_v2 }
 0x33e   :  { %v3579_v11 = vpop.permute.xlu1 %3578  ;;  %4665 = vrot.lane.b32.xlu0 %v17342_v44, %s14438_s23 }
 0x33f   :  { %v3595_v45 = vrot.slane %v3579_v11, 4 }
 0x340   :  { %4217 = vrot.lane.b32.xlu1 %v21079_v28, %s14447_s16  ;;  %v3944_v26 = vpop.permute.xlu0 %3943 }
 0x341   :  { %v3612_v7 = vsel %vm21082_vm0, %v3595_v45, %v3579_v11  ;;  %vm21089_vm0 = vcmask 916480  }
 0x342   :  { %3647 = vst.msk [vmem:[#allocation2 + $0x12c] sm:$0xff] %vm15744_vm14, %v3612_v7  ;;  %v4431_v38 = vpop.permute.xlu1 %4430  ;;  %4903 = vrot.lane.b32.xlu0 %v17397_v51, %s14441_s13 }
 0x343   :  { %4472 = vst.msk [vmem:[#allocation2 + $0x94] sm:$0xf] %vm21083_vm3, %v4431_v38 }
 0x344   :  { %4667 = vrot.lane.b32.xlu1 %v17403_v9, %s14438_s23  ;;  %v3713_v61 = vpop.permute.xlu0 %3712 }
 0x345   :  { %3747 = vst.msk [vmem:[#allocation2 + $0x11c] sm:$0xf] %vm21084_vm6, %v3713_v61 }
 0x346   :  { %v4137_v20 = vpop.permute.xlu1 %4136  ;;  %3820 = vst.msk [vmem:[#allocation2 + $0x11c] sm:$0xf] %vm21085_vm1, %v3786_v30  ;;  %4300 = vrot.lane.b32.xlu0 %v21060_v52, %s14450_s14 }
 0x347   :  { %4176 = vst.msk [vmem:[#allocation2 + $0xbc] sm:$0xf] %vm4166_vm2, %v4137_v20 }
 0x348   :  { %4905 = vrot.lane.b32.xlu1 %v21086_v25, %s14441_s13  ;;  %v3871_v3 = vpop.permute.xlu0 %3870 }
 0x349   :  { %3905 = vst.msk [vmem:[#allocation2 + $0x11c] sm:$0xf] %vm3890_vm4, %v3871_v3 }
 0x34a   :  { %v4576_v19 = vpop.permute.xlu1 %4575  ;;  %3978 = vst.msk [vmem:[#allocation2 + $0x11c] sm:$0xf] %vm21088_vm9, %v3944_v26  ;;  %4737 = vrot.lane.b32.xlu0 %v17284_v59, %s14440_s29 }
 0x34b   :  { %4614 = vst.msk [vmem:[#allocation2 + $0xc0] sm:$0xf] %vm21087_vm5, %v4576_v19 }
 0x34c   :  { %4302 = vrot.lane.b32.xlu1 %v17342_v44, %s14450_s14  ;;  %v4011_v55 = vpop.permute.xlu0 %4010 }
 0x34d   :  { %v4028_v23 = vrot.slane %v4011_v55, 4 }
 0x34e   :  { %v3788_v12 = vpop.permute.xlu1 %3787  ;;  %4373 = vrot.lane.b32.xlu0 %v21069_v60, %s14448_s17 }
 0x34f   :  { %v4045_v62 = vsel %vm21089_vm0, %v4028_v23, %v4011_v55 }
 0x350   :  { %4739 = vrot.lane.b32.xlu1 %v17367_v1, %s14440_s29  ;;  %4080 = vst.msk [vmem:[#allocation2 + $0x11c] sm:$0xff] %vm15942_vm13, %v4045_v62  ;;  %v4429_v48 = vpop.permute.xlu0 %4428  ;;  %v13097_v10 = vpop.f32.mrf.mxu1  ;;  %v13576_v62 = vld [vmem:[#allocation2 + $0xc] ss:$20 sps:$4 sm:$0xff]  }
 0x351   :  { %4471 = vst.msk [vmem:[#allocation2 + $0x80] sm:$0xf] %vm21083_vm3, %v4429_v48  ;;  %vm21091_vm3 = vcmask 585088  }
 0x352   :  { %v3946_v39 = vpop.permute.xlu1 %3945  ;;  %4803 = vrot.lane.b32.xlu0 %v17294_v15, %s14437_s22  ;;  %v13098_v11 = vpop.f32.mrf.mxu1 }
 0x353   :  { %v18049_v30 = vadd.f32 %v13098_v11, %v13097_v10  ;;  %v13579_v11 = vld [vmem:[#allocation2 + $0x34] ss:$20 sps:$4 sm:$0xff]  }
 0x354   :  { %4375 = vrot.lane.b32.xlu1 %v17284_v59, %s14448_s17  ;;  %v4135_v2 = vpop.permute.xlu0 %4134 }
 0x355   :  { %4175 = vst.msk [vmem:[#allocation2 + $0xa8] sm:$0xf] %vm4166_vm2, %v4135_v2  ;;  %v13574_v2 = vld [vmem:[#allocation2 + $0x8] ss:$20 sps:$4 sm:$0xff]  }
 0x356   :  { %v3715_v32 = vpop.permute.xlu1 %3714  ;;  %4440 = vrot.lane.b32.xlu0 %v21073_v29, %s14451_s18  ;;  %v21090_v29 = vld [vmem:[#allocation24_spill] sm:$0xff] }
 0x357   :  { %3748 = vst.msk [vmem:[#allocation2 + $0x130] sm:$0xf] %vm21084_vm6, %v3715_v32  ;;  %vm21092_vm6 = vmmov %vm21091_vm3 }
 0x358   :  { %3821 = vst.msk [vmem:[#allocation2 + $0x130] sm:$0xf] %vm21085_vm1, %v3788_v12  ;;  %4805 = vrot.lane.b32.xlu1 %v17406_v27, %s14437_s22  ;;  %v4574_v7 = vpop.permute.xlu0 %4573  ;;  %v13571_v12 = vld [vmem:[#allocation2 + $0x118] ss:$20 sps:$4 sm:$0xff]  }
 0x359   :  { %4613 = vst.msk [vmem:[#allocation2 + $0xac] sm:$0xf] %vm21087_vm5, %v4574_v7  ;;  %vm21096_vm5 = vcmask 781888   ;;  %v13591_v7 = vld [vmem:[%s20695_s3 + $0x128] ss:$0 sps:$4 sm:$0xff]  }
 0x35a   :  { %v3873_v45 = vpop.permute.xlu1 %3872  ;;  %4146 = vrot.lane.b32.xlu0 %v17397_v51, %s14449_s12 }
 0x35b   :  { %3906 = vst.msk [vmem:[#allocation2 + $0x130] sm:$0xf] %vm3890_vm4, %v3873_v45 }
 0x35c   :  { %3979 = vst.msk [vmem:[#allocation2 + $0x130] sm:$0xf] %vm21088_vm9, %v3946_v39  ;;  %4442 = vrot.lane.b32.xlu1 %v17294_v15, %s14451_s18  ;;  %v4208_v26 = vpop.permute.xlu0 %4207  ;;  %vm21097_vm9 = vmmov %vm21096_vm5 }
 0x35d   :  { %4248 = vst.msk [vmem:[#allocation2 + $0xa8] sm:$0xf] %vm4239_vm10, %v4208_v26 }
 0x35e   :  { %v4013_v38 = vpop.permute.xlu1 %4012  ;;  %4585 = vrot.lane.b32.xlu0 %v21090_v29, %s14439_s24 }
 0x35f   :  { %v4029_v20 = vrot.slane %v4013_v38, 4 }
 0x360   :  { %4148 = vrot.lane.b32.xlu1 %v21086_v25, %s14449_s12  ;;  %v4658_v19 = vpop.permute.xlu0 %4657 }
 0x361   :  { %v4046_v61 = vsel %vm21089_vm0, %v4029_v20, %v4013_v38  ;;  %4697 = vst.msk [vmem:[#allocation2 + $0xac] sm:$0xf] %vm21091_vm3, %v4658_v19  ;;  %vm21098_vm0 = vcmask 847488   ;;  %v5213_v38 = vld [vmem:[#allocation2 + $0x44] sm:$0xff]  ;;  %v5210_v20 = vld [vmem:[#allocation2 + $0x30] sm:$0xff] }
 0x362   :  { %4081 = vst.msk [vmem:[#allocation2 + $0x130] sm:$0xff] %vm15942_vm13, %v4046_v61  ;;  %v4210_v15 = vpop.permute.xlu1 %4209  ;;  %4219 = vrot.lane.b32.xlu0 %v17363_v41, %s14447_s16  ;;  %vm21094_vm13 = vcmask 650688   ;;  %vm21101_vm3 = vmmov %vm21098_vm0 }
 0x363   :  { %4249 = vst.msk [vmem:[#allocation2 + $0xbc] sm:$0xf] %vm4239_vm10, %v4210_v15  ;;  %vm21095_vm1 = vmmov %vm21094_vm13 }
 0x364   :  { %4587 = vrot.lane.b32.xlu1 %v17740_v46, %s14439_s24  ;;  %v4896_v25 = vpop.permute.xlu0 %4895 }
 0x365   :  { %v4919_v32 = vrot.slane %v4896_v25, 4 }
 0x366   :  { %v4660_v51 = vpop.permute.xlu1 %4659  ;;  %4669 = vrot.lane.b32.xlu0 %v21093_v33, %s14438_s23 }
 0x367   :  { %4698 = vst.msk [vmem:[#allocation2 + $0xc0] sm:$0xf] %vm21092_vm6, %v4660_v51  ;;  %vm21102_vm6 = vcmask 1043456   ;;  %v12301_v51 = vcombine.low %v5210_v20, %v5213_v38  ;;  %v21114_v38 = vld [vmem:[#allocation10_spill] sm:$0xff] }
 0x368   :  { %4221 = vrot.lane.b32.xlu1 %v21090_v29, %s14447_s16  ;;  %v4293_v23 = vpop.permute.xlu0 %4292  ;;  %13425 = vmatprep.subr.msk.bf16.mxu1 %vm21102_vm6, %v13591_v7 }
 0x369   :  { %v13569_v3 = vld [vmem:[#allocation2 + $0x11c] ss:$20 sps:$4 sm:$0xff]   ;;  %4333 = vst.msk [vmem:[#allocation2 + $0xa8] sm:$0xf] %vm21094_vm13, %v4293_v23  ;;  %vm21103_vm13 = vmmov %vm21102_vm6 }
 0x36a   :  { %v4898_v55 = vpop.permute.xlu1 %4897  ;;  %5874 = vmatprep.mubr.bf16.mxu1 %v13569_v3  ;;  %4907 = vrot.lane.b32.xlu0 %v17825_v63, %s14441_s13  ;;  %v5784_v26 = vsel %vm21103_vm13, %v13591_v7, 0  ;;  %v5216_v23 = vld [vmem:[#allocation2 + $0x58] sm:$0xff]  ;;  %vm21118_vm13 = vcmask 650688  }
 0x36b   :  { %5875 = vmatmul.mubr.bf16.gmra.mxu1 %v13571_v12  ;;  %v4920_v45 = vrot.slane %v4898_v55, 4  ;;  %v21113_v7 = vld [vmem:[#allocation16_spill] sm:$0xff] }
 0x36c   :  { %4671 = vrot.lane.b32.xlu1 %v17817_v31, %s14438_s23  ;;  %v4730_v48 = vpop.permute.xlu0 %4729  ;;  %5915 = vmatprep.mubr.bf16.mxu1 %v13576_v62 }
 0x36d   :  { %4769 = vst.msk [vmem:[#allocation2 + $0xac] sm:$0xf] %vm21096_vm5, %v4730_v48  ;;  %vm21105_vm5 = vcmask 1044288  }
 0x36e   :  { %v4295_v39 = vpop.permute.xlu1 %4294  ;;  %4304 = vrot.lane.b32.xlu0 %v17403_v9, %s14450_s14 }
 0x36f   :  { %4334 = vst.msk [vmem:[#allocation2 + $0xbc] sm:$0xf] %vm21095_vm1, %v4295_v39  ;;  %vm21104_vm1 = vmmov %vm21100_vm12 }
 0x370   :  { %4909 = vrot.lane.b32.xlu1 %v4878_v53, %s14441_s13  ;;  %v4366_v10 = vpop.permute.xlu0 %4365  ;;  %v4935_v53 = vsel %vm21100_vm12, %v4919_v32, %v4896_v25  ;;  %v4936_v19 = vsel %vm21104_vm1, %v4920_v45, %v4898_v55  ;;  %v13581_v25 = vld [vmem:[#allocation2 + $0x5c] ss:$20 sps:$4 sm:$0xff]   ;;  %v5222_v32 = vld [vmem:[#allocation2 + $0x80] sm:$0xff]  ;;  %vm21121_vm1 = vmmov %vm21118_vm13 }
 0x371   :  { %4406 = vst.msk [vmem:[#allocation2 + $0xa8] sm:$0xf] %vm21098_vm0, %v4366_v10  ;;  %v5219_v55 = vld [vmem:[#allocation2 + $0x6c] sm:$0xff]  ;;  %vm21107_vm0 = vcmask 388288   ;;  %v13595_v10 = vld [vmem:[%s20695_s3 + $0x118] sm:$0xff]  }
 0x372   :  { %v4732_v63 = vpop.permute.xlu1 %4731  ;;  %4741 = vrot.lane.b32.xlu0 %v21099_v8, %s14440_s29  ;;  %v12306_v48 = vcombine.low %v5216_v23, %v5219_v55  ;;  %vm21109_vm12 = vmmov %vm21107_vm0  ;;  %v13596_v45 = vld [vmem:[%s20695_s3 + $0x110] sm:$0xff]  }
 0x373   :  { %4770 = vst.msk [vmem:[#allocation2 + $0xc0] sm:$0xf] %vm21097_vm9, %v4732_v63  ;;  %5916 = vmatmul.mubr.bf16.vlgmr.msra.gmra.mxu1 %v13574_v2  ;;  %vm21106_vm9 = vmmov %vm21105_vm5  ;;  %v13594_v63 = vld [vmem:[%s20695_s3 + $0x120] sm:$0xff]  }
 0x374   :  { %4306 = vrot.lane.b32.xlu1 %v21093_v33, %s14450_s14  ;;  %v4796_v50 = vpop.permute.xlu0 %4795  ;;  %5923 = vmatprep.mubr.bf16.mxu1 %v13579_v11  ;;  %v21111_v2 = vld [vmem:[#allocation13_spill] sm:$0xff]  ;;  %v5225_v11 = vld [vmem:[#allocation2 + $0x94] sm:$0xff] }
 0x375   :  { %4835 = vst.msk [vmem:[#allocation2 + $0xac] sm:$0xf] %vm3529_vm7, %v4796_v50  ;;  %13398 = vmatpush3.bf16.msra.mxu1 %v5784_v26 }
 0x376   :  { %v4368_v0 = vpop.permute.xlu1 %4367  ;;  %4967 = vst.msk [vmem:[#allocation2 + $0xac] sm:$0xff] %vm15744_vm14, %v4935_v53  ;;  %4377 = vrot.lane.b32.xlu0 %v17367_v1, %s14448_s17  ;;  %13399 = vmatprep.subr.bf16.mxu1 %v13594_v63  ;;  %v12311_v53 = vcombine.low %v5222_v32, %v5225_v11 }
 0x377   :  { %4407 = vst.msk [vmem:[#allocation2 + $0xbc] sm:$0xf] %vm21101_vm3, %v4368_v0  ;;  %vm21112_vm3 = vcmask 585088  }
 0x378   :  { %4743 = vrot.lane.b32.xlu1 %v17848_v49, %s14440_s29  ;;  %v4433_v15 = vpop.permute.xlu0 %4432  ;;  %vm21115_vm6 = vmmov %vm21112_vm3 }
 0x379   :  { %4473 = vst.msk [vmem:[#allocation2 + $0xa8] sm:$0xf] %vm21105_vm5, %v4433_v15  ;;  %13400 = vmatpush3.bf16.msra.mxu1 %v13594_v63  ;;  %v13597_v15 = vld [vmem:[%s20695_s3 + $0x108] sm:$0xff]   ;;  %vm21122_vm5 = vcmask 781888  }
 0x37a   :  { %v4798_v61 = vpop.permute.xlu1 %4797  ;;  %4807 = vrot.lane.b32.xlu0 %v17860_v58, %s14437_s22  ;;  %13401 = vmatprep.subr.bf16.mxu1 %v13595_v10 }
 0x37b   :  { %4836 = vst.msk [vmem:[#allocation2 + $0xc0] sm:$0xf] %vm3529_vm7, %v4798_v61  ;;  %5924 = vmatmul.mubr.bf16.gmra.mxu1 %v12301_v51  ;;  %v21116_v51 = vld [vmem:[#allocation20_spill] sm:$0xff] }
 0x37c   :  { %4968 = vst.msk [vmem:[#allocation2 + $0xc0] sm:$0xff] %vm15744_vm14, %v4936_v19  ;;  %4379 = vrot.lane.b32.xlu1 %v21099_v8, %s14448_s17  ;;  %v4139_v12 = vpop.permute.xlu0 %4138  ;;  %5931 = vmatprep.mubr.bf16.mxu1 %v13581_v25  ;;  %v21117_v25 = vld [vmem:[#allocation15_spill] sm:$0xff] }
 0x37d   :  { %4177 = vst.msk [vmem:[#allocation2 + $0xd0] sm:$0xf] %vm4166_vm2, %v4139_v12  ;;  %13402 = vmatpush3.bf16.msra.mxu1 %v13595_v10 }
 0x37e   :  { %v4435_v3 = vpop.permute.xlu1 %4434  ;;  %4444 = vrot.lane.b32.xlu0 %v17406_v27, %s14451_s18  ;;  %13403 = vmatprep.subr.bf16.mxu1 %v13596_v45 }
 0x37f   :  { %4474 = vst.msk [vmem:[#allocation2 + $0xbc] sm:$0xf] %vm21106_vm9, %v4435_v3  ;;  %vm21125_vm9 = vmmov %vm21122_vm5 }
 0x380   :  { %4809 = vrot.lane.b32.xlu1 %v2665_v35, %s14437_s22  ;;  %v4578_v39 = vpop.permute.xlu0 %4577  ;;  %v5228_v3 = vld [vmem:[#allocation2 + $0xa8] sm:$0xff] }
 0x381   :  { %4615 = vst.msk [vmem:[#allocation2 + $0xd4] sm:$0xf] %vm21107_vm0, %v4578_v39  ;;  %13404 = vmatpush3.bf16.msra.mxu1 %v13596_v45  ;;  %v21119_v39 = vld [vmem:[#allocation19_spill] sm:$0xff]  ;;  %vm21126_vm0 = vcmask 847488   ;;  %v21130_v45 = vld [vmem:[#allocation37_spill] sm:$0xff] }
 0x382   :  { %v4141_v62 = vpop.permute.xlu1 %4140  ;;  %4983 = vrot.lane.b32.xlu0 %v21108_v54, %s14444_s28  ;;  %13405 = vmatprep.subr.bf16.mxu1 %v13597_v15 }
 0x383   :  { %4178 = vst.msk [vmem:[#allocation2 + $0xe4] sm:$0xf] %vm4166_vm2, %v4141_v62  ;;  %5932 = vmatmul.mubr.bf16.gmra.mxu1 %v12306_v48  ;;  %v13585_v26 = vld [vmem:[#allocation2 + $0xac] ss:$20 sps:$4 sm:$0xff]  }
 0x384   :  { %4446 = vrot.lane.b32.xlu1 %v17860_v58, %s14451_s18  ;;  %v4212_v35 = vpop.permute.xlu0 %4211  ;;  %5939 = vmatprep.mubr.bf16.mxu1 %v13583_v13  ;;  %v21110_v58 = vld [vmem:[#allocation11_spill] sm:$0xff]  ;;  %v13598_v62 = vld [vmem:[%s20695_s3 + $0x100] sm:$0xff]  }
 0x385   :  { %4250 = vst.msk [vmem:[#allocation2 + $0xd0] sm:$0xf] %vm4239_vm10, %v4212_v35  ;;  %13406 = vmatpush3.bf16.msra.mxu1 %v13597_v15  ;;  %v21120_v48 = vld [vmem:[#allocation9_spill] sm:$0xff]  ;;  %v21123_v13 = vld [vmem:[#allocation12_spill] sm:$0xff] }
 0x386   :  { %v4580_v27 = vpop.permute.xlu1 %4579  ;;  %4987 = vrot.lane.b32.xlu0 %v21111_v2, %s14444_s28  ;;  %v5231_v19 = vld [vmem:[#allocation2 + $0xbc] sm:$0xff]  ;;  %13407 = vmatprep.subr.bf16.mxu1 %v13598_v62  ;;  %v21128_v2 = vld [vmem:[#allocation22_spill] sm:$0xff] }
 0x387   :  { %4616 = vst.msk [vmem:[#allocation2 + $0xe8] sm:$0xf] %vm21109_vm12, %v4580_v27  ;;  %v12316_v23 = vcombine.low %v5228_v3, %v5231_v19  ;;  %v21124_v27 = vld [vmem:[#allocation14_spill] sm:$0xff]  ;;  %vm21132_vm12 = vcmask 982016   ;;  %v21135_v3 = vld [vmem:[#allocation31_spill] sm:$0xff] }
 0x388   :  { %4985 = vrot.lane.b32.xlu1 %v21110_v58, %s14444_s28  ;;  %v4662_v50 = vpop.permute.xlu0 %4661  ;;  %v21127_v58 = vld [vmem:[#allocation17_spill] sm:$0xff] }
 0x389   :  { %4699 = vst.msk [vmem:[#allocation2 + $0xd4] sm:$0xf] %vm21112_vm3, %v4662_v50  ;;  %13408 = vmatpush3.bf16.msra.mxu1 %v13598_v62  ;;  %v21129_v50 = vld [vmem:[#allocation38_spill] sm:$0xff]  ;;  %vm21133_vm3 = vmmov %vm21126_vm0 }
 0x38a   :  { %v4214_v0 = vpop.permute.xlu1 %4213  ;;  %5067 = vrot.lane.b32.xlu0 %v21114_v38, %s14442_s21  ;;  %v21131_v38 = vshrl.u32 %v21129_v50, 16  ;;  %v21134_v19 = vshll.u32 %v21129_v50, 16 }
 0x38b   :  { %4251 = vst.msk [vmem:[#allocation2 + $0xe4] sm:$0xf] %vm4239_vm10, %v4214_v0  ;;  %5940 = vmatmul.mubr.bf16.gmra.mxu1 %v12311_v53  ;;  %v12289_v53 = vrot.slane %v21129_v50, 9 }
 0x38c   :  { %4989 = vrot.lane.b32.xlu1 %v21113_v7, %s14444_s28  ;;  %v4900_v61 = vpop.permute.xlu0 %4899  ;;  %5947 = vmatprep.mubr.bf16.mxu1 %v13585_v26  ;;  %v4977_v7 = vrot.slane %v21130_v45, 5  ;;  %v5047_v26 = vrot.slane %v21131_v38, 5 }
 0x38d   :  { %v4921_v32 = vrot.slane %v4900_v61, 4 }
 0x38e   :  { %v4664_v20 = vpop.permute.xlu1 %4663  ;;  %5071 = vrot.lane.b32.xlu0 %v21117_v25, %s14442_s21  ;;  %v5051_v25 = vshrl.u32 %v21130_v45, 16  ;;  %v4978_v62 = vsel %vm14772_vm11, %v12289_v53, %v4977_v7 }
 0x38f   :  { %4700 = vst.msk [vmem:[#allocation2 + $0xe8] sm:$0xf] %vm21115_vm6, %v4664_v20  ;;  %v4937_v20 = vsel %vm21132_vm12, %v4921_v32, %v4900_v61  ;;  %vm21137_vm6 = vmmov %vm21132_vm12  ;;  %vm21153_vm12 = vcmask 781888  }
 0x390   :  { %5069 = vrot.lane.b32.xlu1 %v21116_v51, %s14442_s21  ;;  %v4297_v55 = vpop.permute.xlu0 %4296  ;;  %v5048_v51 = vrot.slane %v21134_v19, 6 }
 0x391   :  { %4335 = vst.msk [vmem:[#allocation2 + $0xd0] sm:$0xf] %vm21118_vm13, %v4297_v55  ;;  %v21136_v55 = vld [vmem:[#allocation34_spill] sm:$0xff]  ;;  %vm21138_vm13 = vcmask 1044288  }
 0x392   :  { %v4902_v12 = vpop.permute.xlu1 %4901  ;;  %5139 = vrot.lane.b32.xlu0 %v21120_v48, %s14445_s15  ;;  %vm21141_vm11 = vmmov %vm21138_vm13 }
 0x393   :  { %5948 = vmatmul.mubr.bf16.gmra.mxu1 %v12316_v23  ;;  %v4922_v15 = vrot.slane %v4902_v12, 4 }
 0x394   :  { %5073 = vrot.lane.b32.xlu1 %v21119_v39, %s14442_s21  ;;  %v4734_v54 = vpop.permute.xlu0 %4733  ;;  %v18206_v39 = vpop.f32.mrf.mxu1 }
 0x395   :  { %4771 = vst.msk [vmem:[#allocation2 + $0xd4] sm:$0xf] %vm21122_vm5, %v4734_v54  ;;  %v4938_v48 = vsel %vm21137_vm6, %v4922_v15, %v4902_v12  ;;  %v5053_v54 = vrot.slane %v5051_v25, 5  ;;  %v21145_v15 = vld [vmem:[#allocation23_spill] sm:$0xff]  ;;  %vm21155_vm6 = vcmask 847488  }
 0x396   :  { %v4299_v63 = vpop.permute.xlu1 %4298  ;;  %5143 = vrot.lane.b32.xlu0 %v21124_v27, %s14445_s15  ;;  %v18218_v12 = vpop.f32.mrf.mxu1 }
 0x397   :  { %4336 = vst.msk [vmem:[#allocation2 + $0xe4] sm:$0xf] %vm21121_vm1, %v4299_v63  ;;  %v5049_v63 = vor.u32 %v5048_v51, %v5047_v26  ;;  %vm21144_vm1 = vcmask 388288  }
 0x398   :  { %5141 = vrot.lane.b32.xlu1 %v21123_v13, %s14445_s15  ;;  %v4370_v10 = vpop.permute.xlu0 %4369  ;;  %v21139_v13 = vshll.u32 %v21130_v45, 16  ;;  %vm21146_vm5 = vmmov %vm21144_vm1 }
 0x399   :  { %4408 = vst.msk [vmem:[#allocation2 + $0xd0] sm:$0xf] %vm21126_vm0, %v4370_v10  ;;  %v5050_v32 = vrot.slane %v5049_v63, 4  ;;  %vm21151_vm0 = vcmask 650688  }
 0x39a   :  { %v4736_v35 = vpop.permute.xlu1 %4735  ;;  %4991 = vrot.lane.b32.xlu0 %v21128_v2, %s14444_s28  ;;  %v5054_v27 = vrot.slane %v21139_v13, 6  ;;  %v21142_v2 = vld [vmem:[#allocation7_spill] sm:$0xff] }
 0x39b   :  { %4772 = vst.msk [vmem:[#allocation2 + $0xe8] sm:$0xf] %vm21125_vm9, %v4736_v35  ;;  %v21148_v13 = vld [vmem:[#allocation35_spill] sm:$0xff] }
 0x39c   :  { %5145 = vrot.lane.b32.xlu1 %v21127_v58, %s14445_s15  ;;  %v4800_v0 = vpop.permute.xlu0 %4799  ;;  %v5055_v58 = vor.u32 %v5054_v27, %v5053_v54  ;;  %v21147_v54 = vld [vmem:[#allocation32_spill] sm:$0xff] }
 0x39d   :  { %4837 = vst.msk [vmem:[#allocation2 + $0xd4] sm:$0xf] %vm3529_vm7, %v4800_v0 }
 0x39e   :  { %v4372_v11 = vpop.permute.xlu1 %4371  ;;  %4969 = vst.msk [vmem:[#allocation2 + $0xd4] sm:$0xff] %vm15744_vm14, %v4937_v20  ;;  %4995 = vrot.lane.b32.xlu0 %v21136_v55, %s14444_s28  ;;  %v5056_v26 = vsel %vm14901_vm15, %v5050_v32, %v5055_v58  ;;  %vm21149_vm15 = vcmask 585088  }
 0x39f   :  { %4409 = vst.msk [vmem:[#allocation2 + $0xe4] sm:$0xf] %vm21133_vm3, %v4372_v11  ;;  %v21143_v11 = vld [vmem:[#allocation18_spill] sm:$0xff]  ;;  %vm21150_vm9 = vmmov %vm21149_vm15 }
 0x3a0   :  { %4993 = vrot.lane.b32.xlu1 %v21135_v3, %s14444_s28  ;;  %v4437_v23 = vpop.permute.xlu0 %4436  ;;  %vm21154_vm3 = vmmov %vm21153_vm12 }
 0x3a1   :  { %4475 = vst.msk [vmem:[#allocation2 + $0xd0] sm:$0xf] %vm21138_vm13, %v4437_v23  ;;  %vm21156_vm13 = vcmask 982016  }
 0x3a2   :  { %v4802_v61 = vpop.permute.xlu1 %4801  ;;  %5075 = vrot.lane.b32.xlu0 %v21140_v22, %s14442_s21 }
 0x3a3   :  { %4838 = vst.msk [vmem:[#allocation2 + $0xe8] sm:$0xf] %vm3529_vm7, %v4802_v61 }
 0x3a4   :  { %4970 = vst.msk [vmem:[#allocation2 + $0xe8] sm:$0xff] %vm15744_vm14, %v4938_v48  ;;  %4997 = vrot.lane.b32.xlu1 %v4978_v62, %s14444_s28  ;;  %v4143_v10 = vpop.permute.xlu0 %4142  ;;  %v12291_v62 = vrot.slane %v21129_v50, 10  ;;  %v5133_v48 = vrot.slane %v21130_v45, 6 }
 0x3a5   :  { %4179 = vst.msk [vmem:[#allocation2 + $0xf8] sm:$0xf] %vm4166_vm2, %v4143_v10 }
 0x3a6   :  { %v4439_v35 = vpop.permute.xlu1 %4438  ;;  %5079 = vrot.lane.b32.xlu0 %v21143_v11, %s14442_s21  ;;  %v5134_v50 = vsel %vm14763_vm8, %v12291_v62, %v5133_v48  ;;  %vm21152_vm8 = vmmov %vm21151_vm0 }
 0x3a7   :  { %4476 = vst.msk [vmem:[#allocation2 + $0xe4] sm:$0xf] %vm21141_vm11, %v4439_v35  ;;  %v13103_v0 = vpop.f32.mrf.mxu1  ;;  %vm21157_vm11 = vmmov %vm21155_vm6 }
 0x3a8   :  { %5077 = vrot.lane.b32.xlu1 %v21142_v2, %s14442_s21  ;;  %v4582_v7 = vpop.permute.xlu0 %4581  ;;  %v5234_v3 = vld [vmem:[#allocation2 + $0xd0] sm:$0xff] }
 0x3a9   :  { %4617 = vst.msk [vmem:[#allocation2 + $0xfc] sm:$0xf] %vm21144_vm1, %v4582_v7  ;;  %v13104_v38 = vpop.f32.mrf.mxu1  ;;  %vm21158_vm1 = vmmov %vm21156_vm13 }
 0x3aa   :  { %v4145_v53 = vpop.permute.xlu1 %4144  ;;  %v18230_v20 = vadd.f32 %v13104_v38, %v13103_v0  ;;  %5147 = vrot.lane.b32.xlu0 %v21145_v15, %s14445_s15 }
 0x3ab   :  { %4180 = vst.msk [vmem:[#allocation2 + $0x10c] sm:$0xf] %vm4166_vm2, %v4145_v53  ;;  %v13106_v19 = vpop.f32.mrf.mxu1  ;;  %v13587_v61 = vld [vmem:[#allocation2 + $0xd4] ss:$20 sps:$4 sm:$0xff]  }
 0x3ac   :  { %5081 = vrot.lane.b32.xlu1 %v5056_v26, %s14442_s21  ;;  %v4216_v25 = vpop.permute.xlu0 %4215  ;;  %5955 = vmatprep.mubr.bf16.mxu1 %v13587_v61 }
 0x3ad   :  { %4252 = vst.msk [vmem:[#allocation2 + $0xf8] sm:$0xf] %vm4239_vm10, %v4216_v25  ;;  %v13107_v23 = vpop.f32.mrf.mxu1 }
 0x3ae   :  { %v4584_v51 = vpop.permute.xlu1 %4583  ;;  %v5237_v55 = vld [vmem:[#allocation2 + $0xe4] sm:$0xff]  ;;  %v18239_v63 = vadd.f32 %v13107_v23, %v13106_v19  ;;  %5151 = vrot.lane.b32.xlu0 %v21148_v13, %s14445_s15 }
 0x3af   :  { %4618 = vst.msk [vmem:[#allocation2 + $0x110] sm:$0xf] %vm21146_vm5, %v4584_v51  ;;  %v12321_v21 = vcombine.low %v5234_v3, %v5237_v55  ;;  %vm21159_vm5 = vcmask 1044288  }
 0x3b0   :  { %5149 = vrot.lane.b32.xlu1 %v21147_v54, %s14445_s15  ;;  %v4666_v22 = vpop.permute.xlu0 %4665 }
 0x3b1   :  { %5956 = vmatmul.mubr.bf16.gmra.mxu1 %v12321_v21  ;;  %4701 = vst.msk [vmem:[#allocation2 + $0xfc] sm:$0xf] %vm21149_vm15, %v4666_v22  ;;  %vm21160_vm15 = vmmov %vm21159_vm5 }
 0x3b2   :  { %v4218_v27 = vpop.permute.xlu1 %4217  ;;  %4999 = vrot.lane.b32.xlu0 %v16928_v4, %s14444_s28 }
 0x3b3   :  { %4253 = vst.msk [vmem:[#allocation2 + $0x10c] sm:$0xf] %vm4239_vm10, %v4218_v27 }
 0x3b4   :  { %5153 = vrot.lane.b32.xlu1 %v5134_v50, %s14445_s15  ;;  %v4904_v35 = vpop.permute.xlu0 %4903 }
 0x3b5   :  { %v4923_v58 = vrot.slane %v4904_v35, 4 }
 0x3b6   :  { %v4668_v45 = vpop.permute.xlu1 %4667  ;;  %5003 = vrot.lane.b32.xlu0 %v21056_v24, %s14444_s28 }
 0x3b7   :  { %4702 = vst.msk [vmem:[#allocation2 + $0x110] sm:$0xf] %vm21150_vm9, %v4668_v45  ;;  %vm21161_vm9 = vcmask 388288  }
 0x3b8   :  { %5001 = vrot.lane.b32.xlu1 %v21054_v56, %s14444_s28  ;;  %v4301_v32 = vpop.permute.xlu0 %4300 }
 0x3b9   :  { %4337 = vst.msk [vmem:[#allocation2 + $0xf8] sm:$0xf] %vm21151_vm0, %v4301_v32  ;;  %vm21162_vm0 = vmmov %vm21161_vm9 }
 0x3ba   :  { %v4906_v10 = vpop.permute.xlu1 %4905  ;;  %5083 = vrot.lane.b32.xlu0 %v17054_v5, %s14442_s21 }
 0x3bb   :  { %v4924_v2 = vrot.slane %v4906_v10, 4 }
 0x3bc   :  { %5005 = vrot.lane.b32.xlu1 %v21079_v28, %s14444_s28  ;;  %v4738_v4 = vpop.permute.xlu0 %4737 }
 0x3bd   :  { %4773 = vst.msk [vmem:[#allocation2 + $0xfc] sm:$0xf] %vm21153_vm12, %v4738_v4 }
 0x3be   :  { %v4303_v16 = vpop.permute.xlu1 %4302  ;;  %5087 = vrot.lane.b32.xlu0 %v21060_v52, %s14442_s21  ;;  %v4940_v52 = vsel %vm21158_vm1, %v4924_v2, %v4906_v10 }
 0x3bf   :  { %4338 = vst.msk [vmem:[#allocation2 + $0x10c] sm:$0xf] %vm21152_vm8, %v4303_v16 }
 0x3c0   :  { %5085 = vrot.lane.b32.xlu1 %v21058_v40, %s14442_s21  ;;  %v4374_v24 = vpop.permute.xlu0 %4373  ;;  %v4939_v40 = vsel %vm21156_vm13, %v4923_v58, %v4904_v35  ;;  %vm21168_vm13 = vmmov %vm21157_vm11 }
 0x3c1   :  { %4410 = vst.msk [vmem:[#allocation2 + $0xf8] sm:$0xf] %vm21155_vm6, %v4374_v24  ;;  %vm21167_vm6 = vmmov %vm21154_vm3 }
 0x3c2   :  { %v4740_v56 = vpop.permute.xlu1 %4739  ;;  %5155 = vrot.lane.b32.xlu0 %v21042_v36, %s14445_s15 }
 0x3c3   :  { %4774 = vst.msk [vmem:[#allocation2 + $0x110] sm:$0xf] %vm21154_vm3, %v4740_v56 }
 0x3c4   :  { %5089 = vrot.lane.b32.xlu1 %v17342_v44, %s14442_s21  ;;  %v4804_v28 = vpop.permute.xlu0 %4803 }
 0x3c5   :  { %4839 = vst.msk [vmem:[#allocation2 + $0xfc] sm:$0xf] %vm3529_vm7, %v4804_v28 }
 0x3c6   :  { %v4376_v5 = vpop.permute.xlu1 %4375  ;;  %4971 = vst.msk [vmem:[#allocation2 + $0xfc] sm:$0xff] %vm15744_vm14, %v4939_v40  ;;  %5159 = vrot.lane.b32.xlu0 %v21069_v60, %s14445_s15 }
 0x3c7   :  { %4411 = vst.msk [vmem:[#allocation2 + $0x10c] sm:$0xf] %vm21157_vm11, %v4376_v5  ;;  %vm21169_vm11 = vmmov %vm21158_vm1 }
 0x3c8   :  { %5157 = vrot.lane.b32.xlu1 %v21067_v43, %s14445_s15  ;;  %v4441_v36 = vpop.permute.xlu0 %4440  ;;  %vm21170_vm1 = vmmov %vm21168_vm13 }
 0x3c9   :  { %4477 = vst.msk [vmem:[#allocation2 + $0xf8] sm:$0xf] %vm21159_vm5, %v4441_v36  ;;  %vm21171_vm5 = vmmov %vm21169_vm11 }
 0x3ca   :  { %v4806_v44 = vpop.permute.xlu1 %4805  ;;  %5007 = vrot.lane.b32.xlu0 %v17363_v41, %s14444_s28 }
 0x3cb   :  { %4840 = vst.msk [vmem:[#allocation2 + $0x110] sm:$0xf] %vm3529_vm7, %v4806_v44 }
 0x3cc   :  { %4972 = vst.msk [vmem:[#allocation2 + $0x110] sm:$0xff] %vm15744_vm14, %v4940_v52  ;;  %5161 = vrot.lane.b32.xlu1 %v17284_v59, %s14445_s15  ;;  %v4147_v11 = vpop.permute.xlu0 %4146 }
 0x3cd   :  { %4181 = vst.msk [vmem:[#allocation2 + $0x120] sm:$0xf] %vm4166_vm2, %v4147_v11 }
 0x3ce   :  { %v4443_v43 = vpop.permute.xlu1 %4442  ;;  %5011 = vrot.lane.b32.xlu0 %v17740_v46, %s14444_s28 }
 0x3cf   :  { %4478 = vst.msk [vmem:[#allocation2 + $0x10c] sm:$0xf] %vm21160_vm15, %v4443_v43  ;;  %v13109_v60 = vpop.f32.mrf.mxu1 }
 0x3d0   :  { %5009 = vrot.lane.b32.xlu1 %v21090_v29, %s14444_s28  ;;  %v4586_v53 = vpop.permute.xlu0 %4585  ;;  %v5240_v46 = vld [vmem:[#allocation2 + $0xf8] sm:$0xff] }
 0x3d1   :  { %4619 = vst.msk [vmem:[#allocation2 + $0x124] sm:$0xf] %vm21161_vm9, %v4586_v53  ;;  %v13110_v59 = vpop.f32.mrf.mxu1  ;;  %vm21172_vm9 = vmmov %vm21160_vm15 }
 0x3d2   :  { %v4149_v0 = vpop.permute.xlu1 %4148  ;;  %v18300_v41 = vadd.f32 %v13110_v59, %v13109_v60  ;;  %5091 = vrot.lane.b32.xlu0 %v17403_v9, %s14442_s21 }
 0x3d3   :  { %4182 = vst.msk [vmem:[#allocation2 + $0x134] sm:$0xf] %vm4166_vm2, %v4149_v0  ;;  %v13112_v29 = vpop.f32.mrf.mxu1  ;;  %v13589_v15 = vld [vmem:[#allocation2 + $0xfc] ss:$20 sps:$4 sm:$0xff]   ;;  %vm21163_vm2 = vcmask 585088  }
 0x3d4   :  { %5013 = vrot.lane.b32.xlu1 %v17941_v47, %s14444_s28  ;;  %v4220_v38 = vpop.permute.xlu0 %4219  ;;  %5963 = vmatprep.mubr.bf16.mxu1 %v13589_v15  ;;  %vm21164_vm8 = vmmov %vm21163_vm2 }
 0x3d5   :  { %4254 = vst.msk [vmem:[#allocation2 + $0x120] sm:$0xf] %vm4239_vm10, %v4220_v38  ;;  %v13113_v19 = vpop.f32.mrf.mxu1 }
 0x3d6   :  { %v4588_v7 = vpop.permute.xlu1 %4587  ;;  %v5243_v26 = vld [vmem:[#allocation2 + $0x10c] sm:$0xff]  ;;  %v18308_v25 = vadd.f32 %v13113_v19, %v13112_v29  ;;  %5095 = vrot.lane.b32.xlu0 %v17817_v31, %s14442_s21 }
 0x3d7   :  { %4620 = vst.msk [vmem:[#allocation2 + $0x138] sm:$0xf] %vm21162_vm0, %v4588_v7  ;;  %v12326_v51 = vcombine.low %v5240_v46, %v5243_v26  ;;  %vm21173_vm0 = vcmask 322688  }
 0x3d8   :  { %5093 = vrot.lane.b32.xlu1 %v21093_v33, %s14442_s21  ;;  %v4670_v47 = vpop.permute.xlu0 %4669 }
 0x3d9   :  { %5964 = vmatmul.mubr.bf16.gmra.mxu1 %v12326_v51  ;;  %4703 = vst.msk [vmem:[#allocation2 + $0x124] sm:$0xf] %vm21163_vm2, %v4670_v47  ;;  %vm21174_vm2 = vmmov %vm21173_vm0  ;;  %v13609_v47 = vld [vmem:[%s20697_s5 + $0x4e4] ss:$16 sps:$4 sm:$0xff]  }
 0x3da   :  { %v4222_v9 = vpop.permute.xlu1 %4221  ;;  %5163 = vrot.lane.b32.xlu0 %v17367_v1, %s14445_s15  ;;  %11109 = vmatprep.subr.bf16.mxu0 %v13609_v47 }
 0x3db   :  { %4255 = vst.msk [vmem:[#allocation2 + $0x134] sm:$0xf] %vm4239_vm10, %v4222_v9  ;;  %vm21165_vm10 = vcmask 650688   ;;  %v13607_v9 = vld [vmem:[%s20697_s5 + $0x4e0] ss:$16 sps:$4 sm:$0xff]  }
 0x3dc   :  { %5097 = vrot.lane.b32.xlu1 %v17959_v14, %s14442_s21  ;;  %v4908_v55 = vpop.permute.xlu0 %4907  ;;  %vm21166_vm12 = vmmov %vm21165_vm10  ;;  %11110 = vmatpush1.bf16.msra.mxu0 %v13607_v9 }
 0x3dd   :  { %v4925_v21 = vrot.slane %v4908_v55, 4 }
 0x3de   :  { %v4672_v3 = vpop.permute.xlu1 %4671  ;;  %5167 = vrot.lane.b32.xlu0 %v17848_v49, %s14445_s15 }
 0x3df   :  { %4704 = vst.msk [vmem:[#allocation2 + $0x138] sm:$0xf] %vm21164_vm8, %v4672_v3  ;;  %v4941_v62 = vsel %vm21169_vm11, %v4925_v21, %v4908_v55  ;;  %vm21175_vm8 = vmmov %vm21173_vm0 }
 0x3e0   :  { %5165 = vrot.lane.b32.xlu1 %v21099_v8, %s14445_s15  ;;  %v4305_v33 = vpop.permute.xlu0 %4304  ;;  %vm21182_vm11 = vmmov %vm21173_vm0 }
 0x3e1   :  { %4339 = vst.msk [vmem:[#allocation2 + $0x120] sm:$0xf] %vm21165_vm10, %v4305_v33  ;;  %v13610_v33 = vld [vmem:[%s20697_s5 + $0x4c0] ss:$16 sps:$4 sm:$0xff]  }
 0x3e2   :  { %v4910_v31 = vpop.permute.xlu1 %4909 }
 0x3e3   :  { %v4926_v48 = vrot.slane %v4910_v31, 4 }
 0x3e4   :  { %5169 = vrot.lane.b32.xlu1 %v17947_v57, %s14445_s15  ;;  %v4742_v61 = vpop.permute.xlu0 %4741 }
 0x3e5   :  { %4775 = vst.msk [vmem:[#allocation2 + $0x124] sm:$0xf] %vm21154_vm3, %v4742_v61  ;;  %v4942_v13 = vsel %vm21171_vm5, %v4926_v48, %v4910_v31  ;;  %vm21184_vm5 = vmmov %vm21173_vm0  ;;  %v13612_v31 = vld [vmem:[%s20697_s5 + $0x4c4] ss:$16 sps:$4 sm:$0xff]  }
 0x3e6   :  { %v4307_v14 = vpop.permute.xlu1 %4306  ;;  %11111 = vmatprep.subr.bf16.mxu0 %v13612_v31 }
 0x3e7   :  { %4340 = vst.msk [vmem:[#allocation2 + $0x134] sm:$0xf] %vm21166_vm12, %v4307_v14  ;;  %11112 = vmatpush1.bf16.msra.mxu0 %v13610_v33 }
 0x3e8   :  { %v4378_v23 = vpop.permute.xlu0 %4377 }
 0x3e9   :  { %4412 = vst.msk [vmem:[#allocation2 + $0x120] sm:$0xf] %vm21168_vm13, %v4378_v23  ;;  %vm5758_vm13 = vcmask 719872  }
 0x3ea   :  { %v4744_v1 = vpop.permute.xlu1 %4743 }
 0x3eb   :  { %4776 = vst.msk [vmem:[#allocation2 + $0x138] sm:$0xf] %vm21167_vm6, %v4744_v1  ;;  %vm21181_vm6 = vmmov %vm21173_vm0 }
 0x3ec   :  { %v4808_v8 = vpop.permute.xlu0 %4807 }
 0x3ed   :  { %4841 = vst.msk [vmem:[#allocation2 + $0x124] sm:$0xf] %vm3529_vm7, %v4808_v8 }
 0x3ee   :  { %v4380_v49 = vpop.permute.xlu1 %4379  ;;  %4973 = vst.msk [vmem:[#allocation2 + $0x124] sm:$0xff] %vm15744_vm14, %v4941_v62 }
 0x3ef   :  { %4413 = vst.msk [vmem:[#allocation2 + $0x134] sm:$0xf] %vm21170_vm1, %v4380_v49  ;;  %vm21183_vm1 = vmmov %vm21173_vm0 }
 0x3f0   :  { %v4445_v54 = vpop.permute.xlu0 %4444 }
 0x3f1   :  { %4479 = vst.msk [vmem:[#allocation2 + $0x120] sm:$0xf] %vm21160_vm15, %v4445_v54 }
 0x3f2   :  { %v4810_v57 = vpop.permute.xlu1 %4809 }
 0x3f3   :  { %4842 = vst.msk [vmem:[#allocation2 + $0x138] sm:$0xf] %vm3529_vm7, %v4810_v57  ;;  %vm21176_vm7 = vmmov %vm21173_vm0 }
 0x3f4   :  { %4974 = vst.msk [vmem:[#allocation2 + $0x138] sm:$0xff] %vm15744_vm14, %v4942_v13  ;;  %v4984_v22 = vpop.permute.xlu0 %4983  ;;  %vm21177_vm14 = vcmask 519488  }
 0x3f5   :  { %5031 = vst.msk [vmem:[#allocation2 + $0x10] sm:$0xf] %vm21173_vm0, %v4984_v22  ;;  %vm21178_vm10 = vmmov %vm21177_vm14 }
 0x3f6   :  { %v4447_v27 = vpop.permute.xlu1 %4446  ;;  %vm21179_vm12 = vmmov %vm21178_vm10 }
 0x3f7   :  { %4480 = vst.msk [vmem:[#allocation2 + $0x134] sm:$0xf] %vm21172_vm9, %v4447_v27  ;;  %v13115_v50 = vpop.f32.mrf.mxu1  ;;  %vm21180_vm3 = vmmov %vm21178_vm10 }
 0x3f8   :  { %v4988_v35 = vpop.permute.xlu0 %4987  ;;  %v5246_v56 = vld [vmem:[#allocation2 + $0x120] sm:$0xff]  ;;  %vm21185_vm15 = vmmov %vm21180_vm3 }
 0x3f9   :  { %5033 = vst.msk [vmem:[#allocation2 + $0x38] sm:$0xf] %vm21175_vm8, %v4988_v35  ;;  %v13116_v10 = vpop.f32.mrf.mxu1  ;;  %vm21186_vm9 = vmmov %vm21180_vm3  ;;  %v18401_v35 = vld [vmem:[%s20696_s4] ss:$0 sm:$0xff]  ;;  %s14414_s4 = scalar_lea.vmem %s12043_s20, 32 }
 0x3fa   :  { %v4986_v45 = vpop.permute.xlu1 %4985  ;;  %v18346_v32 = vadd.f32 %v13116_v10, %v13115_v50  ;;  %vm21187_vm0 = vmmov %vm21180_vm3  ;;  %p14415_p0 = scmp.ne.s32.totalorder %s12043_s20, %s14414_s4  ;;  %p14420_p2 = scmp.lt.s32.totalorder %s14414_s4, %s14414_s4 }
 0x3fb   :  { %5032 = vst.msk [vmem:[#allocation2 + $0x24] sm:$0xf] %vm21174_vm2, %v4986_v45  ;;  %v13118_v16 = vpop.f32.mrf.mxu1  ;;  %v13592_v58 = vld [vmem:[#allocation2 + $0x124] ss:$20 sps:$4 sm:$0xff]   ;;  %vm21188_vm2 = vmmov %vm21187_vm0 }
 0x3fc   :  { %v5068_v6 = vpop.permute.xlu0 %5067  ;;  %5971 = vmatprep.mubr.bf16.mxu1 %v13592_v58  ;;  %vm21189_vm8 = vmmov %vm21183_vm1  ;;  %v21198_v58 = vld [vmem:[#allocation21_spill] sm:$0xff]  ;;  %p14421_p3 = por %p14420_p2, %p14419_p1 }
 0x3fd   :  { %5115 = vst.msk [vmem:[#allocation2 + $0x10] sm:$0xf] %vm21177_vm14, %v5068_v6  ;;  %v13119_v5 = vpop.f32.mrf.mxu1  ;;  %vm21191_vm14 = vmmov %vm21183_vm1 }
 0x3fe   :  { %v4990_v4 = vpop.permute.xlu1 %4989  ;;  %v5249_v24 = vld [vmem:[#allocation2 + $0x134] sm:$0xff]  ;;  %v18350_v40 = vadd.f32 %v13119_v5, %v13118_v16  ;;  %v21199_v5 = vld [vmem:[#allocation45_spill] sm:$0xff]  ;;  %p14422_p4 = pnand %p14421_p3, %p14415_p0 }
 0x3ff   :  { %5034 = vst.msk [vmem:[#allocation2 + $0x4c] sm:$0xf] %vm21176_vm7, %v4990_v4  ;;  %v12331_v28 = vcombine.low %v5246_v56, %v5249_v24  ;;  %vm21190_vm7 = vmmov %vm21183_vm1  ;;  %v21197_v56 = vld [vmem:[#allocation43_spill] sm:$0xff] }
 0x400   :  { %v5072_v44 = vpop.permute.xlu0 %5071  ;;  %v5821_v24 = vadd.f32 %v21197_v56, %v18401_v35 }
 0x401   :  { %5972 = vmatmul.mubr.bf16.gmra.mxu1 %v12331_v28  ;;  %5117 = vst.msk [vmem:[#allocation2 + $0x38] sm:$0xf] %vm21179_vm12, %v5072_v44  ;;  %vm21193_vm12 = vmmov %vm21187_vm0  ;;  %v13084_v28 = vadd.f32 %v21199_v5, %v21198_v58  ;;  %v13102_v58 = vadd.f32 %v18218_v12, %v18206_v39 }
 0x402   :  { %v5070_v2 = vpop.permute.xlu1 %5069 }
 0x403   :  { %5116 = vst.msk [vmem:[#allocation2 + $0x24] sm:$0xf] %vm21178_vm10, %v5070_v2  ;;  %vm21192_vm10 = vmmov %vm21183_vm1 }
 0x404   :  { %v5140_v52 = vpop.permute.xlu0 %5139 }
 0x405   :  { %5187 = vst.msk [vmem:[#allocation2 + $0x10] sm:$0xf] %vm3890_vm4, %v5140_v52 }
 0x406   :  { %v5074_v36 = vpop.permute.xlu1 %5073 }
 0x407   :  { %5118 = vst.msk [vmem:[#allocation2 + $0x4c] sm:$0xf] %vm21180_vm3, %v5074_v36  ;;  %vm21194_vm3 = vmmov %vm21187_vm0 }
 0x408   :  { %v5144_v11 = vpop.permute.xlu0 %5143 }
 0x409   :  { %5189 = vst.msk [vmem:[#allocation2 + $0x38] sm:$0xf] %vm3890_vm4, %v5144_v11 }
 0x40a   :  { %v5142_v43 = vpop.permute.xlu1 %5141 }
 0x40b   :  { %5188 = vst.msk [vmem:[#allocation2 + $0x24] sm:$0xf] %vm3890_vm4, %v5142_v43 }
 0x40c   :  { %v4992_v0 = vpop.permute.xlu0 %4991 }
 0x40d   :  { %5035 = vst.msk [vmem:[#allocation2 + $0x60] sm:$0xf] %vm21181_vm6, %v4992_v0  ;;  %vm21195_vm6 = vmmov %vm21187_vm0 }
 0x40e   :  { %v5146_v60 = vpop.permute.xlu1 %5145 }
 0x40f   :  { %5190 = vst.msk [vmem:[#allocation2 + $0x4c] sm:$0xf] %vm3890_vm4, %v5146_v60  ;;  %v5824_v60 = vadd.f32 %v13084_v28, %v18401_v35 }
 0x410   :  { %v4996_v59 = vpop.permute.xlu0 %4995 }
 0x411   :  { %5037 = vst.msk [vmem:[#allocation2 + $0x88] sm:$0xf] %vm21183_vm1, %v4996_v59 }
 0x412   :  { %v4994_v53 = vpop.permute.xlu1 %4993  ;;  %v13599_v29 = vld [vmem:[#allocation2 + $0x10] ss:$20 sps:$4 sm:$0xff]  }
 0x413   :  { %5036 = vst.msk [vmem:[#allocation2 + $0x74] sm:$0xf] %vm21182_vm11, %v4994_v53  ;;  %13409 = vmatprep.mubr.msk.bf16.mxu1 %vm5758_vm13, %v13599_v29  ;;  %vm21196_vm11 = vmmov %vm21187_vm0 }
 0x414   :  { %v5076_v38 = vpop.permute.xlu0 %5075 }
 0x415   :  { %5119 = vst.msk [vmem:[#allocation2 + $0x60] sm:$0xf] %vm21185_vm15, %v5076_v38  ;;  %vm21202_vm15 = vmmov %vm21183_vm1 }
 0x416   :  { %v4998_v7 = vpop.permute.xlu1 %4997  ;;  %v13600_v46 = vld [vmem:[#allocation2 + $0x38] ss:$20 sps:$4 sm:$0xff]  }
 0x417   :  { %5038 = vst.msk [vmem:[#allocation2 + $0x9c] sm:$0xf] %vm21184_vm5, %v4998_v7  ;;  %13410 = vmatmul.mubr.msk.bf16.vlgmr.msra.gmra.mxu1 %vm5758_vm13, %v13600_v46  ;;  %v21200_v46 = vld [vmem:[#allocation54_spill] sm:$0xff]  ;;  %vm21201_vm5 = vmmov %vm21183_vm1 }
 0x418   :  { %v5080_v15 = vpop.permute.xlu0 %5079 }
 0x419   :  { %5121 = vst.msk [vmem:[#allocation2 + $0x88] sm:$0xf] %vm21187_vm0, %v5080_v15  ;;  %v13090_v15 = vadd.f32 %v17875_v34, %v17862_v37 }
 0x41a   :  { %v5078_v26 = vpop.permute.xlu1 %5077 }
 0x41b   :  { %5120 = vst.msk [vmem:[#allocation2 + $0x74] sm:$0xf] %vm21186_vm9, %v5078_v26  ;;  %v5829_v26 = vadd.f32 %v21200_v46, %v18401_v35  ;;  %v5832_v33 = vadd.f32 %v13090_v15, %v18401_v35  ;;  %vm21203_vm9 = vmmov %vm21183_vm1  ;;  %v13619_v46 = vld [vmem:[%s20697_s5 + $0x460] ss:$16 sps:$4 sm:$0xff]  }
 0x41c   :  { %v5148_v51 = vpop.permute.xlu0 %5147 }
 0x41d   :  { %5191 = vst.msk [vmem:[#allocation2 + $0x60] sm:$0xf] %vm3890_vm4, %v5148_v51 }
 0x41e   :  { %v5082_v19 = vpop.permute.xlu1 %5081 }
 0x41f   :  { %5122 = vst.msk [vmem:[#allocation2 + $0x9c] sm:$0xf] %vm21188_vm2, %v5082_v19  ;;  %vm21204_vm2 = vmmov %vm21187_vm0 }
 0x420   :  { %v5152_v55 = vpop.permute.xlu0 %5151 }
 0x421   :  { %5193 = vst.msk [vmem:[#allocation2 + $0x88] sm:$0xf] %vm3890_vm4, %v5152_v55 }
 0x422   :  { %v5150_v3 = vpop.permute.xlu1 %5149 }
 0x423   :  { %5192 = vst.msk [vmem:[#allocation2 + $0x74] sm:$0xf] %vm3890_vm4, %v5150_v3 }
 0x424   :  { %v5000_v61 = vpop.permute.xlu0 %4999 }
 0x425   :  { %5039 = vst.msk [vmem:[#allocation2 + $0xb0] sm:$0xf] %vm21189_vm8, %v5000_v61  ;;  %vm21205_vm8 = vmmov %vm21187_vm0 }
 0x426   :  { %v5154_v14 = vpop.permute.xlu1 %5153 }
 0x427   :  { %5194 = vst.msk [vmem:[#allocation2 + $0x9c] sm:$0xf] %vm3890_vm4, %v5154_v14 }
 0x428   :  { %v5004_v23 = vpop.permute.xlu0 %5003 }
 0x429   :  { %5041 = vst.msk [vmem:[#allocation2 + $0xd8] sm:$0xf] %vm21191_vm14, %v5004_v23 }
 0x42a   :  { %v5002_v1 = vpop.permute.xlu1 %5001  ;;  %v13601_v21 = vld [vmem:[#allocation2 + $0x60] ss:$20 sps:$4 sm:$0xff]  }
 0x42b   :  { %5040 = vst.msk [vmem:[#allocation2 + $0xc4] sm:$0xf] %vm21190_vm7, %v5002_v1  ;;  %13413 = vmatprep.mubr.msk.bf16.mxu1 %vm5758_vm13, %v13601_v21  ;;  %v13121_v49 = vpop.f32.mrf.mxu1  ;;  %vm21206_vm7 = vmmov %vm21187_vm0 }
 0x42c   :  { %v5084_v62 = vpop.permute.xlu0 %5083 }
 0x42d   :  { %5123 = vst.msk [vmem:[#allocation2 + $0xb0] sm:$0xf] %vm21193_vm12, %v5084_v62  ;;  %v13122_v57 = vpop.f32.mrf.mxu1 }
 0x42e   :  { %v5006_v8 = vpop.permute.xlu1 %5005  ;;  %v13602_v48 = vld [vmem:[#allocation2 + $0x88] ss:$20 sps:$4 sm:$0xff]   ;;  %v18391_v54 = vadd.f32 %v13122_v57, %v13121_v49  ;;  %v5837_v49 = vadd.f32 %v17884_v42, %v18401_v35  ;;  %v13615_v57 = vld [vmem:[%s20697_s5 + $0x4a4] ss:$16 sps:$4 sm:$0xff]  }
 0x42f   :  { %5042 = vst.msk [vmem:[#allocation2 + $0xec] sm:$0xf] %vm21192_vm10, %v5006_v8  ;;  %13414 = vmatmul.mubr.msk.bf16.gmra.mxu1 %vm5758_vm13, %v13602_v48  ;;  %v13124_v13 = vpop.f32.mrf.mxu1  ;;  %v13096_v8 = vadd.f32 %v18039_v17, %v18030_v18  ;;  %v13613_v48 = vld [vmem:[%s20697_s5 + $0x4a0] ss:$16 sps:$4 sm:$0xff]   ;;  %11113 = vmatprep.subr.bf16.mxu0 %v13615_v57  ;;  %v13627_v57 = vld [vmem:[%s20697_s5 + $0xe4] ss:$16 sps:$4 sm:$0xff]  }
 0x430   :  { %v5088_v22 = vpop.permute.xlu0 %5087  ;;  %11114 = vmatpush1.bf16.msra.mxu0 %v13613_v48  ;;  %v13624_v48 = vld [vmem:[%s20697_s5 + $0x444] ss:$16 sps:$4 sm:$0xff]   ;;  %11027 = vmatprep.subr.bf16.mxu1 %v13627_v57 }
 0x431   :  { %5125 = vst.msk [vmem:[#allocation2 + $0xd8] sm:$0xf] %vm21195_vm6, %v5088_v22  ;;  %v13125_v50 = vpop.f32.mrf.mxu1  ;;  %v5840_v18 = vadd.f32 %v13096_v8, %v18401_v35 }
 0x432   :  { %v5086_v27 = vpop.permute.xlu1 %5085  ;;  %v18396_v45 = vadd.f32 %v13125_v50, %v13124_v13 }
 0x433   :  { %5124 = vst.msk [vmem:[#allocation2 + $0xc4] sm:$0xf] %vm21194_vm3, %v5086_v27  ;;  %v13143_v10 = vpop.f32.mrf.mxu1 }
 0x434   :  { %v5156_v4 = vpop.permute.xlu0 %5155 }
 0x435   :  { %5195 = vst.msk [vmem:[#allocation2 + $0xb0] sm:$0xf] %vm3890_vm4, %v5156_v4  ;;  %v13144_v6 = vpop.f32.mrf.mxu1 }
 0x436   :  { %v5090_v16 = vpop.permute.xlu1 %5089  ;;  %v13145_v2 = vadd.f32 %v13144_v6, %v13143_v10 }
 0x437   :  { %5126 = vst.msk [vmem:[#allocation2 + $0xec] sm:$0xf] %vm21196_vm11, %v5090_v16  ;;  %v13146_v44 = vpop.f32.mrf.mxu1 }
 0x438   :  { %v5160_v52 = vpop.permute.xlu0 %5159  ;;  %v18409_v43 = vadd.f32 %v13145_v2, %v5821_v24  ;;  %v5845_v24 = vadd.f32 %v18049_v30, %v18401_v35 }
 0x439   :  { %5197 = vst.msk [vmem:[#allocation2 + $0xd8] sm:$0xf] %vm3890_vm4, %v5160_v52  ;;  %v13147_v11 = vpop.f32.mrf.mxu1 }
 0x43a   :  { %v5158_v36 = vpop.permute.xlu1 %5157  ;;  %v13148_v0 = vadd.f32 %v13147_v11, %v13146_v44  ;;  %v5848_v11 = vadd.f32 %v13102_v58, %v18401_v35  ;;  %v6097_v58 = vlaneseq }
 0x43b   :  { %5196 = vst.msk [vmem:[#allocation2 + $0xc4] sm:$0xf] %vm3890_vm4, %v5158_v36  ;;  %v13149_v53 = vpop.f32.mrf.mxu1 }
 0x43c   :  { %v5008_v29 = vpop.permute.xlu0 %5007  ;;  %v18414_v7 = vadd.f32 %v13148_v0, %v5824_v60 }
 0x43d   :  { %5043 = vst.msk [vmem:[#allocation2 + $0x100] sm:$0xf] %vm21183_vm1, %v5008_v29  ;;  %v13150_v38 = vpop.f32.mrf.mxu1  ;;  %v13618_v29 = vld [vmem:[%s20697_s5 + $0x484] ss:$16 sps:$4 sm:$0xff]  }
 0x43e   :  { %v5162_v59 = vpop.permute.xlu1 %5161  ;;  %v13151_v19 = vadd.f32 %v13150_v38, %v13149_v53  ;;  %11115 = vmatprep.subr.bf16.mxu0 %v13618_v29 }
 0x43f   :  { %5198 = vst.msk [vmem:[#allocation2 + $0xec] sm:$0xf] %vm3890_vm4, %v5162_v59  ;;  %v13152_v51 = vpop.f32.mrf.mxu1  ;;  %v13616_v59 = vld [vmem:[%s20697_s5 + $0x480] ss:$16 sps:$4 sm:$0xff]  }
 0x440   :  { %v5012_v47 = vpop.permute.xlu0 %5011  ;;  %v18422_v55 = vadd.f32 %v13151_v19, %v5829_v26  ;;  %11116 = vmatpush1.bf16.msra.mxu0 %v13616_v59  ;;  %v13621_v26 = vld [vmem:[%s20697_s5 + $0x464] ss:$16 sps:$4 sm:$0xff]   ;;  %v14453_v59 = vmov 1966171168  }
 0x441   :  { %5045 = vst.msk [vmem:[#allocation2 + $0x128] sm:$0xf] %vm21202_vm15, %v5012_v47  ;;  %v13153_v31 = vpop.f32.mrf.mxu1  ;;  %11117 = vmatprep.subr.bf16.mxu0 %v13621_v26  ;;  %v6553_v29 = vunpack.c.l.s4 %v14453_v59 }
 0x442   :  { %v5010_v9 = vpop.permute.xlu1 %5009  ;;  %v13603_v3 = vld [vmem:[#allocation2 + $0xb0] ss:$20 sps:$4 sm:$0xff]   ;;  %v13154_v14 = vadd.f32 %v13153_v31, %v13152_v51 }
 0x443   :  { %5044 = vst.msk [vmem:[#allocation2 + $0x114] sm:$0xf] %vm21201_vm5, %v5010_v9  ;;  %13417 = vmatprep.mubr.msk.bf16.mxu1 %vm5758_vm13, %v13603_v3  ;;  %v13155_v61 = vpop.f32.mrf.mxu1 }
 0x444   :  { %v5092_v37 = vpop.permute.xlu0 %5091  ;;  %v18428_v23 = vadd.f32 %v13154_v14, %v5832_v33  ;;  %11118 = vmatpush1.bf16.msra.mxu0 %v13619_v46  ;;  %v5869_v14 = vadd.f32 %v18346_v32, %v18401_v35  ;;  %v13625_v32 = vld [vmem:[%s20697_s5 + $0xe0] ss:$16 sps:$4 sm:$0xff]  }
 0x445   :  { %5127 = vst.msk [vmem:[#allocation2 + $0x100] sm:$0xf] %vm21187_vm0, %v5092_v37  ;;  %v13156_v21 = vpop.f32.mrf.mxu1  ;;  %11119 = vmatprep.subr.bf16.mxu0 %v13624_v48  ;;  %11028 = vmatpush1.bf16.msra.mxu1 %v13625_v32  ;;  %v18573_v48 = vadd.f32 %v18230_v20, %v18401_v35 }
 0x446   :  { %v5014_v1 = vpop.permute.xlu1 %5013  ;;  %v13604_v34 = vld [vmem:[#allocation2 + $0xd8] ss:$20 sps:$4 sm:$0xff]   ;;  %v13157_v62 = vadd.f32 %v13156_v21, %v13155_v61  ;;  %v5872_v21 = vadd.f32 %v18350_v40, %v18401_v35 }
 0x447   :  { %5046 = vst.msk [vmem:[#allocation2 + $0x13c] sm:$0xf] %vm21203_vm9, %v5014_v1  ;;  %13418 = vmatmul.mubr.msk.bf16.gmra.mxu1 %vm5758_vm13, %v13604_v34  ;;  %v13158_v13 = vpop.f32.mrf.mxu1 }
 0x448   :  { %v5096_v22 = vpop.permute.xlu0 %5095  ;;  %v18443_v50 = vadd.f32 %v13157_v62, %v5837_v49  ;;  %v13622_v62 = vld [vmem:[%s20697_s5 + $0x440] ss:$16 sps:$4 sm:$0xff]  }
 0x449   :  { %5129 = vst.msk [vmem:[#allocation2 + $0x128] sm:$0xf] %vm21205_vm8, %v5096_v22  ;;  %v13159_v42 = vpop.f32.mrf.mxu1  ;;  %11120 = vmatpush1.bf16.msra.mxu0 %v13622_v62  ;;  %v13630_v22 = vld [vmem:[%s20697_s5 + $0xc4] ss:$16 sps:$4 sm:$0xff]  }
 0x44a   :  { %v5094_v27 = vpop.permute.xlu1 %5093  ;;  %v13160_v17 = vadd.f32 %v13159_v42, %v13158_v13  ;;  %11029 = vmatprep.subr.bf16.mxu1 %v13630_v22 }
 0x44b   :  { %5128 = vst.msk [vmem:[#allocation2 + $0x114] sm:$0xf] %vm21204_vm2, %v5094_v27  ;;  %v13161_v10 = vpop.f32.mrf.mxu1  ;;  %v13628_v27 = vld [vmem:[%s20697_s5 + $0xc0] ss:$16 sps:$4 sm:$0xff]  }
 0x44c   :  { %v5164_v4 = vpop.permute.xlu0 %5163  ;;  %v18448_v6 = vadd.f32 %v13160_v17, %v5840_v18  ;;  %11030 = vmatpush1.bf16.msra.mxu1 %v13628_v27  ;;  %v13631_v18 = vld [vmem:[%s20697_s5 + $0xa0] ss:$16 sps:$4 sm:$0xff]   ;;  %v13633_v17 = vld [vmem:[%s20697_s5 + $0xa4] ss:$16 sps:$4 sm:$0xff]  }
 0x44d   :  { %5199 = vst.msk [vmem:[#allocation2 + $0x100] sm:$0xf] %vm3890_vm4, %v5164_v4  ;;  %v13162_v56 = vpop.f32.mrf.mxu1  ;;  %v13639_v4 = vld [vmem:[%s20697_s5 + $0x84] ss:$16 sps:$4 sm:$0xff]   ;;  %11031 = vmatprep.subr.bf16.mxu1 %v13633_v17  ;;  %v14454_v17 = vmov 1935823168  }
 0x44e   :  { %v5098_v16 = vpop.permute.xlu1 %5097  ;;  %v13163_v5 = vadd.f32 %v13162_v56, %v13161_v10  ;;  %v13634_v10 = vld [vmem:[%s20697_s5 + $0x420] ss:$16 sps:$4 sm:$0xff]   ;;  %v14452_v56 = vmov 1983009808  }
 0x44f   :  { %5130 = vst.msk [vmem:[#allocation2 + $0x13c] sm:$0xf] %vm21206_vm7, %v5098_v16  ;;  %v13164_v28 = vpop.f32.mrf.mxu1  ;;  %v13636_v16 = vld [vmem:[%s20697_s5 + $0x424] ss:$16 sps:$4 sm:$0xff]  }
 0x450   :  { %v5168_v44 = vpop.permute.xlu0 %5167  ;;  %v18456_v36 = vadd.f32 %v13163_v5, %v5845_v24  ;;  %v6095_v24 = vunpack.c.l.s4 %v14452_v56  ;;  %11121 = vmatprep.subr.bf16.mxu0 %v13636_v16  ;;  %11032 = vmatpush1.bf16.msra.mxu1 %v13631_v18 }
 0x451   :  { %5201 = vst.msk [vmem:[#allocation2 + $0x128] sm:$0xf] %vm3890_vm4, %v5168_v44  ;;  %v13165_v52 = vpop.f32.mrf.mxu1  ;;  %11122 = vmatpush1.bf16.msra.mxu0 %v13634_v10  ;;  %11033 = vmatprep.subr.bf16.mxu1 %v13639_v4  ;;  %v18583_v10 = vunpack.c.l.s4 %v14454_v17 }
 0x452   :  { %v5166_v2 = vpop.permute.xlu1 %5165  ;;  %v13166_v60 = vadd.f32 %v13165_v52, %v13164_v28  ;;  %v13637_v28 = vld [vmem:[%s20697_s5 + $0x80] ss:$16 sps:$4 sm:$0xff]   ;;  %v6096_v52 = vunpack.c.0.s8 %v6095_v24 }
 0x453   :  { %5200 = vst.msk [vmem:[#allocation2 + $0x114] sm:$0xf] %vm3890_vm4, %v5166_v2  ;;  %v18466_v12 = vpop.f32.mrf.mxu1  ;;  %v13642_v2 = vld [vmem:[%s20697_s5 + $0x64] ss:$16 sps:$4 sm:$0xff]  }
 0x454   :  { %v18461_v53 = vadd.f32 %v13166_v60, %v5848_v11  ;;  %v18549_v11 = vshrl.u32 %v6097_v58, 7  ;;  %11034 = vmatpush1.bf16.msra.mxu1 %v13637_v28 }
 0x455   :  { %v18474_v38 = vpop.f32.mrf.mxu1  ;;  %11035 = vmatprep.subr.bf16.mxu1 %v13642_v2 }
 0x456   :  { %v5170_v0 = vpop.permute.xlu1 %5169 }
 0x457   :  { %5202 = vst.msk [vmem:[#allocation2 + $0x13c] sm:$0xf] %vm3890_vm4, %v5170_v0  ;;  %v18482_v15 = vpop.f32.mrf.mxu1  ;;  %v13640_v0 = vld [vmem:[%s20697_s5 + $0x60] ss:$16 sps:$4 sm:$0xff]   ;;  %vm21207_vm4 = vcmask 1041408  }
 0x458   :  { %11036 = vmatpush1.bf16.msra.mxu1 %v13640_v0  ;;  %vm21209_vm14 = vmmov %vm21207_vm4 }
 0x459   :  { %v18484_v19 = vpop.f32.mrf.mxu1  ;;  %vm21210_vm10 = vmmov %vm21207_vm4 }
 0x45a   :  { %v13605_v30 = vld [vmem:[#allocation2 + $0x100] ss:$20 sps:$4 sm:$0xff]   ;;  %vm21211_vm12 = vmmov %vm21207_vm4 }
 0x45b   :  { %13421 = vmatprep.mubr.msk.bf16.mxu1 %vm5758_vm13, %v13605_v30  ;;  %v13645_v30 = vld [vmem:[%s20697_s5 + $0x44] ss:$16 sps:$4 sm:$0xff]   ;;  %vm21212_vm3 = vmmov %vm21207_vm4 }
 0x45c   :  { %11037 = vmatprep.subr.bf16.mxu1 %v13645_v30  ;;  %vm21213_vm6 = vmmov %vm21212_vm3 }
 0x45d   :  { %vm21214_vm11 = vmmov %vm21212_vm3 }
 0x45e   :  { %v13606_v39 = vld [vmem:[#allocation2 + $0x128] ss:$20 sps:$4 sm:$0xff]   ;;  %vm21215_vm1 = vmmov %vm21212_vm3 }
 0x45f   :  { %13422 = vmatmul.mubr.msk.bf16.gmra.mxu1 %vm5758_vm13, %v13606_v39  ;;  %vm21208_vm13 = vmmov %vm21207_vm4 }
 0x460   :  { %vm21216_vm5 = vmmov %vm21215_vm1 }
 0x461   :  { %vm21217_vm15 = vmmov %vm21215_vm1 }
 0x462   :  { %vm21218_vm9 = vmmov %vm21215_vm1 }
 0x463   :  { %vm21219_vm0 = vmmov %vm21215_vm1 }
 0x464   :  { %vm21220_vm2 = vmmov %vm21219_vm0 }
 0x465   :  { %vm21221_vm8 = vmmov %vm21219_vm0 }
 0x466   :  { %vm21222_vm7 = vmmov %vm21219_vm0 }
 0x471   :  { %v18486_v51 = vpop.f32.mrf.mxu1 }
 0x473   :  { %v18488_v9 = vpop.f32.mrf.mxu1 }
 0x475   :  { %v18490_v47 = vpop.f32.mrf.mxu1 }
 0x477   :  { %v18492_v3 = vpop.f32.mrf.mxu1 }
 0x499   :  { %v13179_v31 = vpop.f32.mrf.mxu1 }
 0x49b   :  { %v13180_v33 = vpop.f32.mrf.mxu1 }
 0x49c   :  { %v13181_v61 = vadd.f32 %v13180_v33, %v13179_v31  ;;  %v18560_v31 = vsub.s32 %v6096_v52, %v18549_v11 }
 0x49d   :  { %v13182_v1 = vpop.f32.mrf.mxu1 }
 0x49e   :  { %v18496_v37 = vadd.f32 %v13181_v61, %v5869_v14  ;;  %v13643_v14 = vld [vmem:[%s20697_s5 + $0x40] ss:$16 sps:$4 sm:$0xff]  }
 0x49f   :  { %v13183_v34 = vpop.f32.mrf.mxu1  ;;  %11038 = vmatpush1.bf16.msra.mxu1 %v13643_v14 }
 0x4a0   :  { %v13184_v49 = vadd.f32 %v13183_v34, %v13182_v1 }
 0x4a2   :  { %v18500_v8 = vadd.f32 %v13184_v49, %v5872_v21 }
 0x4c1   :  { %v18514_v40 = vpop.f32.mrf.mxu1 }
 0x4c3   :  { %v18516_v13 = vpop.f32.mrf.mxu1 }
 0x4c5   :  { %v18524_v42 = vpop.f32.mrf.mxu1 }
 0x4c7   :  { %v18541_v5 = vpop.f32.mrf.mxu1 }
 0x4d7   :  { %v13411_v44 = vpop.f32.mrf.mxu1 }
 0x4d8   :  { %v6023_v46 = vadd.f32 %v13411_v44, %v18422_v55  ;;  %v13648_v55 = vld [vmem:[%s20697_s5 + $0x24] ss:$16 sps:$4 sm:$0xff]  }
 0x4d9   :  { %v6014_v60 = vpop.f32.mrf.mxu1  ;;  %11039 = vmatprep.subr.bf16.mxu1 %v13648_v55 }
 0x4da   :  { %v6015_v61 = vadd.f32 %v6014_v60, %v18409_v43  ;;  %v13646_v43 = vld [vmem:[%s20697_s5 + $0x20] ss:$16 sps:$4 sm:$0xff]  }
 0x4db   :  { %v13412_v39 = vpop.f32.mrf.mxu1  ;;  %11040 = vmatpush1.bf16.msra.mxu1 %v13646_v43 }
 0x4dc   :  { %v6026_v26 = vadd.f32 %v13412_v39, %v18428_v23  ;;  %v6554_v23 = vunpack.c.0.s8 %v6553_v29 }
 0x4dd   :  { %v6017_v33 = vpop.f32.mrf.mxu1 }
 0x4de   :  { %v6078_v1 = vmax.f32 %v6023_v46, %v6026_v26  ;;  %v6018_v34 = vadd.f32 %v6017_v33, %v18414_v7  ;;  %v18581_v18 = vsub.s32 %v6554_v23, %v18549_v11 }
 0x4e0   :  { %v6110_v21 = vcombine.high %v6078_v1, %v6078_v1  ;;  %v6117_v49 = vrot.slane %v6078_v1, %v18560_v31  ;;  %v6077_v62 = vmax.f32 %v6015_v61, %v6018_v34 }
 0x4e2   :  { %v6124_v7 = vrot.slane %v6110_v21, %v18560_v31  ;;  %v6125_v32 = vcombine.high %v6117_v49, %v6117_v49  ;;  %v6290_v57 = vsel %vm21207_vm4, %v6117_v49, -inf  ;;  %v6093_v27 = vcombine.high %v6077_v62, %v6077_v62  ;;  %vm21223_vm4 = vmmov %vm21219_vm0 }
 0x4e3   :  { %v6291_v22 = vrot.slane %v6290_v57, 4  ;;  %v6100_v20 = vrot.slane %v6077_v62, %v18560_v31 }
 0x4e4   :  { %v6126_v16 = vcombine.high %v6124_v7, %v6124_v7  ;;  %v6297_v4 = vsel %vm21208_vm13, %v6125_v32, -inf  ;;  %v6304_v56 = vsel %vm21209_vm14, %v6124_v7, -inf  ;;  %v6107_v24 = vrot.slane %v6093_v27, %v18560_v31  ;;  %vm21224_vm13 = vmmov %vm21219_vm0 }
 0x4e5   :  { %v6292_v58 = vmax.f32 %v6290_v57, %v6291_v22  ;;  %v6298_v28 = vrot.slane %v6297_v4, 4  ;;  %v6305_v2 = vrot.slane %v6304_v56, 4  ;;  %v6108_v44 = vcombine.high %v6100_v20, %v6100_v20  ;;  %v13651_v22 = vld [vmem:[%s20697_s5 + $0x4] ss:$16 sps:$4 sm:$0xff]   ;;  %vm21225_vm14 = vmmov %vm21219_vm0 }
 0x4e6   :  { %v6311_v52 = vsel %vm21210_vm10, %v6126_v16, -inf  ;;  %v6109_v60 = vcombine.high %v6107_v24, %v6107_v24  ;;  %v6262_v0 = vsel %vm21211_vm12, %v6100_v20, -inf  ;;  %v6276_v30 = vsel %vm21212_vm3, %v6107_v24, -inf  ;;  %11041 = vmatprep.subr.bf16.mxu1 %v13651_v22  ;;  %vm21226_vm10 = vmmov %vm21219_vm0 }
 0x4e7   :  { %v6293_v39 = vrot.slane %v6292_v58, 2  ;;  %v6299_v59 = vmax.f32 %v6297_v4, %v6298_v28  ;;  %v6306_v29 = vmax.f32 %v6304_v56, %v6305_v2  ;;  %v6312_v46 = vrot.slane %v6311_v52, 4  ;;  %v13649_v56 = vld [vmem:[%s20697_s5] ss:$16 sps:$4 sm:$0xff]   ;;  %vm21227_vm12 = vmmov %vm21219_vm0 }
 0x4e8   :  { %v6263_v26 = vrot.slane %v6262_v0, 4  ;;  %v6269_v33 = vsel %vm21213_vm6, %v6108_v44, -inf  ;;  %v6277_v14 = vrot.slane %v6276_v30, 4  ;;  %v6283_v61 = vsel %vm21214_vm11, %v6109_v60, -inf  ;;  %v13654_v44 = vld [vmem:[%s20697_s5 + $0x404] ss:$16 sps:$4 sm:$0xff]   ;;  %11042 = vmatpush1.bf16.msra.mxu1 %v13649_v56  ;;  %vm21228_vm3 = vmmov %vm21219_vm0 }
 0x4e9   :  { %v6294_v1 = vmax.f32 %v6292_v58, %v6293_v39  ;;  %v6300_v34 = vrot.slane %v6299_v59, 2  ;;  %v6307_v55 = vrot.slane %v6306_v29, 2  ;;  %v6313_v23 = vmax.f32 %v6311_v52, %v6312_v46  ;;  %v13652_v39 = vld [vmem:[%s20697_s5 + $0x400] ss:$16 sps:$4 sm:$0xff]   ;;  %11123 = vmatprep.subr.bf16.mxu0 %v13654_v44  ;;  %vm21229_vm6 = vmmov %vm21219_vm0 }
 0x4ea   :  { %v6264_v21 = vmax.f32 %v6262_v0, %v6263_v26  ;;  %v6270_v49 = vrot.slane %v6269_v33, 4  ;;  %v6278_v62 = vmax.f32 %v6276_v30, %v6277_v14  ;;  %v6284_v43 = vrot.slane %v6283_v61, 4  ;;  %11124 = vmatpush1.bf16.msra.mxu0 %v13652_v39  ;;  %vm21230_vm11 = vmmov %vm21219_vm0 }
 0x4eb   :  { %v6295_v7 = vrot.slane %v6294_v1, 1  ;;  %v6301_v32 = vmax.f32 %v6299_v59, %v6300_v34  ;;  %v6308_v57 = vmax.f32 %v6306_v29, %v6307_v55  ;;  %v6314_v27 = vrot.slane %v6313_v23, 2 }
 0x4ec   :  { %v6265_v17 = vrot.slane %v6264_v21, 2  ;;  %v6271_v20 = vmax.f32 %v6269_v33, %v6270_v49  ;;  %v6279_v16 = vrot.slane %v6278_v62, 2  ;;  %v6285_v4 = vmax.f32 %v6283_v61, %v6284_v43  ;;  %v13657_v33 = vld [vmem:[%s20697_s5 + $0x1e4] ss:$16 sps:$4 sm:$0xff]  }
 0x4ed   :  { %v6296_v24 = vmax.f32 %v6294_v1, %v6295_v7  ;;  %v6302_v58 = vrot.slane %v6301_v32, 1  ;;  %v6309_v28 = vrot.slane %v6308_v57, 1  ;;  %v6315_v2 = vmax.f32 %v6313_v23, %v6314_v27  ;;  %v13655_v23 = vld [vmem:[%s20697_s5 + $0x1e0] ss:$16 sps:$4 sm:$0xff]   ;;  %11043 = vmatprep.subr.bf16.mxu1 %v13657_v33  ;;  %v13660_v7 = vld [vmem:[%s20697_s5 + $0x5e4] ss:$16 sps:$4 sm:$0xff]  }
 0x4ee   :  { %v6266_v52 = vmax.f32 %v6264_v21, %v6265_v17  ;;  %v6272_v60 = vrot.slane %v6271_v20, 2  ;;  %v6280_v0 = vmax.f32 %v6278_v62, %v6279_v16  ;;  %v6286_v30 = vrot.slane %v6285_v4, 2  ;;  %11044 = vmatpush2.bf16.msra.mxu1 %v13655_v23  ;;  %v13658_v17 = vld [vmem:[%s20697_s5 + $0x5e0] ss:$16 sps:$4 sm:$0xff]   ;;  %11125 = vmatprep.subr.bf16.mxu0 %v13660_v7  ;;  %v13669_v23 = vld [vmem:[%s20697_s5 + $0x1a4] ss:$16 sps:$4 sm:$0xff]  }
 0x4ef   :  { %v6303_v59 = vmax.f32 %v6301_v32, %v6302_v58  ;;  %v6310_v29 = vmax.f32 %v6308_v57, %v6309_v28  ;;  %v6316_v46 = vrot.slane %v6315_v2, 1  ;;  %v6490_v26 = vmax.f32 %v6296_v24, 0.0  ;;  %v18609_v55 = vpop.f32.mrf.mxu1  ;;  %v13663_v24 = vld [vmem:[%s20697_s5 + $0x1c4] ss:$16 sps:$4 sm:$0xff]   ;;  %11126 = vmatpush2.bf16.msra.mxu0 %v13658_v17 }
 0x4f0   :  { %v6267_v14 = vrot.slane %v6266_v52, 1  ;;  %v6273_v61 = vmax.f32 %v6271_v20, %v6272_v60  ;;  %v6281_v1 = vrot.slane %v6280_v0, 1  ;;  %v6287_v34 = vmax.f32 %v6285_v4, %v6286_v30  ;;  %v13661_v60 = vld [vmem:[%s20697_s5 + $0x1c0] ss:$16 sps:$4 sm:$0xff]   ;;  %11045 = vmatprep.subr.bf16.mxu1 %v13663_v24  ;;  %v13678_v24 = vld [vmem:[%s20697_s5 + $0x584] ss:$16 sps:$4 sm:$0xff]  }
 0x4f1   :  { %v6317_v21 = vmax.f32 %v6315_v2, %v6316_v46  ;;  %v6491_v49 = vmax.f32 %v6303_v59, 0.0  ;;  %v6492_v62 = vmax.f32 %v6310_v29, 0.0  ;;  %v6522_v43 = vpack.c.bf16 %v6490_v26, %v6490_v26  ;;  %v13666_v59 = vld [vmem:[%s20697_s5 + $0x5c4] ss:$16 sps:$4 sm:$0xff]  }
 0x4f2   :  { %v6268_v32 = vmax.f32 %v6266_v52, %v6267_v14  ;;  %v6274_v57 = vrot.slane %v6273_v61, 1  ;;  %v6282_v27 = vmax.f32 %v6280_v0, %v6281_v1  ;;  %v6288_v22 = vrot.slane %v6287_v34, 1  ;;  %v18625_v52 = vpop.f32.mrf.mxu1  ;;  %11046 = vmatpush2.bf16.msra.mxu1 %v13661_v60  ;;  %v13664_v14 = vld [vmem:[%s20697_s5 + $0x5c0] ss:$16 sps:$4 sm:$0xff]   ;;  %11127 = vmatprep.subr.bf16.mxu0 %v13666_v59 }
 0x4f3   :  { %v5856_v20 = vadd.f32 %v18239_v63, %v18401_v35  ;;  %v6493_v16 = vmax.f32 %v6317_v21, 0.0  ;;  %v6523_v4 = vpack.c.bf16 %v6491_v49, %v6491_v49  ;;  %v6524_v56 = vpack.c.bf16 %v6492_v62, %v6492_v62  ;;  %11128 = vmatpush2.bf16.msra.mxu0 %v13664_v14  ;;  %11047 = vmatprep.subr.bf16.mxu1 %v13669_v23  ;;  %v13690_v14 = vld [vmem:[%s20697_s5 + $0x544] ss:$16 sps:$4 sm:$0xff]   ;;  %v13685_v23 = vld [vmem:[%s20697_s5 + $0x140] ss:$16 sps:$4 sm:$0xff]  }
 0x4f4   :  { %v6275_v58 = vmax.f32 %v6273_v61, %v6274_v57  ;;  %v6289_v28 = vmax.f32 %v6287_v34, %v6288_v22  ;;  %v6486_v2 = vmax.f32 %v6268_v32, 0.0  ;;  %v6488_v44 = vmax.f32 %v6282_v27, 0.0 }
 0x4f5   :  { %v6525_v63 = vpack.c.bf16 %v6493_v16, %v6493_v16  ;;  %v6582_v0 = vunpack.c.0.s8 %v18583_v10  ;;  %v6875_v30 = vrot.slane %v6522_v43, %v18581_v18  ;;  %v6954_v39 = vrot.slane %v6523_v4, %v18581_v18  ;;  %v13416_v43 = vpop.f32.mrf.mxu1  ;;  %v13675_v16 = vld [vmem:[%s20697_s5 + $0x184] ss:$16 sps:$4 sm:$0xff]  }
 0x4f6   :  { %v7033_v29 = vrot.slane %v6524_v56, %v18581_v18  ;;  %v6487_v46 = vmax.f32 %v6275_v58, 0.0  ;;  %v6489_v26 = vmax.f32 %v6289_v28, 0.0  ;;  %v6518_v33 = vpack.c.bf16 %v6486_v2, %v6486_v2  ;;  %v13681_v58 = vld [vmem:[%s20697_s5 + $0x164] ss:$16 sps:$4 sm:$0xff]  }
 0x4f7   :  { %v5861_v10 = vadd.f32 %v18300_v41, %v18401_v35  ;;  %v13169_v61 = vadd.f32 %v18474_v38, %v18466_v12  ;;  %v13172_v1 = vadd.f32 %v18484_v19, %v18482_v15  ;;  %v13175_v34 = vadd.f32 %v18488_v9, %v18486_v51  ;;  %v13667_v12 = vld [vmem:[%s20697_s5 + $0x1a0] ss:$16 sps:$4 sm:$0xff]   ;;  %v13672_v9 = vld [vmem:[%s20697_s5 + $0x5a4] ss:$16 sps:$4 sm:$0xff]   ;;  %v6033_v56 = vpop.f32.mrf.mxu1 }
 0x4f8   :  { %v7112_v21 = vrot.slane %v6525_v63, %v18581_v18  ;;  %v6519_v49 = vpack.c.bf16 %v6487_v46, %v6487_v46  ;;  %v6520_v62 = vpack.c.bf16 %v6488_v44, %v6488_v44  ;;  %v6558_v41 = vrot.slane %v6518_v33, %v18581_v18  ;;  %11048 = vmatpush2.bf16.msra.mxu1 %v13667_v12  ;;  %v13684_v63 = vld [vmem:[%s20697_s5 + $0x564] ss:$16 sps:$4 sm:$0xff]  }
 0x4f9   :  { %v5864_v38 = vadd.f32 %v18308_v25, %v18401_v35  ;;  %v13178_v15 = vadd.f32 %v18492_v3, %v18490_v47  ;;  %v18661_v19 = vsub.s32 %v6582_v0, %v18549_v11  ;;  %v6882_v51 = vrot.slane %v6875_v30, %v18581_v18  ;;  %v13670_v47 = vld [vmem:[%s20697_s5 + $0x5a0] ss:$16 sps:$4 sm:$0xff]   ;;  %11129 = vmatprep.subr.bf16.mxu0 %v13672_v9 }
 0x4fa   :  { %v5877_v7 = vadd.f32 %v18391_v54, %v18401_v35  ;;  %v6961_v32 = vrot.slane %v6954_v39, %v18581_v18  ;;  %v7040_v25 = vrot.slane %v7033_v29, %v18581_v18  ;;  %v6521_v57 = vpack.c.bf16 %v6489_v26, %v6489_v26  ;;  %v13673_v54 = vld [vmem:[%s20697_s5 + $0x180] ss:$16 sps:$4 sm:$0xff]   ;;  %11130 = vmatpush2.bf16.msra.mxu0 %v13670_v47  ;;  %v13687_v29 = vld [vmem:[%s20697_s5 + $0x144] ss:$16 sps:$4 sm:$0xff]  }
 0x4fb   :  { %v5880_v3 = vadd.f32 %v18396_v45, %v18401_v35  ;;  %v18676_v27 = vadd.f32 %v13175_v34, %v5861_v10  ;;  %v18679_v22 = vadd.f32 %v13169_v61, %v18573_v48  ;;  %v18681_v17 = vadd.f32 %v13172_v1, %v5856_v20  ;;  %v13676_v20 = vld [vmem:[%s20697_s5 + $0x580] ss:$16 sps:$4 sm:$0xff]   ;;  %11049 = vmatprep.subr.bf16.mxu1 %v13675_v16  ;;  %v13696_v47 = vld [vmem:[%s20697_s5 + $0x524] ss:$16 sps:$4 sm:$0xff]  }
 0x4fc   :  { %v7119_v4 = vrot.slane %v7112_v21, %v18581_v18  ;;  %v6565_v45 = vrot.slane %v6558_v41, %v18581_v18  ;;  %v6638_v35 = vrot.slane %v6519_v49, %v18581_v18  ;;  %v6717_v48 = vrot.slane %v6520_v62, %v18581_v18  ;;  %11050 = vmatpush2.bf16.msra.mxu1 %v13673_v54  ;;  %v13688_v9 = vld [vmem:[%s20697_s5 + $0x540] ss:$16 sps:$4 sm:$0xff]  }
 0x4fd   :  { %v13187_v28 = vadd.f32 %v18516_v13, %v18514_v40  ;;  %v13190_v2 = vadd.f32 %v18541_v5, %v18524_v42  ;;  %v6903_v44 = vrot.slane %v6882_v51, %v18661_v19  ;;  %v18707_v60 = vadd.f32 %v13178_v15, %v5864_v38  ;;  %v13679_v13 = vld [vmem:[%s20697_s5 + $0x160] ss:$16 sps:$4 sm:$0xff]   ;;  %11131 = vmatprep.subr.bf16.mxu0 %v13678_v24  ;;  %v13699_v24 = vld [vmem:[%s20697_s5 + $0x104] ss:$16 sps:$4 sm:$0xff]  }
 0x4fe   :  { %v6982_v0 = vrot.slane %v6961_v32, %v18661_v19  ;;  %v7061_v30 = vrot.slane %v7040_v25, %v18661_v19  ;;  %v6796_v39 = vrot.slane %v6521_v57, %v18581_v18  ;;  %v6039_v40 = vadd.f32 %v18609_v55, %v18456_v36  ;;  %11051 = vmatprep.subr.bf16.mxu1 %v13681_v58 }
 0x4ff   :  { %v6031_v42 = vadd.f32 %v18625_v52, %v18443_v50  ;;  %v6042_v5 = vadd.f32 %v13416_v43, %v18461_v53  ;;  %v6034_v59 = vadd.f32 %v6033_v56, %v18448_v6  ;;  %v7140_v36 = vrot.slane %v7119_v4, %v18661_v19  ;;  %11132 = vmatpush2.bf16.msra.mxu0 %v13676_v20  ;;  %v13682_v50 = vld [vmem:[%s20697_s5 + $0x560] ss:$16 sps:$4 sm:$0xff]   ;;  %v13693_v43 = vld [vmem:[%s20697_s5 + $0x124] ss:$16 sps:$4 sm:$0xff]  }
 0x500   :  { %v6586_v55 = vrot.slane %v6565_v45, %v18661_v19  ;;  %v18730_v46 = vrot.slane %v6638_v35, %v18581_v18  ;;  %v18733_v26 = vrot.slane %v6717_v48, %v18581_v18  ;;  %v18738_v52 = vadd.f32 %v13187_v28, %v5877_v7  ;;  %11133 = vmatprep.subr.bf16.mxu0 %v13684_v63  ;;  %v13691_v45 = vld [vmem:[%s20697_s5 + $0x120] ss:$16 sps:$4 sm:$0xff]  }
 0x501   :  { %v6080_v6 = vmax.f32 %v6039_v40, %v6042_v5  ;;  %v6079_v53 = vmax.f32 %v6031_v42, %v6034_v59  ;;  %v18740_v33 = vadd.f32 %v13190_v2, %v5880_v3  ;;  %v18746_v10 = vrot.slane %v6903_v44, %v18661_v19  ;;  %11052 = vmatpush2.bf16.msra.mxu1 %v13679_v13  ;;  %v13694_v63 = vld [vmem:[%s20697_s5 + $0x520] ss:$16 sps:$4 sm:$0xff]   ;;  %v13702_v13 = vld [vmem:[%s20697_s5 + $0x504] ss:$16 sps:$4 sm:$0xff]  }
 0x502   :  { %v18749_v61 = vrot.slane %v6982_v0, %v18661_v19  ;;  %v18752_v1 = vrot.slane %v7061_v30, %v18661_v19  ;;  %v18755_v34 = vrot.slane %v6796_v39, %v18581_v18  ;;  %11053 = vmatprep.subr.bf16.mxu1 %v13687_v29  ;;  %v18766_v12 = vrot.slane %v7140_v36, %v18661_v19  ;;  %v13697_v36 = vld [vmem:[%s20697_s5 + $0x100] ss:$16 sps:$4 sm:$0xff]  }
 0x503   :  { %v6144_v21 = vcombine.high %v6080_v6, %v6080_v6  ;;  %v6151_v49 = vrot.slane %v6080_v6, %v18560_v31  ;;  %v6127_v62 = vcombine.high %v6079_v53, %v6079_v53  ;;  %v6134_v41 = vrot.slane %v6079_v53, %v18560_v31  ;;  %11134 = vmatpush2.bf16.msra.mxu0 %v13682_v50 }
 0x504   :  { %v18769_v38 = vrot.slane %v6586_v55, %v18661_v19  ;;  %v6666_v15 = vrot.slane %v18730_v46, %v18661_v19  ;;  %v6745_v51 = vrot.slane %v18733_v26, %v18661_v19  ;;  %11135 = vmatprep.subr.bf16.mxu0 %v13690_v14  ;;  %v6824_v3 = vrot.slane %v18755_v34, %v18661_v19  ;;  %v13705_v14 = vld [vmem:[%s20697_s5 + $0x2e4] ss:$16 sps:$4 sm:$0xff]  }
 0x505   :  { %v6158_v7 = vrot.slane %v6144_v21, %v18560_v31  ;;  %v6159_v32 = vcombine.high %v6151_v49, %v6151_v49  ;;  %v6346_v25 = vsel %vm21215_vm1, %v6151_v49, -inf  ;;  %v6141_v57 = vrot.slane %v6127_v62, %v18560_v31  ;;  %11054 = vmatpush2.bf16.msra.mxu1 %v13685_v23 }
 0x506   :  { %v6347_v54 = vrot.slane %v6346_v25, 4  ;;  %v6142_v16 = vcombine.high %v6134_v41, %v6134_v41  ;;  %v6318_v4 = vsel %vm21216_vm5, %v6134_v41, -inf  ;;  %11055 = vmatprep.subr.bf16.mxu1 %v13693_v43  ;;  %v13700_v41 = vld [vmem:[%s20697_s5 + $0x500] ss:$16 sps:$4 sm:$0xff]   ;;  %v6925_v26 = vunpack.c.l.b16 %v18746_v10  ;;  %vm21233_vm5 = vmmov %vm21219_vm0 }
 0x507   :  { %v6160_v35 = vcombine.high %v6158_v7, %v6158_v7  ;;  %v6353_v48 = vsel %vm21217_vm15, %v6159_v32, -inf  ;;  %v6360_v56 = vsel %vm21218_vm9, %v6158_v7, -inf  ;;  %v6143_v20 = vcombine.high %v6141_v57, %v6141_v57  ;;  %11136 = vmatpush2.bf16.msra.mxu0 %v13688_v9  ;;  %vm21234_vm15 = vmmov %vm21219_vm0 }
 0x508   :  { %v6348_v58 = vmax.f32 %v6346_v25, %v6347_v54  ;;  %v6354_v28 = vrot.slane %v6353_v48, 4  ;;  %v6361_v2 = vrot.slane %v6360_v56, 4  ;;  %v6319_v44 = vrot.slane %v6318_v4, 4  ;;  %11137 = vmatprep.subr.bf16.mxu0 %v13696_v47  ;;  %v13709_v25 = vld [vmem:[%s20697_s5 + $0x8e4] ss:$16 sps:$4 sm:$0xff]   ;;  %vm21235_vm9 = vmmov %vm21219_vm0 }
 0x509   :  { %v6367_v0 = vsel %vm21219_vm0, %v6160_v35, -inf  ;;  %v6325_v30 = vsel %vm21220_vm2, %v6142_v16, -inf  ;;  %v6332_v39 = vsel %vm21221_vm8, %v6141_v57, -inf  ;;  %v6339_v40 = vsel %vm21222_vm7, %v6143_v20, -inf  ;;  %11056 = vmatpush2.bf16.msra.mxu1 %v13691_v45  ;;  %vm21237_vm2 = vmmov %vm21219_vm0 }
 0x50a   :  { %v6349_v42 = vrot.slane %v6348_v58, 2  ;;  %v6355_v5 = vmax.f32 %v6353_v48, %v6354_v28  ;;  %v6362_v59 = vmax.f32 %v6360_v56, %v6361_v2  ;;  %v6368_v29 = vrot.slane %v6367_v0, 4  ;;  %11057 = vmatprep.subr.bf16.mxu1 %v13699_v24  ;;  %vm21238_vm8 = vmmov %vm21219_vm0 }
 0x50b   :  { %v6320_v55 = vmax.f32 %v6318_v4, %v6319_v44  ;;  %v6326_v50 = vrot.slane %v6325_v30, 4  ;;  %v6333_v6 = vrot.slane %v6332_v39, 4  ;;  %v6340_v53 = vrot.slane %v6339_v40, 4  ;;  %11138 = vmatpush2.bf16.msra.mxu0 %v13694_v63  ;;  %vm21239_vm7 = vmmov %vm21219_vm0 }
 0x50c   :  { %v6350_v23 = vmax.f32 %v6348_v58, %v6349_v42  ;;  %v6356_v21 = vrot.slane %v6355_v5, 2  ;;  %v6363_v49 = vrot.slane %v6362_v59, 2  ;;  %v6369_v62 = vmax.f32 %v6367_v0, %v6368_v29  ;;  %11139 = vmatprep.subr.bf16.mxu0 %v13702_v13  ;;  %v18817_v0 = vpop.f32.mrf.mxu1 }
 0x50d   :  { %v6321_v43 = vrot.slane %v6320_v55, 2  ;;  %v6327_v9 = vmax.f32 %v6325_v30, %v6326_v50  ;;  %v6334_v7 = vmax.f32 %v6332_v39, %v6333_v6  ;;  %v6341_v32 = vmax.f32 %v6339_v40, %v6340_v53  ;;  %11058 = vmatpush2.bf16.msra.mxu1 %v13697_v36 }
 0x50e   :  { %v6351_v57 = vrot.slane %v6350_v23, 1  ;;  %v6357_v47 = vmax.f32 %v6355_v5, %v6356_v21  ;;  %v6364_v54 = vmax.f32 %v6362_v59, %v6363_v49  ;;  %v6370_v16 = vrot.slane %v6369_v62, 2  ;;  %11068 = vmatprep.subr.bf16.mxu1 %v13705_v14  ;;  %v6046_v49 = vpop.f32.mrf.mxu1 }
 0x50f   :  { %v6322_v4 = vmax.f32 %v6320_v55, %v6321_v43  ;;  %v6328_v45 = vrot.slane %v6327_v9, 2  ;;  %v6335_v35 = vrot.slane %v6334_v7, 2  ;;  %v6342_v48 = vrot.slane %v6341_v32, 2  ;;  %11140 = vmatpush2.bf16.msra.mxu0 %v13700_v41 }
 0x510   :  { %v6352_v56 = vmax.f32 %v6350_v23, %v6351_v57  ;;  %v6358_v20 = vrot.slane %v6357_v47, 1  ;;  %v6365_v24 = vrot.slane %v6364_v54, 1  ;;  %v6371_v58 = vmax.f32 %v6369_v62, %v6370_v16  ;;  %11191 = vmatprep.subr.bf16.mxu0 %v13709_v25 }
 0x511   :  { %v6323_v28 = vrot.slane %v6322_v4, 1  ;;  %v6329_v2 = vmax.f32 %v6327_v9, %v6328_v45  ;;  %v6336_v44 = vmax.f32 %v6334_v7, %v6335_v35  ;;  %v6343_v63 = vmax.f32 %v6341_v32, %v6342_v48 }
 0x512   :  { %v6359_v30 = vmax.f32 %v6357_v47, %v6358_v20  ;;  %v6366_v39 = vmax.f32 %v6364_v54, %v6365_v24  ;;  %v6372_v40 = vrot.slane %v6371_v58, 1  ;;  %v6498_v13 = vmax.f32 %v6352_v56, 0.0  ;;  %v13420_v20 = vpop.f32.mrf.mxu1 }
 0x513   :  { %v6324_v42 = vmax.f32 %v6322_v4, %v6323_v28  ;;  %v6330_v5 = vrot.slane %v6329_v2, 1  ;;  %v6337_v59 = vrot.slane %v6336_v44, 1  ;;  %v6344_v29 = vrot.slane %v6343_v63, 1 }
 0x514   :  { %v6373_v36 = vmax.f32 %v6371_v58, %v6372_v40  ;;  %v6499_v55 = vmax.f32 %v6359_v30, 0.0  ;;  %v6500_v50 = vmax.f32 %v6366_v39, 0.0  ;;  %v6530_v6 = vpack.c.bf16 %v6498_v13, %v6498_v13 }
 0x515   :  { %v6331_v53 = vmax.f32 %v6329_v2, %v6330_v5  ;;  %v6338_v14 = vmax.f32 %v6336_v44, %v6337_v59  ;;  %v6345_v23 = vmax.f32 %v6343_v63, %v6344_v29  ;;  %v6494_v21 = vmax.f32 %v6324_v42, 0.0 }
 0x516   :  { %v6501_v62 = vmax.f32 %v6373_v36, 0.0  ;;  %v6531_v41 = vpack.c.bf16 %v6499_v55, %v6499_v55  ;;  %v6532_v43 = vpack.c.bf16 %v6500_v50, %v6500_v50  ;;  %v7507_v9 = vrot.slane %v6530_v6, %v18581_v18  ;;  %v6049_v36 = vpop.f32.mrf.mxu1 }
 0x517   :  { %v6495_v7 = vmax.f32 %v6331_v53, 0.0  ;;  %v6496_v32 = vmax.f32 %v6338_v14, 0.0  ;;  %v6497_v25 = vmax.f32 %v6345_v23, 0.0  ;;  %v6526_v57 = vpack.c.bf16 %v6494_v21, %v6494_v21 }
 0x518   :  { %v6533_v47 = vpack.c.bf16 %v6501_v62, %v6501_v62  ;;  %v7514_v54 = vrot.slane %v7507_v9, %v18581_v18  ;;  %v7586_v16 = vrot.slane %v6531_v41, %v18581_v18  ;;  %v7665_v4 = vrot.slane %v6532_v43, %v18581_v18 }
 0x519   :  { %v6527_v45 = vpack.c.bf16 %v6495_v7, %v6495_v7  ;;  %v6528_v35 = vpack.c.bf16 %v6496_v32, %v6496_v32  ;;  %v6529_v48 = vpack.c.bf16 %v6497_v25, %v6497_v25  ;;  %v7191_v56 = vrot.slane %v6526_v57, %v18581_v18 }
 0x51a   :  { %v7535_v24 = vrot.slane %v7514_v54, %v18661_v19  ;;  %v7593_v58 = vrot.slane %v7586_v16, %v18581_v18  ;;  %v7672_v28 = vrot.slane %v7665_v4, %v18581_v18  ;;  %v7744_v2 = vrot.slane %v6533_v47, %v18581_v18 }
 0x51b   :  { %v7198_v44 = vrot.slane %v7191_v56, %v18581_v18  ;;  %v7270_v63 = vrot.slane %v6527_v45, %v18581_v18  ;;  %v7349_v30 = vrot.slane %v6528_v35, %v18581_v18  ;;  %v7428_v39 = vrot.slane %v6529_v48, %v18581_v18 }
 0x51c   :  { %v18836_v40 = vrot.slane %v6666_v15, %v18661_v19  ;;  %v18842_v13 = vrot.slane %v6745_v51, %v18661_v19  ;;  %v7614_v42 = vrot.slane %v7593_v58, %v18661_v19  ;;  %v7693_v5 = vrot.slane %v7672_v28, %v18661_v19 }
 0x51d   :  { %v18850_v59 = vrot.slane %v6824_v3, %v18661_v19  ;;  %v7751_v46 = vrot.slane %v7744_v2, %v18581_v18  ;;  %v7219_v15 = vrot.slane %v7198_v44, %v18661_v19  ;;  %v7277_v29 = vrot.slane %v7270_v63, %v18581_v18 }
 0x51e   :  { %v7004_v51 = vunpack.c.l.b16 %v18749_v61  ;;  %v7083_v55 = vunpack.c.l.b16 %v18752_v1  ;;  %v7162_v50 = vunpack.c.l.b16 %v18766_v12  ;;  %v18860_v6 = vrot.slane %v7535_v24, %v18661_v19 }
 0x51f   :  { %v18863_v34 = vrot.slane %v7614_v42, %v18661_v19  ;;  %v7356_v3 = vrot.slane %v7349_v30, %v18581_v18  ;;  %v18867_v53 = vrot.slane %v7428_v39, %v18581_v18  ;;  %v13423_v14 = vpop.f32.mrf.mxu1  ;;  %v6608_v23 = vunpack.c.l.b16 %v18769_v38 }
 0x520   :  { %v6688_v21 = vunpack.c.l.b16 %v18836_v40  ;;  %v6767_v62 = vunpack.c.l.b16 %v18842_v13  ;;  %v18873_v41 = vrot.slane %v7693_v5, %v18661_v19  ;;  %v7772_v9 = vrot.slane %v7751_v46, %v18661_v19 }
 0x521   :  { %v18878_v7 = vrot.slane %v7219_v15, %v18661_v19  ;;  %v7298_v32 = vrot.slane %v7277_v29, %v18661_v19  ;;  %v6062_v25 = vpop.f32.mrf.mxu1  ;;  %v6055_v57 = vadd.f32 %v18817_v0, %v18676_v27  ;;  %v6047_v47 = vadd.f32 %v6046_v49, %v18679_v22 }
 0x522   :  { %v6058_v54 = vadd.f32 %v13420_v20, %v18707_v60  ;;  %v6050_v16 = vadd.f32 %v6049_v36, %v18681_v17  ;;  %v7377_v35 = vrot.slane %v7356_v3, %v18661_v19  ;;  %v18894_v60 = vrot.slane %v7772_v9, %v18661_v19 }
 0x523   :  { %v13424_v56 = vpop.f32.mrf.mxu1  ;;  %v18898_v0 = vrot.slane %v7298_v32, %v18661_v19  ;;  %v6071_v49 = vadd.f32 %v13423_v14, %v18738_v52  ;;  %vm6611_vm1 = vcmask 1041409  }
 0x524   :  { %v6082_v58 = vmax.f32 %v6055_v57, %v6058_v54  ;;  %v6081_v27 = vmax.f32 %v6047_v47, %v6050_v16  ;;  %v6074_v22 = vadd.f32 %v13424_v56, %v18740_v33  ;;  %v18904_v30 = vrot.slane %v7377_v35, %v18661_v19 }
 0x525   :  { %v6065_v20 = vpop.f32.mrf.mxu1  ;;  %v18907_v33 = vadd.f32 %v6062_v25, %v18496_v37 }
 0x526   :  { %v6178_v28 = vcombine.high %v6082_v58, %v6082_v58  ;;  %v6185_v2 = vrot.slane %v6082_v58, %v18560_v31  ;;  %v6161_v44 = vcombine.high %v6081_v27, %v6081_v27  ;;  %v6168_v63 = vrot.slane %v6081_v27, %v18560_v31 }
 0x527   :  { %v18909_v39 = vmax.f32 %v6071_v49, %v6074_v22  ;;  %v18912_v42 = vadd.f32 %v6065_v20, %v18500_v8 }
 0x528   :  { %v6192_v52 = vrot.slane %v6178_v28, %v18560_v31  ;;  %v6193_v5 = vcombine.high %v6185_v2, %v6185_v2  ;;  %v6402_v46 = vsel %vm21223_vm4, %v6185_v2, -inf  ;;  %v6175_v15 = vrot.slane %v6161_v44, %v18560_v31  ;;  %vm21240_vm4 = vmmov %vm21219_vm0 }
 0x529   :  { %v6403_v29 = vrot.slane %v6402_v46, 4  ;;  %v6176_v36 = vcombine.high %v6168_v63, %v6168_v63  ;;  %v6374_v3 = vsel %vm21224_vm13, %v6168_v63, -inf  ;;  %v21232_v13 = vcombine.high %v18909_v39, %v18909_v39 }
 0x52a   :  { %v6194_v14 = vcombine.high %v6192_v52, %v6192_v52  ;;  %v6409_v9 = vsel %vm21225_vm14, %v6193_v5, -inf  ;;  %v6416_v8 = vsel %vm21226_vm10, %v6192_v52, -inf  ;;  %v6177_v32 = vcombine.high %v6175_v15, %v6175_v15 }
 0x52b   :  { %v6404_v25 = vmax.f32 %v6402_v46, %v6403_v29  ;;  %v6410_v57 = vrot.slane %v6409_v9, 4  ;;  %v6417_v47 = vrot.slane %v6416_v8, 4  ;;  %v6375_v54 = vrot.slane %v6374_v3, 4 }
 0x52c   :  { %v6423_v16 = vsel %vm21227_vm12, %v6194_v14, -inf  ;;  %v6381_v35 = vsel %vm21228_vm3, %v6176_v36, -inf  ;;  %v6388_v56 = vsel %vm21229_vm6, %v6175_v15, -inf  ;;  %v6395_v58 = vsel %vm21230_vm11, %v6177_v32, -inf }
 0x52d   :  { %v6405_v27 = vrot.slane %v6404_v25, 2  ;;  %v6411_v22 = vmax.f32 %v6409_v9, %v6410_v57  ;;  %v6418_v49 = vmax.f32 %v6416_v8, %v6417_v47  ;;  %v6424_v20 = vrot.slane %v6423_v16, 4 }
 0x52e   :  { %v6376_v28 = vmax.f32 %v6374_v3, %v6375_v54  ;;  %v6382_v2 = vrot.slane %v6381_v35, 4  ;;  %v6389_v44 = vrot.slane %v6388_v56, 4  ;;  %v6396_v63 = vrot.slane %v6395_v58, 4 }
 0x52f   :  { %v6406_v52 = vmax.f32 %v6404_v25, %v6405_v27  ;;  %v6412_v5 = vrot.slane %v6411_v22, 2  ;;  %v6419_v46 = vrot.slane %v6418_v49, 2  ;;  %v6425_v29 = vmax.f32 %v6423_v16, %v6424_v20 }
 0x530   :  { %v6377_v17 = vrot.slane %v6376_v28, 2  ;;  %v6383_v14 = vmax.f32 %v6381_v35, %v6382_v2  ;;  %v6390_v24 = vmax.f32 %v6388_v56, %v6389_v44  ;;  %v6397_v36 = vmax.f32 %v6395_v58, %v6396_v63 }
 0x531   :  { %v6407_v45 = vrot.slane %v6406_v52, 1  ;;  %v6413_v15 = vmax.f32 %v6411_v22, %v6412_v5  ;;  %v6420_v4 = vmax.f32 %v6418_v49, %v6419_v46  ;;  %v6426_v32 = vrot.slane %v6425_v29, 2 }
 0x532   :  { %v6378_v48 = vmax.f32 %v6376_v28, %v6377_v17  ;;  %v6384_v9 = vrot.slane %v6383_v14, 2  ;;  %v6391_v8 = vrot.slane %v6390_v24, 2  ;;  %v6398_v57 = vrot.slane %v6397_v36, 2 }
 0x533   :  { %v6408_v3 = vmax.f32 %v6406_v52, %v6407_v45  ;;  %v6414_v47 = vrot.slane %v6413_v15, 1  ;;  %v6421_v54 = vrot.slane %v6420_v4, 1  ;;  %v6427_v37 = vmax.f32 %v6425_v29, %v6426_v32 }
 0x534   :  { %v6379_v25 = vrot.slane %v6378_v48, 1  ;;  %v6385_v27 = vmax.f32 %v6383_v14, %v6384_v9  ;;  %v6392_v43 = vmax.f32 %v6390_v24, %v6391_v8  ;;  %v6399_v16 = vmax.f32 %v6397_v36, %v6398_v57 }
 0x535   :  { %v6415_v20 = vmax.f32 %v6413_v15, %v6414_v47  ;;  %v6422_v35 = vmax.f32 %v6420_v4, %v6421_v54  ;;  %v6428_v56 = vrot.slane %v6427_v37, 1  ;;  %v6506_v58 = vmax.f32 %v6408_v3, 0.0 }
 0x536   :  { %v6380_v2 = vmax.f32 %v6378_v48, %v6379_v25  ;;  %v6386_v22 = vrot.slane %v6385_v27, 1  ;;  %v6393_v49 = vrot.slane %v6392_v43, 1  ;;  %v6400_v44 = vrot.slane %v6399_v16, 1 }
 0x537   :  { %v6429_v17 = vmax.f32 %v6427_v37, %v6428_v56  ;;  %v6507_v28 = vmax.f32 %v6415_v20, 0.0  ;;  %v6508_v63 = vmax.f32 %v6422_v35, 0.0  ;;  %v6538_v5 = vpack.c.bf16 %v6506_v58, %v6506_v58 }
 0x538   :  { %v6387_v45 = vmax.f32 %v6385_v27, %v6386_v22  ;;  %v6394_v52 = vmax.f32 %v6392_v43, %v6393_v49  ;;  %v6401_v46 = vmax.f32 %v6399_v16, %v6400_v44  ;;  %v6502_v29 = vmax.f32 %v6380_v2, 0.0 }
 0x539   :  { %v6509_v32 = vmax.f32 %v6429_v17, 0.0  ;;  %v6539_v14 = vpack.c.bf16 %v6507_v28, %v6507_v28  ;;  %v6540_v24 = vpack.c.bf16 %v6508_v63, %v6508_v63  ;;  %v6889_v36 = vrot.slane %v6538_v5, %v18581_v18 }
 0x53a   :  { %v6503_v4 = vmax.f32 %v6387_v45, 0.0  ;;  %v6504_v15 = vmax.f32 %v6394_v52, 0.0  ;;  %v6505_v48 = vmax.f32 %v6401_v46, 0.0  ;;  %v6534_v9 = vpack.c.bf16 %v6502_v29, %v6502_v29 }
 0x53b   :  { %v6541_v8 = vpack.c.bf16 %v6509_v32, %v6509_v32  ;;  %v6896_v37 = vrot.slane %v6889_v36, %v18581_v18  ;;  %v6968_v57 = vrot.slane %v6539_v14, %v18581_v18  ;;  %v7047_v3 = vrot.slane %v6540_v24, %v18581_v18 }
 0x53c   :  { %v6535_v43 = vpack.c.bf16 %v6503_v4, %v6503_v4  ;;  %v6536_v47 = vpack.c.bf16 %v6504_v15, %v6504_v15  ;;  %v6537_v54 = vpack.c.bf16 %v6505_v48, %v6505_v48  ;;  %v6572_v25 = vrot.slane %v6534_v9, %v18581_v18 }
 0x53d   :  { %v6917_v27 = vrot.slane %v6896_v37, %v18661_v19  ;;  %v6975_v16 = vrot.slane %v6968_v57, %v18581_v18  ;;  %v7054_v20 = vrot.slane %v7047_v3, %v18581_v18  ;;  %v7126_v35 = vrot.slane %v6541_v8, %v18581_v18 }
 0x53e   :  { %v6579_v56 = vrot.slane %v6572_v25, %v18581_v18  ;;  %v6652_v58 = vrot.slane %v6535_v43, %v18581_v18  ;;  %v6731_v2 = vrot.slane %v6536_v47, %v18581_v18  ;;  %v6810_v22 = vrot.slane %v6537_v54, %v18581_v18 }
 0x53f   :  { %v6924_v49 = vrot.slane %v6917_v27, %v18661_v19  ;;  %v6996_v44 = vrot.slane %v6975_v16, %v18661_v19  ;;  %v7075_v17 = vrot.slane %v7054_v20, %v18661_v19  ;;  %v7133_v28 = vrot.slane %v7126_v35, %v18581_v18 }
 0x540   :  { %v6600_v63 = vrot.slane %v6579_v56, %v18661_v19  ;;  %v6659_v5 = vrot.slane %v6652_v58, %v18581_v18  ;;  %v6738_v45 = vrot.slane %v6731_v2, %v18581_v18  ;;  %v6817_v52 = vrot.slane %v6810_v22, %v18581_v18 }
 0x541   :  { %v6926_v46 = vunpack.c.l.b16 %v6924_v49  ;;  %v7003_v29 = vrot.slane %v6996_v44, %v18661_v19  ;;  %v7082_v32 = vrot.slane %v7075_v17, %v18661_v19  ;;  %v7154_v14 = vrot.slane %v7133_v28, %v18661_v19 }
 0x542   :  { %v6607_v24 = vrot.slane %v6600_v63, %v18661_v19  ;;  %v6680_v36 = vrot.slane %v6659_v5, %v18661_v19  ;;  %v6759_v4 = vrot.slane %v6738_v45, %v18661_v19  ;;  %v6838_v15 = vrot.slane %v6817_v52, %v18661_v19 }
 0x543   :  { %v6927_v48 = vrot.slane %v6926_v46, 7  ;;  %v7005_v9 = vunpack.c.l.b16 %v7003_v29  ;;  %v7084_v8 = vunpack.c.l.b16 %v7082_v32  ;;  %v7161_v37 = vrot.slane %v7154_v14, %v18661_v19 }
 0x544   :  { %v6609_v57 = vunpack.c.l.b16 %v6607_v24  ;;  %v6687_v3 = vrot.slane %v6680_v36, %v18661_v19  ;;  %v6766_v43 = vrot.slane %v6759_v4, %v18661_v19  ;;  %v6845_v47 = vrot.slane %v6838_v15, %v18661_v19 }
 0x545   :  { %v6928_v54 = vsel %vm6611_vm1, %v6927_v48, %v6925_v26  ;;  %v7006_v25 = vrot.slane %v7005_v9, 7  ;;  %v7085_v27 = vrot.slane %v7084_v8, 7  ;;  %v7163_v16 = vunpack.c.l.b16 %v7161_v37 }
 0x546   :  { %v6929_v20 = vpack.c.b16 %v6928_v54, %v6928_v54  ;;  %v6610_v35 = vrot.slane %v6609_v57, 7  ;;  %v6689_v56 = vunpack.c.l.b16 %v6687_v3  ;;  %v6768_v58 = vunpack.c.l.b16 %v6766_v43 }
 0x547   :  { %v7007_v2 = vsel %vm6611_vm1, %v7006_v25, %v7004_v51  ;;  %v7086_v22 = vsel %vm6611_vm1, %v7085_v27, %v7083_v55  ;;  %v7164_v49 = vrot.slane %v7163_v16, 7  ;;  %v6847_v44 = vunpack.c.l.b16 %v6845_v47 }
 0x548   :  { %v6936_v10 = vrot.slane %v6929_v20, %v18581_v18  ;;  %v7008_v26 = vpack.c.b16 %v7007_v2, %v7007_v2  ;;  %v7087_v17 = vpack.c.b16 %v7086_v22, %v7086_v22  ;;  %v6612_v28 = vsel %vm6611_vm1, %v6610_v35, %v6608_v23 }
 0x549   :  { %v7165_v61 = vsel %vm6611_vm1, %v7164_v49, %v7162_v50  ;;  %v6613_v63 = vpack.c.b16 %v6612_v28, %v6612_v28  ;;  %v6690_v51 = vrot.slane %v6689_v56, 7  ;;  %v6769_v5 = vrot.slane %v6768_v58, 7 }
 0x54a   :  { %12384 = vst.sshfl [vmem:[#allocation3 + $0x4] sm:$0x1 pattern:$0x73625140] %v6936_v10  ;;  %v7015_v1 = vrot.slane %v7008_v26, %v18581_v18  ;;  %v7094_v55 = vrot.slane %v7087_v17, %v18581_v18  ;;  %v7166_v45 = vpack.c.b16 %v7165_v61, %v7165_v61  ;;  %v6848_v52 = vrot.slane %v6847_v44, 7 }
 0x54b   :  { %v6620_v46 = vrot.slane %v6613_v63, %v18581_v18  ;;  %v6691_v38 = vsel %vm6611_vm1, %v6690_v51, %v6688_v21  ;;  %v6770_v12 = vsel %vm6611_vm1, %v6769_v5, %v6767_v62  ;;  %v6219_v50 = vrot.slane %v18909_v39, %v18560_v31 }
 0x54c   :  { %12385 = vst.sshfl [vmem:[#allocation3 + $0x5] sm:$0x1 pattern:$0x73625140] %v7015_v1  ;;  %v7173_v23 = vrot.slane %v7166_v45, %v18581_v18  ;;  %v6692_v29 = vpack.c.b16 %v6691_v38, %v6691_v38  ;;  %v6771_v32 = vpack.c.b16 %v6770_v12, %v6770_v12  ;;  %v21231_v14 = vunpack.c.l.b16 %v18850_v59 }
 0x54d   :  { %12386 = vst.sshfl [vmem:[#allocation3 + $0x6] sm:$0x1 pattern:$0x73625140] %v7094_v55  ;;  %v6226_v21 = vrot.slane %v21232_v13, %v18560_v31  ;;  %v6227_v62 = vcombine.high %v6219_v50, %v6219_v50  ;;  %v6458_v36 = vsel %vm21233_vm5, %v6219_v50, -inf  ;;  %v6083_v59 = vmax.f32 %v18907_v33, %v18912_v42 }
 0x54e   :  { %v6849_v24 = vsel %vm6611_vm1, %v6848_v52, %v21231_v14  ;;  %12380 = vst.sshfl [vmem:[#allocation3] sm:$0x1 pattern:$0x73625140] %v6620_v46  ;;  %v6699_v4 = vrot.slane %v6692_v29, %v18581_v18  ;;  %v6778_v15 = vrot.slane %v6771_v32, %v18581_v18  ;;  %v6459_v48 = vrot.slane %v6458_v36, 4 }
 0x54f   :  { %v6850_v40 = vpack.c.b16 %v6849_v24, %v6849_v24  ;;  %12387 = vst.sshfl [vmem:[#allocation3 + $0x7] sm:$0x1 pattern:$0x73625140] %v7173_v23  ;;  %v6228_v8 = vcombine.high %v6226_v21, %v6226_v21  ;;  %v6465_v37 = vsel %vm21234_vm15, %v6227_v62, -inf  ;;  %v6472_v39 = vsel %vm21235_vm9, %v6226_v21, -inf }
 0x550   :  { %12381 = vst.sshfl [vmem:[#allocation3 + $0x1] sm:$0x1 pattern:$0x73625140] %v6699_v4  ;;  %v6460_v57 = vmax.f32 %v6458_v36, %v6459_v48  ;;  %v6466_v3 = vrot.slane %v6465_v37, 4  ;;  %v6473_v43 = vrot.slane %v6472_v39, 4  ;;  %v6195_v47 = vcombine.high %v6083_v59, %v6083_v59 }
 0x551   :  { %v6857_v9 = vrot.slane %v6850_v40, %v18581_v18  ;;  %12382 = vst.sshfl [vmem:[#allocation3 + $0x2] sm:$0x1 pattern:$0x73625140] %v6778_v15  ;;  %v7794_v54 = vunpack.c.l.b16 %v18894_v60  ;;  %v21236_v25 = vrot.slane %v18867_v53, %v18661_v19  ;;  %v6479_v42 = vsel %vm21219_vm0, %v6228_v8, -inf }
 0x552   :  { %v6202_v27 = vrot.slane %v6083_v59, %v18560_v31  ;;  %v6461_v16 = vrot.slane %v6460_v57, 2  ;;  %v6467_v20 = vmax.f32 %v6465_v37, %v6466_v3  ;;  %v6474_v35 = vmax.f32 %v6472_v39, %v6473_v43 }
 0x553   :  { %v19006_v33 = vrot.slane %v21236_v25, %v18661_v19  ;;  %12383 = vst.sshfl [vmem:[#allocation3 + $0x3] sm:$0x1 pattern:$0x73625140] %v6857_v9  ;;  %v6480_v56 = vrot.slane %v6479_v42, 4  ;;  %v7320_v58 = vunpack.c.l.b16 %v18898_v0  ;;  %v6209_v2 = vrot.slane %v6195_v47, %v18560_v31 }
 0x554   :  { %v6210_v22 = vcombine.high %v6202_v27, %v6202_v27  ;;  %v6430_v49 = vsel %vm21237_vm2, %v6202_v27, -inf  ;;  %v6462_v44 = vmax.f32 %v6460_v57, %v6461_v16  ;;  %v6468_v53 = vrot.slane %v6467_v20, 2 }
 0x555   :  { %v6475_v10 = vrot.slane %v6474_v35, 2  ;;  %v6481_v26 = vmax.f32 %v6479_v42, %v6480_v56  ;;  %v6211_v17 = vcombine.high %v6209_v2, %v6209_v2  ;;  %v6431_v28 = vrot.slane %v6430_v49, 4 }
 0x556   :  { %v6437_v61 = vsel %vm21238_vm8, %v6210_v22, -inf  ;;  %v6444_v63 = vsel %vm21239_vm7, %v6209_v2, -inf  ;;  %v6463_v51 = vrot.slane %v6462_v44, 1  ;;  %v6469_v5 = vmax.f32 %v6467_v20, %v6468_v53 }
 0x557   :  { %v6476_v1 = vmax.f32 %v6474_v35, %v6475_v10  ;;  %v6482_v55 = vrot.slane %v6481_v26, 2  ;;  %v6432_v45 = vmax.f32 %v6430_v49, %v6431_v28  ;;  %v6438_v52 = vrot.slane %v6437_v61, 4 }
 0x558   :  { %v6445_v31 = vrot.slane %v6444_v63, 4  ;;  %v6451_v46 = vsel %vm21240_vm4, %v6211_v17, -inf  ;;  %v6464_v38 = vmax.f32 %v6462_v44, %v6463_v51  ;;  %v6470_v12 = vrot.slane %v6469_v5, 1 }
 0x559   :  { %v6477_v50 = vrot.slane %v6476_v1, 1  ;;  %v6483_v23 = vmax.f32 %v6481_v26, %v6482_v55  ;;  %v6433_v29 = vrot.slane %v6432_v45, 2  ;;  %v6439_v32 = vmax.f32 %v6437_v61, %v6438_v52 }
 0x55a   :  { %v6446_v14 = vmax.f32 %v6444_v63, %v6445_v31  ;;  %v6452_v24 = vrot.slane %v6451_v46, 4  ;;  %v6471_v40 = vmax.f32 %v6469_v5, %v6470_v12  ;;  %v6514_v62 = vmax.f32 %v6464_v38, 0.0 }
 0x55b   :  { %v6478_v13 = vmax.f32 %v6476_v1, %v6477_v50  ;;  %v6484_v21 = vrot.slane %v6483_v23, 1  ;;  %v6434_v36 = vmax.f32 %v6432_v45, %v6433_v29  ;;  %v6440_v4 = vrot.slane %v6439_v32, 2 }
 0x55c   :  { %v6447_v15 = vrot.slane %v6446_v14, 2  ;;  %v6453_v48 = vmax.f32 %v6451_v46, %v6452_v24  ;;  %v6515_v9 = vmax.f32 %v6471_v40, 0.0  ;;  %v6546_v37 = vpack.c.bf16 %v6514_v62, %v6514_v62 }
 0x55d   :  { %v6485_v59 = vmax.f32 %v6483_v23, %v6484_v21  ;;  %v6516_v8 = vmax.f32 %v6478_v13, 0.0  ;;  %v6435_v39 = vrot.slane %v6434_v36, 1  ;;  %v6441_v57 = vmax.f32 %v6439_v32, %v6440_v4 }
 0x55e   :  { %v6448_v3 = vmax.f32 %v6446_v14, %v6447_v15  ;;  %v6454_v43 = vrot.slane %v6453_v48, 2  ;;  %v6547_v25 = vpack.c.bf16 %v6515_v9, %v6515_v9  ;;  %v7521_v27 = vrot.slane %v6546_v37, %v18581_v18 }
 0x55f   :  { %v6517_v47 = vmax.f32 %v6485_v59, 0.0  ;;  %v6548_v42 = vpack.c.bf16 %v6516_v8, %v6516_v8  ;;  %v6436_v16 = vmax.f32 %v6434_v36, %v6435_v39  ;;  %v6442_v20 = vrot.slane %v6441_v57, 1 }
 0x560   :  { %v6449_v35 = vrot.slane %v6448_v3, 1  ;;  %v6455_v56 = vmax.f32 %v6453_v48, %v6454_v43  ;;  %v7528_v22 = vrot.slane %v7521_v27, %v18581_v18  ;;  %v7600_v49 = vrot.slane %v6547_v25, %v18581_v18 }
 0x561   :  { %v6549_v2 = vpack.c.bf16 %v6517_v47, %v6517_v47  ;;  %v7679_v44 = vrot.slane %v6548_v42, %v18581_v18  ;;  %v6443_v53 = vmax.f32 %v6441_v57, %v6442_v20  ;;  %v6510_v17 = vmax.f32 %v6436_v16, 0.0 }
 0x562   :  { %v6450_v10 = vmax.f32 %v6448_v3, %v6449_v35  ;;  %v6456_v26 = vrot.slane %v6455_v56, 1  ;;  %v7549_v28 = vrot.slane %v7528_v22, %v18661_v19  ;;  %v7607_v61 = vrot.slane %v7600_v49, %v18581_v18 }
 0x563   :  { %v7686_v63 = vrot.slane %v7679_v44, %v18581_v18  ;;  %v7758_v51 = vrot.slane %v6549_v2, %v18581_v18  ;;  %v6511_v1 = vmax.f32 %v6443_v53, 0.0  ;;  %v6542_v45 = vpack.c.bf16 %v6510_v17, %v6510_v17  ;;  %v7815_v17 = vld [vmem:[#allocation3] sm:$0xff] }
 0x564   :  { %v6457_v5 = vmax.f32 %v6455_v56, %v6456_v26  ;;  %v6512_v55 = vmax.f32 %v6450_v10, 0.0  ;;  %v7556_v52 = vrot.slane %v7549_v28, %v18661_v19  ;;  %v7628_v31 = vrot.slane %v7607_v61, %v18661_v19 }
 0x565   :  { %v7707_v46 = vrot.slane %v7686_v63, %v18661_v19  ;;  %v7765_v38 = vrot.slane %v7758_v51, %v18581_v18  ;;  %v6543_v50 = vpack.c.bf16 %v6511_v1, %v6511_v1  ;;  %v7205_v29 = vrot.slane %v6542_v45, %v18581_v18 }
 0x566   :  { %v6513_v12 = vmax.f32 %v6457_v5, 0.0  ;;  %v6544_v23 = vpack.c.bf16 %v6512_v55, %v6512_v55  ;;  %v7558_v32 = vunpack.c.l.b16 %v7556_v52  ;;  %v7635_v14 = vrot.slane %v7628_v31, %v18661_v19 }
 0x567   :  { %v7714_v24 = vrot.slane %v7707_v46, %v18661_v19  ;;  %v7786_v40 = vrot.slane %v7765_v38, %v18661_v19  ;;  %v7212_v21 = vrot.slane %v7205_v29, %v18581_v18  ;;  %v7284_v62 = vrot.slane %v6543_v50, %v18581_v18 }
 0x568   :  { %v6545_v13 = vpack.c.bf16 %v6513_v12, %v6513_v12  ;;  %v7363_v36 = vrot.slane %v6544_v23, %v18581_v18  ;;  %v7559_v4 = vrot.slane %v7558_v32, 7  ;;  %v7637_v15 = vunpack.c.l.b16 %v7635_v14 }
 0x569   :  { %v7716_v48 = vunpack.c.l.b16 %v7714_v24  ;;  %v7793_v59 = vrot.slane %v7786_v40, %v18661_v19  ;;  %v7233_v9 = vrot.slane %v7212_v21, %v18661_v19  ;;  %v7291_v8 = vrot.slane %v7284_v62, %v18581_v18 }
 0x56a   :  { %v7370_v37 = vrot.slane %v7363_v36, %v18581_v18  ;;  %v7442_v39 = vrot.slane %v6545_v13, %v18581_v18  ;;  %v21241_v57 = vunpack.c.l.b16 %v18860_v6  ;;  %v7638_v43 = vrot.slane %v7637_v15, 7 }
 0x56b   :  { %v7717_v47 = vrot.slane %v7716_v48, 7  ;;  %v7795_v25 = vunpack.c.l.b16 %v7793_v59  ;;  %v7240_v27 = vrot.slane %v7233_v9, %v18661_v19  ;;  %v7312_v16 = vrot.slane %v7291_v8, %v18661_v19 }
 0x56c   :  { %v7560_v3 = vsel %vm6611_vm1, %v7559_v4, %v21241_v57  ;;  %v7391_v20 = vrot.slane %v7370_v37, %v18661_v19  ;;  %v21242_v35 = vunpack.c.l.b16 %v18863_v34  ;;  %v21243_v2 = vunpack.c.l.b16 %v18873_v41 }
 0x56d   :  { %v7561_v42 = vpack.c.b16 %v7560_v3, %v7560_v3  ;;  %v7796_v22 = vrot.slane %v7795_v25, 7  ;;  %v7449_v49 = vrot.slane %v7442_v39, %v18581_v18  ;;  %v7242_v26 = vunpack.c.l.b16 %v7240_v27  ;;  %v13707_v39 = vld [vmem:[%s20697_s5 + $0x8e0] ss:$16 sps:$4 sm:$0xff]   ;;  %v13718_v25 = vld [vmem:[%s20697_s5 + $0x2a4] ss:$16 sps:$4 sm:$0xff]  }
 0x56e   :  { %v7639_v56 = vsel %vm6611_vm1, %v7638_v43, %v21242_v35  ;;  %v7718_v6 = vsel %vm6611_vm1, %v7717_v47, %v21243_v2  ;;  %v7319_v34 = vrot.slane %v7312_v16, %v18661_v19  ;;  %v7398_v61 = vrot.slane %v7391_v20, %v18661_v19  ;;  %v13710_v43 = vld [vmem:[%s20697_s5 + $0x2c0] ss:$16 sps:$4 sm:$0xff]   ;;  %v13715_v47 = vld [vmem:[%s20697_s5 + $0x8c4] ss:$16 sps:$4 sm:$0xff]  }
 0x56f   :  { %v7568_v44 = vrot.slane %v7561_v42, %v18581_v18  ;;  %v7640_v53 = vpack.c.b16 %v7639_v56, %v7639_v56  ;;  %v7719_v10 = vpack.c.b16 %v7718_v6, %v7718_v6  ;;  %v7797_v28 = vsel %vm6611_vm1, %v7796_v22, %v7794_v54  ;;  %v13713_v42 = vld [vmem:[%s20697_s5 + $0x8c0] ss:$16 sps:$4 sm:$0xff]   ;;  %v13721_v16 = vld [vmem:[%s20697_s5 + $0x8a4] ss:$16 sps:$4 sm:$0xff]  }
 0x570   :  { %v7470_v41 = vrot.slane %v7449_v49, %v18661_v19  ;;  %v7798_v5 = vpack.c.b16 %v7797_v28, %v7797_v28  ;;  %v7243_v1 = vrot.slane %v7242_v26, 7  ;;  %v7321_v55 = vunpack.c.l.b16 %v7319_v34  ;;  %v13716_v27 = vld [vmem:[%s20697_s5 + $0x2a0] ss:$16 sps:$4 sm:$0xff]   ;;  %v13724_v20 = vld [vmem:[%s20697_s5 + $0x284] ss:$16 sps:$4 sm:$0xff]  }
 0x571   :  { %12392 = vst.sshfl [vmem:[#allocation3 + $0xc] sm:$0x1 pattern:$0x73625140] %v7568_v44  ;;  %v7647_v63 = vrot.slane %v7640_v53, %v18581_v18  ;;  %v7726_v51 = vrot.slane %v7719_v10, %v18581_v18  ;;  %v7400_v45 = vunpack.c.l.b16 %v7398_v61  ;;  %v8360_v60 = vrot.slane %v7815_v17, %v18581_v18  ;;  %v13719_v35 = vld [vmem:[%s20697_s5 + $0x8a0] ss:$16 sps:$4 sm:$0xff]  }
 0x572   :  { %v7477_v52 = vrot.slane %v7470_v41, %v18661_v19  ;;  %v7399_v54 = vunpack.c.l.b16 %v18904_v30  ;;  %v7805_v31 = vrot.slane %v7798_v5, %v18581_v18  ;;  %v21244_v46 = vunpack.c.l.b16 %v18878_v7  ;;  %v13722_v56 = vld [vmem:[%s20697_s5 + $0x280] ss:$16 sps:$4 sm:$0xff]   ;;  %v13727_v2 = vld [vmem:[%s20697_s5 + $0x884] ss:$16 sps:$4 sm:$0xff]  }
 0x573   :  { %12393 = vst.sshfl [vmem:[#allocation3 + $0xd] sm:$0x1 pattern:$0x73625140] %v7647_v63  ;;  %v8353_v12 = vcombine.high %v7815_v17, %v7815_v17  ;;  %v7322_v23 = vrot.slane %v7321_v55, 7  ;;  %v7401_v29 = vrot.slane %v7400_v45, 7  ;;  %v7478_v14 = vunpack.c.l.b16 %v19006_v33 }
 0x574   :  { %12394 = vst.sshfl [vmem:[#allocation3 + $0xe] sm:$0x1 pattern:$0x73625140] %v7726_v51  ;;  %v7244_v38 = vsel %vm6611_vm1, %v7243_v1, %v21244_v46  ;;  %v7479_v32 = vunpack.c.l.b16 %v7477_v52  ;;  %v8368_v19 = vcombine.high %v8360_v60, %v8360_v60  ;;  %v13703_v33 = vld [vmem:[%s20697_s5 + $0x2e0] ss:$16 sps:$4 sm:$0xff]   ;;  %v19084_v0 = vrot.slane %v8360_v60, %v18581_v18 }
 0x575   :  { %v7245_v50 = vpack.c.b16 %v7244_v38, %v7244_v38  ;;  %12395 = vst.sshfl [vmem:[#allocation3 + $0xf] sm:$0x1 pattern:$0x73625140] %v7805_v31  ;;  %v8367_v24 = vrot.slane %v8353_v12, %v18581_v18  ;;  %v7323_v40 = vsel %vm6611_vm1, %v7322_v23, %v7320_v58  ;;  %v7402_v7 = vsel %vm6611_vm1, %v7401_v29, %v7399_v54  ;;  %v13712_v58 = vld [vmem:[%s20697_s5 + $0x2c4] ss:$16 sps:$4 sm:$0xff]  }
 0x576   :  { %v7480_v13 = vrot.slane %v7479_v32, 7  ;;  %v7324_v21 = vpack.c.b16 %v7323_v40, %v7323_v40  ;;  %v7403_v62 = vpack.c.b16 %v7402_v7, %v7402_v7  ;;  %v19077_v36 = vrot.slane %v8368_v19, %v18581_v18  ;;  %v13730_v6 = vld [vmem:[%s20697_s5 + $0x264] ss:$16 sps:$4 sm:$0xff]   ;;  %v13725_v44 = vld [vmem:[%s20697_s5 + $0x880] ss:$16 sps:$4 sm:$0xff]  }
 0x577   :  { %v7252_v30 = vrot.slane %v7245_v50, %v18581_v18  ;;  %v8369_v4 = vcombine.high %v8367_v24, %v8367_v24  ;;  %v19106_v3 = vrot.slane %v8367_v24, %v18581_v18  ;;  %v13728_v53 = vld [vmem:[%s20697_s5 + $0x260] ss:$16 sps:$4 sm:$0xff]   ;;  %v13733_v10 = vld [vmem:[%s20697_s5 + $0x864] ss:$16 sps:$4 sm:$0xff]   ;;  %vm12034_vm13 = vcmask 74752  }
 0x578   :  { %v7481_v15 = vsel %vm6611_vm1, %v7480_v13, %v7478_v14  ;;  %v7331_v48 = vrot.slane %v7324_v21, %v18581_v18  ;;  %v7410_v59 = vrot.slane %v7403_v62, %v18581_v18  ;;  %11059 = vmatprep.mubr.bf16.mxu1 %v19077_v36  ;;  %v19094_v8 = vcombine.high %v19077_v36, %v19077_v36  ;;  %v13736_v17 = vld [vmem:[%s20697_s5 + $0x244] ss:$16 sps:$4 sm:$0xff]   ;;  %v13731_v34 = vld [vmem:[%s20697_s5 + $0x860] ss:$16 sps:$4 sm:$0xff]  }
 0x579   :  { %12388 = vst.sshfl [vmem:[#allocation3 + $0x8] sm:$0x1 pattern:$0x73625140] %v7252_v30  ;;  %v7482_v9 = vpack.c.b16 %v7481_v15, %v7481_v15  ;;  %11060 = vmatmul.mubr.bf16.vlgmr.msra.gmra.mxu1 %v19084_v0  ;;  %v19098_v37 = vrot.slane %v8369_v4, %v18581_v18  ;;  %v13734_v61 = vld [vmem:[%s20697_s5 + $0x240] ss:$16 sps:$4 sm:$0xff]  }
 0x57a   :  { %12389 = vst.sshfl [vmem:[#allocation3 + $0x9] sm:$0x1 pattern:$0x73625140] %v7331_v48  ;;  %11069 = vmatpush1.bf16.msra.mxu1 %v13703_v33  ;;  %11100 = vmatprep.mubr.bf16.mxu1 %v19094_v8  ;;  %v13739_v41 = vld [vmem:[%s20697_s5 + $0x844] ss:$16 sps:$4 sm:$0xff]  }
 0x57b   :  { %12390 = vst.sshfl [vmem:[#allocation3 + $0xa] sm:$0x1 pattern:$0x73625140] %v7410_v59  ;;  %v7489_v57 = vrot.slane %v7482_v9, %v18581_v18  ;;  %11141 = vmatprep.mubr.bf16.mxu0 %v19098_v37  ;;  %11070 = vmatprep.subr.bf16.mxu1 %v13712_v58  ;;  %v13742_v63 = vld [vmem:[%s20697_s5 + $0x224] ss:$16 sps:$4 sm:$0xff]  }
 0x57c   :  { %11142 = vmatmul.mubr.bf16.vlgmr.msra.gmra.mxu0 %v19106_v3  ;;  %v13737_v51 = vld [vmem:[%s20697_s5 + $0x840] ss:$16 sps:$4 sm:$0xff]   ;;  %v13745_v1 = vld [vmem:[%s20697_s5 + $0x824] ss:$16 sps:$4 sm:$0xff]  }
 0x57d   :  { %12391 = vst.sshfl [vmem:[#allocation3 + $0xb] sm:$0x1 pattern:$0x73625140] %v7489_v57  ;;  %11192 = vmatpush1.bf16.msra.mxu0 %v13707_v39  ;;  %v13740_v5 = vld [vmem:[%s20697_s5 + $0x220] ss:$16 sps:$4 sm:$0xff]  }
 0x57e   :  { %11071 = vmatpush1.bf16.msra.mxu1 %v13710_v43  ;;  %11193 = vmatprep.subr.bf16.mxu0 %v13715_v47  ;;  %v13748_v55 = vld [vmem:[%s20697_s5 + $0x204] ss:$16 sps:$4 sm:$0xff]   ;;  %v13743_v45 = vld [vmem:[%s20697_s5 + $0x820] ss:$16 sps:$4 sm:$0xff]  }
 0x57f   :  { %11072 = vmatprep.subr.bf16.mxu1 %v13718_v25  ;;  %v13746_v52 = vld [vmem:[%s20697_s5 + $0x200] ss:$16 sps:$4 sm:$0xff]   ;;  %v13751_v60 = vld [vmem:[%s20697_s5 + $0x804] ss:$16 sps:$4 sm:$0xff]  }
 0x580   :  { %v13754_v54 = vld [vmem:[%s20697_s5 + $0x3e4] ss:$16 sps:$4 sm:$0xff]   ;;  %v13749_v31 = vld [vmem:[%s20697_s5 + $0x800] ss:$16 sps:$4 sm:$0xff]  }
 0x581   :  { %11194 = vmatpush1.bf16.msra.mxu0 %v13713_v42  ;;  %v13752_v46 = vld [vmem:[%s20697_s5 + $0x3e0] ss:$16 sps:$4 sm:$0xff]   ;;  %v13757_v38 = vld [vmem:[%s20697_s5 + $0x9e4] ss:$16 sps:$4 sm:$0xff]  }
 0x582   :  { %11073 = vmatpush1.bf16.msra.mxu1 %v13716_v27  ;;  %11195 = vmatprep.subr.bf16.mxu0 %v13721_v16  ;;  %v13760_v12 = vld [vmem:[%s20697_s5 + $0x3c4] ss:$16 sps:$4 sm:$0xff]   ;;  %v13755_v50 = vld [vmem:[%s20697_s5 + $0x9e0] ss:$16 sps:$4 sm:$0xff]  }
 0x583   :  { %11074 = vmatprep.subr.bf16.mxu1 %v13724_v20  ;;  %v13758_v23 = vld [vmem:[%s20697_s5 + $0x3c0] ss:$16 sps:$4 sm:$0xff]   ;;  %v13763_v29 = vld [vmem:[%s20697_s5 + $0x9c4] ss:$16 sps:$4 sm:$0xff]  }
 0x584   :  { %v19143_v22 = vld [vmem:[#allocation3 + $0x8] sm:$0xff]  ;;  %v13766_v32 = vld [vmem:[%s20697_s5 + $0x3a4] ss:$16 sps:$4 sm:$0xff]   ;;  %v13761_v14 = vld [vmem:[%s20697_s5 + $0x9c0] ss:$16 sps:$4 sm:$0xff]  }
 0x585   :  { %v19147_v49 = vrot.slane %v19143_v22, %v18581_v18  ;;  %11196 = vmatpush1.bf16.msra.mxu0 %v13719_v35  ;;  %v13764_v19 = vld [vmem:[%s20697_s5 + $0x3a0] ss:$16 sps:$4 sm:$0xff]   ;;  %v13769_v24 = vld [vmem:[%s20697_s5 + $0x9a4] ss:$16 sps:$4 sm:$0xff]   ;;  %v8402_v25 = vcombine.high %v19143_v22, %v19143_v22 }
 0x586   :  { %11075 = vmatpush1.bf16.msra.mxu1 %v13722_v56  ;;  %11197 = vmatprep.subr.bf16.mxu0 %v13727_v2  ;;  %v13772_v30 = vld [vmem:[%s20697_s5 + $0x384] ss:$16 sps:$4 sm:$0xff]   ;;  %v13767_v40 = vld [vmem:[%s20697_s5 + $0x9a0] ss:$16 sps:$4 sm:$0xff]  }
 0x587   :  { %v8417_v26 = vcombine.high %v19147_v49, %v19147_v49  ;;  %11076 = vmatprep.subr.bf16.mxu1 %v13730_v6  ;;  %v13770_v7 = vld [vmem:[%s20697_s5 + $0x380] ss:$16 sps:$4 sm:$0xff]   ;;  %v13775_v13 = vld [vmem:[%s20697_s5 + $0x984] ss:$16 sps:$4 sm:$0xff]   ;;  %v19302_v35 = vrot.slane %v8402_v25, %v18581_v18  ;;  %v19312_v6 = vcombine.high %v19084_v0, %v19084_v0 }
 0x588   :  { %v13778_v21 = vld [vmem:[%s20697_s5 + $0x364] ss:$16 sps:$4 sm:$0xff]   ;;  %v13773_v62 = vld [vmem:[%s20697_s5 + $0x980] ss:$16 sps:$4 sm:$0xff]  }
 0x589   :  { %v19164_v28 = vrot.slane %v8417_v26, %v18581_v18  ;;  %11198 = vmatpush1.bf16.msra.mxu0 %v13725_v44  ;;  %v13776_v33 = vld [vmem:[%s20697_s5 + $0x360] ss:$16 sps:$4 sm:$0xff]   ;;  %v13781_v4 = vld [vmem:[%s20697_s5 + $0x964] ss:$16 sps:$4 sm:$0xff]   ;;  %v8418_v44 = vcombine.high %v19302_v35, %v19302_v35 }
 0x58a   :  { %11077 = vmatpush1.bf16.msra.mxu1 %v13728_v53  ;;  %11199 = vmatprep.subr.bf16.mxu0 %v13733_v10  ;;  %v13784_v15 = vld [vmem:[%s20697_s5 + $0x344] ss:$16 sps:$4 sm:$0xff]   ;;  %v13779_v58 = vld [vmem:[%s20697_s5 + $0x960] ss:$16 sps:$4 sm:$0xff]   ;;  %v19324_v10 = vcombine.high %v19098_v37, %v19098_v37 }
 0x58b   :  { %11078 = vmatprep.subr.bf16.mxu1 %v13736_v17  ;;  %11223 = vmatprep.mubr.bf16.mxu0 %v19164_v28  ;;  %v13782_v48 = vld [vmem:[%s20697_s5 + $0x340] ss:$16 sps:$4 sm:$0xff]   ;;  %v13787_v59 = vld [vmem:[%s20697_s5 + $0x944] ss:$16 sps:$4 sm:$0xff]   ;;  %v19332_v17 = vrot.slane %v19147_v49, %v18581_v18 }
 0x58c   :  { %v13790_v9 = vld [vmem:[%s20697_s5 + $0x324] ss:$16 sps:$4 sm:$0xff]   ;;  %v13785_v39 = vld [vmem:[%s20697_s5 + $0x940] ss:$16 sps:$4 sm:$0xff]  }
 0x58d   :  { %11200 = vmatpush1.bf16.msra.mxu0 %v13731_v34  ;;  %v13788_v57 = vld [vmem:[%s20697_s5 + $0x320] ss:$16 sps:$4 sm:$0xff]   ;;  %v13793_v43 = vld [vmem:[%s20697_s5 + $0x924] ss:$16 sps:$4 sm:$0xff]  }
 0x58e   :  { %11079 = vmatpush1.bf16.msra.mxu1 %v13734_v61  ;;  %11201 = vmatprep.subr.bf16.mxu0 %v13739_v41  ;;  %v13796_v47 = vld [vmem:[%s20697_s5 + $0x304] ss:$16 sps:$4 sm:$0xff]   ;;  %v13791_v42 = vld [vmem:[%s20697_s5 + $0x920] ss:$16 sps:$4 sm:$0xff]   ;;  %v19342_v41 = vrot.slane %v8418_v44, %v18581_v18 }
 0x58f   :  { %11080 = vmatprep.subr.bf16.mxu1 %v13742_v63  ;;  %v13794_v27 = vld [vmem:[%s20697_s5 + $0x300] ss:$16 sps:$4 sm:$0xff]   ;;  %v13799_v16 = vld [vmem:[%s20697_s5 + $0x904] ss:$16 sps:$4 sm:$0xff]  }
 0x590   :  { %v13802_v20 = vld [vmem:[%s20697_s5 + $0x6e4] ss:$16 sps:$4 sm:$0xff]   ;;  %v13797_v56 = vld [vmem:[%s20697_s5 + $0x900] ss:$16 sps:$4 sm:$0xff]  }
 0x591   :  { %11202 = vmatpush1.bf16.msra.mxu0 %v13737_v51  ;;  %v13800_v2 = vld [vmem:[%s20697_s5 + $0x6e0] ss:$16 sps:$4 sm:$0xff]   ;;  %v13805_v22 = vld [vmem:[%s20697_s5 + $0xce4] ss:$16 sps:$4 sm:$0xff]  }
 0x592   :  { %11081 = vmatpush1.bf16.msra.mxu1 %v13740_v5  ;;  %11203 = vmatprep.subr.bf16.mxu0 %v13745_v1  ;;  %v13809_v53 = vld [vmem:[%s20697_s5 + $0x6c4] ss:$16 sps:$4 sm:$0xff]   ;;  %v13803_v26 = vld [vmem:[%s20697_s5 + $0xce0] ss:$16 sps:$4 sm:$0xff]  }
 0x593   :  { %11082 = vmatprep.subr.bf16.mxu1 %v13748_v55  ;;  %v13807_v34 = vld [vmem:[%s20697_s5 + $0x6c0] ss:$16 sps:$4 sm:$0xff]   ;;  %v13812_v61 = vld [vmem:[%s20697_s5 + $0xcc4] ss:$16 sps:$4 sm:$0xff]  }
 0x594   :  { %v13815_v49 = vld [vmem:[%s20697_s5 + $0x6a4] ss:$16 sps:$4 sm:$0xff]   ;;  %v13810_v63 = vld [vmem:[%s20697_s5 + $0xcc0] ss:$16 sps:$4 sm:$0xff]  }
 0x595   :  { %11204 = vmatpush1.bf16.msra.mxu0 %v13743_v45  ;;  %v13813_v51 = vld [vmem:[%s20697_s5 + $0x6a0] ss:$16 sps:$4 sm:$0xff]   ;;  %v13818_v5 = vld [vmem:[%s20697_s5 + $0xca4] ss:$16 sps:$4 sm:$0xff]  }
 0x596   :  { %11083 = vmatpush1.bf16.msra.mxu1 %v13746_v52  ;;  %11205 = vmatprep.subr.bf16.mxu0 %v13751_v60  ;;  %v13821_v1 = vld [vmem:[%s20697_s5 + $0x684] ss:$16 sps:$4 sm:$0xff]   ;;  %v13816_v55 = vld [vmem:[%s20697_s5 + $0xca0] ss:$16 sps:$4 sm:$0xff]  }
 0x597   :  { %11084 = vmatprep.subr.bf16.mxu1 %v13754_v54  ;;  %v13819_v45 = vld [vmem:[%s20697_s5 + $0x680] ss:$16 sps:$4 sm:$0xff]   ;;  %v13824_v52 = vld [vmem:[%s20697_s5 + $0xc84] ss:$16 sps:$4 sm:$0xff]  }
 0x598   :  { %v13827_v60 = vld [vmem:[%s20697_s5 + $0x664] ss:$16 sps:$4 sm:$0xff]   ;;  %v13822_v54 = vld [vmem:[%s20697_s5 + $0xc80] ss:$16 sps:$4 sm:$0xff]  }
 0x599   :  { %11206 = vmatpush1.bf16.msra.mxu0 %v13749_v31  ;;  %v13825_v31 = vld [vmem:[%s20697_s5 + $0x660] ss:$16 sps:$4 sm:$0xff]  }
 0x59a   :  { %11085 = vmatpush2.bf16.msra.mxu1 %v13752_v46  ;;  %11207 = vmatprep.subr.bf16.mxu0 %v13757_v38  ;;  %v13830_v46 = vld [vmem:[%s20697_s5 + $0xc64] ss:$16 sps:$4 sm:$0xff]   ;;  %v13867_v25 = vld [vmem:[%s20697_s5 + $0x780] ss:$16 sps:$4 sm:$0xff]  }
 0x59b   :  { %11086 = vmatprep.subr.bf16.mxu1 %v13760_v12  ;;  %v13833_v38 = vld [vmem:[%s20697_s5 + $0x644] ss:$16 sps:$4 sm:$0xff]   ;;  %v13828_v12 = vld [vmem:[%s20697_s5 + $0xc60] ss:$16 sps:$4 sm:$0xff]  }
 0x59c   :  { %v13879_v44 = vld [vmem:[%s20697_s5 + $0x740] ss:$16 sps:$4 sm:$0xff]  }
 0x59d   :  { %11208 = vmatpush2.bf16.msra.mxu0 %v13755_v50  ;;  %v13831_v50 = vld [vmem:[%s20697_s5 + $0x640] ss:$16 sps:$4 sm:$0xff]  }
 0x59e   :  { %11087 = vmatpush2.bf16.msra.mxu1 %v13758_v23  ;;  %11209 = vmatprep.subr.bf16.mxu0 %v13763_v29  ;;  %v13836_v23 = vld [vmem:[%s20697_s5 + $0xc44] ss:$16 sps:$4 sm:$0xff]  }
 0x59f   :  { %11088 = vmatprep.subr.bf16.mxu1 %v13766_v32  ;;  %v13839_v29 = vld [vmem:[%s20697_s5 + $0x624] ss:$16 sps:$4 sm:$0xff]   ;;  %v13834_v32 = vld [vmem:[%s20697_s5 + $0xc40] ss:$16 sps:$4 sm:$0xff]  }
 0x5a1   :  { %11210 = vmatpush2.bf16.msra.mxu0 %v13761_v14  ;;  %v13837_v14 = vld [vmem:[%s20697_s5 + $0x620] ss:$16 sps:$4 sm:$0xff]  }
 0x5a2   :  { %11089 = vmatpush2.bf16.msra.mxu1 %v13764_v19  ;;  %11211 = vmatprep.subr.bf16.mxu0 %v13769_v24  ;;  %v13842_v19 = vld [vmem:[%s20697_s5 + $0xc24] ss:$16 sps:$4 sm:$0xff]  }
 0x5a3   :  { %11090 = vmatprep.subr.bf16.mxu1 %v13772_v30  ;;  %v13845_v24 = vld [vmem:[%s20697_s5 + $0x604] ss:$16 sps:$4 sm:$0xff]   ;;  %v13840_v30 = vld [vmem:[%s20697_s5 + $0xc20] ss:$16 sps:$4 sm:$0xff]  }
 0x5a5   :  { %11212 = vmatpush2.bf16.msra.mxu0 %v13767_v40  ;;  %v13843_v40 = vld [vmem:[%s20697_s5 + $0x600] ss:$16 sps:$4 sm:$0xff]  }
 0x5a6   :  { %11091 = vmatpush2.bf16.msra.mxu1 %v13770_v7  ;;  %11213 = vmatprep.subr.bf16.mxu0 %v13775_v13  ;;  %v13848_v7 = vld [vmem:[%s20697_s5 + $0xc04] ss:$16 sps:$4 sm:$0xff]  }
 0x5a7   :  { %11092 = vmatprep.subr.bf16.mxu1 %v13778_v21  ;;  %v13851_v13 = vld [vmem:[%s20697_s5 + $0x7e4] ss:$16 sps:$4 sm:$0xff]   ;;  %v13846_v21 = vld [vmem:[%s20697_s5 + $0xc00] ss:$16 sps:$4 sm:$0xff]  }
 0x5a9   :  { %11214 = vmatpush2.bf16.msra.mxu0 %v13773_v62  ;;  %v13849_v62 = vld [vmem:[%s20697_s5 + $0x7e0] ss:$16 sps:$4 sm:$0xff]  }
 0x5aa   :  { %11093 = vmatpush2.bf16.msra.mxu1 %v13776_v33  ;;  %11215 = vmatprep.subr.bf16.mxu0 %v13781_v4  ;;  %v13854_v33 = vld [vmem:[%s20697_s5 + $0xde4] ss:$16 sps:$4 sm:$0xff]  }
 0x5ab   :  { %11094 = vmatprep.subr.bf16.mxu1 %v13784_v15  ;;  %v13857_v4 = vld [vmem:[%s20697_s5 + $0x7c4] ss:$16 sps:$4 sm:$0xff]   ;;  %v13852_v15 = vld [vmem:[%s20697_s5 + $0xde0] ss:$16 sps:$4 sm:$0xff]  }
 0x5ad   :  { %11216 = vmatpush2.bf16.msra.mxu0 %v13779_v58  ;;  %v13855_v58 = vld [vmem:[%s20697_s5 + $0x7c0] ss:$16 sps:$4 sm:$0xff]  }
 0x5ae   :  { %11095 = vmatpush2.bf16.msra.mxu1 %v13782_v48  ;;  %11217 = vmatprep.subr.bf16.mxu0 %v13787_v59  ;;  %v13860_v48 = vld [vmem:[%s20697_s5 + $0xdc4] ss:$16 sps:$4 sm:$0xff]  }
 0x5af   :  { %11096 = vmatprep.subr.bf16.mxu1 %v13790_v9  ;;  %v13863_v59 = vld [vmem:[%s20697_s5 + $0x7a4] ss:$16 sps:$4 sm:$0xff]   ;;  %v13858_v9 = vld [vmem:[%s20697_s5 + $0xdc0] ss:$16 sps:$4 sm:$0xff]  }
 0x5b1   :  { %11218 = vmatpush2.bf16.msra.mxu0 %v13785_v39  ;;  %v13861_v39 = vld [vmem:[%s20697_s5 + $0x7a0] ss:$16 sps:$4 sm:$0xff]  }
 0x5b2   :  { %11097 = vmatpush2.bf16.msra.mxu1 %v13788_v57  ;;  %11219 = vmatprep.subr.bf16.mxu0 %v13793_v43  ;;  %v13866_v57 = vld [vmem:[%s20697_s5 + $0xda4] ss:$16 sps:$4 sm:$0xff]  }
 0x5b3   :  { %11098 = vmatprep.subr.bf16.mxu1 %v13796_v47  ;;  %v13869_v43 = vld [vmem:[%s20697_s5 + $0x784] ss:$16 sps:$4 sm:$0xff]   ;;  %v13864_v47 = vld [vmem:[%s20697_s5 + $0xda0] ss:$16 sps:$4 sm:$0xff]  }
 0x5b5   :  { %11220 = vmatpush2.bf16.msra.mxu0 %v13791_v42  ;;  %v13872_v42 = vld [vmem:[%s20697_s5 + $0xd84] ss:$16 sps:$4 sm:$0xff]  }
 0x5b6   :  { %11099 = vmatpush2.bf16.msra.mxu1 %v13794_v27  ;;  %11221 = vmatprep.subr.bf16.mxu0 %v13799_v16  ;;  %v13875_v27 = vld [vmem:[%s20697_s5 + $0x764] ss:$16 sps:$4 sm:$0xff]   ;;  %v13870_v16 = vld [vmem:[%s20697_s5 + $0xd80] ss:$16 sps:$4 sm:$0xff]  }
 0x5b7   :  { %11150 = vmatprep.subr.bf16.mxu1 %v13802_v20  ;;  %v13873_v20 = vld [vmem:[%s20697_s5 + $0x760] ss:$16 sps:$4 sm:$0xff]  }
 0x5b9   :  { %11222 = vmatpush2.bf16.msra.mxu0 %v13797_v56  ;;  %11101 = vmatmul.mubr.bf16.vlgmr.msra.gmra.mxu1 %v19312_v6  ;;  %v13878_v56 = vld [vmem:[%s20697_s5 + $0xd64] ss:$16 sps:$4 sm:$0xff]  }
 0x5ba   :  { %11151 = vmatpush1.bf16.msra.mxu1 %v13800_v2  ;;  %11182 = vmatprep.mubr.bf16.mxu1 %v19324_v10  ;;  %v13881_v2 = vld [vmem:[%s20697_s5 + $0x744] ss:$16 sps:$4 sm:$0xff]  }
 0x5bb   :  { %11273 = vmatprep.subr.bf16.mxu0 %v13805_v22  ;;  %11152 = vmatprep.subr.bf16.mxu1 %v13809_v53  ;;  %v13876_v22 = vld [vmem:[%s20697_s5 + $0xd60] ss:$16 sps:$4 sm:$0xff]   ;;  %v13884_v53 = vld [vmem:[%s20697_s5 + $0xd44] ss:$16 sps:$4 sm:$0xff]  }
 0x5bc   :  { %11224 = vmatmul.mubr.bf16.vlgmr.msra.gmra.mxu0 %v19332_v17 }
 0x5bd   :  { %11274 = vmatpush1.bf16.msra.mxu0 %v13803_v26  ;;  %11305 = vmatprep.mubr.bf16.mxu0 %v19342_v41  ;;  %v13887_v26 = vld [vmem:[%s20697_s5 + $0x724] ss:$16 sps:$4 sm:$0xff]  }
 0x5be   :  { %11153 = vmatpush1.bf16.msra.mxu1 %v13807_v34  ;;  %11275 = vmatprep.subr.bf16.mxu0 %v13812_v61  ;;  %v13882_v34 = vld [vmem:[%s20697_s5 + $0xd40] ss:$16 sps:$4 sm:$0xff]  }
 0x5bf   :  { %11154 = vmatprep.subr.bf16.mxu1 %v13815_v49  ;;  %v13885_v61 = vld [vmem:[%s20697_s5 + $0x720] ss:$16 sps:$4 sm:$0xff]   ;;  %v13890_v49 = vld [vmem:[%s20697_s5 + $0xd24] ss:$16 sps:$4 sm:$0xff]  }
 0x5c1   :  { %11276 = vmatpush1.bf16.msra.mxu0 %v13810_v63  ;;  %v13893_v63 = vld [vmem:[%s20697_s5 + $0x704] ss:$16 sps:$4 sm:$0xff]  }
 0x5c2   :  { %11155 = vmatpush1.bf16.msra.mxu1 %v13813_v51  ;;  %11277 = vmatprep.subr.bf16.mxu0 %v13818_v5  ;;  %v13888_v51 = vld [vmem:[%s20697_s5 + $0xd20] ss:$16 sps:$4 sm:$0xff]  }
 0x5c3   :  { %11156 = vmatprep.subr.bf16.mxu1 %v13821_v1  ;;  %v13891_v5 = vld [vmem:[%s20697_s5 + $0x700] ss:$16 sps:$4 sm:$0xff]   ;;  %v13896_v1 = vld [vmem:[%s20697_s5 + $0xd04] ss:$16 sps:$4 sm:$0xff]  }
 0x5c5   :  { %11278 = vmatpush1.bf16.msra.mxu0 %v13816_v55  ;;  %v13899_v55 = vld [vmem:[%s20697_s5 + $0xae4] ss:$16 sps:$4 sm:$0xff]  }
 0x5c6   :  { %11157 = vmatpush1.bf16.msra.mxu1 %v13819_v45  ;;  %11279 = vmatprep.subr.bf16.mxu0 %v13824_v52  ;;  %v13894_v45 = vld [vmem:[%s20697_s5 + $0xd00] ss:$16 sps:$4 sm:$0xff]  }
 0x5c7   :  { %11158 = vmatprep.subr.bf16.mxu1 %v13827_v60  ;;  %v13897_v52 = vld [vmem:[%s20697_s5 + $0xae0] ss:$16 sps:$4 sm:$0xff]   ;;  %v19525_v60 = vcombine.high %v19106_v3, %v19106_v3 }
 0x5c9   :  { %11280 = vmatpush1.bf16.msra.mxu0 %v13822_v54  ;;  %v13902_v54 = vld [vmem:[%s20697_s5 + $0xec] ss:$16 sps:$4 sm:$0xff]  }
 0x5ca   :  { %11159 = vmatpush1.bf16.msra.mxu1 %v13825_v31  ;;  %11281 = vmatprep.subr.bf16.mxu0 %v13830_v46  ;;  %v13905_v31 = vld [vmem:[%s20697_s5 + $0xac4] ss:$16 sps:$4 sm:$0xff]   ;;  %v19535_v46 = vcombine.high %v19164_v28, %v19164_v28 }
 0x5cb   :  { %11160 = vmatprep.subr.bf16.mxu1 %v13833_v38  ;;  %v13900_v38 = vld [vmem:[%s20697_s5 + $0xe8] ss:$16 sps:$4 sm:$0xff]  }
 0x5cd   :  { %11282 = vmatpush1.bf16.msra.mxu0 %v13828_v12  ;;  %v19543_v12 = vrot.slane %v19302_v35, %v18581_v18  ;;  %v13906_v18 = vld [vmem:[%s20697_s5 + $0xc8] ss:$16 sps:$4 sm:$0xff]   ;;  %v13909_v35 = vld [vmem:[%s20697_s5 + $0xaa0] ss:$16 sps:$4 sm:$0xff]  }
 0x5ce   :  { %11161 = vmatpush1.bf16.msra.mxu1 %v13831_v50  ;;  %11283 = vmatprep.subr.bf16.mxu0 %v13836_v23  ;;  %v13903_v50 = vld [vmem:[%s20697_s5 + $0xac0] ss:$16 sps:$4 sm:$0xff]   ;;  %v13908_v23 = vld [vmem:[%s20697_s5 + $0xcc] ss:$16 sps:$4 sm:$0xff]  }
 0x5cf   :  { %11162 = vmatprep.subr.bf16.mxu1 %v13839_v29  ;;  %v13911_v29 = vld [vmem:[%s20697_s5 + $0xaa4] ss:$16 sps:$4 sm:$0xff]  }
 0x5d1   :  { %11284 = vmatpush1.bf16.msra.mxu0 %v13834_v32  ;;  %v13914_v32 = vld [vmem:[%s20697_s5 + $0xac] ss:$16 sps:$4 sm:$0xff]  }
 0x5d2   :  { %11163 = vmatpush1.bf16.msra.mxu1 %v13837_v14  ;;  %11285 = vmatprep.subr.bf16.mxu0 %v13842_v19  ;;  %v13917_v14 = vld [vmem:[%s20697_s5 + $0xa84] ss:$16 sps:$4 sm:$0xff]   ;;  %v13915_v19 = vld [vmem:[%s20697_s5 + $0xa80] ss:$16 sps:$4 sm:$0xff]  }
 0x5d3   :  { %11164 = vmatprep.subr.bf16.mxu1 %v13845_v24  ;;  %v13920_v24 = vld [vmem:[%s20697_s5 + $0x8c] ss:$16 sps:$4 sm:$0xff]  }
 0x5d5   :  { %11286 = vmatpush1.bf16.msra.mxu0 %v13840_v30  ;;  %v13923_v30 = vld [vmem:[%s20697_s5 + $0xa64] ss:$16 sps:$4 sm:$0xff]  }
 0x5d6   :  { %11165 = vmatpush1.bf16.msra.mxu1 %v13843_v40  ;;  %11287 = vmatprep.subr.bf16.mxu0 %v13848_v7  ;;  %v13918_v40 = vld [vmem:[%s20697_s5 + $0x88] ss:$16 sps:$4 sm:$0xff]   ;;  %v13921_v7 = vld [vmem:[%s20697_s5 + $0xa60] ss:$16 sps:$4 sm:$0xff]  }
 0x5d7   :  { %11166 = vmatprep.subr.bf16.mxu1 %v13851_v13  ;;  %v13926_v13 = vld [vmem:[%s20697_s5 + $0x6c] ss:$16 sps:$4 sm:$0xff]  }
 0x5d9   :  { %11288 = vmatpush1.bf16.msra.mxu0 %v13846_v21  ;;  %v13929_v21 = vld [vmem:[%s20697_s5 + $0xa44] ss:$16 sps:$4 sm:$0xff]  }
 0x5da   :  { %11167 = vmatpush2.bf16.msra.mxu1 %v13849_v62  ;;  %11289 = vmatprep.subr.bf16.mxu0 %v13854_v33  ;;  %v13924_v62 = vld [vmem:[%s20697_s5 + $0x68] ss:$16 sps:$4 sm:$0xff]   ;;  %v13927_v33 = vld [vmem:[%s20697_s5 + $0xa40] ss:$16 sps:$4 sm:$0xff]  }
 0x5db   :  { %11168 = vmatprep.subr.bf16.mxu1 %v13857_v4  ;;  %v13932_v4 = vld [vmem:[%s20697_s5 + $0x4c] ss:$16 sps:$4 sm:$0xff]  }
 0x5dd   :  { %11290 = vmatpush2.bf16.msra.mxu0 %v13852_v15  ;;  %v13935_v15 = vld [vmem:[%s20697_s5 + $0xa24] ss:$16 sps:$4 sm:$0xff]  }
 0x5de   :  { %11169 = vmatpush2.bf16.msra.mxu1 %v13855_v58  ;;  %11291 = vmatprep.subr.bf16.mxu0 %v13860_v48  ;;  %v13930_v58 = vld [vmem:[%s20697_s5 + $0x48] ss:$16 sps:$4 sm:$0xff]   ;;  %v13933_v48 = vld [vmem:[%s20697_s5 + $0xa20] ss:$16 sps:$4 sm:$0xff]  }
 0x5df   :  { %11170 = vmatprep.subr.bf16.mxu1 %v13863_v59  ;;  %v13938_v59 = vld [vmem:[%s20697_s5 + $0x2c] ss:$16 sps:$4 sm:$0xff]  }
 0x5e1   :  { %11292 = vmatpush2.bf16.msra.mxu0 %v13858_v9  ;;  %v13941_v9 = vld [vmem:[%s20697_s5 + $0xa04] ss:$16 sps:$4 sm:$0xff]  }
 0x5e2   :  { %11171 = vmatpush2.bf16.msra.mxu1 %v13861_v39  ;;  %11293 = vmatprep.subr.bf16.mxu0 %v13866_v57  ;;  %v13936_v39 = vld [vmem:[%s20697_s5 + $0x28] ss:$16 sps:$4 sm:$0xff]   ;;  %v13939_v57 = vld [vmem:[%s20697_s5 + $0xa00] ss:$16 sps:$4 sm:$0xff]  }
 0x5e3   :  { %11172 = vmatprep.subr.bf16.mxu1 %v13869_v43  ;;  %v13944_v43 = vld [vmem:[%s20697_s5 + $0xc] ss:$16 sps:$4 sm:$0xff]  }
 0x5e5   :  { %11294 = vmatpush2.bf16.msra.mxu0 %v13864_v47  ;;  %v13947_v47 = vld [vmem:[%s20697_s5 + $0xbe4] ss:$16 sps:$4 sm:$0xff]  }
 0x5e6   :  { %11173 = vmatpush2.bf16.msra.mxu1 %v13867_v25  ;;  %11295 = vmatprep.subr.bf16.mxu0 %v13872_v42  ;;  %v13942_v25 = vld [vmem:[%s20697_s5 + $0x8] ss:$16 sps:$4 sm:$0xff]   ;;  %v13945_v42 = vld [vmem:[%s20697_s5 + $0xbe0] ss:$16 sps:$4 sm:$0xff]  }
 0x5e7   :  { %11174 = vmatprep.subr.bf16.mxu1 %v13875_v27  ;;  %v13950_v27 = vld [vmem:[%s20697_s5 + $0x1ec] ss:$16 sps:$4 sm:$0xff]  }
 0x5e9   :  { %11296 = vmatpush2.bf16.msra.mxu0 %v13870_v16  ;;  %v13953_v16 = vld [vmem:[%s20697_s5 + $0xbc4] ss:$16 sps:$4 sm:$0xff]  }
 0x5ea   :  { %11175 = vmatpush2.bf16.msra.mxu1 %v13873_v20  ;;  %11297 = vmatprep.subr.bf16.mxu0 %v13878_v56  ;;  %v13948_v20 = vld [vmem:[%s20697_s5 + $0x1e8] ss:$16 sps:$4 sm:$0xff]   ;;  %v13951_v56 = vld [vmem:[%s20697_s5 + $0xbc0] ss:$16 sps:$4 sm:$0xff]  }
 0x5eb   :  { %11176 = vmatprep.subr.bf16.mxu1 %v13881_v2  ;;  %v13956_v2 = vld [vmem:[%s20697_s5 + $0x1cc] ss:$16 sps:$4 sm:$0xff]  }
 0x5ed   :  { %11298 = vmatpush2.bf16.msra.mxu0 %v13876_v22  ;;  %v13959_v22 = vld [vmem:[%s20697_s5 + $0xba4] ss:$16 sps:$4 sm:$0xff]  }
 0x5ee   :  { %11177 = vmatpush2.bf16.msra.mxu1 %v13879_v44  ;;  %11299 = vmatprep.subr.bf16.mxu0 %v13884_v53  ;;  %v13954_v44 = vld [vmem:[%s20697_s5 + $0x1c8] ss:$16 sps:$4 sm:$0xff]   ;;  %v13957_v53 = vld [vmem:[%s20697_s5 + $0xba0] ss:$16 sps:$4 sm:$0xff]  }
 0x5ef   :  { %11178 = vmatprep.subr.bf16.mxu1 %v13887_v26  ;;  %v13962_v26 = vld [vmem:[%s20697_s5 + $0x1ac] ss:$16 sps:$4 sm:$0xff]  }
 0x5f1   :  { %11300 = vmatpush2.bf16.msra.mxu0 %v13882_v34  ;;  %v13965_v34 = vld [vmem:[%s20697_s5 + $0xb84] ss:$16 sps:$4 sm:$0xff]  }
 0x5f2   :  { %11179 = vmatpush2.bf16.msra.mxu1 %v13885_v61  ;;  %11301 = vmatprep.subr.bf16.mxu0 %v13890_v49  ;;  %v13960_v61 = vld [vmem:[%s20697_s5 + $0x1a8] ss:$16 sps:$4 sm:$0xff]   ;;  %v13963_v49 = vld [vmem:[%s20697_s5 + $0xb80] ss:$16 sps:$4 sm:$0xff]  }
 0x5f3   :  { %11180 = vmatprep.subr.bf16.mxu1 %v13893_v63  ;;  %v13968_v63 = vld [vmem:[%s20697_s5 + $0x18c] ss:$16 sps:$4 sm:$0xff]  }
 0x5f5   :  { %11302 = vmatpush2.bf16.msra.mxu0 %v13888_v51  ;;  %v13971_v51 = vld [vmem:[%s20697_s5 + $0xb64] ss:$16 sps:$4 sm:$0xff]  }
 0x5f6   :  { %11181 = vmatpush2.bf16.msra.mxu1 %v13891_v5  ;;  %11303 = vmatprep.subr.bf16.mxu0 %v13896_v1  ;;  %v13966_v5 = vld [vmem:[%s20697_s5 + $0x188] ss:$16 sps:$4 sm:$0xff]   ;;  %v13969_v1 = vld [vmem:[%s20697_s5 + $0xb60] ss:$16 sps:$4 sm:$0xff]  }
 0x5f7   :  { %11232 = vmatprep.subr.bf16.mxu1 %v13899_v55  ;;  %v13974_v55 = vld [vmem:[%s20697_s5 + $0x16c] ss:$16 sps:$4 sm:$0xff]  }
 0x5f9   :  { %11304 = vmatpush2.bf16.msra.mxu0 %v13894_v45  ;;  %11183 = vmatmul.mubr.bf16.vlgmr.msra.gmra.mxu1 %v19525_v60  ;;  %v13977_v45 = vld [vmem:[%s20697_s5 + $0xb44] ss:$16 sps:$4 sm:$0xff]  }
 0x5fa   :  { %11233 = vmatpush1.bf16.msra.mxu1 %v13897_v52  ;;  %11264 = vmatprep.mubr.bf16.mxu1 %v19535_v46  ;;  %v13972_v52 = vld [vmem:[%s20697_s5 + $0x168] ss:$16 sps:$4 sm:$0xff]  }
 0x5fb   :  { %11355 = vmatprep.subr.bf16.mxu0 %v13902_v54  ;;  %11234 = vmatprep.subr.bf16.mxu1 %v13905_v31  ;;  %v13975_v54 = vld [vmem:[%s20697_s5 + $0xb40] ss:$16 sps:$4 sm:$0xff]   ;;  %v13980_v31 = vld [vmem:[%s20697_s5 + $0x14c] ss:$16 sps:$4 sm:$0xff]  }
 0x5fc   :  { %11306 = vmatmul.mubr.bf16.vlgmr.msra.gmra.mxu0 %v19543_v12 }
 0x5fd   :  { %11356 = vmatpush1.bf16.msra.mxu0 %v13900_v38  ;;  %11387 = vmatprep.mubr.bf16.mxu0 %v19077_v36  ;;  %v13912_v36 = vld [vmem:[%s20697_s5 + $0xa8] ss:$16 sps:$4 sm:$0xff]   ;;  %v13983_v38 = vld [vmem:[%s20697_s5 + $0xb24] ss:$16 sps:$4 sm:$0xff]  }
 0x5fe   :  { %11235 = vmatpush1.bf16.msra.mxu1 %v13903_v50  ;;  %11357 = vmatprep.subr.bf16.mxu0 %v13908_v23  ;;  %v13978_v50 = vld [vmem:[%s20697_s5 + $0x148] ss:$16 sps:$4 sm:$0xff]   ;;  %v13981_v23 = vld [vmem:[%s20697_s5 + $0xb20] ss:$16 sps:$4 sm:$0xff]  }
 0x5ff   :  { %11236 = vmatprep.subr.bf16.mxu1 %v13911_v29  ;;  %v13986_v29 = vld [vmem:[%s20697_s5 + $0x12c] ss:$16 sps:$4 sm:$0xff]  }
 0x601   :  { %11358 = vmatpush1.bf16.msra.mxu0 %v13906_v18  ;;  %v13989_v18 = vld [vmem:[%s20697_s5 + $0xb04] ss:$16 sps:$4 sm:$0xff]  }
 0x602   :  { %11237 = vmatpush1.bf16.msra.mxu1 %v13909_v35  ;;  %11359 = vmatprep.subr.bf16.mxu0 %v13914_v32  ;;  %v13984_v35 = vld [vmem:[%s20697_s5 + $0x128] ss:$16 sps:$4 sm:$0xff]   ;;  %v13987_v32 = vld [vmem:[%s20697_s5 + $0xb00] ss:$16 sps:$4 sm:$0xff]  }
 0x603   :  { %11238 = vmatprep.subr.bf16.mxu1 %v13917_v14  ;;  %v13992_v14 = vld [vmem:[%s20697_s5 + $0x10c] ss:$16 sps:$4 sm:$0xff]  }
 0x605   :  { %11360 = vmatpush1.bf16.msra.mxu0 %v13912_v36  ;;  %v13995_v36 = vld [vmem:[%s20697_s5 + $0xee4] ss:$16 sps:$4 sm:$0xff]  }
 0x606   :  { %11239 = vmatpush1.bf16.msra.mxu1 %v13915_v19  ;;  %11361 = vmatprep.subr.bf16.mxu0 %v13920_v24  ;;  %v13990_v19 = vld [vmem:[%s20697_s5 + $0x108] ss:$16 sps:$4 sm:$0xff]   ;;  %v13993_v24 = vld [vmem:[%s20697_s5 + $0xee0] ss:$16 sps:$4 sm:$0xff]  }
 0x607   :  { %11240 = vmatprep.subr.bf16.mxu1 %v13923_v30  ;;  %v19733_v30 = vcombine.high %v19332_v17, %v19332_v17 }
 0x609   :  { %11362 = vmatpush1.bf16.msra.mxu0 %v13918_v40  ;;  %v13998_v40 = vld [vmem:[%s20697_s5 + $0x4ec] ss:$16 sps:$4 sm:$0xff]  }
 0x60a   :  { %11241 = vmatpush1.bf16.msra.mxu1 %v13921_v7  ;;  %11363 = vmatprep.subr.bf16.mxu0 %v13926_v13  ;;  %v14001_v7 = vld [vmem:[%s20697_s5 + $0xec4] ss:$16 sps:$4 sm:$0xff]   ;;  %v19743_v13 = vcombine.high %v19342_v41, %v19342_v41 }
 0x60b   :  { %11242 = vmatprep.subr.bf16.mxu1 %v13929_v21 }
 0x60d   :  { %11364 = vmatpush1.bf16.msra.mxu0 %v13924_v62  ;;  %v13996_v62 = vld [vmem:[%s20697_s5 + $0x4e8] ss:$16 sps:$4 sm:$0xff]  }
 0x60e   :  { %11243 = vmatpush1.bf16.msra.mxu1 %v13927_v33  ;;  %11365 = vmatprep.subr.bf16.mxu0 %v13932_v4  ;;  %v13999_v33 = vld [vmem:[%s20697_s5 + $0xec0] ss:$16 sps:$4 sm:$0xff]   ;;  %v14004_v4 = vld [vmem:[%s20697_s5 + $0x4cc] ss:$16 sps:$4 sm:$0xff]  }
 0x60f   :  { %11244 = vmatprep.subr.bf16.mxu1 %v13935_v15 }
 0x611   :  { %11366 = vmatpush1.bf16.msra.mxu0 %v13930_v58  ;;  %v14007_v58 = vld [vmem:[%s20697_s5 + $0xea4] ss:$16 sps:$4 sm:$0xff]  }
 0x612   :  { %11245 = vmatpush1.bf16.msra.mxu1 %v13933_v48  ;;  %11367 = vmatprep.subr.bf16.mxu0 %v13938_v59 }
 0x613   :  { %11246 = vmatprep.subr.bf16.mxu1 %v13941_v9  ;;  %v14002_v9 = vld [vmem:[%s20697_s5 + $0x4c8] ss:$16 sps:$4 sm:$0xff]  }
 0x615   :  { %11368 = vmatpush1.bf16.msra.mxu0 %v13936_v39 }
 0x616   :  { %11247 = vmatpush1.bf16.msra.mxu1 %v13939_v57  ;;  %11369 = vmatprep.subr.bf16.mxu0 %v13944_v43  ;;  %v14005_v57 = vld [vmem:[%s20697_s5 + $0xea0] ss:$16 sps:$4 sm:$0xff]  }
 0x617   :  { %11248 = vmatprep.subr.bf16.mxu1 %v13947_v47 }
 0x619   :  { %11370 = vmatpush1.bf16.msra.mxu0 %v13942_v25  ;;  %v14008_v25 = vld [vmem:[%s20697_s5 + $0x4a8] ss:$16 sps:$4 sm:$0xff]  }
 0x61a   :  { %11249 = vmatpush2.bf16.msra.mxu1 %v13945_v42  ;;  %11371 = vmatprep.subr.bf16.mxu0 %v13950_v27  ;;  %v14011_v27 = vld [vmem:[%s20697_s5 + $0xe80] ss:$16 sps:$4 sm:$0xff]  }
 0x61b   :  { %11250 = vmatprep.subr.bf16.mxu1 %v13953_v16  ;;  %v14016_v16 = vld [vmem:[%s20697_s5 + $0x48c] ss:$16 sps:$4 sm:$0xff]  }
 0x61d   :  { %11372 = vmatpush2.bf16.msra.mxu0 %v13948_v20  ;;  %v14019_v20 = vld [vmem:[%s20697_s5 + $0xe64] ss:$16 sps:$4 sm:$0xff]  }
 0x61e   :  { %11251 = vmatpush2.bf16.msra.mxu1 %v13951_v56  ;;  %11373 = vmatprep.subr.bf16.mxu0 %v13956_v2  ;;  %v14014_v56 = vld [vmem:[%s20697_s5 + $0x488] ss:$16 sps:$4 sm:$0xff]   ;;  %v14017_v2 = vld [vmem:[%s20697_s5 + $0xe60] ss:$16 sps:$4 sm:$0xff]  }
 0x61f   :  { %11252 = vmatprep.subr.bf16.mxu1 %v13959_v22  ;;  %v14022_v22 = vld [vmem:[%s20697_s5 + $0x46c] ss:$16 sps:$4 sm:$0xff]  }
 0x621   :  { %11374 = vmatpush2.bf16.msra.mxu0 %v13954_v44  ;;  %v14025_v44 = vld [vmem:[%s20697_s5 + $0xe44] ss:$16 sps:$4 sm:$0xff]  }
 0x622   :  { %11253 = vmatpush2.bf16.msra.mxu1 %v13957_v53  ;;  %11375 = vmatprep.subr.bf16.mxu0 %v13962_v26  ;;  %v14020_v53 = vld [vmem:[%s20697_s5 + $0x468] ss:$16 sps:$4 sm:$0xff]   ;;  %v14023_v26 = vld [vmem:[%s20697_s5 + $0xe40] ss:$16 sps:$4 sm:$0xff]  }
 0x623   :  { %11254 = vmatprep.subr.bf16.mxu1 %v13965_v34  ;;  %v14028_v34 = vld [vmem:[%s20697_s5 + $0x44c] ss:$16 sps:$4 sm:$0xff]  }
 0x625   :  { %11376 = vmatpush2.bf16.msra.mxu0 %v13960_v61  ;;  %v14031_v61 = vld [vmem:[%s20697_s5 + $0xe24] ss:$16 sps:$4 sm:$0xff]  }
 0x626   :  { %11255 = vmatpush2.bf16.msra.mxu1 %v13963_v49  ;;  %11377 = vmatprep.subr.bf16.mxu0 %v13968_v63  ;;  %v14026_v49 = vld [vmem:[%s20697_s5 + $0x448] ss:$16 sps:$4 sm:$0xff]   ;;  %v14029_v63 = vld [vmem:[%s20697_s5 + $0xe20] ss:$16 sps:$4 sm:$0xff]  }
 0x627   :  { %11256 = vmatprep.subr.bf16.mxu1 %v13971_v51  ;;  %v14034_v51 = vld [vmem:[%s20697_s5 + $0x42c] ss:$16 sps:$4 sm:$0xff]  }
 0x629   :  { %11378 = vmatpush2.bf16.msra.mxu0 %v13966_v5  ;;  %v14037_v5 = vld [vmem:[%s20697_s5 + $0xe04] ss:$16 sps:$4 sm:$0xff]  }
 0x62a   :  { %11257 = vmatpush2.bf16.msra.mxu1 %v13969_v1  ;;  %11379 = vmatprep.subr.bf16.mxu0 %v13974_v55  ;;  %v14032_v1 = vld [vmem:[%s20697_s5 + $0x428] ss:$16 sps:$4 sm:$0xff]   ;;  %v14035_v55 = vld [vmem:[%s20697_s5 + $0xe00] ss:$16 sps:$4 sm:$0xff]  }
 0x62b   :  { %11258 = vmatprep.subr.bf16.mxu1 %v13977_v45  ;;  %v14040_v45 = vld [vmem:[%s20697_s5 + $0x40c] ss:$16 sps:$4 sm:$0xff]  }
 0x62d   :  { %11380 = vmatpush2.bf16.msra.mxu0 %v13972_v52  ;;  %v14043_v52 = vld [vmem:[%s20697_s5 + $0xfe4] ss:$16 sps:$4 sm:$0xff]  }
 0x62e   :  { %11259 = vmatpush2.bf16.msra.mxu1 %v13975_v54  ;;  %11381 = vmatprep.subr.bf16.mxu0 %v13980_v31  ;;  %v14038_v54 = vld [vmem:[%s20697_s5 + $0x408] ss:$16 sps:$4 sm:$0xff]   ;;  %v14041_v31 = vld [vmem:[%s20697_s5 + $0xfe0] ss:$16 sps:$4 sm:$0xff]  }
 0x62f   :  { %11260 = vmatprep.subr.bf16.mxu1 %v13983_v38  ;;  %v14046_v38 = vld [vmem:[%s20697_s5 + $0x5ec] ss:$16 sps:$4 sm:$0xff]  }
 0x631   :  { %11382 = vmatpush2.bf16.msra.mxu0 %v13978_v50  ;;  %v14049_v50 = vld [vmem:[%s20697_s5 + $0xfc4] ss:$16 sps:$4 sm:$0xff]  }
 0x632   :  { %11261 = vmatpush2.bf16.msra.mxu1 %v13981_v23  ;;  %11383 = vmatprep.subr.bf16.mxu0 %v13986_v29  ;;  %v14044_v23 = vld [vmem:[%s20697_s5 + $0x5e8] ss:$16 sps:$4 sm:$0xff]   ;;  %v14047_v29 = vld [vmem:[%s20697_s5 + $0xfc0] ss:$16 sps:$4 sm:$0xff]  }
 0x633   :  { %11262 = vmatprep.subr.bf16.mxu1 %v13989_v18  ;;  %v14052_v18 = vld [vmem:[%s20697_s5 + $0x5cc] ss:$16 sps:$4 sm:$0xff]  }
 0x635   :  { %11384 = vmatpush2.bf16.msra.mxu0 %v13984_v35  ;;  %v14055_v35 = vld [vmem:[%s20697_s5 + $0xfa4] ss:$16 sps:$4 sm:$0xff]  }
 0x636   :  { %11263 = vmatpush2.bf16.msra.mxu1 %v13987_v32  ;;  %11385 = vmatprep.subr.bf16.mxu0 %v13992_v14  ;;  %v14050_v32 = vld [vmem:[%s20697_s5 + $0x5c8] ss:$16 sps:$4 sm:$0xff]   ;;  %v14053_v14 = vld [vmem:[%s20697_s5 + $0xfa0] ss:$16 sps:$4 sm:$0xff]  }
 0x637   :  { %11314 = vmatprep.subr.bf16.mxu1 %v13995_v36  ;;  %v14058_v36 = vld [vmem:[%s20697_s5 + $0x5ac] ss:$16 sps:$4 sm:$0xff]  }
 0x639   :  { %11386 = vmatpush2.bf16.msra.mxu0 %v13990_v19  ;;  %11265 = vmatmul.mubr.bf16.vlgmr.msra.gmra.mxu1 %v19733_v30  ;;  %v19746_v21 = vpop.f32.mrf.mxu1  ;;  %v14061_v19 = vld [vmem:[%s20697_s5 + $0xf84] ss:$16 sps:$4 sm:$0xff]  }
 0x63a   :  { %11315 = vmatpush1.bf16.msra.mxu1 %v13993_v24  ;;  %11346 = vmatprep.mubr.bf16.mxu1 %v19743_v13  ;;  %v14056_v24 = vld [vmem:[%s20697_s5 + $0x5a8] ss:$16 sps:$4 sm:$0xff]  }
 0x63b   :  { %11437 = vmatprep.subr.bf16.mxu0 %v13998_v40  ;;  %v19758_v15 = vpop.f32.mrf.mxu1  ;;  %11316 = vmatprep.subr.bf16.mxu1 %v14001_v7  ;;  %v14059_v40 = vld [vmem:[%s20697_s5 + $0xf80] ss:$16 sps:$4 sm:$0xff]   ;;  %v14064_v7 = vld [vmem:[%s20697_s5 + $0x58c] ss:$16 sps:$4 sm:$0xff]  }
 0x63c   :  { %11388 = vmatmul.mubr.bf16.vlgmr.msra.gmra.mxu0 %v19084_v0  ;;  %v19764_v48 = vpop.f32.mrf.mxu0  ;;  %v14010_v0 = vld [vmem:[%s20697_s5 + $0x4ac] ss:$16 sps:$4 sm:$0xff]  }
 0x63d   :  { %11438 = vmatpush1.bf16.msra.mxu0 %v13996_v62  ;;  %11469 = vmatprep.mubr.bf16.mxu0 %v19098_v37  ;;  %v11065_v59 = vpop.f32.mrf.mxu1  ;;  %v14013_v37 = vld [vmem:[%s20697_s5 + $0xe84] ss:$16 sps:$4 sm:$0xff]  }
 0x63e   :  { %v19770_v39 = vpop.f32.mrf.mxu0  ;;  %11317 = vmatpush1.bf16.msra.mxu1 %v13999_v33  ;;  %11439 = vmatprep.subr.bf16.mxu0 %v14004_v4  ;;  %v14067_v62 = vld [vmem:[%s20697_s5 + $0xf64] ss:$16 sps:$4 sm:$0xff]   ;;  %v14062_v33 = vld [vmem:[%s20697_s5 + $0x588] ss:$16 sps:$4 sm:$0xff]   ;;  %v14065_v4 = vld [vmem:[%s20697_s5 + $0xf60] ss:$16 sps:$4 sm:$0xff]  }
 0x63f   :  { %v11066_v43 = vpop.f32.mrf.mxu1  ;;  %11318 = vmatprep.subr.bf16.mxu1 %v14007_v58  ;;  %v14070_v58 = vld [vmem:[%s20697_s5 + $0x56c] ss:$16 sps:$4 sm:$0xff]   ;;  %v14073_v59 = vld [vmem:[%s20697_s5 + $0xf44] ss:$16 sps:$4 sm:$0xff]  }
 0x640   :  { %v11147_v47 = vpop.f32.mrf.mxu0  ;;  %v14079_v43 = vld [vmem:[%s20697_s5 + $0xf24] ss:$16 sps:$4 sm:$0xff]  }
 0x641   :  { %11440 = vmatpush1.bf16.msra.mxu0 %v14002_v9  ;;  %v14068_v9 = vld [vmem:[%s20697_s5 + $0x568] ss:$16 sps:$4 sm:$0xff]   ;;  %v14077_v47 = vld [vmem:[%s20697_s5 + $0xf20] ss:$16 sps:$4 sm:$0xff]  }
 0x642   :  { %v11148_v42 = vpop.f32.mrf.mxu0  ;;  %11319 = vmatpush1.bf16.msra.mxu1 %v14005_v57  ;;  %11441 = vmatprep.subr.bf16.mxu0 %v14010_v0  ;;  %v14071_v57 = vld [vmem:[%s20697_s5 + $0xf40] ss:$16 sps:$4 sm:$0xff]   ;;  %v14076_v0 = vld [vmem:[%s20697_s5 + $0x54c] ss:$16 sps:$4 sm:$0xff]  }
 0x643   :  { %11320 = vmatprep.subr.bf16.mxu1 %v14013_v37  ;;  %v14074_v37 = vld [vmem:[%s20697_s5 + $0x548] ss:$16 sps:$4 sm:$0xff]   ;;  %v14085_v42 = vld [vmem:[%s20697_s5 + $0xf04] ss:$16 sps:$4 sm:$0xff]  }
 0x645   :  { %11442 = vmatpush1.bf16.msra.mxu0 %v14008_v25  ;;  %v14082_v25 = vld [vmem:[%s20697_s5 + $0x52c] ss:$16 sps:$4 sm:$0xff]  }
 0x646   :  { %11321 = vmatpush1.bf16.msra.mxu1 %v14011_v27  ;;  %11443 = vmatprep.subr.bf16.mxu0 %v14016_v16  ;;  %v8333_v27 = vsub.s32 0, %v18549_v11  ;;  %v19929_v16 = vld [vmem:[%s20698_s6] sm:$0xf] }
 0x647   :  { %11322 = vmatprep.subr.bf16.mxu1 %v14019_v20  ;;  %v14080_v20 = vld [vmem:[%s20697_s5 + $0x528] ss:$16 sps:$4 sm:$0xff]  }
 0x649   :  { %11444 = vmatpush1.bf16.msra.mxu0 %v14014_v56  ;;  %v8337_v56 = vsub.s32 1, %v18549_v11 }
 0x64a   :  { %11323 = vmatpush1.bf16.msra.mxu1 %v14017_v2  ;;  %11445 = vmatprep.subr.bf16.mxu0 %v14022_v22  ;;  %v14083_v2 = vld [vmem:[%s20697_s5 + $0xf00] ss:$16 sps:$4 sm:$0xff]   ;;  %v14088_v22 = vld [vmem:[%s20697_s5 + $0x50c] ss:$16 sps:$4 sm:$0xff]  }
 0x64b   :  { %11324 = vmatprep.subr.bf16.mxu1 %v14025_v44  ;;  %v14091_v44 = vld [vmem:[%s20697_s5 + $0x2ec] ss:$16 sps:$4 sm:$0xff]  }
 0x64d   :  { %11446 = vmatpush1.bf16.msra.mxu0 %v14020_v53  ;;  %v8334_v53 = vrot.slane %v19929_v16, %v8333_v27  ;;  %v14136_v27 = vld [vmem:[%s20697_s5 + $0x80c] ss:$16 sps:$4 sm:$0xff]  }
 0x64e   :  { %11325 = vmatpush1.bf16.msra.mxu1 %v14023_v26  ;;  %11447 = vmatprep.subr.bf16.mxu0 %v14028_v34  ;;  %v14086_v26 = vld [vmem:[%s20697_s5 + $0x508] ss:$16 sps:$4 sm:$0xff]   ;;  %v8338_v34 = vrot.slane %v19929_v16, %v8337_v56 }
 0x64f   :  { %11326 = vmatprep.subr.bf16.mxu1 %v14031_v61  ;;  %v14089_v61 = vld [vmem:[%s20697_s5 + $0x2e8] ss:$16 sps:$4 sm:$0xff]  }
 0x650   :  { %v14134_v56 = vld [vmem:[%s20697_s5 + $0x808] ss:$16 sps:$4 sm:$0xff]  }
 0x651   :  { %11448 = vmatpush1.bf16.msra.mxu0 %v14026_v49  ;;  %v19954_v49 = vcombine.high %v19543_v12, %v19543_v12 }
 0x652   :  { %11327 = vmatpush1.bf16.msra.mxu1 %v14029_v63  ;;  %11449 = vmatprep.subr.bf16.mxu0 %v14034_v51  ;;  %v14094_v63 = vld [vmem:[%s20697_s5 + $0x8ec] ss:$16 sps:$4 sm:$0xff]  }
 0x653   :  { %11328 = vmatprep.subr.bf16.mxu1 %v14037_v5  ;;  %v14097_v51 = vld [vmem:[%s20697_s5 + $0x2cc] ss:$16 sps:$4 sm:$0xff]   ;;  %v11062_v5 = vadd.f32 %v19746_v21, %v8334_v53  ;;  %v14140_v53 = vld [vmem:[%s20697_s5 + $0x9e8] ss:$16 sps:$4 sm:$0xff]  }
 0x654   :  { %v14100_v21 = vld [vmem:[%s20697_s5 + $0x8cc] ss:$16 sps:$4 sm:$0xff]  }
 0x655   :  { %11450 = vmatpush1.bf16.msra.mxu0 %v14032_v1 }
 0x656   :  { %11329 = vmatpush1.bf16.msra.mxu1 %v14035_v55  ;;  %11451 = vmatprep.subr.bf16.mxu0 %v14040_v45  ;;  %v14092_v55 = vld [vmem:[%s20697_s5 + $0x8e8] ss:$16 sps:$4 sm:$0xff]   ;;  %v11064_v45 = vadd.f32 %v19758_v15, %v8338_v34  ;;  %v14148_v34 = vld [vmem:[%s20697_s5 + $0x9cc] ss:$16 sps:$4 sm:$0xff]  }
 0x657   :  { %11330 = vmatprep.subr.bf16.mxu1 %v14043_v52 }
 0x659   :  { %11452 = vmatpush1.bf16.msra.mxu0 %v14038_v54  ;;  %v14095_v54 = vld [vmem:[%s20697_s5 + $0x2c8] ss:$16 sps:$4 sm:$0xff]  }
 0x65a   :  { %11331 = vmatpush2.bf16.msra.mxu1 %v14041_v31  ;;  %11453 = vmatprep.subr.bf16.mxu0 %v14046_v38  ;;  %v14103_v38 = vld [vmem:[%s20697_s5 + $0x2ac] ss:$16 sps:$4 sm:$0xff]  }
 0x65b   :  { %11332 = vmatprep.subr.bf16.mxu1 %v14049_v50 }
 0x65d   :  { %11454 = vmatpush2.bf16.msra.mxu0 %v14044_v23 }
 0x65e   :  { %11333 = vmatpush2.bf16.msra.mxu1 %v14047_v29  ;;  %11455 = vmatprep.subr.bf16.mxu0 %v14052_v18  ;;  %v14098_v29 = vld [vmem:[%s20697_s5 + $0x8c8] ss:$16 sps:$4 sm:$0xff]  }
 0x65f   :  { %11334 = vmatprep.subr.bf16.mxu1 %v14055_v35  ;;  %v14101_v35 = vld [vmem:[%s20697_s5 + $0x2a8] ss:$16 sps:$4 sm:$0xff]  }
 0x661   :  { %11456 = vmatpush2.bf16.msra.mxu0 %v14050_v32  ;;  %v14109_v32 = vld [vmem:[%s20697_s5 + $0x28c] ss:$16 sps:$4 sm:$0xff]  }
 0x662   :  { %11335 = vmatpush2.bf16.msra.mxu1 %v14053_v14  ;;  %11457 = vmatprep.subr.bf16.mxu0 %v14058_v36  ;;  %v14104_v36 = vld [vmem:[%s20697_s5 + $0x8a8] ss:$16 sps:$4 sm:$0xff]  }
 0x663   :  { %11336 = vmatprep.subr.bf16.mxu1 %v14061_v19 }
 0x665   :  { %11458 = vmatpush2.bf16.msra.mxu0 %v14056_v24  ;;  %v14112_v24 = vld [vmem:[%s20697_s5 + $0x88c] ss:$16 sps:$4 sm:$0xff]  }
 0x666   :  { %11337 = vmatpush2.bf16.msra.mxu1 %v14059_v40  ;;  %11459 = vmatprep.subr.bf16.mxu0 %v14064_v7  ;;  %v14115_v40 = vld [vmem:[%s20697_s5 + $0x26c] ss:$16 sps:$4 sm:$0xff]   ;;  %v14110_v7 = vld [vmem:[%s20697_s5 + $0x888] ss:$16 sps:$4 sm:$0xff]  }
 0x667   :  { %11338 = vmatprep.subr.bf16.mxu1 %v14067_v62  ;;  %v14113_v62 = vld [vmem:[%s20697_s5 + $0x268] ss:$16 sps:$4 sm:$0xff]  }
 0x669   :  { %11460 = vmatpush2.bf16.msra.mxu0 %v14062_v33  ;;  %v14118_v33 = vld [vmem:[%s20697_s5 + $0x86c] ss:$16 sps:$4 sm:$0xff]  }
 0x66a   :  { %11339 = vmatpush2.bf16.msra.mxu1 %v14065_v4  ;;  %11461 = vmatprep.subr.bf16.mxu0 %v14070_v58  ;;  %v14121_v4 = vld [vmem:[%s20697_s5 + $0x24c] ss:$16 sps:$4 sm:$0xff]   ;;  %v14116_v58 = vld [vmem:[%s20697_s5 + $0x868] ss:$16 sps:$4 sm:$0xff]  }
 0x66b   :  { %11340 = vmatprep.subr.bf16.mxu1 %v14073_v59  ;;  %v14119_v59 = vld [vmem:[%s20697_s5 + $0x248] ss:$16 sps:$4 sm:$0xff]  }
 0x66d   :  { %11462 = vmatpush2.bf16.msra.mxu0 %v14068_v9  ;;  %v14124_v9 = vld [vmem:[%s20697_s5 + $0x84c] ss:$16 sps:$4 sm:$0xff]  }
 0x66e   :  { %11341 = vmatpush2.bf16.msra.mxu1 %v14071_v57  ;;  %11463 = vmatprep.subr.bf16.mxu0 %v14076_v0  ;;  %v14127_v57 = vld [vmem:[%s20697_s5 + $0x22c] ss:$16 sps:$4 sm:$0xff]   ;;  %v14122_v0 = vld [vmem:[%s20697_s5 + $0x848] ss:$16 sps:$4 sm:$0xff]  }
 0x66f   :  { %11342 = vmatprep.subr.bf16.mxu1 %v14079_v43  ;;  %v14125_v43 = vld [vmem:[%s20697_s5 + $0x228] ss:$16 sps:$4 sm:$0xff]  }
 0x671   :  { %11464 = vmatpush2.bf16.msra.mxu0 %v14074_v37  ;;  %v14130_v37 = vld [vmem:[%s20697_s5 + $0x82c] ss:$16 sps:$4 sm:$0xff]  }
 0x672   :  { %11343 = vmatpush2.bf16.msra.mxu1 %v14077_v47  ;;  %11465 = vmatprep.subr.bf16.mxu0 %v14082_v25  ;;  %v14133_v47 = vld [vmem:[%s20697_s5 + $0x20c] ss:$16 sps:$4 sm:$0xff]   ;;  %v14128_v25 = vld [vmem:[%s20697_s5 + $0x828] ss:$16 sps:$4 sm:$0xff]  }
 0x673   :  { %11344 = vmatprep.subr.bf16.mxu1 %v14085_v42  ;;  %v14131_v42 = vld [vmem:[%s20697_s5 + $0x208] ss:$16 sps:$4 sm:$0xff]  }
 0x675   :  { %11466 = vmatpush2.bf16.msra.mxu0 %v14080_v20  ;;  %v14139_v20 = vld [vmem:[%s20697_s5 + $0x3ec] ss:$16 sps:$4 sm:$0xff]  }
 0x676   :  { %11345 = vmatpush2.bf16.msra.mxu1 %v14083_v2  ;;  %11467 = vmatprep.subr.bf16.mxu0 %v14088_v22  ;;  %v14137_v2 = vld [vmem:[%s20697_s5 + $0x3e8] ss:$16 sps:$4 sm:$0xff]   ;;  %v14142_v22 = vld [vmem:[%s20697_s5 + $0x9ec] ss:$16 sps:$4 sm:$0xff]  }
 0x677   :  { %11396 = vmatprep.subr.bf16.mxu1 %v14091_v44  ;;  %v14145_v44 = vld [vmem:[%s20697_s5 + $0x3cc] ss:$16 sps:$4 sm:$0xff]  }
 0x679   :  { %11468 = vmatpush2.bf16.msra.mxu0 %v14086_v26  ;;  %v11102_v1 = vpop.f32.mrf.mxu1  ;;  %11347 = vmatmul.mubr.bf16.vlgmr.msra.gmra.mxu1 %v19954_v49  ;;  %v14143_v26 = vld [vmem:[%s20697_s5 + $0x3c8] ss:$16 sps:$4 sm:$0xff]  }
 0x67a   :  { %v11103_v52 = vadd.f32 %v11102_v1, %v11062_v5  ;;  %11397 = vmatpush1.bf16.msra.mxu1 %v14089_v61  ;;  %11428 = vmatprep.mubr.bf16.mxu1 %v19094_v8  ;;  %v14151_v61 = vld [vmem:[%s20697_s5 + $0x3ac] ss:$16 sps:$4 sm:$0xff]  }
 0x67b   :  { %v11104_v31 = vpop.f32.mrf.mxu1  ;;  %11519 = vmatprep.subr.bf16.mxu0 %v14094_v63  ;;  %11398 = vmatprep.subr.bf16.mxu1 %v14097_v51  ;;  %v14146_v63 = vld [vmem:[%s20697_s5 + $0x9c8] ss:$16 sps:$4 sm:$0xff]   ;;  %v14154_v5 = vld [vmem:[%s20697_s5 + $0x9ac] ss:$16 sps:$4 sm:$0xff]  }
 0x67c   :  { %v11105_v15 = vadd.f32 %v11104_v31, %v11064_v45  ;;  %v19978_v50 = vpop.f32.mrf.mxu0  ;;  %11470 = vmatmul.mubr.bf16.vlgmr.msra.gmra.mxu0 %v19106_v3  ;;  %v19982_v8 = vadd.f32 %v19764_v48, %v11103_v52  ;;  %v14106_v3 = vld [vmem:[%s20697_s5 + $0x8ac] ss:$16 sps:$4 sm:$0xff]   ;;  %v14149_v51 = vld [vmem:[%s20697_s5 + $0x3a8] ss:$16 sps:$4 sm:$0xff]  }
 0x67d   :  { %11520 = vmatpush1.bf16.msra.mxu0 %v14092_v55  ;;  %11551 = vmatprep.mubr.bf16.mxu0 %v19164_v28  ;;  %v11106_v23 = vpop.f32.mrf.mxu1  ;;  %v14157_v1 = vld [vmem:[%s20697_s5 + $0x38c] ss:$16 sps:$4 sm:$0xff]   ;;  %v14152_v55 = vld [vmem:[%s20697_s5 + $0x9a8] ss:$16 sps:$4 sm:$0xff]  }
 0x67e   :  { %v19988_v18 = vpop.f32.mrf.mxu0  ;;  %11399 = vmatpush1.bf16.msra.mxu1 %v14095_v54  ;;  %11521 = vmatprep.subr.bf16.mxu0 %v14100_v21  ;;  %v19997_v48 = vadd.f32 %v19770_v39, %v11105_v15  ;;  %v14107_v39 = vld [vmem:[%s20697_s5 + $0x288] ss:$16 sps:$4 sm:$0xff]   ;;  %v14160_v52 = vld [vmem:[%s20697_s5 + $0x98c] ss:$16 sps:$4 sm:$0xff]  }
 0x67f   :  { %v11107_v28 = vpop.f32.mrf.mxu1  ;;  %11400 = vmatprep.subr.bf16.mxu1 %v14103_v38  ;;  %v14155_v45 = vld [vmem:[%s20697_s5 + $0x388] ss:$16 sps:$4 sm:$0xff]   ;;  %v14163_v54 = vld [vmem:[%s20697_s5 + $0x36c] ss:$16 sps:$4 sm:$0xff]  }
 0x680   :  { %v11229_v14 = vpop.f32.mrf.mxu0  ;;  %v14158_v21 = vld [vmem:[%s20697_s5 + $0x988] ss:$16 sps:$4 sm:$0xff]   ;;  %v14166_v38 = vld [vmem:[%s20697_s5 + $0x96c] ss:$16 sps:$4 sm:$0xff]  }
 0x681   :  { %11522 = vmatpush1.bf16.msra.mxu0 %v14098_v29  ;;  %v14161_v31 = vld [vmem:[%s20697_s5 + $0x368] ss:$16 sps:$4 sm:$0xff]   ;;  %v14169_v15 = vld [vmem:[%s20697_s5 + $0x34c] ss:$16 sps:$4 sm:$0xff]  }
 0x682   :  { %v11230_v19 = vpop.f32.mrf.mxu0  ;;  %11401 = vmatpush1.bf16.msra.mxu1 %v14101_v35  ;;  %11523 = vmatprep.subr.bf16.mxu0 %v14106_v3  ;;  %v14164_v23 = vld [vmem:[%s20697_s5 + $0x968] ss:$16 sps:$4 sm:$0xff]   ;;  %v14172_v35 = vld [vmem:[%s20697_s5 + $0x94c] ss:$16 sps:$4 sm:$0xff]  }
 0x683   :  { %11402 = vmatprep.subr.bf16.mxu1 %v14109_v32  ;;  %v14167_v29 = vld [vmem:[%s20697_s5 + $0x348] ss:$16 sps:$4 sm:$0xff]   ;;  %v14175_v3 = vld [vmem:[%s20697_s5 + $0x32c] ss:$16 sps:$4 sm:$0xff]  }
 0x684   :  { %v14170_v28 = vld [vmem:[%s20697_s5 + $0x948] ss:$16 sps:$4 sm:$0xff]   ;;  %v14178_v14 = vld [vmem:[%s20697_s5 + $0x92c] ss:$16 sps:$4 sm:$0xff]  }
 0x685   :  { %11524 = vmatpush1.bf16.msra.mxu0 %v14104_v36  ;;  %v14173_v32 = vld [vmem:[%s20697_s5 + $0x328] ss:$16 sps:$4 sm:$0xff]   ;;  %v14181_v36 = vld [vmem:[%s20697_s5 + $0x30c] ss:$16 sps:$4 sm:$0xff]  }
 0x686   :  { %11403 = vmatpush1.bf16.msra.mxu1 %v14107_v39  ;;  %11525 = vmatprep.subr.bf16.mxu0 %v14112_v24  ;;  %v14176_v19 = vld [vmem:[%s20697_s5 + $0x928] ss:$16 sps:$4 sm:$0xff]   ;;  %v14184_v24 = vld [vmem:[%s20697_s5 + $0x90c] ss:$16 sps:$4 sm:$0xff]  }
 0x687   :  { %11404 = vmatprep.subr.bf16.mxu1 %v14115_v40  ;;  %v14179_v39 = vld [vmem:[%s20697_s5 + $0x308] ss:$16 sps:$4 sm:$0xff]   ;;  %v14187_v40 = vld [vmem:[%s20697_s5 + $0x6ec] ss:$16 sps:$4 sm:$0xff]  }
 0x689   :  { %11526 = vmatpush1.bf16.msra.mxu0 %v14110_v7  ;;  %v14182_v7 = vld [vmem:[%s20697_s5 + $0x908] ss:$16 sps:$4 sm:$0xff]  }
 0x68a   :  { %11405 = vmatpush1.bf16.msra.mxu1 %v14113_v62  ;;  %11527 = vmatprep.subr.bf16.mxu0 %v14118_v33  ;;  %v14185_v62 = vld [vmem:[%s20697_s5 + $0x6e8] ss:$16 sps:$4 sm:$0xff]   ;;  %v14190_v33 = vld [vmem:[%s20697_s5 + $0xcec] ss:$16 sps:$4 sm:$0xff]  }
 0x68b   :  { %11406 = vmatprep.subr.bf16.mxu1 %v14121_v4  ;;  %v14193_v4 = vld [vmem:[%s20697_s5 + $0x6cc] ss:$16 sps:$4 sm:$0xff]  }
 0x68d   :  { %11528 = vmatpush1.bf16.msra.mxu0 %v14116_v58 }
 0x68e   :  { %11407 = vmatpush1.bf16.msra.mxu1 %v14119_v59  ;;  %11529 = vmatprep.subr.bf16.mxu0 %v14124_v9  ;;  %v14188_v59 = vld [vmem:[%s20697_s5 + $0xce8] ss:$16 sps:$4 sm:$0xff]  }
 0x68f   :  { %11408 = vmatprep.subr.bf16.mxu1 %v14127_v57  ;;  %v14191_v57 = vld [vmem:[%s20697_s5 + $0x6c8] ss:$16 sps:$4 sm:$0xff]  }
 0x691   :  { %11530 = vmatpush1.bf16.msra.mxu0 %v14122_v0  ;;  %v14196_v0 = vld [vmem:[%s20697_s5 + $0xccc] ss:$16 sps:$4 sm:$0xff]  }
 0x692   :  { %11409 = vmatpush1.bf16.msra.mxu1 %v14125_v43  ;;  %11531 = vmatprep.subr.bf16.mxu0 %v14130_v37 }
 0x693   :  { %11410 = vmatprep.subr.bf16.mxu1 %v14133_v47 }
 0x695   :  { %11532 = vmatpush1.bf16.msra.mxu0 %v14128_v25  ;;  %v14194_v25 = vld [vmem:[%s20697_s5 + $0xcc8] ss:$16 sps:$4 sm:$0xff]  }
 0x696   :  { %11411 = vmatpush1.bf16.msra.mxu1 %v14131_v42  ;;  %11533 = vmatprep.subr.bf16.mxu0 %v14136_v27  ;;  %v14205_v27 = vld [vmem:[%s20697_s5 + $0x68c] ss:$16 sps:$4 sm:$0xff]  }
 0x697   :  { %11412 = vmatprep.subr.bf16.mxu1 %v14139_v20 }
 0x699   :  { %11534 = vmatpush1.bf16.msra.mxu0 %v14134_v56  ;;  %v14200_v56 = vld [vmem:[%s20697_s5 + $0xca8] ss:$16 sps:$4 sm:$0xff]  }
 0x69a   :  { %11413 = vmatpush2.bf16.msra.mxu1 %v14137_v2  ;;  %11535 = vmatprep.subr.bf16.mxu0 %v14142_v22  ;;  %v14208_v22 = vld [vmem:[%s20697_s5 + $0xc8c] ss:$16 sps:$4 sm:$0xff]  }
 0x69b   :  { %11414 = vmatprep.subr.bf16.mxu1 %v14145_v44  ;;  %v14211_v44 = vld [vmem:[%s20697_s5 + $0x66c] ss:$16 sps:$4 sm:$0xff]  }
 0x69d   :  { %11536 = vmatpush2.bf16.msra.mxu0 %v14140_v53  ;;  %v14206_v53 = vld [vmem:[%s20697_s5 + $0xc88] ss:$16 sps:$4 sm:$0xff]  }
 0x69e   :  { %11415 = vmatpush2.bf16.msra.mxu1 %v14143_v26  ;;  %11537 = vmatprep.subr.bf16.mxu0 %v14148_v34  ;;  %v14209_v26 = vld [vmem:[%s20697_s5 + $0x668] ss:$16 sps:$4 sm:$0xff]   ;;  %v14214_v34 = vld [vmem:[%s20697_s5 + $0xc6c] ss:$16 sps:$4 sm:$0xff]  }
 0x69f   :  { %11416 = vmatprep.subr.bf16.mxu1 %v14151_v61  ;;  %v14217_v61 = vld [vmem:[%s20697_s5 + $0x64c] ss:$16 sps:$4 sm:$0xff]  }
 0x6a1   :  { %11538 = vmatpush2.bf16.msra.mxu0 %v14146_v63  ;;  %v14212_v63 = vld [vmem:[%s20697_s5 + $0xc68] ss:$16 sps:$4 sm:$0xff]  }
 0x6a2   :  { %11417 = vmatpush2.bf16.msra.mxu1 %v14149_v51  ;;  %11539 = vmatprep.subr.bf16.mxu0 %v14154_v5  ;;  %v14215_v51 = vld [vmem:[%s20697_s5 + $0x648] ss:$16 sps:$4 sm:$0xff]   ;;  %v14220_v5 = vld [vmem:[%s20697_s5 + $0xc4c] ss:$16 sps:$4 sm:$0xff]  }
 0x6a3   :  { %11418 = vmatprep.subr.bf16.mxu1 %v14157_v1  ;;  %v14223_v1 = vld [vmem:[%s20697_s5 + $0x62c] ss:$16 sps:$4 sm:$0xff]  }
 0x6a5   :  { %11540 = vmatpush2.bf16.msra.mxu0 %v14152_v55  ;;  %v14218_v55 = vld [vmem:[%s20697_s5 + $0xc48] ss:$16 sps:$4 sm:$0xff]  }
 0x6a6   :  { %11419 = vmatpush2.bf16.msra.mxu1 %v14155_v45  ;;  %11541 = vmatprep.subr.bf16.mxu0 %v14160_v52  ;;  %v14221_v45 = vld [vmem:[%s20697_s5 + $0x628] ss:$16 sps:$4 sm:$0xff]   ;;  %v14226_v52 = vld [vmem:[%s20697_s5 + $0xc2c] ss:$16 sps:$4 sm:$0xff]  }
 0x6a7   :  { %11420 = vmatprep.subr.bf16.mxu1 %v14163_v54  ;;  %v14229_v54 = vld [vmem:[%s20697_s5 + $0x60c] ss:$16 sps:$4 sm:$0xff]  }
 0x6a9   :  { %11542 = vmatpush2.bf16.msra.mxu0 %v14158_v21  ;;  %v14224_v21 = vld [vmem:[%s20697_s5 + $0xc28] ss:$16 sps:$4 sm:$0xff]  }
 0x6aa   :  { %11421 = vmatpush2.bf16.msra.mxu1 %v14161_v31  ;;  %11543 = vmatprep.subr.bf16.mxu0 %v14166_v38  ;;  %v14227_v31 = vld [vmem:[%s20697_s5 + $0x608] ss:$16 sps:$4 sm:$0xff]   ;;  %v14232_v38 = vld [vmem:[%s20697_s5 + $0xc0c] ss:$16 sps:$4 sm:$0xff]  }
 0x6ab   :  { %11422 = vmatprep.subr.bf16.mxu1 %v14169_v15  ;;  %v14235_v15 = vld [vmem:[%s20697_s5 + $0x7ec] ss:$16 sps:$4 sm:$0xff]  }
 0x6ad   :  { %11544 = vmatpush2.bf16.msra.mxu0 %v14164_v23  ;;  %v14230_v23 = vld [vmem:[%s20697_s5 + $0xc08] ss:$16 sps:$4 sm:$0xff]  }
 0x6ae   :  { %11423 = vmatpush2.bf16.msra.mxu1 %v14167_v29  ;;  %11545 = vmatprep.subr.bf16.mxu0 %v14172_v35  ;;  %v14233_v29 = vld [vmem:[%s20697_s5 + $0x7e8] ss:$16 sps:$4 sm:$0xff]   ;;  %v14238_v35 = vld [vmem:[%s20697_s5 + $0xdec] ss:$16 sps:$4 sm:$0xff]  }
 0x6af   :  { %11424 = vmatprep.subr.bf16.mxu1 %v14175_v3  ;;  %v14241_v3 = vld [vmem:[%s20697_s5 + $0x7cc] ss:$16 sps:$4 sm:$0xff]  }
 0x6b1   :  { %11546 = vmatpush2.bf16.msra.mxu0 %v14170_v28  ;;  %v14236_v28 = vld [vmem:[%s20697_s5 + $0xde8] ss:$16 sps:$4 sm:$0xff]  }
 0x6b2   :  { %11425 = vmatpush2.bf16.msra.mxu1 %v14173_v32  ;;  %11547 = vmatprep.subr.bf16.mxu0 %v14178_v14  ;;  %v14239_v32 = vld [vmem:[%s20697_s5 + $0x7c8] ss:$16 sps:$4 sm:$0xff]   ;;  %v14244_v14 = vld [vmem:[%s20697_s5 + $0xdcc] ss:$16 sps:$4 sm:$0xff]  }
 0x6b3   :  { %11426 = vmatprep.subr.bf16.mxu1 %v14181_v36  ;;  %v14247_v36 = vld [vmem:[%s20697_s5 + $0x7ac] ss:$16 sps:$4 sm:$0xff]  }
 0x6b5   :  { %11548 = vmatpush2.bf16.msra.mxu0 %v14176_v19  ;;  %v14242_v19 = vld [vmem:[%s20697_s5 + $0xdc8] ss:$16 sps:$4 sm:$0xff]  }
 0x6b6   :  { %11427 = vmatpush2.bf16.msra.mxu1 %v14179_v39  ;;  %11549 = vmatprep.subr.bf16.mxu0 %v14184_v24  ;;  %v14245_v39 = vld [vmem:[%s20697_s5 + $0x7a8] ss:$16 sps:$4 sm:$0xff]   ;;  %v14250_v24 = vld [vmem:[%s20697_s5 + $0xdac] ss:$16 sps:$4 sm:$0xff]  }
 0x6b7   :  { %11478 = vmatprep.subr.bf16.mxu1 %v14187_v40  ;;  %v14253_v40 = vld [vmem:[%s20697_s5 + $0x78c] ss:$16 sps:$4 sm:$0xff]  }
 0x6b9   :  { %11550 = vmatpush2.bf16.msra.mxu0 %v14182_v7  ;;  %v11184_v58 = vpop.f32.mrf.mxu1  ;;  %11429 = vmatmul.mubr.bf16.vlgmr.msra.gmra.mxu1 %v19312_v6  ;;  %v14199_v6 = vld [vmem:[%s20697_s5 + $0x6ac] ss:$16 sps:$4 sm:$0xff]   ;;  %v14248_v7 = vld [vmem:[%s20697_s5 + $0xda8] ss:$16 sps:$4 sm:$0xff]  }
 0x6ba   :  { %v11185_v9 = vadd.f32 %v11184_v58, %v19982_v8  ;;  %11479 = vmatpush1.bf16.msra.mxu1 %v14185_v62  ;;  %11510 = vmatprep.mubr.bf16.mxu1 %v19324_v10  ;;  %v14251_v62 = vld [vmem:[%s20697_s5 + $0x788] ss:$16 sps:$4 sm:$0xff]  }
 0x6bb   :  { %v11186_v43 = vpop.f32.mrf.mxu1  ;;  %11601 = vmatprep.subr.bf16.mxu0 %v14190_v33  ;;  %11480 = vmatprep.subr.bf16.mxu1 %v14193_v4  ;;  %v14256_v33 = vld [vmem:[%s20697_s5 + $0xd8c] ss:$16 sps:$4 sm:$0xff]   ;;  %v14254_v58 = vld [vmem:[%s20697_s5 + $0xd88] ss:$16 sps:$4 sm:$0xff]  }
 0x6bc   :  { %v11187_v8 = vadd.f32 %v11186_v43, %v19997_v48  ;;  %v20186_v37 = vpop.f32.mrf.mxu0  ;;  %11552 = vmatmul.mubr.bf16.vlgmr.msra.gmra.mxu0 %v19332_v17  ;;  %v20190_v10 = vadd.f32 %v19978_v50, %v11185_v9  ;;  %v14197_v48 = vld [vmem:[%s20697_s5 + $0x6a8] ss:$16 sps:$4 sm:$0xff]   ;;  %v14202_v17 = vld [vmem:[%s20697_s5 + $0xcac] ss:$16 sps:$4 sm:$0xff]  }
 0x6bd   :  { %11602 = vmatpush1.bf16.msra.mxu0 %v14188_v59  ;;  %11633 = vmatprep.mubr.bf16.mxu0 %v19342_v41  ;;  %v11188_v47 = vpop.f32.mrf.mxu1  ;;  %v14259_v4 = vld [vmem:[%s20697_s5 + $0x76c] ss:$16 sps:$4 sm:$0xff]   ;;  %v14257_v59 = vld [vmem:[%s20697_s5 + $0x768] ss:$16 sps:$4 sm:$0xff]  }
 0x6be   :  { %v20196_v42 = vpop.f32.mrf.mxu0  ;;  %11481 = vmatpush1.bf16.msra.mxu1 %v14191_v57  ;;  %11603 = vmatprep.subr.bf16.mxu0 %v14196_v0  ;;  %v20205_v50 = vadd.f32 %v19988_v18, %v11187_v8  ;;  %v14203_v18 = vld [vmem:[%s20697_s5 + $0x688] ss:$16 sps:$4 sm:$0xff]   ;;  %v14262_v9 = vld [vmem:[%s20697_s5 + $0xd6c] ss:$16 sps:$4 sm:$0xff]  }
 0x6bf   :  { %v11189_v41 = vpop.f32.mrf.mxu1  ;;  %11482 = vmatprep.subr.bf16.mxu1 %v14199_v6  ;;  %v14265_v57 = vld [vmem:[%s20697_s5 + $0x74c] ss:$16 sps:$4 sm:$0xff]   ;;  %v14260_v0 = vld [vmem:[%s20697_s5 + $0xd68] ss:$16 sps:$4 sm:$0xff]  }
 0x6c0   :  { %v11311_v20 = vpop.f32.mrf.mxu0  ;;  %v14263_v43 = vld [vmem:[%s20697_s5 + $0x748] ss:$16 sps:$4 sm:$0xff]   ;;  %v14268_v6 = vld [vmem:[%s20697_s5 + $0xd4c] ss:$16 sps:$4 sm:$0xff]  }
 0x6c1   :  { %11604 = vmatpush1.bf16.msra.mxu0 %v14194_v25  ;;  %v14271_v8 = vld [vmem:[%s20697_s5 + $0x72c] ss:$16 sps:$4 sm:$0xff]   ;;  %v14266_v47 = vld [vmem:[%s20697_s5 + $0xd48] ss:$16 sps:$4 sm:$0xff]  }
 0x6c2   :  { %v11312_v2 = vpop.f32.mrf.mxu0  ;;  %11483 = vmatpush1.bf16.msra.mxu1 %v14197_v48  ;;  %11605 = vmatprep.subr.bf16.mxu0 %v14202_v17  ;;  %v14269_v25 = vld [vmem:[%s20697_s5 + $0x728] ss:$16 sps:$4 sm:$0xff]   ;;  %v14274_v48 = vld [vmem:[%s20697_s5 + $0xd2c] ss:$16 sps:$4 sm:$0xff]  }
 0x6c3   :  { %11484 = vmatprep.subr.bf16.mxu1 %v14205_v27  ;;  %v14277_v17 = vld [vmem:[%s20697_s5 + $0x70c] ss:$16 sps:$4 sm:$0xff]   ;;  %v14272_v41 = vld [vmem:[%s20697_s5 + $0xd28] ss:$16 sps:$4 sm:$0xff]  }
 0x6c4   :  { %v14275_v27 = vld [vmem:[%s20697_s5 + $0x708] ss:$16 sps:$4 sm:$0xff]   ;;  %v14280_v20 = vld [vmem:[%s20697_s5 + $0xd0c] ss:$16 sps:$4 sm:$0xff]  }
 0x6c5   :  { %11606 = vmatpush1.bf16.msra.mxu0 %v14200_v56  ;;  %v14283_v56 = vld [vmem:[%s20697_s5 + $0xaec] ss:$16 sps:$4 sm:$0xff]   ;;  %v14278_v2 = vld [vmem:[%s20697_s5 + $0xd08] ss:$16 sps:$4 sm:$0xff]  }
 0x6c6   :  { %11485 = vmatpush1.bf16.msra.mxu1 %v14203_v18  ;;  %11607 = vmatprep.subr.bf16.mxu0 %v14208_v22  ;;  %v14281_v18 = vld [vmem:[%s20697_s5 + $0xae8] ss:$16 sps:$4 sm:$0xff]   ;;  %v14286_v22 = vld [vmem:[%s20697_s5 + $0xacc] ss:$16 sps:$4 sm:$0xff]  }
 0x6c7   :  { %11486 = vmatprep.subr.bf16.mxu1 %v14211_v44  ;;  %v14314_v44 = vld [vmem:[%s20699_s7 + $0x78] sm:$0xff]  }
 0x6c9   :  { %11608 = vmatpush1.bf16.msra.mxu0 %v14206_v53 }
 0x6ca   :  { %11487 = vmatpush1.bf16.msra.mxu1 %v14209_v26  ;;  %11609 = vmatprep.subr.bf16.mxu0 %v14214_v34  ;;  %v14315_v26 = vld [vmem:[%s20699_s7 + $0x38] sm:$0xff]  }
 0x6cb   :  { %11488 = vmatprep.subr.bf16.mxu1 %v14217_v61  ;;  %v14284_v61 = vld [vmem:[%s20697_s5 + $0xac8] ss:$16 sps:$4 sm:$0xff]  }
 0x6cd   :  { %11610 = vmatpush1.bf16.msra.mxu0 %v14212_v63  ;;  %v14319_v63 = vld [vmem:[%s20699_s7 + $0x70] sm:$0xff]  }
 0x6ce   :  { %11489 = vmatpush1.bf16.msra.mxu1 %v14215_v51  ;;  %11611 = vmatprep.subr.bf16.mxu0 %v14220_v5 }
 0x6cf   :  { %11490 = vmatprep.subr.bf16.mxu1 %v14223_v1 }
 0x6d1   :  { %11612 = vmatpush1.bf16.msra.mxu0 %v14218_v55  ;;  %v14320_v55 = vld [vmem:[%s20699_s7 + $0x30] sm:$0xff]  }
 0x6d2   :  { %11491 = vmatpush1.bf16.msra.mxu1 %v14221_v45  ;;  %11613 = vmatprep.subr.bf16.mxu0 %v14226_v52 }
 0x6d3   :  { %11492 = vmatprep.subr.bf16.mxu1 %v14229_v54  ;;  %v14292_v54 = vld [vmem:[%s20697_s5 + $0xa8c] ss:$16 sps:$4 sm:$0xff]  }
 0x6d5   :  { %11614 = vmatpush1.bf16.msra.mxu0 %v14224_v21 }
 0x6d6   :  { %11493 = vmatpush1.bf16.msra.mxu1 %v14227_v31  ;;  %11615 = vmatprep.subr.bf16.mxu0 %v14232_v38  ;;  %v14325_v31 = vld [vmem:[%s20699_s7 + $0x28] sm:$0xff]  }
 0x6d7   :  { %11494 = vmatprep.subr.bf16.mxu1 %v14235_v15  ;;  %v14290_v15 = vld [vmem:[%s20697_s5 + $0xa88] ss:$16 sps:$4 sm:$0xff]  }
 0x6d9   :  { %11616 = vmatpush1.bf16.msra.mxu0 %v14230_v23  ;;  %v14295_v23 = vld [vmem:[%s20697_s5 + $0xa6c] ss:$16 sps:$4 sm:$0xff]  }
 0x6da   :  { %11495 = vmatpush2.bf16.msra.mxu1 %v14233_v29  ;;  %11617 = vmatprep.subr.bf16.mxu0 %v14238_v35  ;;  %v14330_v29 = vld [vmem:[%s20699_s7 + $0x20] sm:$0xff]   ;;  %v14293_v35 = vld [vmem:[%s20697_s5 + $0xa68] ss:$16 sps:$4 sm:$0xff]  }
 0x6db   :  { %11496 = vmatprep.subr.bf16.mxu1 %v14241_v3  ;;  %v14334_v3 = vld [vmem:[%s20699_s7 + $0x58] sm:$0xff]  }
 0x6dd   :  { %11618 = vmatpush2.bf16.msra.mxu0 %v14236_v28  ;;  %v14298_v28 = vld [vmem:[%s20697_s5 + $0xa4c] ss:$16 sps:$4 sm:$0xff]  }
 0x6de   :  { %11497 = vmatpush2.bf16.msra.mxu1 %v14239_v32  ;;  %11619 = vmatprep.subr.bf16.mxu0 %v14244_v14  ;;  %v14335_v32 = vld [vmem:[%s20699_s7 + $0x18] sm:$0xff]  }
 0x6df   :  { %11498 = vmatprep.subr.bf16.mxu1 %v14247_v36  ;;  %v14296_v14 = vld [vmem:[%s20697_s5 + $0xa48] ss:$16 sps:$4 sm:$0xff]   ;;  %v14339_v36 = vld [vmem:[%s20699_s7 + $0x50] sm:$0xff]  }
 0x6e1   :  { %11620 = vmatpush2.bf16.msra.mxu0 %v14242_v19  ;;  %v14301_v19 = vld [vmem:[%s20697_s5 + $0xa2c] ss:$16 sps:$4 sm:$0xff]  }
 0x6e2   :  { %11499 = vmatpush2.bf16.msra.mxu1 %v14245_v39  ;;  %11621 = vmatprep.subr.bf16.mxu0 %v14250_v24  ;;  %v14340_v39 = vld [vmem:[%s20699_s7 + $0x10] sm:$0xff]   ;;  %v14299_v24 = vld [vmem:[%s20697_s5 + $0xa28] ss:$16 sps:$4 sm:$0xff]  }
 0x6e3   :  { %11500 = vmatprep.subr.bf16.mxu1 %v14253_v40  ;;  %v14344_v40 = vld [vmem:[%s20699_s7 + $0x48] sm:$0xff]  }
 0x6e5   :  { %11622 = vmatpush2.bf16.msra.mxu0 %v14248_v7  ;;  %v14304_v7 = vld [vmem:[%s20697_s5 + $0xa0c] ss:$16 sps:$4 sm:$0xff]  }
 0x6e6   :  { %11501 = vmatpush2.bf16.msra.mxu1 %v14251_v62  ;;  %11623 = vmatprep.subr.bf16.mxu0 %v14256_v33  ;;  %v14345_v62 = vld [vmem:[%s20699_s7 + $0x8] sm:$0xff]  }
 0x6e7   :  { %11502 = vmatprep.subr.bf16.mxu1 %v14259_v4  ;;  %v14302_v33 = vld [vmem:[%s20697_s5 + $0xa08] ss:$16 sps:$4 sm:$0xff]   ;;  %v14349_v4 = vld [vmem:[%s20699_s7 + $0x40] sm:$0xff]  }
 0x6e9   :  { %11624 = vmatpush2.bf16.msra.mxu0 %v14254_v58  ;;  %v14307_v58 = vld [vmem:[%s20697_s5 + $0xbec] ss:$16 sps:$4 sm:$0xff]  }
 0x6ea   :  { %11503 = vmatpush2.bf16.msra.mxu1 %v14257_v59  ;;  %11625 = vmatprep.subr.bf16.mxu0 %v14262_v9  ;;  %v14350_v59 = vld [vmem:[%s20699_s7] sm:$0xff]   ;;  %v14305_v9 = vld [vmem:[%s20697_s5 + $0xbe8] ss:$16 sps:$4 sm:$0xff]  }
 0x6eb   :  { %11504 = vmatprep.subr.bf16.mxu1 %v14265_v57  ;;  %v14310_v57 = vld [vmem:[%s20697_s5 + $0xbcc] ss:$16 sps:$4 sm:$0xff]  }
 0x6ed   :  { %11626 = vmatpush2.bf16.msra.mxu0 %v14260_v0  ;;  %v14308_v0 = vld [vmem:[%s20697_s5 + $0xbc8] ss:$16 sps:$4 sm:$0xff]  }
 0x6ee   :  { %11505 = vmatpush2.bf16.msra.mxu1 %v14263_v43  ;;  %11627 = vmatprep.subr.bf16.mxu0 %v14268_v6  ;;  %v14313_v43 = vld [vmem:[%s20697_s5 + $0xbac] ss:$16 sps:$4 sm:$0xff]   ;;  %v14311_v6 = vld [vmem:[%s20697_s5 + $0xba8] ss:$16 sps:$4 sm:$0xff]  }
 0x6ef   :  { %11506 = vmatprep.subr.bf16.mxu1 %v14271_v8  ;;  %v14318_v8 = vld [vmem:[%s20697_s5 + $0xb8c] ss:$16 sps:$4 sm:$0xff]  }
 0x6f1   :  { %11628 = vmatpush2.bf16.msra.mxu0 %v14266_v47  ;;  %v14316_v47 = vld [vmem:[%s20697_s5 + $0xb88] ss:$16 sps:$4 sm:$0xff]  }
 0x6f2   :  { %11507 = vmatpush2.bf16.msra.mxu1 %v14269_v25  ;;  %11629 = vmatprep.subr.bf16.mxu0 %v14274_v48  ;;  %v14323_v25 = vld [vmem:[%s20697_s5 + $0xb6c] ss:$16 sps:$4 sm:$0xff]   ;;  %v14321_v48 = vld [vmem:[%s20697_s5 + $0xb68] ss:$16 sps:$4 sm:$0xff]  }
 0x6f3   :  { %11508 = vmatprep.subr.bf16.mxu1 %v14277_v17  ;;  %v14328_v17 = vld [vmem:[%s20697_s5 + $0xb4c] ss:$16 sps:$4 sm:$0xff]  }
 0x6f5   :  { %11630 = vmatpush2.bf16.msra.mxu0 %v14272_v41  ;;  %v14326_v41 = vld [vmem:[%s20697_s5 + $0xb48] ss:$16 sps:$4 sm:$0xff]  }
 0x6f6   :  { %11509 = vmatpush2.bf16.msra.mxu1 %v14275_v27  ;;  %11631 = vmatprep.subr.bf16.mxu0 %v14280_v20  ;;  %v14333_v27 = vld [vmem:[%s20697_s5 + $0xb2c] ss:$16 sps:$4 sm:$0xff]   ;;  %v14331_v20 = vld [vmem:[%s20697_s5 + $0xb28] ss:$16 sps:$4 sm:$0xff]  }
 0x6f7   :  { %11560 = vmatprep.subr.bf16.mxu1 %v14283_v56  ;;  %v14338_v56 = vld [vmem:[%s20697_s5 + $0xb0c] ss:$16 sps:$4 sm:$0xff]  }
 0x6f9   :  { %11632 = vmatpush2.bf16.msra.mxu0 %v14278_v2  ;;  %v11266_v53 = vpop.f32.mrf.mxu1  ;;  %11511 = vmatmul.mubr.bf16.vlgmr.msra.gmra.mxu1 %v19525_v60  ;;  %v14289_v60 = vld [vmem:[%s20697_s5 + $0xaac] ss:$16 sps:$4 sm:$0xff]   ;;  %v14336_v2 = vld [vmem:[%s20697_s5 + $0xb08] ss:$16 sps:$4 sm:$0xff]  }
 0x6fa   :  { %v11267_v34 = vadd.f32 %v11266_v53, %v20190_v10  ;;  %11561 = vmatpush1.bf16.msra.mxu1 %v14281_v18  ;;  %11592 = vmatprep.mubr.bf16.mxu1 %v19535_v46  ;;  %v14343_v18 = vld [vmem:[%s20697_s5 + $0xeec] ss:$16 sps:$4 sm:$0xff]  }
 0x6fb   :  { %v11268_v51 = vpop.f32.mrf.mxu1  ;;  %11562 = vmatprep.subr.bf16.mxu1 %v14286_v22  ;;  %13205 = vmatprep.subr.bf16.mxu0 %v14314_v44  ;;  %v14341_v22 = vld [vmem:[%s20697_s5 + $0xee8] ss:$16 sps:$4 sm:$0xff]   ;;  %v14348_v44 = vld [vmem:[%s20697_s5 + $0xecc] ss:$16 sps:$4 sm:$0xff]  }
 0x6fc   :  { %v11269_v10 = vadd.f32 %v11268_v51, %v20205_v50  ;;  %v20394_v5 = vpop.f32.mrf.mxu0  ;;  %11634 = vmatmul.mubr.bf16.vlgmr.msra.gmra.mxu0 %v19543_v12  ;;  %v20398_v46 = vadd.f32 %v20186_v37, %v11267_v34  ;;  %v14287_v50 = vld [vmem:[%s20697_s5 + $0xaa8] ss:$16 sps:$4 sm:$0xff]  }
 0x6fd   :  { %v11270_v1 = vpop.f32.mrf.mxu1  ;;  %13206 = vmatpush3.bf16.msra.mxu0 %v14315_v26  ;;  %v14324_v12 = vld [vmem:[%s20699_s7 + $0x68] sm:$0xff]  }
 0x6fe   :  { %v20403_v45 = vpop.f32.mrf.mxu0  ;;  %11563 = vmatpush1.bf16.msra.mxu1 %v14284_v61  ;;  %13207 = vmatprep.subr.bf16.mxu0 %v14319_v63  ;;  %v20412_v37 = vadd.f32 %v20196_v42, %v11269_v10  ;;  %v14329_v42 = vld [vmem:[%s20699_s7 + $0x60] sm:$0xff]   ;;  %v14346_v34 = vld [vmem:[%s20697_s5 + $0xec8] ss:$16 sps:$4 sm:$0xff]   ;;  %v14353_v63 = vld [vmem:[%s20697_s5 + $0xeac] ss:$16 sps:$4 sm:$0xff]  }
 0x6ff   :  { %v11271_v52 = vpop.f32.mrf.mxu1  ;;  %11564 = vmatprep.subr.bf16.mxu1 %v14289_v60 }
 0x700   :  { %v11393_v21 = vpop.f32.mrf.mxu0 }
 0x701   :  { %13208 = vmatpush3.bf16.msra.mxu0 %v14320_v55  ;;  %v14354_v21 = vld [vmem:[%s20697_s5 + $0xe88] ss:$16 sps:$4 sm:$0xff]  }
 0x702   :  { %v11394_v38 = vpop.f32.mrf.mxu0  ;;  %11565 = vmatpush1.bf16.msra.mxu1 %v14287_v50  ;;  %13209 = vmatprep.subr.bf16.mxu0 %v14324_v12  ;;  %v14356_v50 = vld [vmem:[%s20697_s5 + $0xe8c] ss:$16 sps:$4 sm:$0xff]  }
 0x703   :  { %11566 = vmatprep.subr.bf16.mxu1 %v14292_v54  ;;  %v14357_v38 = vld [vmem:[%s20697_s5 + $0xe68] ss:$16 sps:$4 sm:$0xff]  }
 0x705   :  { %13210 = vmatpush3.bf16.msra.mxu0 %v14325_v31  ;;  %v14359_v31 = vld [vmem:[%s20697_s5 + $0xe6c] ss:$16 sps:$4 sm:$0xff]  }
 0x706   :  { %11567 = vmatpush1.bf16.msra.mxu1 %v14290_v15  ;;  %13211 = vmatprep.subr.bf16.mxu0 %v14329_v42  ;;  %v14362_v15 = vld [vmem:[%s20697_s5 + $0xe4c] ss:$16 sps:$4 sm:$0xff]   ;;  %v14360_v42 = vld [vmem:[%s20697_s5 + $0xe48] ss:$16 sps:$4 sm:$0xff]  }
 0x707   :  { %11568 = vmatprep.subr.bf16.mxu1 %v14295_v23  ;;  %v14365_v23 = vld [vmem:[%s20697_s5 + $0xe2c] ss:$16 sps:$4 sm:$0xff]  }
 0x709   :  { %13212 = vmatpush3.bf16.msra.mxu0 %v14330_v29  ;;  %v14363_v29 = vld [vmem:[%s20697_s5 + $0xe28] ss:$16 sps:$4 sm:$0xff]  }
 0x70a   :  { %11569 = vmatpush1.bf16.msra.mxu1 %v14293_v35  ;;  %13213 = vmatprep.subr.bf16.mxu0 %v14334_v3  ;;  %v14368_v35 = vld [vmem:[%s20697_s5 + $0xe0c] ss:$16 sps:$4 sm:$0xff]   ;;  %v14366_v3 = vld [vmem:[%s20697_s5 + $0xe08] ss:$16 sps:$4 sm:$0xff]  }
 0x70b   :  { %11570 = vmatprep.subr.bf16.mxu1 %v14298_v28  ;;  %v14371_v28 = vld [vmem:[%s20697_s5 + $0xfec] ss:$16 sps:$4 sm:$0xff]  }
 0x70d   :  { %13214 = vmatpush3.bf16.msra.mxu0 %v14335_v32  ;;  %v14369_v32 = vld [vmem:[%s20697_s5 + $0xfe8] ss:$16 sps:$4 sm:$0xff]  }
 0x70e   :  { %11571 = vmatpush1.bf16.msra.mxu1 %v14296_v14  ;;  %13215 = vmatprep.subr.bf16.mxu0 %v14339_v36  ;;  %v14374_v14 = vld [vmem:[%s20697_s5 + $0xfcc] ss:$16 sps:$4 sm:$0xff]   ;;  %v14372_v36 = vld [vmem:[%s20697_s5 + $0xfc8] ss:$16 sps:$4 sm:$0xff]  }
 0x70f   :  { %11572 = vmatprep.subr.bf16.mxu1 %v14301_v19  ;;  %v14377_v19 = vld [vmem:[%s20697_s5 + $0xfac] ss:$16 sps:$4 sm:$0xff]  }
 0x711   :  { %13216 = vmatpush3.bf16.msra.mxu0 %v14340_v39  ;;  %v14375_v39 = vld [vmem:[%s20697_s5 + $0xfa8] ss:$16 sps:$4 sm:$0xff]  }
 0x712   :  { %11573 = vmatpush1.bf16.msra.mxu1 %v14299_v24  ;;  %13217 = vmatprep.subr.bf16.mxu0 %v14344_v40  ;;  %v14380_v24 = vld [vmem:[%s20697_s5 + $0xf8c] ss:$16 sps:$4 sm:$0xff]   ;;  %v14378_v40 = vld [vmem:[%s20697_s5 + $0xf88] ss:$16 sps:$4 sm:$0xff]  }
 0x713   :  { %11574 = vmatprep.subr.bf16.mxu1 %v14304_v7  ;;  %v14383_v7 = vld [vmem:[%s20697_s5 + $0xf6c] ss:$16 sps:$4 sm:$0xff]  }
 0x715   :  { %13218 = vmatpush3.bf16.msra.mxu0 %v14345_v62  ;;  %v14381_v62 = vld [vmem:[%s20697_s5 + $0xf68] ss:$16 sps:$4 sm:$0xff]  }
 0x716   :  { %11575 = vmatpush1.bf16.msra.mxu1 %v14302_v33  ;;  %13219 = vmatprep.subr.bf16.mxu0 %v14349_v4  ;;  %v14386_v33 = vld [vmem:[%s20697_s5 + $0xf4c] ss:$16 sps:$4 sm:$0xff]   ;;  %v14384_v4 = vld [vmem:[%s20697_s5 + $0xf48] ss:$16 sps:$4 sm:$0xff]  }
 0x717   :  { %11576 = vmatprep.subr.bf16.mxu1 %v14307_v58  ;;  %v14389_v58 = vld [vmem:[%s20697_s5 + $0xf2c] ss:$16 sps:$4 sm:$0xff]  }
 0x719   :  { %13220 = vmatpush3.bf16.msra.mxu0 %v14350_v59  ;;  %v14387_v59 = vld [vmem:[%s20697_s5 + $0xf28] ss:$16 sps:$4 sm:$0xff]  }
 0x71a   :  { %11577 = vmatpush2.bf16.msra.mxu1 %v14305_v9  ;;  %v14392_v9 = vld [vmem:[%s20697_s5 + $0xf0c] ss:$16 sps:$4 sm:$0xff]  }
 0x71b   :  { %11578 = vmatprep.subr.bf16.mxu1 %v14310_v57  ;;  %v8341_v57 = vsub.s32 2, %v18549_v11 }
 0x71e   :  { %11579 = vmatpush2.bf16.msra.mxu1 %v14308_v0  ;;  %v8345_v0 = vsub.s32 3, %v18549_v11 }
 0x71f   :  { %11580 = vmatprep.subr.bf16.mxu1 %v14313_v43  ;;  %v14390_v43 = vld [vmem:[%s20697_s5 + $0xf08] ss:$16 sps:$4 sm:$0xff]  }
 0x722   :  { %11581 = vmatpush2.bf16.msra.mxu1 %v14311_v6  ;;  %v8342_v6 = vrot.slane %v19929_v16, %v8341_v57 }
 0x723   :  { %11582 = vmatprep.subr.bf16.mxu1 %v14318_v8  ;;  %v8346_v8 = vrot.slane %v19929_v16, %v8345_v0 }
 0x726   :  { %11583 = vmatpush2.bf16.msra.mxu1 %v14316_v47  ;;  %v11390_v47 = vadd.f32 %v20394_v5, %v8342_v6  ;;  %v14393_v5 = vld [vmem:[%s20699_s7 + $0xf8] sm:$0xff]  }
 0x727   :  { %11584 = vmatprep.subr.bf16.mxu1 %v14323_v25  ;;  %13227 = vmatprep.subr.bf16.mxu0 %v14393_v5 }
 0x72a   :  { %11585 = vmatpush2.bf16.msra.mxu1 %v14321_v48  ;;  %v11392_v48 = vadd.f32 %v20403_v45, %v8346_v8  ;;  %v14395_v45 = vld [vmem:[%s20699_s7 + $0xf0] sm:$0xff]  }
 0x72b   :  { %11586 = vmatprep.subr.bf16.mxu1 %v14328_v17 }
 0x72e   :  { %11587 = vmatpush2.bf16.msra.mxu1 %v14326_v41 }
 0x72f   :  { %11588 = vmatprep.subr.bf16.mxu1 %v14333_v27 }
 0x732   :  { %11589 = vmatpush2.bf16.msra.mxu1 %v14331_v20 }
 0x733   :  { %11590 = vmatprep.subr.bf16.mxu1 %v14338_v56 }
 0x736   :  { %11591 = vmatpush2.bf16.msra.mxu1 %v14336_v2 }
 0x737   :  { %11642 = vmatprep.subr.bf16.mxu1 %v14343_v18 }
 0x739   :  { %v11348_v53 = vpop.f32.mrf.mxu1  ;;  %11593 = vmatmul.mubr.bf16.vlgmr.msra.gmra.mxu1 %v19733_v30 }
 0x73a   :  { %v11349_v26 = vadd.f32 %v11348_v53, %v20398_v46  ;;  %11643 = vmatpush1.bf16.msra.mxu1 %v14341_v22  ;;  %11674 = vmatprep.mubr.bf16.mxu1 %v19743_v13  ;;  %v14351_v13 = vld [vmem:[%s20697_s5 + $0xea8] ss:$16 sps:$4 sm:$0xff]   ;;  %v14396_v53 = vld [vmem:[%s20699_s7 + $0xb0] sm:$0xff]  }
 0x73b   :  { %v11350_v61 = vpop.f32.mrf.mxu1  ;;  %11644 = vmatprep.subr.bf16.mxu1 %v14348_v44 }
 0x73c   :  { %v11351_v51 = vadd.f32 %v11350_v61, %v20412_v37  ;;  %v20544_v60 = vpop.f32.mrf.mxu0  ;;  %v11683_v30 = vmax.f32 %v11349_v26, 0.0  ;;  %v14397_v26 = vld [vmem:[%s20699_s7 + $0xe8] sm:$0xff]   ;;  %v14399_v61 = vld [vmem:[%s20699_s7 + $0xe0] sm:$0xff]  }
 0x73d   :  { %v11352_v10 = vpop.f32.mrf.mxu1 }
 0x73e   :  { %v11684_v46 = vmax.f32 %v11351_v51, 0.0  ;;  %v20546_v1 = vpop.f32.mrf.mxu0  ;;  %11645 = vmatpush1.bf16.msra.mxu1 %v14346_v34  ;;  %v11687_v52 = vpack.c.bf16 %v11683_v30, %v11683_v30  ;;  %v14398_v34 = vld [vmem:[%s20699_s7 + $0xa8] sm:$0xff]   ;;  %v14401_v51 = vld [vmem:[%s20699_s7 + $0xd8] sm:$0xff]   ;;  %v14403_v30 = vld [vmem:[%s20699_s7 + $0xd0] sm:$0xff]  }
 0x73f   :  { %v11353_v55 = vpop.f32.mrf.mxu1  ;;  %11646 = vmatprep.subr.bf16.mxu1 %v14353_v63  ;;  %v14400_v63 = vld [vmem:[%s20699_s7 + $0xa0] sm:$0xff]   ;;  %v14404_v10 = vld [vmem:[%s20699_s7 + $0x90] sm:$0xff]  }
 0x740   :  { %v11688_v12 = vpack.c.bf16 %v11684_v46, %v11684_v46  ;;  %v11475_v37 = vpop.f32.mrf.mxu0 }
 0x742   :  { %v11476_v54 = vpop.f32.mrf.mxu0  ;;  %11647 = vmatpush1.bf16.msra.mxu1 %v14351_v13  ;;  %11986 = vmatprep.mubr.bf16.mxu0 %v11688_v12 }
 0x743   :  { %11987 = vmatmul.mubr.bf16.vlgmr.msra.gmra.mxu0 %v11687_v52  ;;  %11648 = vmatprep.subr.bf16.mxu1 %v14356_v50 }
 0x746   :  { %11649 = vmatpush1.bf16.msra.mxu1 %v14354_v21 }
 0x747   :  { %11650 = vmatprep.subr.bf16.mxu1 %v14359_v31 }
 0x74a   :  { %11651 = vmatpush1.bf16.msra.mxu1 %v14357_v38  ;;  %v14405_v38 = vld [vmem:[%s20699_s7 + $0xc8] sm:$0xff]  }
 0x74b   :  { %11652 = vmatprep.subr.bf16.mxu1 %v14362_v15  ;;  %v14406_v15 = vld [vmem:[%s20699_s7 + $0x88] sm:$0xff]  }
 0x74e   :  { %11653 = vmatpush1.bf16.msra.mxu1 %v14360_v42  ;;  %v14407_v42 = vld [vmem:[%s20699_s7 + $0xc0] sm:$0xff]  }
 0x74f   :  { %11654 = vmatprep.subr.bf16.mxu1 %v14365_v23 }
 0x752   :  { %11655 = vmatpush1.bf16.msra.mxu1 %v14363_v29  ;;  %v14408_v29 = vld [vmem:[%s20699_s7 + $0x80] sm:$0xff]  }
 0x753   :  { %11656 = vmatprep.subr.bf16.mxu1 %v14368_v35 }
 0x756   :  { %11657 = vmatpush1.bf16.msra.mxu1 %v14366_v3 }
 0x757   :  { %11658 = vmatprep.subr.bf16.mxu1 %v14371_v28 }
 0x75a   :  { %11659 = vmatpush2.bf16.msra.mxu1 %v14369_v32 }
 0x75b   :  { %11660 = vmatprep.subr.bf16.mxu1 %v14374_v14 }
 0x75e   :  { %11661 = vmatpush2.bf16.msra.mxu1 %v14372_v36 }
 0x75f   :  { %11662 = vmatprep.subr.bf16.mxu1 %v14377_v19 }
 0x762   :  { %11663 = vmatpush2.bf16.msra.mxu1 %v14375_v39 }
 0x763   :  { %11664 = vmatprep.subr.bf16.mxu1 %v14380_v24 }
 0x766   :  { %11665 = vmatpush2.bf16.msra.mxu1 %v14378_v40 }
 0x767   :  { %11666 = vmatprep.subr.bf16.mxu1 %v14383_v7 }
 0x76a   :  { %11667 = vmatpush2.bf16.msra.mxu1 %v14381_v62 }
 0x76b   :  { %11668 = vmatprep.subr.bf16.mxu1 %v14386_v33 }
 0x76e   :  { %11669 = vmatpush2.bf16.msra.mxu1 %v14384_v4 }
 0x76f   :  { %11670 = vmatprep.subr.bf16.mxu1 %v14389_v58 }
 0x772   :  { %11671 = vmatpush2.bf16.msra.mxu1 %v14387_v59 }
 0x773   :  { %11672 = vmatprep.subr.bf16.mxu1 %v14392_v9 }
 0x776   :  { %11673 = vmatpush2.bf16.msra.mxu1 %v14390_v43 }
 0x779   :  { %v11430_v25 = vpop.f32.mrf.mxu1  ;;  %11675 = vmatmul.mubr.bf16.vlgmr.msra.gmra.mxu1 %v19954_v49  ;;  %v14394_v49 = vld [vmem:[%s20699_s7 + $0xb8] sm:$0xff]  }
 0x77a   :  { %v11431_v17 = vadd.f32 %v11430_v25, %v11390_v47  ;;  %13228 = vmatpush3.bf16.msra.mxu0 %v14394_v49  ;;  %v12908_v25 = vld [vmem:[%s20700_s8] ss:$0 sm:$0xff] }
 0x77b   :  { %v11432_v11 = vpop.f32.mrf.mxu1  ;;  %13229 = vmatprep.subr.bf16.mxu0 %v14395_v45 }
 0x77c   :  { %v11433_v41 = vadd.f32 %v11432_v11, %v11392_v48  ;;  %v11553_v27 = vpop.f32.mrf.mxu0  ;;  %v11472_v20 = vadd.f32 %v20544_v60, %v11431_v17  ;;  %v14402_v60 = vld [vmem:[%s20699_s7 + $0x98] sm:$0xff]  }
 0x77d   :  { %v11434_v56 = vpop.f32.mrf.mxu1 }
 0x77e   :  { %v11555_v2 = vpop.f32.mrf.mxu0  ;;  %v11474_v18 = vadd.f32 %v20546_v1, %v11433_v41  ;;  %13230 = vmatpush3.bf16.msra.mxu0 %v14396_v53 }
 0x77f   :  { %v11435_v22 = vpop.f32.mrf.mxu1  ;;  %13231 = vmatprep.subr.bf16.mxu0 %v14397_v26 }
 0x780   :  { %v11557_v16 = vpop.f32.mrf.mxu0 }
 0x782   :  { %v11558_v44 = vpop.f32.mrf.mxu0  ;;  %13232 = vmatpush3.bf16.msra.mxu0 %v14398_v34 }
 0x783   :  { %13233 = vmatprep.subr.bf16.mxu0 %v14399_v61 }
 0x786   :  { %13234 = vmatpush3.bf16.msra.mxu0 %v14400_v63 }
 0x787   :  { %13235 = vmatprep.subr.bf16.mxu0 %v14401_v51 }
 0x78a   :  { %13236 = vmatpush3.bf16.msra.mxu0 %v14402_v60 }
 0x78b   :  { %13237 = vmatprep.subr.bf16.mxu0 %v14403_v30 }
 0x78e   :  { %13238 = vmatpush3.bf16.msra.mxu0 %v14404_v10 }
 0x78f   :  { %13239 = vmatprep.subr.bf16.mxu0 %v14405_v38 }
 0x792   :  { %13240 = vmatpush3.bf16.msra.mxu0 %v14406_v15 }
 0x793   :  { %13241 = vmatprep.subr.bf16.mxu0 %v14407_v42 }
 0x796   :  { %13242 = vmatpush3.bf16.msra.mxu0 %v14408_v29 }
 0x7b9   :  { %v11512_v46 = vpop.f32.mrf.mxu1 }
 0x7ba   :  { %v11513_v1 = vadd.f32 %v11512_v46, %v11472_v20 }
 0x7bb   :  { %v11514_v13 = vpop.f32.mrf.mxu1 }
 0x7bc   :  { %v11515_v55 = vadd.f32 %v11514_v13, %v11474_v18  ;;  %v11635_v50 = vpop.f32.mrf.mxu0  ;;  %v11554_v12 = vadd.f32 %v11553_v27, %v11513_v1 }
 0x7bd   :  { %v11516_v37 = vpop.f32.mrf.mxu1 }
 0x7be   :  { %v11637_v52 = vpop.f32.mrf.mxu0  ;;  %v11556_v54 = vadd.f32 %v11555_v2, %v11515_v55 }
 0x7bf   :  { %v11517_v21 = vpop.f32.mrf.mxu1 }
 0x7c0   :  { %v11639_v31 = vpop.f32.mrf.mxu0 }
 0x7c2   :  { %v11640_v23 = vpop.f32.mrf.mxu0 }
 0x7f9   :  { %v11594_v35 = vpop.f32.mrf.mxu1 }
 0x7fa   :  { %v11595_v3 = vadd.f32 %v11594_v35, %v11554_v12 }
 0x7fb   :  { %v11596_v28 = vpop.f32.mrf.mxu1 }
 0x7fc   :  { %v11597_v32 = vadd.f32 %v11596_v28, %v11556_v54  ;;  %v11636_v14 = vadd.f32 %v11635_v50, %v11595_v3 }
 0x7fd   :  { %v11598_v36 = vpop.f32.mrf.mxu1 }
 0x7fe   :  { %v11638_v19 = vadd.f32 %v11637_v52, %v11597_v32 }
 0x7ff   :  { %v11599_v39 = vpop.f32.mrf.mxu1 }
 0x803   :  { %v13221_v24 = vpop.f32.mrf.mxu0 }
 0x805   :  { %v13222_v40 = vpop.f32.mrf.mxu0 }
 0x806   :  { %v13223_v7 = vadd.f32 %v13222_v40, %v13221_v24 }
 0x807   :  { %v13224_v62 = vpop.f32.mrf.mxu0 }
 0x808   :  { %v11989_v11 = vadd.f32 %v13223_v7, %v12908_v25 }
 0x809   :  { %v13225_v33 = vpop.f32.mrf.mxu0 }
 0x839   :  { %v11676_v4 = vpop.f32.mrf.mxu1 }
 0x83a   :  { %v11677_v58 = vadd.f32 %v11676_v4, %v11636_v14 }
 0x83b   :  { %v11678_v59 = vpop.f32.mrf.mxu1 }
 0x83c   :  { %v11679_v9 = vadd.f32 %v11678_v59, %v11638_v19  ;;  %v11685_v57 = vmax.f32 %v11677_v58, 0.0 }
 0x83d   :  { %v11680_v0 = vpop.f32.mrf.mxu1 }
 0x83e   :  { %v11686_v43 = vmax.f32 %v11679_v9, 0.0  ;;  %v11689_v47 = vpack.c.bf16 %v11685_v57, %v11685_v57 }
 0x83f   :  { %v11681_v6 = vpop.f32.mrf.mxu1 }
 0x840   :  { %v11690_v8 = vpack.c.bf16 %v11686_v43, %v11686_v43 }
 0x842   :  { %12026 = vmatprep.mubr.bf16.mxu0 %v11690_v8 }
 0x843   :  { %12027 = vmatmul.mubr.bf16.vlgmr.msra.gmra.mxu0 %v11689_v47 }
 0x903   :  { %v13243_v48 = vpop.f32.mrf.mxu0 }
 0x905   :  { %v13244_v17 = vpop.f32.mrf.mxu0 }
 0x906   :  { %v13245_v41 = vadd.f32 %v13244_v17, %v13243_v48 }
 0x907   :  { %v13246_v27 = vpop.f32.mrf.mxu0 }
 0x908   :  { %v12029_v20 = vadd.f32 %v13245_v41, %v11989_v11 }
 0x909   :  { %v13247_v56 = vpop.f32.mrf.mxu0 }
 0x90a   :  { %12035 = vst.msk [vmem:[#allocation4] sm:$0x3] %vm12034_vm13, %v12029_v20 }
 0x90b   :  { %14425 = shalt.err (!%p14422_p4)
}
 0x90c   :  { %12045 = dma.vmem_to_hbm [thread:$0]  %s12043_s20, 32, %s20701_s9, [#allocation5]  }
 0x90d   :  { %14434 = dma.done.wait [#allocation5], 32  }
 0x90e   :  { %14435 = vsyncadd [#allocation5], 4294967264 }
 0x90f   :  { %12049 = vsyncpa [#allocation5], 1 }

</bundles_post_ra>
